<compile_context>
chip_gen: v6e
topology: v6e:2x2x1
jax: 0.10.0
libtpu: 0.0.40
codegen_flags: <defaults>
</compile_context>

<pallas_src>
import numpy as np

import jax
import jax.numpy as jnp
from jax.experimental import pallas as pl
from jax.experimental.pallas import tpu as pltpu


# ----------------------------------------------------------------------------
# Parameter prep (host side, one-time): Toeplitz conv weights + BN folding.
# ----------------------------------------------------------------------------
def _toeplitz_stack(w, wp):
    """w: (Cout, Cin, KH, KW) torch layout.  Returns (KH, wp*Cin, Wo*Cout) with
    T[kh][wi*Cin+ci, ow*Cout+co] = w[co, ci, kh, wi-ow] (zero outside the window)."""
    cout, cin, kh_, kw_ = w.shape
    wo = wp - kw_ + 1
    t = np.zeros((kh_, wp * cin, wo * cout), np.float32)
    for kh in range(kh_):
        for ow in range(wo):
            for kw in range(kw_):
                wi = ow + kw
                t[kh, wi * cin:(wi + 1) * cin, ow * cout:(ow + 1) * cout] = w[:, :, kh, kw].T
    return t


def _bias_row(b, wo):
    return np.tile(np.asarray(b, np.float32), wo).reshape(1, -1)


def _fold_bn_into_next_conv(w, b, bn, eps=1e-5):
    """Eval-mode BN (applied to this conv's *input*) folded into conv weights/bias."""
    gamma, beta, mean, var = (np.asarray(t, np.float32) for t in bn)
    scale = gamma / np.sqrt(var + eps)
    shift = beta - mean * scale
    wf = w * scale[None, :, None, None]
    bf = b + (w * shift[None, :, None, None]).sum(axis=(1, 2, 3))
    return wf, bf


def prepare_params(params):
    """Raw torch-layout params -> Toeplitz weight stacks + tiled bias rows (jnp)."""
    cw = lambda t: (np.asarray(t[0], np.float32), np.asarray(t[1], np.float32))
    w1, b1 = cw(params["conv1"])
    wb11, bb11 = cw(params["b1c1"])
    wb12, bb12 = cw(params["b1c2"])
    w2, b2 = cw(params["conv2"])
    w2, b2 = _fold_bn_into_next_conv(w2, b2, params["bn1"])      # bn1 -> conv2 (valid conv)
    wb21, bb21 = cw(params["b2c1"])
    wb22, bb22 = cw(params["b2c2"])
    w3, b3 = cw(params["conv3"])
    w3, b3 = _fold_bn_into_next_conv(w3, b3, params["bn2"])      # bn2 -> conv3 (valid conv)
    wfc, bfc = cw(params["fc"])
    wfc_c = wfc.reshape(10, 16, 3, 3)                            # torch NCHW flatten order

    prep = {
        "conv1": (_toeplitz_stack(w1, 32), _bias_row(b1, 28)),   # (5,32,448), (1,448)
        "b1c1": (_toeplitz_stack(wb11, 16), _bias_row(bb11, 14)),
        "b1c2": (_toeplitz_stack(wb12, 16), _bias_row(bb12, 14)),
        "conv2": (_toeplitz_stack(w2, 14), _bias_row(b2, 10)),   # (5,224,320), (1,320)
        "b2c1": (_toeplitz_stack(wb21, 7), _bias_row(bb21, 5)),
        "b2c2": (_toeplitz_stack(wb22, 7), _bias_row(bb22, 5)),
        "conv3": (_toeplitz_stack(w3, 5), _bias_row(b3, 3)),     # (3,160,48), (1,48)
        "fc": (_toeplitz_stack(wfc_c, 3), bfc.reshape(1, 10)),   # fc as a 3x3 valid "conv"
    }
    return jax.tree_util.tree_map(jnp.asarray, prep)


# ----------------------------------------------------------------------------
# The single fused kernel.
# ----------------------------------------------------------------------------
def _make_kernel(TB):
    def kernel(x_ref,
               t1, c1b, tb11, bb11, tb12, bb12,
               t2, c2b, tb21, bb21, tb22, bb22,
               t3, c3b, tfc, bfc,
               o_ref,
               a1, p1, hp1, a2, p2, hp2):
        f32 = jnp.float32

        def conv(read, t_ref, b_ref, kh_taps, relu=True):
            # sum over kh of (Ho*TB, Wp*Cin) @ (Wp*Cin, Wo*Cout) row-Toeplitz matmuls
            acc = jnp.dot(read(0), t_ref[0], preferred_element_type=f32)
            for kh in range(1, kh_taps):
                acc = acc + jnp.dot(read(kh), t_ref[kh], preferred_element_type=f32)
            acc = acc + b_ref[...]
            if relu:
                acc = jnp.maximum(acc, 0.0)
            return acc

        def pool2x2(y, ho, wo, c, hp_ref, dst_ref):
            # y: (ho*TB, wo*c); rows=(oh,b), cols=(ow,ch).  2x2 max pool, all in VMEM.
            for m in range(ho // 2):
                r0 = y[(2 * m) * TB:(2 * m + 1) * TB, :]
                r1 = y[(2 * m + 1) * TB:(2 * m + 2) * TB, :]
                hp_ref[m * TB:(m + 1) * TB, :] = jnp.maximum(r0, r1)
            hp = hp_ref[...]
            for j in range(wo // 2):
                c0 = hp[:, (2 * j) * c:(2 * j + 1) * c]
                c1 = hp[:, (2 * j + 1) * c:(2 * j + 2) * c]
                dst_ref[:, j * c:(j + 1) * c] = jnp.maximum(c0, c1)

        # ---- relu(conv1): 32x32x1 -> 28x28x16, then maxpool -> 14x14x16 (into a1)
        x0 = x_ref[0]                                                  # (32*TB, 32)
        y = conv(lambda kh: x0[kh * TB:(kh + 28) * TB, :], t1, c1b, 5)  # (28*TB, 448)
        pool2x2(y, 28, 28, 16, hp1, a1)                                 # a1: (14*TB, 224)

        # ---- residual block 1 (16 ch, 14x14, 3x3 pad=1)
        xin = a1[...]
        p1[...] = jnp.zeros(p1.shape, f32)
        p1[TB:15 * TB, 16:240] = xin                                    # zero-padded copy
        yb = conv(lambda kh: p1[kh * TB:(kh + 14) * TB, :], tb11, bb11, 3)
        p1[TB:15 * TB, 16:240] = yb
        yb = conv(lambda kh: p1[kh * TB:(kh + 14) * TB, :], tb12, bb12, 3)
        x1 = jnp.maximum(xin + yb, 0.0)                                 # relu(x + y); bn1 folded into conv2

        # ---- relu(conv2): 14x14x16 -> 10x10x32, then maxpool -> 5x5x32 (into a2)
        y = conv(lambda kh: x1[kh * TB:(kh + 10) * TB, :], t2, c2b, 5)  # (10*TB, 320)
        pool2x2(y, 10, 10, 32, hp2, a2)                                 # a2: (5*TB, 160)

        # ---- residual block 2 (32 ch, 5x5, 3x3 pad=1)
        xin = a2[...]
        p2[...] = jnp.zeros(p2.shape, f32)
        p2[TB:6 * TB, 32:192] = xin
        yb = conv(lambda kh: p2[kh * TB:(kh + 5) * TB, :], tb21, bb21, 3)
        p2[TB:6 * TB, 32:192] = yb
        yb = conv(lambda kh: p2[kh * TB:(kh + 5) * TB, :], tb22, bb22, 3)
        x2 = jnp.maximum(xin + yb, 0.0)                                 # bn2 folded into conv3

        # ---- relu(conv3): 5x5x32 -> 3x3x16
        y3 = conv(lambda kh: x2[kh * TB:(kh + 3) * TB, :], t3, c3b, 3)  # (3*TB, 48)

        # ---- fc (torch NCHW-flatten order baked into tfc): -> (TB, 10)
        out = conv(lambda kh: y3[kh * TB:(kh + 1) * TB, :], tfc, bfc, 3, relu=False)
        o_ref[0] = out

    return kernel


# ----------------------------------------------------------------------------
# Public forward: one pallas_call over batch tiles.
# ----------------------------------------------------------------------------
def res_model_forward(prep, x_nchw):
    n = x_nchw.shape[0]
    assert x_nchw.shape[1] == 1 and x_nchw.shape[2] == 32 and x_nchw.shape[3] == 32

    TB = min(8, max(1, n // 2))           # batch tile (>=2 grid steps when n>=2)
    g = (n + TB - 1) // TB
    n_pad = g * TB

    x = x_nchw[:, 0, :, :].astype(jnp.float32)                      # (n, 32, 32)
    if n_pad != n:
        x = jnp.concatenate([x, jnp.zeros((n_pad - n, 32, 32), jnp.float32)], axis=0)
    # canonical row layout per tile: row = h*TB + b, col = w   (one-time HBM layout glue)
    x = x.reshape(g, TB, 32, 32).transpose(0, 2, 1, 3).reshape(g, 32 * TB, 32)

    t1, c1b = prep["conv1"]
    tb11, bb11 = prep["b1c1"]
    tb12, bb12 = prep["b1c2"]
    t2, c2b = prep["conv2"]
    tb21, bb21 = prep["b2c1"]
    tb22, bb22 = prep["b2c2"]
    t3, c3b = prep["conv3"]
    tfc, bfc = prep["fc"]
    weights = [t1, c1b, tb11, bb11, tb12, bb12, t2, c2b,
               tb21, bb21, tb22, bb22, t3, c3b, tfc, bfc]

    def full_spec(a):
        nd = a.ndim
        return pl.BlockSpec(a.shape, lambda gi, nd=nd: (0,) * nd)   # fetched once

    out = pl.pallas_call(
        _make_kernel(TB),
        out_shape=jax.ShapeDtypeStruct((g, TB, 10), jnp.float32),
        grid=(g,),
        in_specs=[pl.BlockSpec((1, 32 * TB, 32), lambda gi: (gi, 0, 0))]
                 + [full_spec(a) for a in weights],
        out_specs=pl.BlockSpec((1, TB, 10), lambda gi: (gi, 0, 0)),
        scratch_shapes=[
            pltpu.VMEM((14 * TB, 14 * 16), jnp.float32),   # a1: pooled stage-1 / block-1 activation
            pltpu.VMEM((16 * TB, 16 * 16), jnp.float32),   # p1: zero-padded 16x16x16
            pltpu.VMEM((14 * TB, 28 * 16), jnp.float32),   # hp1: H-pooled conv1 output
            pltpu.VMEM((5 * TB, 5 * 32), jnp.float32),     # a2
            pltpu.VMEM((7 * TB, 7 * 32), jnp.float32),     # p2: zero-padded 7x7x32
            pltpu.VMEM((5 * TB, 10 * 32), jnp.float32),    # hp2
        ],
        compiler_params=pltpu.CompilerParams(
            dimension_semantics=("parallel",),
            vmem_limit_bytes=48 * 1024 * 1024,
        ),
    )(x, *weights)

    return out.reshape(n_pad, 10)[:n]


# ----------------------------------------------------------------------------
# Deterministic parameter init (torch layouts, PyTorch-like defaults)
# ----------------------------------------------------------------------------
def _conv_init(key, cout, cin, kh, kw):
    k1, k2 = jax.random.split(key)
    bound = 1.0 / np.sqrt(cin * kh * kw)
    w = jax.random.uniform(k1, (cout, cin, kh, kw), jnp.float32, -bound, bound)
    b = jax.random.uniform(k2, (cout,), jnp.float32, -bound, bound)
    return w, b


def init_params(key):
    ks = jax.random.split(key, 8)
    p = {
        "conv1": _conv_init(ks[0], 16, 1, 5, 5),
        "b1c1": _conv_init(ks[1], 16, 16, 3, 3),
        "b1c2": _conv_init(ks[2], 16, 16, 3, 3),
        "conv2": _conv_init(ks[3], 32, 16, 5, 5),
        "b2c1": _conv_init(ks[4], 32, 32, 3, 3),
        "b2c2": _conv_init(ks[5], 32, 32, 3, 3),
        "conv3": _conv_init(ks[6], 16, 32, 3, 3),
    }
    kw_, kb_ = jax.random.split(ks[7])
    bound = 1.0 / np.sqrt(144.0)
    p["fc"] = (jax.random.uniform(kw_, (10, 144), jnp.float32, -bound, bound),
               jax.random.uniform(kb_, (10,), jnp.float32, -bound, bound))
    # BatchNorm2d defaults: gamma=1, beta=0, running_mean=0, running_var=1 (eval mode)
    p["bn1"] = (jnp.ones(16, jnp.float32), jnp.zeros(16, jnp.float32),
                jnp.zeros(16, jnp.float32), jnp.ones(16, jnp.float32))
    p["bn2"] = (jnp.ones(32, jnp.float32), jnp.zeros(32, jnp.float32),
                jnp.zeros(32, jnp.float32), jnp.ones(32, jnp.float32))
    return p


# ----------------------------------------------------------------------------
# Pure-JAX reference (for a numerical sanity check of the fused kernel)
# ----------------------------------------------------------------------------
def reference_forward(params, x):
    prec = jax.lax.Precision.HIGHEST

    def conv(h, wb, pad):
        w, b = wb
        y = jax.lax.conv_general_dilated(
            h, w, window_strides=(1, 1), padding=[(pad, pad), (pad, pad)],
            dimension_numbers=("NCHW", "OIHW", "NCHW"), precision=prec)
        return y + b.reshape(1, -1, 1, 1)

    def bn(h, p, eps=1e-5):
        gamma, beta, mean, var = p
        s = gamma / jnp.sqrt(var + eps)
        t = beta - mean * s
        return h * s.reshape(1, -1, 1, 1) + t.reshape(1, -1, 1, 1)

    def mp(h):
        return jax.lax.reduce_window(h, -jnp.inf, jax.lax.max,
                                     (1, 1, 2, 2), (1, 1, 2, 2), "VALID")

    relu = lambda t: jnp.maximum(t, 0.0)

    def block(h, c1, c2):
        y = relu(conv(h, c1, 1))
        y = relu(conv(y, c2, 1))
        return relu(h + y)

    n = x.shape[0]
    h = relu(conv(x, params["conv1"], 0))
    h = mp(h)
    h = block(h, params["b1c1"], params["b1c2"])
    h = bn(h, params["bn1"])
    h = relu(conv(h, params["conv2"], 0))
    h = mp(h)
    h = block(h, params["b2c1"], params["b2c2"])
    h = bn(h, params["bn2"])
    h = relu(conv(h, params["conv3"], 0))
    h = h.reshape(n, -1)
    wf, bf = params["fc"]
    return jnp.dot(h, wf.T, precision=prec) + bf


if __name__ == "__main__":
    key = jax.random.PRNGKey(0)
    kp, kx = jax.random.split(key)
    params = init_params(kp)
    prep = prepare_params(params)

    # batch=2, in_ch=1, 32x32 spatial (so fc sees 16*3*3 = 144 features).
    x = jax.random.normal(kx, (2, 1, 32, 32), jnp.float32)

    out = jax.block_until_ready(jax.jit(res_model_forward)(prep, x))
    assert out.shape == (2, 10)

    ref = jax.block_until_ready(jax.jit(reference_forward)(params, x))
    assert bool(jnp.allclose(out, ref, atol=3e-2, rtol=3e-2)), "kernel/reference mismatch"

    print("KERNEL_OK")
</pallas_src>

<mosaic_0001>
module attributes {stable_mosaic.version = 11 : i64} {
  func.func @kernel(%arg0: i32, %arg1: memref<1x32x32xf32, #tpu.memory_space<vmem>>, %arg2: memref<5x32x448xf32, #tpu.memory_space<vmem>>, %arg3: memref<1x448xf32, #tpu.memory_space<vmem>>, %arg4: memref<3x256x224xf32, #tpu.memory_space<vmem>>, %arg5: memref<1x224xf32, #tpu.memory_space<vmem>>, %arg6: memref<3x256x224xf32, #tpu.memory_space<vmem>>, %arg7: memref<1x224xf32, #tpu.memory_space<vmem>>, %arg8: memref<5x224x320xf32, #tpu.memory_space<vmem>>, %arg9: memref<1x320xf32, #tpu.memory_space<vmem>>, %arg10: memref<3x224x160xf32, #tpu.memory_space<vmem>>, %arg11: memref<1x160xf32, #tpu.memory_space<vmem>>, %arg12: memref<3x224x160xf32, #tpu.memory_space<vmem>>, %arg13: memref<1x160xf32, #tpu.memory_space<vmem>>, %arg14: memref<3x160x48xf32, #tpu.memory_space<vmem>>, %arg15: memref<1x48xf32, #tpu.memory_space<vmem>>, %arg16: memref<3x48x10xf32, #tpu.memory_space<vmem>>, %arg17: memref<1x10xf32, #tpu.memory_space<vmem>>, %arg18: memref<1x1x10xf32, #tpu.memory_space<vmem>>, %arg19: memref<14x224xf32, #tpu.memory_space<vmem>>, %arg20: memref<16x256xf32, #tpu.memory_space<vmem>>, %arg21: memref<14x448xf32, #tpu.memory_space<vmem>>, %arg22: memref<5x160xf32, #tpu.memory_space<vmem>>, %arg23: memref<7x224xf32, #tpu.memory_space<vmem>>, %arg24: memref<5x320xf32, #tpu.memory_space<vmem>>) attributes {dimension_semantics = [#tpu.dimension_semantics<parallel>], iteration_bounds = array<i64: 2>, scalar_prefetch = 0 : i64, scratch_operands = 6 : i64, tpu.core_type = #tpu.core_type<tc>, window_params = [{transform_indices = @transform_0, window_bounds = array<i64: 1, 32, 32>}, {pipeline_mode = #tpu.pipeline_mode<synchronous>, transform_indices = @transform_1, window_bounds = array<i64: 5, 32, 448>}, {pipeline_mode = #tpu.pipeline_mode<synchronous>, transform_indices = @transform_2, window_bounds = array<i64: 1, 448>}, {pipeline_mode = #tpu.pipeline_mode<synchronous>, transform_indices = @transform_3, window_bounds = array<i64: 3, 256, 224>}, {pipeline_mode = #tpu.pipeline_mode<synchronous>, transform_indices = @transform_4, window_bounds = array<i64: 1, 224>}, {pipeline_mode = #tpu.pipeline_mode<synchronous>, transform_indices = @transform_5, window_bounds = array<i64: 3, 256, 224>}, {pipeline_mode = #tpu.pipeline_mode<synchronous>, transform_indices = @transform_6, window_bounds = array<i64: 1, 224>}, {pipeline_mode = #tpu.pipeline_mode<synchronous>, transform_indices = @transform_7, window_bounds = array<i64: 5, 224, 320>}, {pipeline_mode = #tpu.pipeline_mode<synchronous>, transform_indices = @transform_8, window_bounds = array<i64: 1, 320>}, {pipeline_mode = #tpu.pipeline_mode<synchronous>, transform_indices = @transform_9, window_bounds = array<i64: 3, 224, 160>}, {pipeline_mode = #tpu.pipeline_mode<synchronous>, transform_indices = @transform_10, window_bounds = array<i64: 1, 160>}, {pipeline_mode = #tpu.pipeline_mode<synchronous>, transform_indices = @transform_11, window_bounds = array<i64: 3, 224, 160>}, {pipeline_mode = #tpu.pipeline_mode<synchronous>, transform_indices = @transform_12, window_bounds = array<i64: 1, 160>}, {pipeline_mode = #tpu.pipeline_mode<synchronous>, transform_indices = @transform_13, window_bounds = array<i64: 3, 160, 48>}, {pipeline_mode = #tpu.pipeline_mode<synchronous>, transform_indices = @transform_14, window_bounds = array<i64: 1, 48>}, {pipeline_mode = #tpu.pipeline_mode<synchronous>, transform_indices = @transform_15, window_bounds = array<i64: 3, 48, 10>}, {pipeline_mode = #tpu.pipeline_mode<synchronous>, transform_indices = @transform_16, window_bounds = array<i64: 1, 10>}, {transform_indices = @transform_17, window_bounds = array<i64: 1, 1, 10>}]} {
    %c0 = arith.constant 0 : index
    %c0_0 = arith.constant 0 : index
    %c0_1 = arith.constant 0 : index
    %0 = vector.load %arg1[%c0, %c0_0, %c0_1] : memref<1x32x32xf32, #tpu.memory_space<vmem>>, vector<1x32x32xf32>
    %1 = vector.shape_cast %0 : vector<1x32x32xf32> to vector<32x32xf32>
    %2 = vector.extract_strided_slice %1 {offsets = [0, 0], sizes = [28, 32], strides = [1, 1]} : vector<32x32xf32> to vector<28x32xf32>
    %c0_2 = arith.constant 0 : index
    %c0_3 = arith.constant 0 : index
    %c0_4 = arith.constant 0 : index
    %3 = vector.load %arg2[%c0_2, %c0_3, %c0_4] : memref<5x32x448xf32, #tpu.memory_space<vmem>>, vector<1x32x448xf32>
    %4 = vector.shape_cast %3 : vector<1x32x448xf32> to vector<32x448xf32>
    %cst = arith.constant dense<0.000000e+00> : vector<28x448xf32>
    %5 = tpu.matmul %2, %4, %cst {dimension_numbers = #tpu.dot_dimension_numbers<[1], [0], [0], [1], [0, 0, 1, 1], [], []>} : vector<28x32xf32>, vector<32x448xf32>, vector<28x448xf32> -> vector<28x448xf32>
    %6 = vector.extract_strided_slice %1 {offsets = [1, 0], sizes = [28, 32], strides = [1, 1]} : vector<32x32xf32> to vector<28x32xf32>
    %c1 = arith.constant 1 : index
    %c0_5 = arith.constant 0 : index
    %c0_6 = arith.constant 0 : index
    %7 = vector.load %arg2[%c1, %c0_5, %c0_6] : memref<5x32x448xf32, #tpu.memory_space<vmem>>, vector<1x32x448xf32>
    %8 = vector.shape_cast %7 : vector<1x32x448xf32> to vector<32x448xf32>
    %cst_7 = arith.constant dense<0.000000e+00> : vector<28x448xf32>
    %9 = tpu.matmul %6, %8, %cst_7 {dimension_numbers = #tpu.dot_dimension_numbers<[1], [0], [0], [1], [0, 0, 1, 1], [], []>} : vector<28x32xf32>, vector<32x448xf32>, vector<28x448xf32> -> vector<28x448xf32>
    %10 = arith.addf %5, %9 : vector<28x448xf32>
    %11 = vector.extract_strided_slice %1 {offsets = [2, 0], sizes = [28, 32], strides = [1, 1]} : vector<32x32xf32> to vector<28x32xf32>
    %c2 = arith.constant 2 : index
    %c0_8 = arith.constant 0 : index
    %c0_9 = arith.constant 0 : index
    %12 = vector.load %arg2[%c2, %c0_8, %c0_9] : memref<5x32x448xf32, #tpu.memory_space<vmem>>, vector<1x32x448xf32>
    %13 = vector.shape_cast %12 : vector<1x32x448xf32> to vector<32x448xf32>
    %cst_10 = arith.constant dense<0.000000e+00> : vector<28x448xf32>
    %14 = tpu.matmul %11, %13, %cst_10 {dimension_numbers = #tpu.dot_dimension_numbers<[1], [0], [0], [1], [0, 0, 1, 1], [], []>} : vector<28x32xf32>, vector<32x448xf32>, vector<28x448xf32> -> vector<28x448xf32>
    %15 = arith.addf %10, %14 : vector<28x448xf32>
    %16 = vector.extract_strided_slice %1 {offsets = [3, 0], sizes = [28, 32], strides = [1, 1]} : vector<32x32xf32> to vector<28x32xf32>
    %c3 = arith.constant 3 : index
    %c0_11 = arith.constant 0 : index
    %c0_12 = arith.constant 0 : index
    %17 = vector.load %arg2[%c3, %c0_11, %c0_12] : memref<5x32x448xf32, #tpu.memory_space<vmem>>, vector<1x32x448xf32>
    %18 = vector.shape_cast %17 : vector<1x32x448xf32> to vector<32x448xf32>
    %cst_13 = arith.constant dense<0.000000e+00> : vector<28x448xf32>
    %19 = tpu.matmul %16, %18, %cst_13 {dimension_numbers = #tpu.dot_dimension_numbers<[1], [0], [0], [1], [0, 0, 1, 1], [], []>} : vector<28x32xf32>, vector<32x448xf32>, vector<28x448xf32> -> vector<28x448xf32>
    %20 = arith.addf %15, %19 : vector<28x448xf32>
    %21 = vector.extract_strided_slice %1 {offsets = [4, 0], sizes = [28, 32], strides = [1, 1]} : vector<32x32xf32> to vector<28x32xf32>
    %c4 = arith.constant 4 : index
    %c0_14 = arith.constant 0 : index
    %c0_15 = arith.constant 0 : index
    %22 = vector.load %arg2[%c4, %c0_14, %c0_15] : memref<5x32x448xf32, #tpu.memory_space<vmem>>, vector<1x32x448xf32>
    %23 = vector.shape_cast %22 : vector<1x32x448xf32> to vector<32x448xf32>
    %cst_16 = arith.constant dense<0.000000e+00> : vector<28x448xf32>
    %24 = tpu.matmul %21, %23, %cst_16 {dimension_numbers = #tpu.dot_dimension_numbers<[1], [0], [0], [1], [0, 0, 1, 1], [], []>} : vector<28x32xf32>, vector<32x448xf32>, vector<28x448xf32> -> vector<28x448xf32>
    %25 = arith.addf %20, %24 : vector<28x448xf32>
    %c0_17 = arith.constant 0 : index
    %c0_18 = arith.constant 0 : index
    %26 = vector.load %arg3[%c0_17, %c0_18] : memref<1x448xf32, #tpu.memory_space<vmem>>, vector<1x448xf32>
    %27 = vector.broadcast %26 : vector<1x448xf32> to vector<28x448xf32>
    %28 = arith.addf %25, %27 : vector<28x448xf32>
    %cst_19 = arith.constant 0.000000e+00 : f32
    %29 = vector.broadcast %cst_19 : f32 to vector<28x448xf32>
    %30 = arith.maximumf %28, %29 : vector<28x448xf32>
    %31 = vector.extract_strided_slice %30 {offsets = [0, 0], sizes = [1, 448], strides = [1, 1]} : vector<28x448xf32> to vector<1x448xf32>
    %32 = vector.extract_strided_slice %30 {offsets = [1, 0], sizes = [1, 448], strides = [1, 1]} : vector<28x448xf32> to vector<1x448xf32>
    %33 = arith.maximumf %31, %32 : vector<1x448xf32>
    %c0_20 = arith.constant 0 : index
    %c0_21 = arith.constant 0 : index
    %34 = vector.load %arg21[%c0_20, %c0_21] : memref<14x448xf32, #tpu.memory_space<vmem>>, vector<1x448xf32>
    tpu.vector_store %arg21[%c0_20, %c0_21], %33 {strides = array<i32>} : memref<14x448xf32, #tpu.memory_space<vmem>>, vector<1x448xf32>,
    %35 = vector.extract_strided_slice %30 {offsets = [2, 0], sizes = [1, 448], strides = [1, 1]} : vector<28x448xf32> to vector<1x448xf32>
    %36 = vector.extract_strided_slice %30 {offsets = [3, 0], sizes = [1, 448], strides = [1, 1]} : vector<28x448xf32> to vector<1x448xf32>
    %37 = arith.maximumf %35, %36 : vector<1x448xf32>
    %c1_22 = arith.constant 1 : index
    %c0_23 = arith.constant 0 : index
    %38 = vector.load %arg21[%c1_22, %c0_23] : memref<14x448xf32, #tpu.memory_space<vmem>>, vector<1x448xf32>
    tpu.vector_store %arg21[%c1_22, %c0_23], %37 {strides = array<i32>} : memref<14x448xf32, #tpu.memory_space<vmem>>, vector<1x448xf32>,
    %39 = vector.extract_strided_slice %30 {offsets = [4, 0], sizes = [1, 448], strides = [1, 1]} : vector<28x448xf32> to vector<1x448xf32>
    %40 = vector.extract_strided_slice %30 {offsets = [5, 0], sizes = [1, 448], strides = [1, 1]} : vector<28x448xf32> to vector<1x448xf32>
    %41 = arith.maximumf %39, %40 : vector<1x448xf32>
    %c2_24 = arith.constant 2 : index
    %c0_25 = arith.constant 0 : index
    %42 = vector.load %arg21[%c2_24, %c0_25] : memref<14x448xf32, #tpu.memory_space<vmem>>, vector<1x448xf32>
    tpu.vector_store %arg21[%c2_24, %c0_25], %41 {strides = array<i32>} : memref<14x448xf32, #tpu.memory_space<vmem>>, vector<1x448xf32>,
    %43 = vector.extract_strided_slice %30 {offsets = [6, 0], sizes = [1, 448], strides = [1, 1]} : vector<28x448xf32> to vector<1x448xf32>
    %44 = vector.extract_strided_slice %30 {offsets = [7, 0], sizes = [1, 448], strides = [1, 1]} : vector<28x448xf32> to vector<1x448xf32>
    %45 = arith.maximumf %43, %44 : vector<1x448xf32>
    %c3_26 = arith.constant 3 : index
    %c0_27 = arith.constant 0 : index
    %46 = vector.load %arg21[%c3_26, %c0_27] : memref<14x448xf32, #tpu.memory_space<vmem>>, vector<1x448xf32>
    tpu.vector_store %arg21[%c3_26, %c0_27], %45 {strides = array<i32>} : memref<14x448xf32, #tpu.memory_space<vmem>>, vector<1x448xf32>,
    %47 = vector.extract_strided_slice %30 {offsets = [8, 0], sizes = [1, 448], strides = [1, 1]} : vector<28x448xf32> to vector<1x448xf32>
    %48 = vector.extract_strided_slice %30 {offsets = [9, 0], sizes = [1, 448], strides = [1, 1]} : vector<28x448xf32> to vector<1x448xf32>
    %49 = arith.maximumf %47, %48 : vector<1x448xf32>
    %c4_28 = arith.constant 4 : index
    %c0_29 = arith.constant 0 : index
    %50 = vector.load %arg21[%c4_28, %c0_29] : memref<14x448xf32, #tpu.memory_space<vmem>>, vector<1x448xf32>
    tpu.vector_store %arg21[%c4_28, %c0_29], %49 {strides = array<i32>} : memref<14x448xf32, #tpu.memory_space<vmem>>, vector<1x448xf32>,
    %51 = vector.extract_strided_slice %30 {offsets = [10, 0], sizes = [1, 448], strides = [1, 1]} : vector<28x448xf32> to vector<1x448xf32>
    %52 = vector.extract_strided_slice %30 {offsets = [11, 0], sizes = [1, 448], strides = [1, 1]} : vector<28x448xf32> to vector<1x448xf32>
    %53 = arith.maximumf %51, %52 : vector<1x448xf32>
    %c5 = arith.constant 5 : index
    %c0_30 = arith.constant 0 : index
    %54 = vector.load %arg21[%c5, %c0_30] : memref<14x448xf32, #tpu.memory_space<vmem>>, vector<1x448xf32>
    tpu.vector_store %arg21[%c5, %c0_30], %53 {strides = array<i32>} : memref<14x448xf32, #tpu.memory_space<vmem>>, vector<1x448xf32>,
    %55 = vector.extract_strided_slice %30 {offsets = [12, 0], sizes = [1, 448], strides = [1, 1]} : vector<28x448xf32> to vector<1x448xf32>
    %56 = vector.extract_strided_slice %30 {offsets = [13, 0], sizes = [1, 448], strides = [1, 1]} : vector<28x448xf32> to vector<1x448xf32>
    %57 = arith.maximumf %55, %56 : vector<1x448xf32>
    %c6 = arith.constant 6 : index
    %c0_31 = arith.constant 0 : index
    %58 = vector.load %arg21[%c6, %c0_31] : memref<14x448xf32, #tpu.memory_space<vmem>>, vector<1x448xf32>
    tpu.vector_store %arg21[%c6, %c0_31], %57 {strides = array<i32>} : memref<14x448xf32, #tpu.memory_space<vmem>>, vector<1x448xf32>,
    %59 = vector.extract_strided_slice %30 {offsets = [14, 0], sizes = [1, 448], strides = [1, 1]} : vector<28x448xf32> to vector<1x448xf32>
    %60 = vector.extract_strided_slice %30 {offsets = [15, 0], sizes = [1, 448], strides = [1, 1]} : vector<28x448xf32> to vector<1x448xf32>
    %61 = arith.maximumf %59, %60 : vector<1x448xf32>
    %c7 = arith.constant 7 : index
    %c0_32 = arith.constant 0 : index
    %62 = vector.load %arg21[%c7, %c0_32] : memref<14x448xf32, #tpu.memory_space<vmem>>, vector<1x448xf32>
    tpu.vector_store %arg21[%c7, %c0_32], %61 {strides = array<i32>} : memref<14x448xf32, #tpu.memory_space<vmem>>, vector<1x448xf32>,
    %63 = vector.extract_strided_slice %30 {offsets = [16, 0], sizes = [1, 448], strides = [1, 1]} : vector<28x448xf32> to vector<1x448xf32>
    %64 = vector.extract_strided_slice %30 {offsets = [17, 0], sizes = [1, 448], strides = [1, 1]} : vector<28x448xf32> to vector<1x448xf32>
    %65 = arith.maximumf %63, %64 : vector<1x448xf32>
    %c8 = arith.constant 8 : index
    %c0_33 = arith.constant 0 : index
    %66 = vector.load %arg21[%c8, %c0_33] : memref<14x448xf32, #tpu.memory_space<vmem>>, vector<1x448xf32>
    tpu.vector_store %arg21[%c8, %c0_33], %65 {strides = array<i32>} : memref<14x448xf32, #tpu.memory_space<vmem>>, vector<1x448xf32>,
    %67 = vector.extract_strided_slice %30 {offsets = [18, 0], sizes = [1, 448], strides = [1, 1]} : vector<28x448xf32> to vector<1x448xf32>
    %68 = vector.extract_strided_slice %30 {offsets = [19, 0], sizes = [1, 448], strides = [1, 1]} : vector<28x448xf32> to vector<1x448xf32>
    %69 = arith.maximumf %67, %68 : vector<1x448xf32>
    %c9 = arith.constant 9 : index
    %c0_34 = arith.constant 0 : index
    %70 = vector.load %arg21[%c9, %c0_34] : memref<14x448xf32, #tpu.memory_space<vmem>>, vector<1x448xf32>
    tpu.vector_store %arg21[%c9, %c0_34], %69 {strides = array<i32>} : memref<14x448xf32, #tpu.memory_space<vmem>>, vector<1x448xf32>,
    %71 = vector.extract_strided_slice %30 {offsets = [20, 0], sizes = [1, 448], strides = [1, 1]} : vector<28x448xf32> to vector<1x448xf32>
    %72 = vector.extract_strided_slice %30 {offsets = [21, 0], sizes = [1, 448], strides = [1, 1]} : vector<28x448xf32> to vector<1x448xf32>
    %73 = arith.maximumf %71, %72 : vector<1x448xf32>
    %c10 = arith.constant 10 : index
    %c0_35 = arith.constant 0 : index
    %74 = vector.load %arg21[%c10, %c0_35] : memref<14x448xf32, #tpu.memory_space<vmem>>, vector<1x448xf32>
    tpu.vector_store %arg21[%c10, %c0_35], %73 {strides = array<i32>} : memref<14x448xf32, #tpu.memory_space<vmem>>, vector<1x448xf32>,
    %75 = vector.extract_strided_slice %30 {offsets = [22, 0], sizes = [1, 448], strides = [1, 1]} : vector<28x448xf32> to vector<1x448xf32>
    %76 = vector.extract_strided_slice %30 {offsets = [23, 0], sizes = [1, 448], strides = [1, 1]} : vector<28x448xf32> to vector<1x448xf32>
    %77 = arith.maximumf %75, %76 : vector<1x448xf32>
    %c11 = arith.constant 11 : index
    %c0_36 = arith.constant 0 : index
    %78 = vector.load %arg21[%c11, %c0_36] : memref<14x448xf32, #tpu.memory_space<vmem>>, vector<1x448xf32>
    tpu.vector_store %arg21[%c11, %c0_36], %77 {strides = array<i32>} : memref<14x448xf32, #tpu.memory_space<vmem>>, vector<1x448xf32>,
    %79 = vector.extract_strided_slice %30 {offsets = [24, 0], sizes = [1, 448], strides = [1, 1]} : vector<28x448xf32> to vector<1x448xf32>
    %80 = vector.extract_strided_slice %30 {offsets = [25, 0], sizes = [1, 448], strides = [1, 1]} : vector<28x448xf32> to vector<1x448xf32>
    %81 = arith.maximumf %79, %80 : vector<1x448xf32>
    %c12 = arith.constant 12 : index
    %c0_37 = arith.constant 0 : index
    %82 = vector.load %arg21[%c12, %c0_37] : memref<14x448xf32, #tpu.memory_space<vmem>>, vector<1x448xf32>
    tpu.vector_store %arg21[%c12, %c0_37], %81 {strides = array<i32>} : memref<14x448xf32, #tpu.memory_space<vmem>>, vector<1x448xf32>,
    %83 = vector.extract_strided_slice %30 {offsets = [26, 0], sizes = [1, 448], strides = [1, 1]} : vector<28x448xf32> to vector<1x448xf32>
    %84 = vector.extract_strided_slice %30 {offsets = [27, 0], sizes = [1, 448], strides = [1, 1]} : vector<28x448xf32> to vector<1x448xf32>
    %85 = arith.maximumf %83, %84 : vector<1x448xf32>
    %c13 = arith.constant 13 : index
    %c0_38 = arith.constant 0 : index
    %86 = vector.load %arg21[%c13, %c0_38] : memref<14x448xf32, #tpu.memory_space<vmem>>, vector<1x448xf32>
    tpu.vector_store %arg21[%c13, %c0_38], %85 {strides = array<i32>} : memref<14x448xf32, #tpu.memory_space<vmem>>, vector<1x448xf32>,
    %c0_39 = arith.constant 0 : index
    %c0_40 = arith.constant 0 : index
    %87 = vector.load %arg21[%c0_39, %c0_40] : memref<14x448xf32, #tpu.memory_space<vmem>>, vector<14x448xf32>
    %88 = vector.extract_strided_slice %87 {offsets = [0, 0], sizes = [14, 16], strides = [1, 1]} : vector<14x448xf32> to vector<14x16xf32>
    %89 = vector.extract_strided_slice %87 {offsets = [0, 16], sizes = [14, 16], strides = [1, 1]} : vector<14x448xf32> to vector<14x16xf32>
    %90 = arith.maximumf %88, %89 : vector<14x16xf32>
    %c0_41 = arith.constant 0 : index
    %c0_42 = arith.constant 0 : index
    %91 = vector.load %arg19[%c0_41, %c0_42] : memref<14x224xf32, #tpu.memory_space<vmem>>, vector<14x16xf32>
    tpu.vector_store %arg19[%c0_41, %c0_42], %90 {strides = array<i32>} : memref<14x224xf32, #tpu.memory_space<vmem>>, vector<14x16xf32>,
    %92 = vector.extract_strided_slice %87 {offsets = [0, 32], sizes = [14, 16], strides = [1, 1]} : vector<14x448xf32> to vector<14x16xf32>
    %93 = vector.extract_strided_slice %87 {offsets = [0, 48], sizes = [14, 16], strides = [1, 1]} : vector<14x448xf32> to vector<14x16xf32>
    %94 = arith.maximumf %92, %93 : vector<14x16xf32>
    %c0_43 = arith.constant 0 : index
    %c16 = arith.constant 16 : index
    %95 = vector.load %arg19[%c0_43, %c16] : memref<14x224xf32, #tpu.memory_space<vmem>>, vector<14x16xf32>
    tpu.vector_store %arg19[%c0_43, %c16], %94 {strides = array<i32>} : memref<14x224xf32, #tpu.memory_space<vmem>>, vector<14x16xf32>,
    %96 = vector.extract_strided_slice %87 {offsets = [0, 64], sizes = [14, 16], strides = [1, 1]} : vector<14x448xf32> to vector<14x16xf32>
    %97 = vector.extract_strided_slice %87 {offsets = [0, 80], sizes = [14, 16], strides = [1, 1]} : vector<14x448xf32> to vector<14x16xf32>
    %98 = arith.maximumf %96, %97 : vector<14x16xf32>
    %c0_44 = arith.constant 0 : index
    %c32 = arith.constant 32 : index
    %99 = vector.load %arg19[%c0_44, %c32] : memref<14x224xf32, #tpu.memory_space<vmem>>, vector<14x16xf32>
    tpu.vector_store %arg19[%c0_44, %c32], %98 {strides = array<i32>} : memref<14x224xf32, #tpu.memory_space<vmem>>, vector<14x16xf32>,
    %100 = vector.extract_strided_slice %87 {offsets = [0, 96], sizes = [14, 16], strides = [1, 1]} : vector<14x448xf32> to vector<14x16xf32>
    %101 = vector.extract_strided_slice %87 {offsets = [0, 112], sizes = [14, 16], strides = [1, 1]} : vector<14x448xf32> to vector<14x16xf32>
    %102 = arith.maximumf %100, %101 : vector<14x16xf32>
    %c0_45 = arith.constant 0 : index
    %c48 = arith.constant 48 : index
    %103 = vector.load %arg19[%c0_45, %c48] : memref<14x224xf32, #tpu.memory_space<vmem>>, vector<14x16xf32>
    tpu.vector_store %arg19[%c0_45, %c48], %102 {strides = array<i32>} : memref<14x224xf32, #tpu.memory_space<vmem>>, vector<14x16xf32>,
    %104 = vector.extract_strided_slice %87 {offsets = [0, 128], sizes = [14, 16], strides = [1, 1]} : vector<14x448xf32> to vector<14x16xf32>
    %105 = vector.extract_strided_slice %87 {offsets = [0, 144], sizes = [14, 16], strides = [1, 1]} : vector<14x448xf32> to vector<14x16xf32>
    %106 = arith.maximumf %104, %105 : vector<14x16xf32>
    %c0_46 = arith.constant 0 : index
    %c64 = arith.constant 64 : index
    %107 = vector.load %arg19[%c0_46, %c64] : memref<14x224xf32, #tpu.memory_space<vmem>>, vector<14x16xf32>
    tpu.vector_store %arg19[%c0_46, %c64], %106 {strides = array<i32>} : memref<14x224xf32, #tpu.memory_space<vmem>>, vector<14x16xf32>,
    %108 = vector.extract_strided_slice %87 {offsets = [0, 160], sizes = [14, 16], strides = [1, 1]} : vector<14x448xf32> to vector<14x16xf32>
    %109 = vector.extract_strided_slice %87 {offsets = [0, 176], sizes = [14, 16], strides = [1, 1]} : vector<14x448xf32> to vector<14x16xf32>
    %110 = arith.maximumf %108, %109 : vector<14x16xf32>
    %c0_47 = arith.constant 0 : index
    %c80 = arith.constant 80 : index
    %111 = vector.load %arg19[%c0_47, %c80] : memref<14x224xf32, #tpu.memory_space<vmem>>, vector<14x16xf32>
    tpu.vector_store %arg19[%c0_47, %c80], %110 {strides = array<i32>} : memref<14x224xf32, #tpu.memory_space<vmem>>, vector<14x16xf32>,
    %112 = vector.extract_strided_slice %87 {offsets = [0, 192], sizes = [14, 16], strides = [1, 1]} : vector<14x448xf32> to vector<14x16xf32>
    %113 = vector.extract_strided_slice %87 {offsets = [0, 208], sizes = [14, 16], strides = [1, 1]} : vector<14x448xf32> to vector<14x16xf32>
    %114 = arith.maximumf %112, %113 : vector<14x16xf32>
    %c0_48 = arith.constant 0 : index
    %c96 = arith.constant 96 : index
    %115 = vector.load %arg19[%c0_48, %c96] : memref<14x224xf32, #tpu.memory_space<vmem>>, vector<14x16xf32>
    tpu.vector_store %arg19[%c0_48, %c96], %114 {strides = array<i32>} : memref<14x224xf32, #tpu.memory_space<vmem>>, vector<14x16xf32>,
    %116 = vector.extract_strided_slice %87 {offsets = [0, 224], sizes = [14, 16], strides = [1, 1]} : vector<14x448xf32> to vector<14x16xf32>
    %117 = vector.extract_strided_slice %87 {offsets = [0, 240], sizes = [14, 16], strides = [1, 1]} : vector<14x448xf32> to vector<14x16xf32>
    %118 = arith.maximumf %116, %117 : vector<14x16xf32>
    %c0_49 = arith.constant 0 : index
    %c112 = arith.constant 112 : index
    %119 = vector.load %arg19[%c0_49, %c112] : memref<14x224xf32, #tpu.memory_space<vmem>>, vector<14x16xf32>
    tpu.vector_store %arg19[%c0_49, %c112], %118 {strides = array<i32>} : memref<14x224xf32, #tpu.memory_space<vmem>>, vector<14x16xf32>,
    %120 = vector.extract_strided_slice %87 {offsets = [0, 256], sizes = [14, 16], strides = [1, 1]} : vector<14x448xf32> to vector<14x16xf32>
    %121 = vector.extract_strided_slice %87 {offsets = [0, 272], sizes = [14, 16], strides = [1, 1]} : vector<14x448xf32> to vector<14x16xf32>
    %122 = arith.maximumf %120, %121 : vector<14x16xf32>
    %c0_50 = arith.constant 0 : index
    %c128 = arith.constant 128 : index
    %123 = vector.load %arg19[%c0_50, %c128] : memref<14x224xf32, #tpu.memory_space<vmem>>, vector<14x16xf32>
    tpu.vector_store %arg19[%c0_50, %c128], %122 {strides = array<i32>} : memref<14x224xf32, #tpu.memory_space<vmem>>, vector<14x16xf32>,
    %124 = vector.extract_strided_slice %87 {offsets = [0, 288], sizes = [14, 16], strides = [1, 1]} : vector<14x448xf32> to vector<14x16xf32>
    %125 = vector.extract_strided_slice %87 {offsets = [0, 304], sizes = [14, 16], strides = [1, 1]} : vector<14x448xf32> to vector<14x16xf32>
    %126 = arith.maximumf %124, %125 : vector<14x16xf32>
    %c0_51 = arith.constant 0 : index
    %c144 = arith.constant 144 : index
    %127 = vector.load %arg19[%c0_51, %c144] : memref<14x224xf32, #tpu.memory_space<vmem>>, vector<14x16xf32>
    tpu.vector_store %arg19[%c0_51, %c144], %126 {strides = array<i32>} : memref<14x224xf32, #tpu.memory_space<vmem>>, vector<14x16xf32>,
    %128 = vector.extract_strided_slice %87 {offsets = [0, 320], sizes = [14, 16], strides = [1, 1]} : vector<14x448xf32> to vector<14x16xf32>
    %129 = vector.extract_strided_slice %87 {offsets = [0, 336], sizes = [14, 16], strides = [1, 1]} : vector<14x448xf32> to vector<14x16xf32>
    %130 = arith.maximumf %128, %129 : vector<14x16xf32>
    %c0_52 = arith.constant 0 : index
    %c160 = arith.constant 160 : index
    %131 = vector.load %arg19[%c0_52, %c160] : memref<14x224xf32, #tpu.memory_space<vmem>>, vector<14x16xf32>
    tpu.vector_store %arg19[%c0_52, %c160], %130 {strides = array<i32>} : memref<14x224xf32, #tpu.memory_space<vmem>>, vector<14x16xf32>,
    %132 = vector.extract_strided_slice %87 {offsets = [0, 352], sizes = [14, 16], strides = [1, 1]} : vector<14x448xf32> to vector<14x16xf32>
    %133 = vector.extract_strided_slice %87 {offsets = [0, 368], sizes = [14, 16], strides = [1, 1]} : vector<14x448xf32> to vector<14x16xf32>
    %134 = arith.maximumf %132, %133 : vector<14x16xf32>
    %c0_53 = arith.constant 0 : index
    %c176 = arith.constant 176 : index
    %135 = vector.load %arg19[%c0_53, %c176] : memref<14x224xf32, #tpu.memory_space<vmem>>, vector<14x16xf32>
    tpu.vector_store %arg19[%c0_53, %c176], %134 {strides = array<i32>} : memref<14x224xf32, #tpu.memory_space<vmem>>, vector<14x16xf32>,
    %136 = vector.extract_strided_slice %87 {offsets = [0, 384], sizes = [14, 16], strides = [1, 1]} : vector<14x448xf32> to vector<14x16xf32>
    %137 = vector.extract_strided_slice %87 {offsets = [0, 400], sizes = [14, 16], strides = [1, 1]} : vector<14x448xf32> to vector<14x16xf32>
    %138 = arith.maximumf %136, %137 : vector<14x16xf32>
    %c0_54 = arith.constant 0 : index
    %c192 = arith.constant 192 : index
    %139 = vector.load %arg19[%c0_54, %c192] : memref<14x224xf32, #tpu.memory_space<vmem>>, vector<14x16xf32>
    tpu.vector_store %arg19[%c0_54, %c192], %138 {strides = array<i32>} : memref<14x224xf32, #tpu.memory_space<vmem>>, vector<14x16xf32>,
    %140 = vector.extract_strided_slice %87 {offsets = [0, 416], sizes = [14, 16], strides = [1, 1]} : vector<14x448xf32> to vector<14x16xf32>
    %141 = vector.extract_strided_slice %87 {offsets = [0, 432], sizes = [14, 16], strides = [1, 1]} : vector<14x448xf32> to vector<14x16xf32>
    %142 = arith.maximumf %140, %141 : vector<14x16xf32>
    %c0_55 = arith.constant 0 : index
    %c208 = arith.constant 208 : index
    %143 = vector.load %arg19[%c0_55, %c208] : memref<14x224xf32, #tpu.memory_space<vmem>>, vector<14x16xf32>
    tpu.vector_store %arg19[%c0_55, %c208], %142 {strides = array<i32>} : memref<14x224xf32, #tpu.memory_space<vmem>>, vector<14x16xf32>,
    %c0_56 = arith.constant 0 : index
    %c0_57 = arith.constant 0 : index
    %144 = vector.load %arg19[%c0_56, %c0_57] : memref<14x224xf32, #tpu.memory_space<vmem>>, vector<14x224xf32>
    %cst_58 = arith.constant 0.000000e+00 : f32
    %145 = vector.broadcast %cst_58 : f32 to vector<16x256xf32>
    %c0_59 = arith.constant 0 : index
    %c0_60 = arith.constant 0 : index
    %146 = vector.load %arg20[%c0_59, %c0_60] : memref<16x256xf32, #tpu.memory_space<vmem>>, vector<16x256xf32>
    tpu.vector_store %arg20[%c0_59, %c0_60], %145 {strides = array<i32>} : memref<16x256xf32, #tpu.memory_space<vmem>>, vector<16x256xf32>,
    %c1_61 = arith.constant 1 : index
    %c16_62 = arith.constant 16 : index
    %147 = vector.load %arg20[%c1_61, %c16_62] : memref<16x256xf32, #tpu.memory_space<vmem>>, vector<14x224xf32>
    tpu.vector_store %arg20[%c1_61, %c16_62], %144 {strides = array<i32>} : memref<16x256xf32, #tpu.memory_space<vmem>>, vector<14x224xf32>,
    %c0_63 = arith.constant 0 : index
    %c0_64 = arith.constant 0 : index
    %148 = vector.load %arg20[%c0_63, %c0_64] : memref<16x256xf32, #tpu.memory_space<vmem>>, vector<14x256xf32>
    %c0_65 = arith.constant 0 : index
    %c0_66 = arith.constant 0 : index
    %c0_67 = arith.constant 0 : index
    %149 = vector.load %arg4[%c0_65, %c0_66, %c0_67] : memref<3x256x224xf32, #tpu.memory_space<vmem>>, vector<1x256x224xf32>
    %150 = vector.shape_cast %149 : vector<1x256x224xf32> to vector<256x224xf32>
    %cst_68 = arith.constant dense<0.000000e+00> : vector<14x224xf32>
    %151 = tpu.matmul %148, %150, %cst_68 {dimension_numbers = #tpu.dot_dimension_numbers<[1], [0], [0], [1], [0, 0, 1, 1], [], []>} : vector<14x256xf32>, vector<256x224xf32>, vector<14x224xf32> -> vector<14x224xf32>
    %c1_69 = arith.constant 1 : index
    %c0_70 = arith.constant 0 : index
    %152 = vector.load %arg20[%c1_69, %c0_70] : memref<16x256xf32, #tpu.memory_space<vmem>>, vector<14x256xf32>
    %c1_71 = arith.constant 1 : index
    %c0_72 = arith.constant 0 : index
    %c0_73 = arith.constant 0 : index
    %153 = vector.load %arg4[%c1_71, %c0_72, %c0_73] : memref<3x256x224xf32, #tpu.memory_space<vmem>>, vector<1x256x224xf32>
    %154 = vector.shape_cast %153 : vector<1x256x224xf32> to vector<256x224xf32>
    %cst_74 = arith.constant dense<0.000000e+00> : vector<14x224xf32>
    %155 = tpu.matmul %152, %154, %cst_74 {dimension_numbers = #tpu.dot_dimension_numbers<[1], [0], [0], [1], [0, 0, 1, 1], [], []>} : vector<14x256xf32>, vector<256x224xf32>, vector<14x224xf32> -> vector<14x224xf32>
    %156 = arith.addf %151, %155 : vector<14x224xf32>
    %c2_75 = arith.constant 2 : index
    %c0_76 = arith.constant 0 : index
    %157 = vector.load %arg20[%c2_75, %c0_76] : memref<16x256xf32, #tpu.memory_space<vmem>>, vector<14x256xf32>
    %c2_77 = arith.constant 2 : index
    %c0_78 = arith.constant 0 : index
    %c0_79 = arith.constant 0 : index
    %158 = vector.load %arg4[%c2_77, %c0_78, %c0_79] : memref<3x256x224xf32, #tpu.memory_space<vmem>>, vector<1x256x224xf32>
    %159 = vector.shape_cast %158 : vector<1x256x224xf32> to vector<256x224xf32>
    %cst_80 = arith.constant dense<0.000000e+00> : vector<14x224xf32>
    %160 = tpu.matmul %157, %159, %cst_80 {dimension_numbers = #tpu.dot_dimension_numbers<[1], [0], [0], [1], [0, 0, 1, 1], [], []>} : vector<14x256xf32>, vector<256x224xf32>, vector<14x224xf32> -> vector<14x224xf32>
    %161 = arith.addf %156, %160 : vector<14x224xf32>
    %c0_81 = arith.constant 0 : index
    %c0_82 = arith.constant 0 : index
    %162 = vector.load %arg5[%c0_81, %c0_82] : memref<1x224xf32, #tpu.memory_space<vmem>>, vector<1x224xf32>
    %163 = vector.broadcast %162 : vector<1x224xf32> to vector<14x224xf32>
    %164 = arith.addf %161, %163 : vector<14x224xf32>
    %cst_83 = arith.constant 0.000000e+00 : f32
    %165 = vector.broadcast %cst_83 : f32 to vector<14x224xf32>
    %166 = arith.maximumf %164, %165 : vector<14x224xf32>
    %c1_84 = arith.constant 1 : index
    %c16_85 = arith.constant 16 : index
    %167 = vector.load %arg20[%c1_84, %c16_85] : memref<16x256xf32, #tpu.memory_space<vmem>>, vector<14x224xf32>
    tpu.vector_store %arg20[%c1_84, %c16_85], %166 {strides = array<i32>} : memref<16x256xf32, #tpu.memory_space<vmem>>, vector<14x224xf32>,
    %c0_86 = arith.constant 0 : index
    %c0_87 = arith.constant 0 : index
    %168 = vector.load %arg20[%c0_86, %c0_87] : memref<16x256xf32, #tpu.memory_space<vmem>>, vector<14x256xf32>
    %c0_88 = arith.constant 0 : index
    %c0_89 = arith.constant 0 : index
    %c0_90 = arith.constant 0 : index
    %169 = vector.load %arg6[%c0_88, %c0_89, %c0_90] : memref<3x256x224xf32, #tpu.memory_space<vmem>>, vector<1x256x224xf32>
    %170 = vector.shape_cast %169 : vector<1x256x224xf32> to vector<256x224xf32>
    %cst_91 = arith.constant dense<0.000000e+00> : vector<14x224xf32>
    %171 = tpu.matmul %168, %170, %cst_91 {dimension_numbers = #tpu.dot_dimension_numbers<[1], [0], [0], [1], [0, 0, 1, 1], [], []>} : vector<14x256xf32>, vector<256x224xf32>, vector<14x224xf32> -> vector<14x224xf32>
    %c1_92 = arith.constant 1 : index
    %c0_93 = arith.constant 0 : index
    %172 = vector.load %arg20[%c1_92, %c0_93] : memref<16x256xf32, #tpu.memory_space<vmem>>, vector<14x256xf32>
    %c1_94 = arith.constant 1 : index
    %c0_95 = arith.constant 0 : index
    %c0_96 = arith.constant 0 : index
    %173 = vector.load %arg6[%c1_94, %c0_95, %c0_96] : memref<3x256x224xf32, #tpu.memory_space<vmem>>, vector<1x256x224xf32>
    %174 = vector.shape_cast %173 : vector<1x256x224xf32> to vector<256x224xf32>
    %cst_97 = arith.constant dense<0.000000e+00> : vector<14x224xf32>
    %175 = tpu.matmul %172, %174, %cst_97 {dimension_numbers = #tpu.dot_dimension_numbers<[1], [0], [0], [1], [0, 0, 1, 1], [], []>} : vector<14x256xf32>, vector<256x224xf32>, vector<14x224xf32> -> vector<14x224xf32>
    %176 = arith.addf %171, %175 : vector<14x224xf32>
    %c2_98 = arith.constant 2 : index
    %c0_99 = arith.constant 0 : index
    %177 = vector.load %arg20[%c2_98, %c0_99] : memref<16x256xf32, #tpu.memory_space<vmem>>, vector<14x256xf32>
    %c2_100 = arith.constant 2 : index
    %c0_101 = arith.constant 0 : index
    %c0_102 = arith.constant 0 : index
    %178 = vector.load %arg6[%c2_100, %c0_101, %c0_102] : memref<3x256x224xf32, #tpu.memory_space<vmem>>, vector<1x256x224xf32>
    %179 = vector.shape_cast %178 : vector<1x256x224xf32> to vector<256x224xf32>
    %cst_103 = arith.constant dense<0.000000e+00> : vector<14x224xf32>
    %180 = tpu.matmul %177, %179, %cst_103 {dimension_numbers = #tpu.dot_dimension_numbers<[1], [0], [0], [1], [0, 0, 1, 1], [], []>} : vector<14x256xf32>, vector<256x224xf32>, vector<14x224xf32> -> vector<14x224xf32>
    %181 = arith.addf %176, %180 : vector<14x224xf32>
    %c0_104 = arith.constant 0 : index
    %c0_105 = arith.constant 0 : index
    %182 = vector.load %arg7[%c0_104, %c0_105] : memref<1x224xf32, #tpu.memory_space<vmem>>, vector<1x224xf32>
    %183 = vector.broadcast %182 : vector<1x224xf32> to vector<14x224xf32>
    %184 = arith.addf %181, %183 : vector<14x224xf32>
    %cst_106 = arith.constant 0.000000e+00 : f32
    %185 = vector.broadcast %cst_106 : f32 to vector<14x224xf32>
    %186 = arith.maximumf %184, %185 : vector<14x224xf32>
    %187 = arith.addf %144, %186 : vector<14x224xf32>
    %cst_107 = arith.constant 0.000000e+00 : f32
    %188 = vector.broadcast %cst_107 : f32 to vector<14x224xf32>
    %189 = arith.maximumf %187, %188 : vector<14x224xf32>
    %190 = vector.extract_strided_slice %189 {offsets = [0, 0], sizes = [10, 224], strides = [1, 1]} : vector<14x224xf32> to vector<10x224xf32>
    %c0_108 = arith.constant 0 : index
    %c0_109 = arith.constant 0 : index
    %c0_110 = arith.constant 0 : index
    %191 = vector.load %arg8[%c0_108, %c0_109, %c0_110] : memref<5x224x320xf32, #tpu.memory_space<vmem>>, vector<1x224x320xf32>
    %192 = vector.shape_cast %191 : vector<1x224x320xf32> to vector<224x320xf32>
    %cst_111 = arith.constant dense<0.000000e+00> : vector<10x320xf32>
    %193 = tpu.matmul %190, %192, %cst_111 {dimension_numbers = #tpu.dot_dimension_numbers<[1], [0], [0], [1], [0, 0, 1, 1], [], []>} : vector<10x224xf32>, vector<224x320xf32>, vector<10x320xf32> -> vector<10x320xf32>
    %194 = vector.extract_strided_slice %189 {offsets = [1, 0], sizes = [10, 224], strides = [1, 1]} : vector<14x224xf32> to vector<10x224xf32>
    %c1_112 = arith.constant 1 : index
    %c0_113 = arith.constant 0 : index
    %c0_114 = arith.constant 0 : index
    %195 = vector.load %arg8[%c1_112, %c0_113, %c0_114] : memref<5x224x320xf32, #tpu.memory_space<vmem>>, vector<1x224x320xf32>
    %196 = vector.shape_cast %195 : vector<1x224x320xf32> to vector<224x320xf32>
    %cst_115 = arith.constant dense<0.000000e+00> : vector<10x320xf32>
    %197 = tpu.matmul %194, %196, %cst_115 {dimension_numbers = #tpu.dot_dimension_numbers<[1], [0], [0], [1], [0, 0, 1, 1], [], []>} : vector<10x224xf32>, vector<224x320xf32>, vector<10x320xf32> -> vector<10x320xf32>
    %198 = arith.addf %193, %197 : vector<10x320xf32>
    %199 = vector.extract_strided_slice %189 {offsets = [2, 0], sizes = [10, 224], strides = [1, 1]} : vector<14x224xf32> to vector<10x224xf32>
    %c2_116 = arith.constant 2 : index
    %c0_117 = arith.constant 0 : index
    %c0_118 = arith.constant 0 : index
    %200 = vector.load %arg8[%c2_116, %c0_117, %c0_118] : memref<5x224x320xf32, #tpu.memory_space<vmem>>, vector<1x224x320xf32>
    %201 = vector.shape_cast %200 : vector<1x224x320xf32> to vector<224x320xf32>
    %cst_119 = arith.constant dense<0.000000e+00> : vector<10x320xf32>
    %202 = tpu.matmul %199, %201, %cst_119 {dimension_numbers = #tpu.dot_dimension_numbers<[1], [0], [0], [1], [0, 0, 1, 1], [], []>} : vector<10x224xf32>, vector<224x320xf32>, vector<10x320xf32> -> vector<10x320xf32>
    %203 = arith.addf %198, %202 : vector<10x320xf32>
    %204 = vector.extract_strided_slice %189 {offsets = [3, 0], sizes = [10, 224], strides = [1, 1]} : vector<14x224xf32> to vector<10x224xf32>
    %c3_120 = arith.constant 3 : index
    %c0_121 = arith.constant 0 : index
    %c0_122 = arith.constant 0 : index
    %205 = vector.load %arg8[%c3_120, %c0_121, %c0_122] : memref<5x224x320xf32, #tpu.memory_space<vmem>>, vector<1x224x320xf32>
    %206 = vector.shape_cast %205 : vector<1x224x320xf32> to vector<224x320xf32>
    %cst_123 = arith.constant dense<0.000000e+00> : vector<10x320xf32>
    %207 = tpu.matmul %204, %206, %cst_123 {dimension_numbers = #tpu.dot_dimension_numbers<[1], [0], [0], [1], [0, 0, 1, 1], [], []>} : vector<10x224xf32>, vector<224x320xf32>, vector<10x320xf32> -> vector<10x320xf32>
    %208 = arith.addf %203, %207 : vector<10x320xf32>
    %209 = vector.extract_strided_slice %189 {offsets = [4, 0], sizes = [10, 224], strides = [1, 1]} : vector<14x224xf32> to vector<10x224xf32>
    %c4_124 = arith.constant 4 : index
    %c0_125 = arith.constant 0 : index
    %c0_126 = arith.constant 0 : index
    %210 = vector.load %arg8[%c4_124, %c0_125, %c0_126] : memref<5x224x320xf32, #tpu.memory_space<vmem>>, vector<1x224x320xf32>
    %211 = vector.shape_cast %210 : vector<1x224x320xf32> to vector<224x320xf32>
    %cst_127 = arith.constant dense<0.000000e+00> : vector<10x320xf32>
    %212 = tpu.matmul %209, %211, %cst_127 {dimension_numbers = #tpu.dot_dimension_numbers<[1], [0], [0], [1], [0, 0, 1, 1], [], []>} : vector<10x224xf32>, vector<224x320xf32>, vector<10x320xf32> -> vector<10x320xf32>
    %213 = arith.addf %208, %212 : vector<10x320xf32>
    %c0_128 = arith.constant 0 : index
    %c0_129 = arith.constant 0 : index
    %214 = vector.load %arg9[%c0_128, %c0_129] : memref<1x320xf32, #tpu.memory_space<vmem>>, vector<1x320xf32>
    %215 = vector.broadcast %214 : vector<1x320xf32> to vector<10x320xf32>
    %216 = arith.addf %213, %215 : vector<10x320xf32>
    %cst_130 = arith.constant 0.000000e+00 : f32
    %217 = vector.broadcast %cst_130 : f32 to vector<10x320xf32>
    %218 = arith.maximumf %216, %217 : vector<10x320xf32>
    %219 = vector.extract_strided_slice %218 {offsets = [0, 0], sizes = [1, 320], strides = [1, 1]} : vector<10x320xf32> to vector<1x320xf32>
    %220 = vector.extract_strided_slice %218 {offsets = [1, 0], sizes = [1, 320], strides = [1, 1]} : vector<10x320xf32> to vector<1x320xf32>
    %221 = arith.maximumf %219, %220 : vector<1x320xf32>
    %c0_131 = arith.constant 0 : index
    %c0_132 = arith.constant 0 : index
    %222 = vector.load %arg24[%c0_131, %c0_132] : memref<5x320xf32, #tpu.memory_space<vmem>>, vector<1x320xf32>
    tpu.vector_store %arg24[%c0_131, %c0_132], %221 {strides = array<i32>} : memref<5x320xf32, #tpu.memory_space<vmem>>, vector<1x320xf32>,
    %223 = vector.extract_strided_slice %218 {offsets = [2, 0], sizes = [1, 320], strides = [1, 1]} : vector<10x320xf32> to vector<1x320xf32>
    %224 = vector.extract_strided_slice %218 {offsets = [3, 0], sizes = [1, 320], strides = [1, 1]} : vector<10x320xf32> to vector<1x320xf32>
    %225 = arith.maximumf %223, %224 : vector<1x320xf32>
    %c1_133 = arith.constant 1 : index
    %c0_134 = arith.constant 0 : index
    %226 = vector.load %arg24[%c1_133, %c0_134] : memref<5x320xf32, #tpu.memory_space<vmem>>, vector<1x320xf32>
    tpu.vector_store %arg24[%c1_133, %c0_134], %225 {strides = array<i32>} : memref<5x320xf32, #tpu.memory_space<vmem>>, vector<1x320xf32>,
    %227 = vector.extract_strided_slice %218 {offsets = [4, 0], sizes = [1, 320], strides = [1, 1]} : vector<10x320xf32> to vector<1x320xf32>
    %228 = vector.extract_strided_slice %218 {offsets = [5, 0], sizes = [1, 320], strides = [1, 1]} : vector<10x320xf32> to vector<1x320xf32>
    %229 = arith.maximumf %227, %228 : vector<1x320xf32>
    %c2_135 = arith.constant 2 : index
    %c0_136 = arith.constant 0 : index
    %230 = vector.load %arg24[%c2_135, %c0_136] : memref<5x320xf32, #tpu.memory_space<vmem>>, vector<1x320xf32>
    tpu.vector_store %arg24[%c2_135, %c0_136], %229 {strides = array<i32>} : memref<5x320xf32, #tpu.memory_space<vmem>>, vector<1x320xf32>,
    %231 = vector.extract_strided_slice %218 {offsets = [6, 0], sizes = [1, 320], strides = [1, 1]} : vector<10x320xf32> to vector<1x320xf32>
    %232 = vector.extract_strided_slice %218 {offsets = [7, 0], sizes = [1, 320], strides = [1, 1]} : vector<10x320xf32> to vector<1x320xf32>
    %233 = arith.maximumf %231, %232 : vector<1x320xf32>
    %c3_137 = arith.constant 3 : index
    %c0_138 = arith.constant 0 : index
    %234 = vector.load %arg24[%c3_137, %c0_138] : memref<5x320xf32, #tpu.memory_space<vmem>>, vector<1x320xf32>
    tpu.vector_store %arg24[%c3_137, %c0_138], %233 {strides = array<i32>} : memref<5x320xf32, #tpu.memory_space<vmem>>, vector<1x320xf32>,
    %235 = vector.extract_strided_slice %218 {offsets = [8, 0], sizes = [1, 320], strides = [1, 1]} : vector<10x320xf32> to vector<1x320xf32>
    %236 = vector.extract_strided_slice %218 {offsets = [9, 0], sizes = [1, 320], strides = [1, 1]} : vector<10x320xf32> to vector<1x320xf32>
    %237 = arith.maximumf %235, %236 : vector<1x320xf32>
    %c4_139 = arith.constant 4 : index
    %c0_140 = arith.constant 0 : index
    %238 = vector.load %arg24[%c4_139, %c0_140] : memref<5x320xf32, #tpu.memory_space<vmem>>, vector<1x320xf32>
    tpu.vector_store %arg24[%c4_139, %c0_140], %237 {strides = array<i32>} : memref<5x320xf32, #tpu.memory_space<vmem>>, vector<1x320xf32>,
    %c0_141 = arith.constant 0 : index
    %c0_142 = arith.constant 0 : index
    %239 = vector.load %arg24[%c0_141, %c0_142] : memref<5x320xf32, #tpu.memory_space<vmem>>, vector<5x320xf32>
    %240 = vector.extract_strided_slice %239 {offsets = [0, 0], sizes = [5, 32], strides = [1, 1]} : vector<5x320xf32> to vector<5x32xf32>
    %241 = vector.extract_strided_slice %239 {offsets = [0, 32], sizes = [5, 32], strides = [1, 1]} : vector<5x320xf32> to vector<5x32xf32>
    %242 = arith.maximumf %240, %241 : vector<5x32xf32>
    %c0_143 = arith.constant 0 : index
    %c0_144 = arith.constant 0 : index
    %243 = vector.load %arg22[%c0_143, %c0_144] : memref<5x160xf32, #tpu.memory_space<vmem>>, vector<5x32xf32>
    tpu.vector_store %arg22[%c0_143, %c0_144], %242 {strides = array<i32>} : memref<5x160xf32, #tpu.memory_space<vmem>>, vector<5x32xf32>,
    %244 = vector.extract_strided_slice %239 {offsets = [0, 64], sizes = [5, 32], strides = [1, 1]} : vector<5x320xf32> to vector<5x32xf32>
    %245 = vector.extract_strided_slice %239 {offsets = [0, 96], sizes = [5, 32], strides = [1, 1]} : vector<5x320xf32> to vector<5x32xf32>
    %246 = arith.maximumf %244, %245 : vector<5x32xf32>
    %c0_145 = arith.constant 0 : index
    %c32_146 = arith.constant 32 : index
    %247 = vector.load %arg22[%c0_145, %c32_146] : memref<5x160xf32, #tpu.memory_space<vmem>>, vector<5x32xf32>
    tpu.vector_store %arg22[%c0_145, %c32_146], %246 {strides = array<i32>} : memref<5x160xf32, #tpu.memory_space<vmem>>, vector<5x32xf32>,
    %248 = vector.extract_strided_slice %239 {offsets = [0, 128], sizes = [5, 32], strides = [1, 1]} : vector<5x320xf32> to vector<5x32xf32>
    %249 = vector.extract_strided_slice %239 {offsets = [0, 160], sizes = [5, 32], strides = [1, 1]} : vector<5x320xf32> to vector<5x32xf32>
    %250 = arith.maximumf %248, %249 : vector<5x32xf32>
    %c0_147 = arith.constant 0 : index
    %c64_148 = arith.constant 64 : index
    %251 = vector.load %arg22[%c0_147, %c64_148] : memref<5x160xf32, #tpu.memory_space<vmem>>, vector<5x32xf32>
    tpu.vector_store %arg22[%c0_147, %c64_148], %250 {strides = array<i32>} : memref<5x160xf32, #tpu.memory_space<vmem>>, vector<5x32xf32>,
    %252 = vector.extract_strided_slice %239 {offsets = [0, 192], sizes = [5, 32], strides = [1, 1]} : vector<5x320xf32> to vector<5x32xf32>
    %253 = vector.extract_strided_slice %239 {offsets = [0, 224], sizes = [5, 32], strides = [1, 1]} : vector<5x320xf32> to vector<5x32xf32>
    %254 = arith.maximumf %252, %253 : vector<5x32xf32>
    %c0_149 = arith.constant 0 : index
    %c96_150 = arith.constant 96 : index
    %255 = vector.load %arg22[%c0_149, %c96_150] : memref<5x160xf32, #tpu.memory_space<vmem>>, vector<5x32xf32>
    tpu.vector_store %arg22[%c0_149, %c96_150], %254 {strides = array<i32>} : memref<5x160xf32, #tpu.memory_space<vmem>>, vector<5x32xf32>,
    %256 = vector.extract_strided_slice %239 {offsets = [0, 256], sizes = [5, 32], strides = [1, 1]} : vector<5x320xf32> to vector<5x32xf32>
    %257 = vector.extract_strided_slice %239 {offsets = [0, 288], sizes = [5, 32], strides = [1, 1]} : vector<5x320xf32> to vector<5x32xf32>
    %258 = arith.maximumf %256, %257 : vector<5x32xf32>
    %c0_151 = arith.constant 0 : index
    %c128_152 = arith.constant 128 : index
    %259 = vector.load %arg22[%c0_151, %c128_152] : memref<5x160xf32, #tpu.memory_space<vmem>>, vector<5x32xf32>
    tpu.vector_store %arg22[%c0_151, %c128_152], %258 {strides = array<i32>} : memref<5x160xf32, #tpu.memory_space<vmem>>, vector<5x32xf32>,
    %c0_153 = arith.constant 0 : index
    %c0_154 = arith.constant 0 : index
    %260 = vector.load %arg22[%c0_153, %c0_154] : memref<5x160xf32, #tpu.memory_space<vmem>>, vector<5x160xf32>
    %cst_155 = arith.constant 0.000000e+00 : f32
    %261 = vector.broadcast %cst_155 : f32 to vector<7x224xf32>
    %c0_156 = arith.constant 0 : index
    %c0_157 = arith.constant 0 : index
    %262 = vector.load %arg23[%c0_156, %c0_157] : memref<7x224xf32, #tpu.memory_space<vmem>>, vector<7x224xf32>
    tpu.vector_store %arg23[%c0_156, %c0_157], %261 {strides = array<i32>} : memref<7x224xf32, #tpu.memory_space<vmem>>, vector<7x224xf32>,
    %c1_158 = arith.constant 1 : index
    %c32_159 = arith.constant 32 : index
    %263 = vector.load %arg23[%c1_158, %c32_159] : memref<7x224xf32, #tpu.memory_space<vmem>>, vector<5x160xf32>
    tpu.vector_store %arg23[%c1_158, %c32_159], %260 {strides = array<i32>} : memref<7x224xf32, #tpu.memory_space<vmem>>, vector<5x160xf32>,
    %c0_160 = arith.constant 0 : index
    %c0_161 = arith.constant 0 : index
    %264 = vector.load %arg23[%c0_160, %c0_161] : memref<7x224xf32, #tpu.memory_space<vmem>>, vector<5x224xf32>
    %c0_162 = arith.constant 0 : index
    %c0_163 = arith.constant 0 : index
    %c0_164 = arith.constant 0 : index
    %265 = vector.load %arg10[%c0_162, %c0_163, %c0_164] : memref<3x224x160xf32, #tpu.memory_space<vmem>>, vector<1x224x160xf32>
    %266 = vector.shape_cast %265 : vector<1x224x160xf32> to vector<224x160xf32>
    %cst_165 = arith.constant dense<0.000000e+00> : vector<5x160xf32>
    %267 = tpu.matmul %264, %266, %cst_165 {dimension_numbers = #tpu.dot_dimension_numbers<[1], [0], [0], [1], [0, 0, 1, 1], [], []>} : vector<5x224xf32>, vector<224x160xf32>, vector<5x160xf32> -> vector<5x160xf32>
    %c1_166 = arith.constant 1 : index
    %c0_167 = arith.constant 0 : index
    %268 = vector.load %arg23[%c1_166, %c0_167] : memref<7x224xf32, #tpu.memory_space<vmem>>, vector<5x224xf32>
    %c1_168 = arith.constant 1 : index
    %c0_169 = arith.constant 0 : index
    %c0_170 = arith.constant 0 : index
    %269 = vector.load %arg10[%c1_168, %c0_169, %c0_170] : memref<3x224x160xf32, #tpu.memory_space<vmem>>, vector<1x224x160xf32>
    %270 = vector.shape_cast %269 : vector<1x224x160xf32> to vector<224x160xf32>
    %cst_171 = arith.constant dense<0.000000e+00> : vector<5x160xf32>
    %271 = tpu.matmul %268, %270, %cst_171 {dimension_numbers = #tpu.dot_dimension_numbers<[1], [0], [0], [1], [0, 0, 1, 1], [], []>} : vector<5x224xf32>, vector<224x160xf32>, vector<5x160xf32> -> vector<5x160xf32>
    %272 = arith.addf %267, %271 : vector<5x160xf32>
    %c2_172 = arith.constant 2 : index
    %c0_173 = arith.constant 0 : index
    %273 = vector.load %arg23[%c2_172, %c0_173] : memref<7x224xf32, #tpu.memory_space<vmem>>, vector<5x224xf32>
    %c2_174 = arith.constant 2 : index
    %c0_175 = arith.constant 0 : index
    %c0_176 = arith.constant 0 : index
    %274 = vector.load %arg10[%c2_174, %c0_175, %c0_176] : memref<3x224x160xf32, #tpu.memory_space<vmem>>, vector<1x224x160xf32>
    %275 = vector.shape_cast %274 : vector<1x224x160xf32> to vector<224x160xf32>
    %cst_177 = arith.constant dense<0.000000e+00> : vector<5x160xf32>
    %276 = tpu.matmul %273, %275, %cst_177 {dimension_numbers = #tpu.dot_dimension_numbers<[1], [0], [0], [1], [0, 0, 1, 1], [], []>} : vector<5x224xf32>, vector<224x160xf32>, vector<5x160xf32> -> vector<5x160xf32>
    %277 = arith.addf %272, %276 : vector<5x160xf32>
    %c0_178 = arith.constant 0 : index
    %c0_179 = arith.constant 0 : index
    %278 = vector.load %arg11[%c0_178, %c0_179] : memref<1x160xf32, #tpu.memory_space<vmem>>, vector<1x160xf32>
    %279 = vector.broadcast %278 : vector<1x160xf32> to vector<5x160xf32>
    %280 = arith.addf %277, %279 : vector<5x160xf32>
    %cst_180 = arith.constant 0.000000e+00 : f32
    %281 = vector.broadcast %cst_180 : f32 to vector<5x160xf32>
    %282 = arith.maximumf %280, %281 : vector<5x160xf32>
    %c1_181 = arith.constant 1 : index
    %c32_182 = arith.constant 32 : index
    %283 = vector.load %arg23[%c1_181, %c32_182] : memref<7x224xf32, #tpu.memory_space<vmem>>, vector<5x160xf32>
    tpu.vector_store %arg23[%c1_181, %c32_182], %282 {strides = array<i32>} : memref<7x224xf32, #tpu.memory_space<vmem>>, vector<5x160xf32>,
    %c0_183 = arith.constant 0 : index
    %c0_184 = arith.constant 0 : index
    %284 = vector.load %arg23[%c0_183, %c0_184] : memref<7x224xf32, #tpu.memory_space<vmem>>, vector<5x224xf32>
    %c0_185 = arith.constant 0 : index
    %c0_186 = arith.constant 0 : index
    %c0_187 = arith.constant 0 : index
    %285 = vector.load %arg12[%c0_185, %c0_186, %c0_187] : memref<3x224x160xf32, #tpu.memory_space<vmem>>, vector<1x224x160xf32>
    %286 = vector.shape_cast %285 : vector<1x224x160xf32> to vector<224x160xf32>
    %cst_188 = arith.constant dense<0.000000e+00> : vector<5x160xf32>
    %287 = tpu.matmul %284, %286, %cst_188 {dimension_numbers = #tpu.dot_dimension_numbers<[1], [0], [0], [1], [0, 0, 1, 1], [], []>} : vector<5x224xf32>, vector<224x160xf32>, vector<5x160xf32> -> vector<5x160xf32>
    %c1_189 = arith.constant 1 : index
    %c0_190 = arith.constant 0 : index
    %288 = vector.load %arg23[%c1_189, %c0_190] : memref<7x224xf32, #tpu.memory_space<vmem>>, vector<5x224xf32>
    %c1_191 = arith.constant 1 : index
    %c0_192 = arith.constant 0 : index
    %c0_193 = arith.constant 0 : index
    %289 = vector.load %arg12[%c1_191, %c0_192, %c0_193] : memref<3x224x160xf32, #tpu.memory_space<vmem>>, vector<1x224x160xf32>
    %290 = vector.shape_cast %289 : vector<1x224x160xf32> to vector<224x160xf32>
    %cst_194 = arith.constant dense<0.000000e+00> : vector<5x160xf32>
    %291 = tpu.matmul %288, %290, %cst_194 {dimension_numbers = #tpu.dot_dimension_numbers<[1], [0], [0], [1], [0, 0, 1, 1], [], []>} : vector<5x224xf32>, vector<224x160xf32>, vector<5x160xf32> -> vector<5x160xf32>
    %292 = arith.addf %287, %291 : vector<5x160xf32>
    %c2_195 = arith.constant 2 : index
    %c0_196 = arith.constant 0 : index
    %293 = vector.load %arg23[%c2_195, %c0_196] : memref<7x224xf32, #tpu.memory_space<vmem>>, vector<5x224xf32>
    %c2_197 = arith.constant 2 : index
    %c0_198 = arith.constant 0 : index
    %c0_199 = arith.constant 0 : index
    %294 = vector.load %arg12[%c2_197, %c0_198, %c0_199] : memref<3x224x160xf32, #tpu.memory_space<vmem>>, vector<1x224x160xf32>
    %295 = vector.shape_cast %294 : vector<1x224x160xf32> to vector<224x160xf32>
    %cst_200 = arith.constant dense<0.000000e+00> : vector<5x160xf32>
    %296 = tpu.matmul %293, %295, %cst_200 {dimension_numbers = #tpu.dot_dimension_numbers<[1], [0], [0], [1], [0, 0, 1, 1], [], []>} : vector<5x224xf32>, vector<224x160xf32>, vector<5x160xf32> -> vector<5x160xf32>
    %297 = arith.addf %292, %296 : vector<5x160xf32>
    %c0_201 = arith.constant 0 : index
    %c0_202 = arith.constant 0 : index
    %298 = vector.load %arg13[%c0_201, %c0_202] : memref<1x160xf32, #tpu.memory_space<vmem>>, vector<1x160xf32>
    %299 = vector.broadcast %298 : vector<1x160xf32> to vector<5x160xf32>
    %300 = arith.addf %297, %299 : vector<5x160xf32>
    %cst_203 = arith.constant 0.000000e+00 : f32
    %301 = vector.broadcast %cst_203 : f32 to vector<5x160xf32>
    %302 = arith.maximumf %300, %301 : vector<5x160xf32>
    %303 = arith.addf %260, %302 : vector<5x160xf32>
    %cst_204 = arith.constant 0.000000e+00 : f32
    %304 = vector.broadcast %cst_204 : f32 to vector<5x160xf32>
    %305 = arith.maximumf %303, %304 : vector<5x160xf32>
    %306 = vector.extract_strided_slice %305 {offsets = [0, 0], sizes = [3, 160], strides = [1, 1]} : vector<5x160xf32> to vector<3x160xf32>
    %c0_205 = arith.constant 0 : index
    %c0_206 = arith.constant 0 : index
    %c0_207 = arith.constant 0 : index
    %307 = vector.load %arg14[%c0_205, %c0_206, %c0_207] : memref<3x160x48xf32, #tpu.memory_space<vmem>>, vector<1x160x48xf32>
    %308 = vector.shape_cast %307 : vector<1x160x48xf32> to vector<160x48xf32>
    %cst_208 = arith.constant dense<0.000000e+00> : vector<3x48xf32>
    %309 = tpu.matmul %306, %308, %cst_208 {dimension_numbers = #tpu.dot_dimension_numbers<[1], [0], [0], [1], [0, 0, 1, 1], [], []>} : vector<3x160xf32>, vector<160x48xf32>, vector<3x48xf32> -> vector<3x48xf32>
    %310 = vector.extract_strided_slice %305 {offsets = [1, 0], sizes = [3, 160], strides = [1, 1]} : vector<5x160xf32> to vector<3x160xf32>
    %c1_209 = arith.constant 1 : index
    %c0_210 = arith.constant 0 : index
    %c0_211 = arith.constant 0 : index
    %311 = vector.load %arg14[%c1_209, %c0_210, %c0_211] : memref<3x160x48xf32, #tpu.memory_space<vmem>>, vector<1x160x48xf32>
    %312 = vector.shape_cast %311 : vector<1x160x48xf32> to vector<160x48xf32>
    %cst_212 = arith.constant dense<0.000000e+00> : vector<3x48xf32>
    %313 = tpu.matmul %310, %312, %cst_212 {dimension_numbers = #tpu.dot_dimension_numbers<[1], [0], [0], [1], [0, 0, 1, 1], [], []>} : vector<3x160xf32>, vector<160x48xf32>, vector<3x48xf32> -> vector<3x48xf32>
    %314 = arith.addf %309, %313 : vector<3x48xf32>
    %315 = vector.extract_strided_slice %305 {offsets = [2, 0], sizes = [3, 160], strides = [1, 1]} : vector<5x160xf32> to vector<3x160xf32>
    %c2_213 = arith.constant 2 : index
    %c0_214 = arith.constant 0 : index
    %c0_215 = arith.constant 0 : index
    %316 = vector.load %arg14[%c2_213, %c0_214, %c0_215] : memref<3x160x48xf32, #tpu.memory_space<vmem>>, vector<1x160x48xf32>
    %317 = vector.shape_cast %316 : vector<1x160x48xf32> to vector<160x48xf32>
    %cst_216 = arith.constant dense<0.000000e+00> : vector<3x48xf32>
    %318 = tpu.matmul %315, %317, %cst_216 {dimension_numbers = #tpu.dot_dimension_numbers<[1], [0], [0], [1], [0, 0, 1, 1], [], []>} : vector<3x160xf32>, vector<160x48xf32>, vector<3x48xf32> -> vector<3x48xf32>
    %319 = arith.addf %314, %318 : vector<3x48xf32>
    %c0_217 = arith.constant 0 : index
    %c0_218 = arith.constant 0 : index
    %320 = vector.load %arg15[%c0_217, %c0_218] : memref<1x48xf32, #tpu.memory_space<vmem>>, vector<1x48xf32>
    %321 = vector.broadcast %320 : vector<1x48xf32> to vector<3x48xf32>
    %322 = arith.addf %319, %321 : vector<3x48xf32>
    %cst_219 = arith.constant 0.000000e+00 : f32
    %323 = vector.broadcast %cst_219 : f32 to vector<3x48xf32>
    %324 = arith.maximumf %322, %323 : vector<3x48xf32>
    %325 = vector.extract_strided_slice %324 {offsets = [0, 0], sizes = [1, 48], strides = [1, 1]} : vector<3x48xf32> to vector<1x48xf32>
    %c0_220 = arith.constant 0 : index
    %c0_221 = arith.constant 0 : index
    %c0_222 = arith.constant 0 : index
    %326 = vector.load %arg16[%c0_220, %c0_221, %c0_222] : memref<3x48x10xf32, #tpu.memory_space<vmem>>, vector<1x48x10xf32>
    %327 = vector.shape_cast %326 : vector<1x48x10xf32> to vector<48x10xf32>
    %cst_223 = arith.constant dense<0.000000e+00> : vector<1x10xf32>
    %328 = tpu.matmul %325, %327, %cst_223 {dimension_numbers = #tpu.dot_dimension_numbers<[1], [0], [0], [1], [0, 0, 1, 1], [], []>} : vector<1x48xf32>, vector<48x10xf32>, vector<1x10xf32> -> vector<1x10xf32>
    %329 = vector.extract_strided_slice %324 {offsets = [1, 0], sizes = [1, 48], strides = [1, 1]} : vector<3x48xf32> to vector<1x48xf32>
    %c1_224 = arith.constant 1 : index
    %c0_225 = arith.constant 0 : index
    %c0_226 = arith.constant 0 : index
    %330 = vector.load %arg16[%c1_224, %c0_225, %c0_226] : memref<3x48x10xf32, #tpu.memory_space<vmem>>, vector<1x48x10xf32>
    %331 = vector.shape_cast %330 : vector<1x48x10xf32> to vector<48x10xf32>
    %cst_227 = arith.constant dense<0.000000e+00> : vector<1x10xf32>
    %332 = tpu.matmul %329, %331, %cst_227 {dimension_numbers = #tpu.dot_dimension_numbers<[1], [0], [0], [1], [0, 0, 1, 1], [], []>} : vector<1x48xf32>, vector<48x10xf32>, vector<1x10xf32> -> vector<1x10xf32>
    %333 = arith.addf %328, %332 : vector<1x10xf32>
    %334 = vector.extract_strided_slice %324 {offsets = [2, 0], sizes = [1, 48], strides = [1, 1]} : vector<3x48xf32> to vector<1x48xf32>
    %c2_228 = arith.constant 2 : index
    %c0_229 = arith.constant 0 : index
    %c0_230 = arith.constant 0 : index
    %335 = vector.load %arg16[%c2_228, %c0_229, %c0_230] : memref<3x48x10xf32, #tpu.memory_space<vmem>>, vector<1x48x10xf32>
    %336 = vector.shape_cast %335 : vector<1x48x10xf32> to vector<48x10xf32>
    %cst_231 = arith.constant dense<0.000000e+00> : vector<1x10xf32>
    %337 = tpu.matmul %334, %336, %cst_231 {dimension_numbers = #tpu.dot_dimension_numbers<[1], [0], [0], [1], [0, 0, 1, 1], [], []>} : vector<1x48xf32>, vector<48x10xf32>, vector<1x10xf32> -> vector<1x10xf32>
    %338 = arith.addf %333, %337 : vector<1x10xf32>
    %c0_232 = arith.constant 0 : index
    %c0_233 = arith.constant 0 : index
    %339 = vector.load %arg17[%c0_232, %c0_233] : memref<1x10xf32, #tpu.memory_space<vmem>>, vector<1x10xf32>
    %340 = arith.addf %338, %339 : vector<1x10xf32>
    %c0_234 = arith.constant 0 : index
    %c0_235 = arith.constant 0 : index
    %c0_236 = arith.constant 0 : index
    %341 = vector.load %arg18[%c0_234, %c0_235, %c0_236] : memref<1x1x10xf32, #tpu.memory_space<vmem>>, vector<1x1x10xf32>
    %342 = vector.shape_cast %341 : vector<1x1x10xf32> to vector<1x10xf32>
    %343 = vector.shape_cast %340 : vector<1x10xf32> to vector<1x1x10xf32>
    tpu.vector_store %arg18[%c0_234, %c0_235, %c0_236], %343 {strides = array<i32>} : memref<1x1x10xf32, #tpu.memory_space<vmem>>, vector<1x1x10xf32>,
    return
  }
  func.func @transform_0(%arg0: i32) -> (i32, i32, i32) {
    %c0_i32 = arith.constant 0 : i32
    %c0_i32_0 = arith.constant 0 : i32
    %c0_i32_1 = arith.constant 0 : i32
    return %arg0, %c0_i32, %c0_i32_0 : i32, i32, i32
  }
  func.func @transform_1(%arg0: i32) -> (i32, i32, i32) {
    %c0_i32 = arith.constant 0 : i32
    %c0_i32_0 = arith.constant 0 : i32
    %c0_i32_1 = arith.constant 0 : i32
    %c0_i32_2 = arith.constant 0 : i32
    return %c0_i32, %c0_i32_0, %c0_i32_1 : i32, i32, i32
  }
  func.func @transform_2(%arg0: i32) -> (i32, i32) {
    %c0_i32 = arith.constant 0 : i32
    %c0_i32_0 = arith.constant 0 : i32
    %c0_i32_1 = arith.constant 0 : i32
    return %c0_i32, %c0_i32_0 : i32, i32
  }
  func.func @transform_3(%arg0: i32) -> (i32, i32, i32) {
    %c0_i32 = arith.constant 0 : i32
    %c0_i32_0 = arith.constant 0 : i32
    %c0_i32_1 = arith.constant 0 : i32
    %c0_i32_2 = arith.constant 0 : i32
    return %c0_i32, %c0_i32_0, %c0_i32_1 : i32, i32, i32
  }
  func.func @transform_4(%arg0: i32) -> (i32, i32) {
    %c0_i32 = arith.constant 0 : i32
    %c0_i32_0 = arith.constant 0 : i32
    %c0_i32_1 = arith.constant 0 : i32
    return %c0_i32, %c0_i32_0 : i32, i32
  }
  func.func @transform_5(%arg0: i32) -> (i32, i32, i32) {
    %c0_i32 = arith.constant 0 : i32
    %c0_i32_0 = arith.constant 0 : i32
    %c0_i32_1 = arith.constant 0 : i32
    %c0_i32_2 = arith.constant 0 : i32
    return %c0_i32, %c0_i32_0, %c0_i32_1 : i32, i32, i32
  }
  func.func @transform_6(%arg0: i32) -> (i32, i32) {
    %c0_i32 = arith.constant 0 : i32
    %c0_i32_0 = arith.constant 0 : i32
    %c0_i32_1 = arith.constant 0 : i32
    return %c0_i32, %c0_i32_0 : i32, i32
  }
  func.func @transform_7(%arg0: i32) -> (i32, i32, i32) {
    %c0_i32 = arith.constant 0 : i32
    %c0_i32_0 = arith.constant 0 : i32
    %c0_i32_1 = arith.constant 0 : i32
    %c0_i32_2 = arith.constant 0 : i32
    return %c0_i32, %c0_i32_0, %c0_i32_1 : i32, i32, i32
  }
  func.func @transform_8(%arg0: i32) -> (i32, i32) {
    %c0_i32 = arith.constant 0 : i32
    %c0_i32_0 = arith.constant 0 : i32
    %c0_i32_1 = arith.constant 0 : i32
    return %c0_i32, %c0_i32_0 : i32, i32
  }
  func.func @transform_9(%arg0: i32) -> (i32, i32, i32) {
    %c0_i32 = arith.constant 0 : i32
    %c0_i32_0 = arith.constant 0 : i32
    %c0_i32_1 = arith.constant 0 : i32
    %c0_i32_2 = arith.constant 0 : i32
    return %c0_i32, %c0_i32_0, %c0_i32_1 : i32, i32, i32
  }
  func.func @transform_10(%arg0: i32) -> (i32, i32) {
    %c0_i32 = arith.constant 0 : i32
    %c0_i32_0 = arith.constant 0 : i32
    %c0_i32_1 = arith.constant 0 : i32
    return %c0_i32, %c0_i32_0 : i32, i32
  }
  func.func @transform_11(%arg0: i32) -> (i32, i32, i32) {
    %c0_i32 = arith.constant 0 : i32
    %c0_i32_0 = arith.constant 0 : i32
    %c0_i32_1 = arith.constant 0 : i32
    %c0_i32_2 = arith.constant 0 : i32
    return %c0_i32, %c0_i32_0, %c0_i32_1 : i32, i32, i32
  }
  func.func @transform_12(%arg0: i32) -> (i32, i32) {
    %c0_i32 = arith.constant 0 : i32
    %c0_i32_0 = arith.constant 0 : i32
    %c0_i32_1 = arith.constant 0 : i32
    return %c0_i32, %c0_i32_0 : i32, i32
  }
  func.func @transform_13(%arg0: i32) -> (i32, i32, i32) {
    %c0_i32 = arith.constant 0 : i32
    %c0_i32_0 = arith.constant 0 : i32
    %c0_i32_1 = arith.constant 0 : i32
    %c0_i32_2 = arith.constant 0 : i32
    return %c0_i32, %c0_i32_0, %c0_i32_1 : i32, i32, i32
  }
  func.func @transform_14(%arg0: i32) -> (i32, i32) {
    %c0_i32 = arith.constant 0 : i32
    %c0_i32_0 = arith.constant 0 : i32
    %c0_i32_1 = arith.constant 0 : i32
    return %c0_i32, %c0_i32_0 : i32, i32
  }
  func.func @transform_15(%arg0: i32) -> (i32, i32, i32) {
    %c0_i32 = arith.constant 0 : i32
    %c0_i32_0 = arith.constant 0 : i32
    %c0_i32_1 = arith.constant 0 : i32
    %c0_i32_2 = arith.constant 0 : i32
    return %c0_i32, %c0_i32_0, %c0_i32_1 : i32, i32, i32
  }
  func.func @transform_16(%arg0: i32) -> (i32, i32) {
    %c0_i32 = arith.constant 0 : i32
    %c0_i32_0 = arith.constant 0 : i32
    %c0_i32_1 = arith.constant 0 : i32
    return %c0_i32, %c0_i32_0 : i32, i32
  }
  func.func @transform_17(%arg0: i32) -> (i32, i32, i32) {
    %c0_i32 = arith.constant 0 : i32
    %c0_i32_0 = arith.constant 0 : i32
    %c0_i32_1 = arith.constant 0 : i32
    return %arg0, %c0_i32, %c0_i32_0 : i32, i32, i32
  }
}

</mosaic_0001>

<bundles_post_ra>
// kernel: res_model_forward.1
= control target key start
LH: loop header
LB: loop body
LE: loop exit
PB: predicated region body
PF: predicated region fallthrough
CT: control target
= control target key end

     0   :  { %s12278_s0 = inlined_call_operand.vmem [shape: f32[2,32,32], index: 0, kind: input, shape index: {}]   ;;  %s12279_s1 = inlined_call_operand.vmem [shape: f32[5,32,448], index: 1, kind: input, shape index: {}]   ;;  %s12280_s2 = inlined_call_operand.vmem [shape: f32[1,448], index: 2, kind: input, shape index: {}]   ;;  %s12281_s3 = inlined_call_operand.vmem [shape: f32[3,256,224], index: 3, kind: input, shape index: {}]   ;;  %s12282_s4 = inlined_call_operand.vmem [shape: f32[1,224], index: 4, kind: input, shape index: {}]   ;;  %s12283_s5 = inlined_call_operand.vmem [shape: f32[3,256,224], index: 5, kind: input, shape index: {}]   ;;  %s12284_s6 = inlined_call_operand.vmem [shape: f32[1,224], index: 6, kind: input, shape index: {}]   ;;  %s12285_s7 = inlined_call_operand.vmem [shape: f32[5,224,320], index: 7, kind: input, shape index: {}]   ;;  %s12286_s8 = inlined_call_operand.vmem [shape: f32[1,320], index: 8, kind: input, shape index: {}]   ;;  %s12287_s9 = inlined_call_operand.vmem [shape: f32[3,224,160], index: 9, kind: input, shape index: {}]   ;;  %s12288_s10 = inlined_call_operand.vmem [shape: f32[1,160], index: 10, kind: input, shape index: {}]   ;;  %s12289_s11 = inlined_call_operand.vmem [shape: f32[3,224,160], index: 11, kind: input, shape index: {}]   ;;  %s12290_s12 = inlined_call_operand.vmem [shape: f32[1,160], index: 12, kind: input, shape index: {}]   ;;  %s12291_s13 = inlined_call_operand.vmem [shape: f32[3,160,48], index: 13, kind: input, shape index: {}]   ;;  %s12292_s14 = inlined_call_operand.vmem [shape: f32[1,48], index: 14, kind: input, shape index: {}]   ;;  %s12293_s15 = inlined_call_operand.vmem [shape: f32[3,48,10], index: 15, kind: input, shape index: {}]   ;;  %s12294_s16 = inlined_call_operand.vmem [shape: f32[1,10], index: 16, kind: input, shape index: {}]   ;;  %s12295_s17 = inlined_call_operand.hbm [shape: f32[2,1,10], index: 17, kind: output, shape index: {}]  }
   0x1   :  { %12318 = sst [smem:[#allocation29_spill]] %s12278_s0 }
   0x2   :  { %12319 = sst [smem:[#allocation30_spill]] %s12279_s1 }
   0x3   :  { %12320 = sst [smem:[#allocation31_spill]] %s12294_s16 }
   0x4   :  { %12321 = sst [smem:[#allocation32_spill]] %s12295_s17 }
   0x5   :  { %22 = vsyncpa [#allocation9], 0 }
   0x6   :  { %24 = vsyncpa [#allocation9 + $0x1], 0  ;;  %s7486_s24 = smov 0   ;;  %s7488_s25 = smov 0  }
   0x7   :  { %s7490_s26 = smov 0   ;;  %s7492_s27 = smov 0  }
   0x8 LB: > { %12322 = sst [smem:[#allocation11_spill]] %s7371_s24  ;;  %s7507_s28 = sadd.s32 4294967295, %s7383_s27   ;;  %s7383_s27 = sphi %s7492_s27, %s12368_s27   ;;  %s7379_s26 = sphi %s7490_s26, %s12370_s26   ;;  %s7375_s25 = sphi %s7488_s25, %s12372_s25   ;;  %s7371_s24 = sphi %s7486_s24, %s12371_s24  }
   0x9   : > { %12323 = sst [smem:[#allocation12_spill]] %s7379_s26  ;;  %s6187_s29 = sadd.s32 4294967294, %s7383_s27  }
   0xa   : > { %12324 = sst [smem:[#allocation13_spill]] %s7383_s27  ;;  %s7511_s0 = sadd.s32 1, %s7383_s27  }
   0xb   : > { %12325 = sst [smem:[#allocation14_spill]] %s7511_s0  ;;  %s399_s30 = sadd.s32 1, %s7379_s26 }
   0xc   : > { %s396_s18 = ssub.s32 %s7383_s27, %s7511_s0  ;;  %p409_p0 = scmp.ne.s32.totalorder %s7379_s26, %s7375_s25 }
   0xd   : > { %p397_p1 = scmp.eq.s32.totalorder %s396_s18, 0  ;;  %p410_p2 = scmp.eq.s32.totalorder %s7507_s28, 1 }
   0xe   : > { %p415_p3 = scmp.ne.s32.totalorder %s7375_s25, %s7371_s24  ;;  %p416_p4 = scmp.eq.s32.totalorder %s6187_s29, 1 }
   0xf   : > { %s7522_s19 = scalar_select %p397_p1, %s7379_s26, %s399_s30  }
  0x10   : > { %p7524_p5 = por %p410_p2, %p409_p0  ;;  %p7528_p6 = por %p416_p4, %p415_p3 }
  0x11   : > { %12326 = sst [smem:[#allocation15_spill]] %s7522_s19  ;;  %p6190_p7 = scmp.ge.s32.totalorder %s7383_s27, 1 }
  0x12   : > { %s12328_s20 = scalar_select %p7528_p6, 1, 0 }
  0x13   : > { %p490_p8 = scmp.lt.s32.totalorder %s7383_s27, 3 }
  0x14   : > { %12329 = sst [smem:[#allocation16_spill]] %s12328_s20 }
  0x15   : > { %p491_p9 = pnand %p6190_p7, %p490_p8 }
  0x17   : > { %494 = sbr.rel (%p491_p9) target bundleno = 3414 (0xd56), region = 88 }
  0x1c   : > { %s12330_s23 = sld [smem:[#allocation30_spill]]  ;;  %p541_p10 = scmp.lt.s32.totalorder %s7507_s28, 1  ;;  %v12304_v6 = vmov 0.0   ;;  %vm587_vm0 = vcmask 1046528   ;;  %vm595_vm1 = vcmask 261120   ;;  %vm1439_vm2 = vcmask 1043456  }
  0x1d   : > { %2193 = vst [vmem:[#allocation3] sm:$0xff] %v12304_v6  ;;  %2194 = vst [vmem:[#allocation3 + $0x8] sm:$0xff] %v12304_v6  ;;  %s12331_s16 = sld [smem:[#allocation29_spill]]  ;;  %668 = vmatprep.mubr.f32.mxu0 %v12304_v6  ;;  %757 = vmatprep.mubr.f32.mxu1 %v12304_v6  ;;  %vm985_vm3 = vcmask 1045504   ;;  %vm1212_vm4 = vcmask 1044480   ;;  %vm2035_vm6 = vcmask 130048  }
  0x1e   : > { %2195 = vst [vmem:[#allocation3 + $0x10] sm:$0xff] %v12304_v6  ;;  %2196 = vst [vmem:[#allocation3 + $0x18] sm:$0xff] %v12304_v6  ;;  %s542_s21 = scalar_select %p541_p10, %s7507_s28, 1  ;;  %vm2037_vm7 = vcmask 128000   ;;  %vm2047_vm8 = vcmask 261248   ;;  %vm2057_vm9 = vcmask 392448  }
  0x1f   : > { %4695 = vst [vmem:[#allocation6] sm:$0x7f] %v12304_v6  ;;  %s7388_s20 = smov 96   ;;  %s7389_s30 = smov 80   ;;  %vm2067_vm10 = vcmask 523648   ;;  %vm2049_vm11 = vcmask 259200  }
  0x20   : > { %s7201_s22 = sshll.u32 %s542_s21, 5  ;;  %s7387_s21 = smov 112   ;;  %vm2059_vm12 = vcmask 390400   ;;  %vm2089_vm13 = vcmask 654848   ;;  %vm2069_vm14 = vcmask 521600   ;;  %vm2099_vm15 = vcmask 786048  }
  0x21   : > { %s12315_s18 = smov 64   ;;  %s12316_s17 = smov 32  }
  0x22   : > { %v6206_v0 = vld [vmem:[%s12330_s23 + $0xe8] sm:$0xff]  ;;  %v6208_v1 = vld [vmem:[%s12330_s23 + $0xf8] sm:$0xff]  ;;  %v6205_v2 = vld [vmem:[%s12330_s23 + $0xe0] sm:$0xff]  ;;  %s539_s26 = sand.u32 1, %s7375_s25   ;;  %s12364_s29 = sld [smem:[#allocation32_spill]] }
  0x23   : > { %628 = vmatprep.subr.mxu0 %v6206_v0  ;;  %717 = vmatprep.subr.mxu1 %v6208_v1  ;;  %v6207_v3 = vld [vmem:[%s12330_s23 + $0xf0] sm:$0xff]  ;;  %v6202_v4 = vld [vmem:[%s12330_s23 + $0xc8] sm:$0xff]  ;;  %v6204_v5 = vld [vmem:[%s12330_s23 + $0xd8] sm:$0xff]  ;;  %s545_s19 = scalar_lea.vmem %s12331_s16, %s7201_s22  ;;  %s7391_s16 = smov 48  }
  0x24   : > { %629 = vmatpush1.msra.mxu0 %v6205_v2  ;;  %718 = vmatpush1.msra.mxu1 %v6207_v3  ;;  %v6201_v7 = vld [vmem:[%s12330_s23 + $0xc0] sm:$0xff]  ;;  %v6203_v8 = vld [vmem:[%s12330_s23 + $0xd0] sm:$0xff]  ;;  %v6198_v9 = vld [vmem:[%s12330_s23 + $0xa8] sm:$0xff]  ;;  %s7393_s22 = smov 16   ;;  %s7395_s0 = smov [#allocation8]  }
  0x25   : > { %630 = vmatprep.subr.mxu0 %v6202_v4  ;;  %719 = vmatprep.subr.mxu1 %v6204_v5  ;;  %v6200_v10 = vld [vmem:[%s12330_s23 + $0xb8] sm:$0xff]  ;;  %v6197_v11 = vld [vmem:[%s12330_s23 + $0xa0] sm:$0xff]  ;;  %v6199_v12 = vld [vmem:[%s12330_s23 + $0xb0] sm:$0xff] }
  0x26   : > { %631 = vmatpush1.msra.mxu0 %v6201_v7  ;;  %720 = vmatpush1.msra.mxu1 %v6203_v8  ;;  %v6194_v13 = vld [vmem:[%s12330_s23 + $0x88] sm:$0xff]  ;;  %v6196_v14 = vld [vmem:[%s12330_s23 + $0x98] sm:$0xff]  ;;  %v6193_v15 = vld [vmem:[%s12330_s23 + $0x80] sm:$0xff] }
  0x27   : > { %632 = vmatprep.subr.mxu0 %v6198_v9  ;;  %721 = vmatprep.subr.mxu1 %v6200_v10  ;;  %v6195_v16 = vld [vmem:[%s12330_s23 + $0x90] sm:$0xff]  ;;  %v7594_v17 = vld [vmem:[%s545_s19] sm:$0xff]  ;;  %v7596_v18 = vld [vmem:[%s545_s19 + $0x8] sm:$0xff] }
  0x28   : > { %633 = vmatpush1.msra.mxu0 %v6197_v11  ;;  %722 = vmatpush1.msra.mxu1 %v6199_v12  ;;  %v563_v19 = vld [vmem:[%s12330_s23 + $0x68] sm:$0xff]  ;;  %v565_v20 = vld [vmem:[%s12330_s23 + $0x78] sm:$0xff]  ;;  %v588_v21 = vrot.slane %v7594_v17, 1  ;;  %v589_v22 = vrot.slane %v7596_v18, 1  ;;  %v7606_v23 = vld [vmem:[%s545_s19 + $0x10] sm:$0xff]  ;;  %v1440_v33 = vrot.slane %v7594_v17, 4 }
  0x29   : > { %634 = vmatprep.subr.mxu0 %v6194_v13  ;;  %723 = vmatprep.subr.mxu1 %v6196_v14  ;;  %v562_v25 = vld [vmem:[%s12330_s23 + $0x60] sm:$0xff]  ;;  %v564_v26 = vld [vmem:[%s12330_s23 + $0x70] sm:$0xff]  ;;  %v591_v27 = vrot.slane %v7606_v23, 1  ;;  %v7618_v28 = vld [vmem:[%s545_s19 + $0x18] sm:$0xff]  ;;  %v1441_v34 = vrot.slane %v7596_v18, 4  ;;  %v1443_v37 = vrot.slane %v7606_v23, 4 }
  0x2a   : > { %635 = vmatpush1.msra.mxu0 %v6193_v15  ;;  %724 = vmatpush1.msra.mxu1 %v6195_v16  ;;  %v590_v24 = vsel %vm587_vm0, %v588_v21, %v589_v22  ;;  %v559_v29 = vld [vmem:[%s12330_s23 + $0x48] sm:$0xff]  ;;  %v561_v30 = vld [vmem:[%s12330_s23 + $0x58] sm:$0xff]  ;;  %v593_v32 = vrot.slane %v7618_v28, 1  ;;  %v558_v35 = vld [vmem:[%s12330_s23 + $0x40] sm:$0xff]  ;;  %v7642_v38 = vrot.slane %v7618_v28, 4  ;;  %v986_v1 = vrot.slane %v7594_v17, 2 }
  0x2b   : > { %814 = vmatprep.subr.mxu0 %v563_v19  ;;  %903 = vmatprep.subr.mxu1 %v565_v20  ;;  %v592_v31 = vsel %vm587_vm0, %v589_v22, %v591_v27  ;;  %v560_v36 = vld [vmem:[%s12330_s23 + $0x50] sm:$0xff]  ;;  %v7645_v39 = vsel %vm1439_vm2, %v1440_v33, %v1441_v34  ;;  %v555_v40 = vld [vmem:[%s12330_s23 + $0x28] sm:$0xff]  ;;  %v557_v41 = vld [vmem:[%s12330_s23 + $0x38] sm:$0xff]  ;;  %v7656_v42 = vsel %vm1439_vm2, %v1441_v34, %v1443_v37  ;;  %v987_v2 = vrot.slane %v7596_v18, 2  ;;  %s12361_s19 = smov 32  }
  0x2c   : > { %6209 = vmatmul.mubr.msk.f32.vlgmr.msra.gmra.mxu0 %vm595_vm1, %v590_v24  ;;  %6213 = vmatmul.mubr.msk.f32.vlgmr.msra.gmra.mxu1 %vm595_vm1, %v590_v24  ;;  %v7660_v43 = vsel %vm1439_vm2, %v1443_v37, %v7642_v38  ;;  %v594_v44 = vsel %vm587_vm0, %v591_v27, %v593_v32  ;;  %v554_v45 = vld [vmem:[%s12330_s23 + $0x20] sm:$0xff]  ;;  %v556_v46 = vld [vmem:[%s12330_s23 + $0x30] sm:$0xff]  ;;  %v551_v47 = vld [vmem:[%s12330_s23 + $0x8] sm:$0xff]  ;;  %v989_v9 = vrot.slane %v7606_v23, 2  ;;  %v991_v15 = vrot.slane %v7618_v28, 2 }
  0x2d   : > { %815 = vmatpush1.msra.mxu0 %v562_v25  ;;  %904 = vmatpush1.msra.mxu1 %v564_v26  ;;  %v553_v48 = vld [vmem:[%s12330_s23 + $0x18] sm:$0xff]  ;;  %v550_v49 = vld [vmem:[%s12330_s23] sm:$0xff]  ;;  %v552_v50 = vld [vmem:[%s12330_s23 + $0x10] sm:$0xff]  ;;  %v988_v8 = vsel %vm985_vm3, %v986_v1, %v987_v2  ;;  %v1216_v34 = vrot.slane %v7606_v23, 3 }
  0x2e   : > { %674 = vmatprep.mubr.f32.mxu0 %v12304_v6  ;;  %763 = vmatprep.mubr.f32.mxu1 %v12304_v6  ;;  %v6238_v51 = vld [vmem:[%s12330_s23 + $0x168] sm:$0xff]  ;;  %v6240_v52 = vld [vmem:[%s12330_s23 + $0x178] sm:$0xff]  ;;  %v6237_v53 = vld [vmem:[%s12330_s23 + $0x160] sm:$0xff]  ;;  %v990_v14 = vsel %vm985_vm3, %v987_v2, %v989_v9  ;;  %v992_v22 = vsel %vm985_vm3, %v989_v9, %v991_v15 }
  0x2f   : > { %816 = vmatprep.subr.mxu0 %v559_v29  ;;  %905 = vmatprep.subr.mxu1 %v561_v30  ;;  %v6239_v54 = vld [vmem:[%s12330_s23 + $0x170] sm:$0xff]  ;;  %v6234_v55 = vld [vmem:[%s12330_s23 + $0x148] sm:$0xff]  ;;  %v6236_v56 = vld [vmem:[%s12330_s23 + $0x158] sm:$0xff]  ;;  %v1213_v29 = vrot.slane %v7594_v17, 3  ;;  %v1214_v30 = vrot.slane %v7596_v18, 3 }
  0x30   : > { %6210 = vmatmul.mubr.msk.f32.gmra.mxu0 %vm595_vm1, %v592_v31  ;;  %6214 = vmatmul.mubr.msk.f32.gmra.mxu1 %vm595_vm1, %v592_v31  ;;  %v6233_v57 = vld [vmem:[%s12330_s23 + $0x140] sm:$0xff]  ;;  %v6235_v58 = vld [vmem:[%s12330_s23 + $0x150] sm:$0xff]  ;;  %v6230_v59 = vld [vmem:[%s12330_s23 + $0x128] sm:$0xff] }
  0x31   : > { %817 = vmatpush1.msra.mxu0 %v558_v35  ;;  %906 = vmatpush1.msra.mxu1 %v560_v36  ;;  %v6232_v60 = vld [vmem:[%s12330_s23 + $0x138] sm:$0xff]  ;;  %v6229_v61 = vld [vmem:[%s12330_s23 + $0x120] sm:$0xff]  ;;  %v6231_v62 = vld [vmem:[%s12330_s23 + $0x130] sm:$0xff]  ;;  %v1215_v33 = vsel %vm1212_vm4, %v1213_v29, %v1214_v30 }
  0x32   : > { %680 = vmatprep.mubr.f32.mxu0 %v12304_v6  ;;  %769 = vmatprep.mubr.f32.mxu1 %v12304_v6  ;;  %v6226_v63 = vld [vmem:[%s12330_s23 + $0x108] sm:$0xff]  ;;  %v6228_v0 = vld [vmem:[%s12330_s23 + $0x118] sm:$0xff]  ;;  %v6225_v3 = vld [vmem:[%s12330_s23 + $0x100] sm:$0xff] }
  0x33   : > { %818 = vmatprep.subr.mxu0 %v555_v40  ;;  %907 = vmatprep.subr.mxu1 %v557_v41  ;;  %v6227_v4 = vld [vmem:[%s12330_s23 + $0x110] sm:$0xff]  ;;  %v6262_v5 = vld [vmem:[%s12330_s23 + $0x1e8] sm:$0xff]  ;;  %v6264_v7 = vld [vmem:[%s12330_s23 + $0x1f8] sm:$0xff]  ;;  %v1217_v40 = vsel %vm1212_vm4, %v1214_v30, %v1216_v34  ;;  %v1218_v41 = vrot.slane %v7618_v28, 3 }
  0x34   : > { %6211 = vmatmul.mubr.msk.f32.gmra.mxu0 %vm595_vm1, %v594_v44  ;;  %6215 = vmatmul.mubr.msk.f32.gmra.mxu1 %vm595_vm1, %v594_v44  ;;  %v6261_v10 = vld [vmem:[%s12330_s23 + $0x1e0] sm:$0xff]  ;;  %v6263_v11 = vld [vmem:[%s12330_s23 + $0x1f0] sm:$0xff]  ;;  %v6258_v12 = vld [vmem:[%s12330_s23 + $0x1c8] sm:$0xff] }
  0x35   : > { %819 = vmatpush1.msra.mxu0 %v554_v45  ;;  %908 = vmatpush1.msra.mxu1 %v556_v46  ;;  %v6260_v13 = vld [vmem:[%s12330_s23 + $0x1d8] sm:$0xff]  ;;  %v6257_v16 = vld [vmem:[%s12330_s23 + $0x1c0] sm:$0xff]  ;;  %v6259_v19 = vld [vmem:[%s12330_s23 + $0x1d0] sm:$0xff] }
  0x36   : > { %686 = vmatprep.mubr.f32.mxu0 %v12304_v6  ;;  %775 = vmatprep.mubr.f32.mxu1 %v12304_v6  ;;  %v6254_v20 = vld [vmem:[%s12330_s23 + $0x1a8] sm:$0xff]  ;;  %v6256_v21 = vld [vmem:[%s12330_s23 + $0x1b8] sm:$0xff]  ;;  %v6253_v24 = vld [vmem:[%s12330_s23 + $0x1a0] sm:$0xff] }
  0x37   : > { %820 = vmatprep.subr.mxu0 %v551_v47  ;;  %909 = vmatprep.subr.mxu1 %v553_v48  ;;  %v6255_v25 = vld [vmem:[%s12330_s23 + $0x1b0] sm:$0xff]  ;;  %v6250_v26 = vld [vmem:[%s12330_s23 + $0x188] sm:$0xff]  ;;  %v6252_v27 = vld [vmem:[%s12330_s23 + $0x198] sm:$0xff]  ;;  %v1219_v47 = vsel %vm1212_vm4, %v1216_v34, %v1218_v41 }
  0x38   : > { %6212 = vmatmul.mubr.msk.f32.gmra.mxu0 %vm595_vm1, %v593_v32  ;;  %6216 = vmatmul.mubr.msk.f32.gmra.mxu1 %vm595_vm1, %v593_v32  ;;  %v6249_v31 = vld [vmem:[%s12330_s23 + $0x180] sm:$0xff]  ;;  %v6251_v32 = vld [vmem:[%s12330_s23 + $0x190] sm:$0xff]  ;;  %v6284_v37 = vld [vmem:[%s12330_s23 + $0x258] sm:$0xff] }
  0x39   : > { %821 = vmatpush1.msra.mxu0 %v550_v49  ;;  %910 = vmatpush1.msra.mxu1 %v552_v50  ;;  %v6285_v35 = vld [vmem:[%s12330_s23 + $0x260] sm:$0xff]  ;;  %v6287_v36 = vld [vmem:[%s12330_s23 + $0x270] sm:$0xff]  ;;  %v6280_v46 = vld [vmem:[%s12330_s23 + $0x238] sm:$0xff] }
  0x3a   : > { %854 = vmatprep.mubr.f32.mxu0 %v12304_v6  ;;  %943 = vmatprep.mubr.f32.mxu1 %v12304_v6  ;;  %v6281_v44 = vld [vmem:[%s12330_s23 + $0x240] sm:$0xff]  ;;  %v6283_v45 = vld [vmem:[%s12330_s23 + $0x250] sm:$0xff]  ;;  %v6274_v50 = vld [vmem:[%s12330_s23 + $0x208] sm:$0xff] }
  0x3b   : > { %1025 = vmatprep.subr.mxu0 %v6238_v51  ;;  %1114 = vmatprep.subr.mxu1 %v6240_v52  ;;  %v6277_v48 = vld [vmem:[%s12330_s23 + $0x220] sm:$0xff]  ;;  %v6279_v49 = vld [vmem:[%s12330_s23 + $0x230] sm:$0xff]  ;;  %v6276_v51 = vld [vmem:[%s12330_s23 + $0x218] sm:$0xff] }
  0x3c   : > { %6217 = vmatmul.mubr.msk.f32.vlgmr.msra.gmra.mxu0 %vm595_vm1, %v7594_v17  ;;  %6221 = vmatmul.mubr.msk.f32.vlgmr.msra.gmra.mxu1 %vm595_vm1, %v7594_v17  ;;  %v6286_v17 = vld [vmem:[%s12330_s23 + $0x268] sm:$0xff]  ;;  %v6273_v52 = vld [vmem:[%s12330_s23 + $0x200] sm:$0xff] }
  0x3d   : > { %1026 = vmatpush1.msra.mxu0 %v6237_v53  ;;  %1115 = vmatpush1.msra.mxu1 %v6239_v54  ;;  %v6275_v53 = vld [vmem:[%s12330_s23 + $0x210] sm:$0xff] }
  0x3e   : > { %860 = vmatprep.mubr.f32.mxu0 %v12304_v6  ;;  %949 = vmatprep.mubr.f32.mxu1 %v12304_v6 }
  0x3f   : > { %1027 = vmatprep.subr.mxu0 %v6234_v55  ;;  %1116 = vmatprep.subr.mxu1 %v6236_v56 }
  0x40   : > { %6218 = vmatmul.mubr.msk.f32.gmra.mxu0 %vm595_vm1, %v7596_v18  ;;  %6222 = vmatmul.mubr.msk.f32.gmra.mxu1 %vm595_vm1, %v7596_v18  ;;  %v6288_v18 = vld [vmem:[%s12330_s23 + $0x278] sm:$0xff] }
  0x41   : > { %1028 = vmatpush1.msra.mxu0 %v6233_v57  ;;  %1117 = vmatpush1.msra.mxu1 %v6235_v58 }
  0x42   : > { %866 = vmatprep.mubr.f32.mxu0 %v12304_v6  ;;  %955 = vmatprep.mubr.f32.mxu1 %v12304_v6 }
  0x43   : > { %1029 = vmatprep.subr.mxu0 %v6230_v59  ;;  %1118 = vmatprep.subr.mxu1 %v6232_v60 }
  0x44   : > { %6219 = vmatmul.mubr.msk.f32.gmra.mxu0 %vm595_vm1, %v7606_v23  ;;  %6223 = vmatmul.mubr.msk.f32.gmra.mxu1 %vm595_vm1, %v7606_v23  ;;  %v6282_v23 = vld [vmem:[%s12330_s23 + $0x248] sm:$0xff] }
  0x45   : > { %1030 = vmatpush1.msra.mxu0 %v6229_v61  ;;  %1119 = vmatpush1.msra.mxu1 %v6231_v62 }
  0x46   : > { %872 = vmatprep.mubr.f32.mxu0 %v12304_v6  ;;  %961 = vmatprep.mubr.f32.mxu1 %v12304_v6 }
  0x47   : > { %1031 = vmatprep.subr.mxu0 %v6226_v63  ;;  %1120 = vmatprep.subr.mxu1 %v6228_v0 }
  0x48   : > { %6220 = vmatmul.mubr.msk.f32.gmra.mxu0 %vm595_vm1, %v7618_v28  ;;  %6224 = vmatmul.mubr.msk.f32.gmra.mxu1 %vm595_vm1, %v7618_v28  ;;  %v6278_v28 = vld [vmem:[%s12330_s23 + $0x228] sm:$0xff] }
  0x49   : > { %1032 = vmatpush1.msra.mxu0 %v6225_v3  ;;  %1121 = vmatpush1.msra.mxu1 %v6227_v4 }
  0x4a   : > { %1065 = vmatprep.mubr.f32.mxu0 %v12304_v6  ;;  %1154 = vmatprep.mubr.f32.mxu1 %v12304_v6 }
  0x4b   : > { %1252 = vmatprep.subr.mxu0 %v6262_v5  ;;  %1341 = vmatprep.subr.mxu1 %v6264_v7 }
  0x4c   : > { %6241 = vmatmul.mubr.msk.f32.vlgmr.msra.gmra.mxu0 %vm595_vm1, %v988_v8  ;;  %6245 = vmatmul.mubr.msk.f32.vlgmr.msra.gmra.mxu1 %vm595_vm1, %v988_v8 }
  0x4d   : > { %1253 = vmatpush1.msra.mxu0 %v6261_v10  ;;  %1342 = vmatpush1.msra.mxu1 %v6263_v11 }
  0x4e   : > { %1071 = vmatprep.mubr.f32.mxu0 %v12304_v6  ;;  %1160 = vmatprep.mubr.f32.mxu1 %v12304_v6 }
  0x4f   : > { %1254 = vmatprep.subr.mxu0 %v6258_v12  ;;  %1343 = vmatprep.subr.mxu1 %v6260_v13 }
  0x50   : > { %6242 = vmatmul.mubr.msk.f32.gmra.mxu0 %vm595_vm1, %v990_v14  ;;  %6246 = vmatmul.mubr.msk.f32.gmra.mxu1 %vm595_vm1, %v990_v14 }
  0x51   : > { %1255 = vmatpush1.msra.mxu0 %v6257_v16  ;;  %1344 = vmatpush1.msra.mxu1 %v6259_v19 }
  0x52   : > { %1077 = vmatprep.mubr.f32.mxu0 %v12304_v6  ;;  %1166 = vmatprep.mubr.f32.mxu1 %v12304_v6 }
  0x53   : > { %1256 = vmatprep.subr.mxu0 %v6254_v20  ;;  %1345 = vmatprep.subr.mxu1 %v6256_v21 }
  0x54   : > { %6243 = vmatmul.mubr.msk.f32.gmra.mxu0 %vm595_vm1, %v992_v22  ;;  %6247 = vmatmul.mubr.msk.f32.gmra.mxu1 %vm595_vm1, %v992_v22 }
  0x55   : > { %1257 = vmatpush1.msra.mxu0 %v6253_v24  ;;  %1346 = vmatpush1.msra.mxu1 %v6255_v25 }
  0x56   : > { %1083 = vmatprep.mubr.f32.mxu0 %v12304_v6  ;;  %1172 = vmatprep.mubr.f32.mxu1 %v12304_v6 }
  0x57   : > { %1258 = vmatprep.subr.mxu0 %v6250_v26  ;;  %1347 = vmatprep.subr.mxu1 %v6252_v27 }
  0x58   : > { %6244 = vmatmul.mubr.msk.f32.gmra.mxu0 %vm595_vm1, %v991_v15  ;;  %6248 = vmatmul.mubr.msk.f32.gmra.mxu1 %vm595_vm1, %v991_v15 }
  0x59   : > { %1259 = vmatpush1.msra.mxu0 %v6249_v31  ;;  %1348 = vmatpush1.msra.mxu1 %v6251_v32 }
  0x5a   : > { %1292 = vmatprep.mubr.f32.mxu0 %v12304_v6  ;;  %1381 = vmatprep.mubr.f32.mxu1 %v12304_v6 }
  0x5b   : > { %1479 = vmatprep.subr.mxu0 %v6286_v17  ;;  %1568 = vmatprep.subr.mxu1 %v6288_v18 }
  0x5c   : > { %6265 = vmatmul.mubr.msk.f32.vlgmr.msra.gmra.mxu0 %vm595_vm1, %v1215_v33  ;;  %6269 = vmatmul.mubr.msk.f32.vlgmr.msra.gmra.mxu1 %vm595_vm1, %v1215_v33  ;;  %v12306_v33 = vlaneseq }
  0x5d   : > { %1480 = vmatpush1.msra.mxu0 %v6285_v35  ;;  %1569 = vmatpush1.msra.mxu1 %v6287_v36 }
  0x5e   : > { %1298 = vmatprep.mubr.f32.mxu0 %v12304_v6  ;;  %1387 = vmatprep.mubr.f32.mxu1 %v12304_v6 }
  0x5f   : > { %1481 = vmatprep.subr.mxu0 %v6282_v23  ;;  %1570 = vmatprep.subr.mxu1 %v6284_v37  ;;  %v7972_v37 = vshrl.u32 %v12306_v33, 7 }
  0x60   : > { %6266 = vmatmul.mubr.msk.f32.gmra.mxu0 %vm595_vm1, %v1217_v40  ;;  %6270 = vmatmul.mubr.msk.f32.gmra.mxu1 %vm595_vm1, %v1217_v40 }
  0x61   : > { %1482 = vmatpush1.msra.mxu0 %v6281_v44  ;;  %1571 = vmatpush1.msra.mxu1 %v6283_v45  ;;  %v7386_v44 = vmov 1966171168  }
  0x62   : > { %1304 = vmatprep.mubr.f32.mxu0 %v12304_v6  ;;  %1393 = vmatprep.mubr.f32.mxu1 %v12304_v6  ;;  %v1726_v45 = vunpack.c.l.s4 %v7386_v44 }
  0x63   : > { %1483 = vmatprep.subr.mxu0 %v6278_v28  ;;  %1572 = vmatprep.subr.mxu1 %v6280_v46 }
  0x64   : > { %6267 = vmatmul.mubr.msk.f32.gmra.mxu0 %vm595_vm1, %v1219_v47  ;;  %6271 = vmatmul.mubr.msk.f32.gmra.mxu1 %vm595_vm1, %v1219_v47  ;;  %v7975_v47 = vsub.s32 0, %v7972_v37 }
  0x65   : > { %1484 = vmatpush1.msra.mxu0 %v6277_v48  ;;  %1573 = vmatpush1.msra.mxu1 %v6279_v49  ;;  %v12311_v48 = vsub.s32 2, %v7972_v37  ;;  %v7979_v49 = vsub.s32 1, %v7972_v37 }
  0x66   : > { %1310 = vmatprep.mubr.f32.mxu0 %v12304_v6  ;;  %1399 = vmatprep.mubr.f32.mxu1 %v12304_v6  ;;  %12340 = vst [vmem:[#allocation25_spill] sm:$0xff] %v7975_v47 }
  0x67   : > { %1485 = vmatprep.subr.mxu0 %v6274_v50  ;;  %1574 = vmatprep.subr.mxu1 %v6276_v51  ;;  %12341 = vst [vmem:[#allocation26_spill] sm:$0xff] %v7979_v49 }
  0x68   : > { %6268 = vmatmul.mubr.msk.f32.gmra.mxu0 %vm595_vm1, %v1218_v41  ;;  %6272 = vmatmul.mubr.msk.f32.gmra.mxu1 %vm595_vm1, %v1218_v41 }
  0x69   : > { %1486 = vmatpush1.msra.mxu0 %v6273_v52  ;;  %1575 = vmatpush1.msra.mxu1 %v6275_v53  ;;  %v1649_v52 = vld [vmem:[%s12280_s2] sm:$0xf]  ;;  %v1727_v53 = vunpack.c.0.s8 %v1726_v45 }
  0x6a   : > { %1519 = vmatprep.mubr.f32.mxu0 %v12304_v6  ;;  %1608 = vmatprep.mubr.f32.mxu1 %v12304_v6 }
  0x6c   : > { %6289 = vmatmul.mubr.msk.f32.vlgmr.msra.gmra.mxu0 %vm595_vm1, %v7645_v39  ;;  %6293 = vmatmul.mubr.msk.f32.vlgmr.msra.gmra.mxu1 %vm595_vm1, %v7645_v39 }
  0x6d   : > { %1525 = vmatprep.mubr.f32.mxu0 %v12304_v6  ;;  %1614 = vmatprep.mubr.f32.mxu1 %v12304_v6 }
  0x70   : > { %6290 = vmatmul.mubr.msk.f32.gmra.mxu0 %vm595_vm1, %v7656_v42  ;;  %6294 = vmatmul.mubr.msk.f32.gmra.mxu1 %vm595_vm1, %v7656_v42 }
  0x71   : > { %1531 = vmatprep.mubr.f32.mxu0 %v12304_v6  ;;  %1620 = vmatprep.mubr.f32.mxu1 %v12304_v6 }
  0x74   : > { %6291 = vmatmul.mubr.msk.f32.gmra.mxu0 %vm595_vm1, %v7660_v43  ;;  %6295 = vmatmul.mubr.msk.f32.gmra.mxu1 %vm595_vm1, %v7660_v43 }
  0x75   : > { %1537 = vmatprep.mubr.f32.mxu0 %v12304_v6  ;;  %1626 = vmatprep.mubr.f32.mxu1 %v12304_v6  ;;  %v1665_v6 = vsub.s32 3, %v7972_v37 }
  0x78   : > { %6292 = vmatmul.mubr.msk.f32.gmra.mxu0 %vm595_vm1, %v7642_v38  ;;  %6296 = vmatmul.mubr.msk.f32.gmra.mxu1 %vm595_vm1, %v7642_v38 }
  0xec   : > { %v7927_v39 = vpop.f32.mrf.mxu0  ;;  %v7929_v42 = vpop.f32.mrf.mxu1 }
  0xee   : > { %v7931_v54 = vpop.f32.mrf.mxu0  ;;  %v7933_v55 = vpop.f32.mrf.mxu1 }
  0xf0   : > { %v7935_v56 = vpop.f32.mrf.mxu0  ;;  %v7937_v43 = vpop.f32.mrf.mxu1 }
  0xf2   : > { %v7939_v57 = vpop.f32.mrf.mxu0  ;;  %v7941_v58 = vpop.f32.mrf.mxu1 }
  0xf4   : > { %v7943_v59 = vpop.f32.mrf.mxu0  ;;  %v7945_v60 = vpop.f32.mrf.mxu1 }
  0xf6   : > { %v7947_v38 = vpop.f32.mrf.mxu0  ;;  %v7949_v61 = vpop.f32.mrf.mxu1 }
  0xf8   : > { %v7951_v62 = vpop.f32.mrf.mxu0  ;;  %v7953_v63 = vpop.f32.mrf.mxu1 }
  0xfa   : > { %v7955_v0 = vpop.f32.mrf.mxu0  ;;  %v7957_v1 = vpop.f32.mrf.mxu1 }
  0xfb   : > { %12332 = vst [vmem:[#allocation17_spill] sm:$0xff] %v7955_v0  ;;  %12333 = vst [vmem:[#allocation18_spill] sm:$0xff] %v7957_v1  ;;  %v7998_v1 = vsub.s32 %v1727_v53, %v7972_v37  ;;  %v8000_v0 = vrot.slane %v1649_v52, %v1665_v6 }
  0xfc   : > { %v856_v2 = vpop.f32.mrf.mxu0  ;;  %v945_v3 = vpop.f32.mrf.mxu1 }
  0xfe   : > { %v858_v4 = vpop.f32.mrf.mxu0  ;;  %v947_v5 = vpop.f32.mrf.mxu1 }
 0x100   : > { %v862_v7 = vpop.f32.mrf.mxu0  ;;  %v951_v8 = vpop.f32.mrf.mxu1 }
 0x102   : > { %v864_v9 = vpop.f32.mrf.mxu0  ;;  %v953_v10 = vpop.f32.mrf.mxu1 }
 0x104   : > { %v868_v11 = vpop.f32.mrf.mxu0  ;;  %v957_v12 = vpop.f32.mrf.mxu1 }
 0x106   : > { %v870_v13 = vpop.f32.mrf.mxu0  ;;  %v959_v14 = vpop.f32.mrf.mxu1 }
 0x107   : > { %v871_v6 = vadd.f32 %v870_v13, %v7947_v38 }
 0x108   : > { %v874_v15 = vpop.f32.mrf.mxu0  ;;  %v963_v16 = vpop.f32.mrf.mxu1 }
 0x10a   : > { %v876_v19 = vpop.f32.mrf.mxu0  ;;  %v965_v20 = vpop.f32.mrf.mxu1 }
 0x10c   : > { %v1067_v21 = vpop.f32.mrf.mxu0  ;;  %v1156_v22 = vpop.f32.mrf.mxu1 }
 0x10e   : > { %v1069_v24 = vpop.f32.mrf.mxu0  ;;  %v1158_v25 = vpop.f32.mrf.mxu1 }
 0x110   : > { %v1073_v26 = vpop.f32.mrf.mxu0  ;;  %v1162_v27 = vpop.f32.mrf.mxu1 }
 0x112   : > { %v1075_v29 = vpop.f32.mrf.mxu0  ;;  %v1164_v30 = vpop.f32.mrf.mxu1 }
 0x114   : > { %v1079_v31 = vpop.f32.mrf.mxu0  ;;  %v1168_v32 = vpop.f32.mrf.mxu1 }
 0x116   : > { %v7959_v17 = vpop.f32.mrf.mxu0  ;;  %v7961_v18 = vpop.f32.mrf.mxu1 }
 0x117   : > { %12334 = vst [vmem:[#allocation19_spill] sm:$0xff] %v7959_v17  ;;  %12335 = vst [vmem:[#allocation20_spill] sm:$0xff] %v7961_v18  ;;  %v946_v18 = vadd.f32 %v945_v3, %v7929_v42  ;;  %v869_v42 = vadd.f32 %v868_v11, %v7943_v59 }
 0x118   : > { %v7963_v34 = vpop.f32.mrf.mxu0  ;;  %v7965_v35 = vpop.f32.mrf.mxu1 }
 0x119   : > { %12336 = vst [vmem:[#allocation21_spill] sm:$0xff] %v7963_v34  ;;  %12337 = vst [vmem:[#allocation22_spill] sm:$0xff] %v7965_v35  ;;  %v7993_v35 = vrot.slane %v1649_v52, %v7979_v49  ;;  %v857_v34 = vadd.f32 %v856_v2, %v7927_v39  ;;  %v952_v49 = vadd.f32 %v951_v8, %v7937_v43 }
 0x11a   : > { %v7967_v36 = vpop.f32.mrf.mxu0  ;;  %v7969_v23 = vpop.f32.mrf.mxu1  ;;  %v954_v39 = vadd.f32 %v953_v10, %v7941_v58  ;;  %v958_v2 = vadd.f32 %v957_v12, %v7945_v60  ;;  %v1181_v58 = vadd.f32 %v1156_v22, %v946_v18  ;;  %v1187_v13 = vadd.f32 %v1079_v31, %v869_v42 }
 0x11b   : > { %12338 = vst [vmem:[#allocation23_spill] sm:$0xff] %v7967_v36  ;;  %12339 = vst [vmem:[#allocation24_spill] sm:$0xff] %v7969_v23  ;;  %v7986_v23 = vrot.slane %v1649_v52, %v7975_v47  ;;  %v7990_v36 = vrot.slane %v1649_v52, %v12311_v48  ;;  %v859_v47 = vadd.f32 %v858_v4, %v7931_v54  ;;  %v12344_v4 = vld [vmem:[#allocation17_spill] sm:$0xff] }
 0x11c   : > { %v1294_v40 = vpop.f32.mrf.mxu0  ;;  %v1383_v41 = vpop.f32.mrf.mxu1  ;;  %12343 = vst [vmem:[#allocation28_spill] sm:$0xff] %v7993_v35  ;;  %v863_v48 = vadd.f32 %v862_v7, %v7935_v56  ;;  %v865_v35 = vadd.f32 %v864_v9, %v7939_v57  ;;  %v960_v54 = vadd.f32 %v959_v14, %v7949_v61  ;;  %v964_v56 = vadd.f32 %v963_v16, %v7953_v63 }
 0x11d   : > { %12342 = vst [vmem:[#allocation27_spill] sm:$0xff] %v7986_v23  ;;  %v948_v23 = vadd.f32 %v947_v5, %v7933_v55  ;;  %v875_v55 = vadd.f32 %v874_v15, %v7951_v62  ;;  %v877_v43 = vadd.f32 %v876_v19, %v12344_v4  ;;  %v12345_v5 = vld [vmem:[#allocation18_spill] sm:$0xff]  ;;  %v1179_v7 = vadd.f32 %v1067_v21, %v857_v34 }
 0x11e   : > { %v1296_v28 = vpop.f32.mrf.mxu0  ;;  %v1385_v46 = vpop.f32.mrf.mxu1  ;;  %v966_v57 = vadd.f32 %v965_v20, %v12345_v5  ;;  %v1180_v9 = vadd.f32 %v1069_v24, %v859_v47  ;;  %v1183_v10 = vadd.f32 %v1073_v26, %v863_v48  ;;  %v1185_v11 = vadd.f32 %v1162_v27, %v952_v49  ;;  %v12346_v63 = vld [vmem:[#allocation19_spill] sm:$0xff]  ;;  %v12347_v16 = vld [vmem:[#allocation20_spill] sm:$0xff] }
 0x11f   : > { %v1182_v60 = vadd.f32 %v1158_v25, %v948_v23  ;;  %v1184_v12 = vadd.f32 %v1075_v29, %v865_v35  ;;  %v1186_v38 = vadd.f32 %v1164_v30, %v954_v39  ;;  %v1189_v61 = vadd.f32 %v1168_v32, %v958_v2 }
 0x120   : > { %v1300_v50 = vpop.f32.mrf.mxu0  ;;  %v1389_v51 = vpop.f32.mrf.mxu1  ;;  %v1188_v15 = vadd.f32 %v12346_v63, %v871_v6  ;;  %v1190_v19 = vadd.f32 %v12347_v16, %v960_v54  ;;  %v1406_v20 = vadd.f32 %v1294_v40, %v1179_v7  ;;  %v1408_v21 = vadd.f32 %v1383_v41, %v1181_v58  ;;  %v12348_v22 = vld [vmem:[#allocation21_spill] sm:$0xff]  ;;  %v12349_v24 = vld [vmem:[#allocation22_spill] sm:$0xff] }
 0x121   : > { %v1191_v18 = vadd.f32 %v12348_v22, %v875_v55  ;;  %v1193_v25 = vadd.f32 %v12349_v24, %v964_v56  ;;  %v1407_v34 = vadd.f32 %v1296_v28, %v1180_v9  ;;  %v1409_v35 = vadd.f32 %v1385_v46, %v1182_v60 }
 0x122   : > { %v1302_v44 = vpop.f32.mrf.mxu0  ;;  %v1391_v33 = vpop.f32.mrf.mxu1  ;;  %v12350_v26 = vld [vmem:[#allocation23_spill] sm:$0xff]  ;;  %v12351_v29 = vld [vmem:[#allocation24_spill] sm:$0xff]  ;;  %v1410_v48 = vadd.f32 %v1300_v50, %v1183_v10  ;;  %v1412_v49 = vadd.f32 %v1389_v51, %v1185_v11 }
 0x123   : > { %v8025_v27 = vadd.f32 %v12350_v26, %v877_v43  ;;  %v8028_v30 = vadd.f32 %v12351_v29, %v966_v57  ;;  %v1411_v40 = vadd.f32 %v1302_v44, %v1184_v12  ;;  %v1413_v41 = vadd.f32 %v1391_v33, %v1186_v38  ;;  %v12353_v50 = vld [vmem:[#allocation28_spill] sm:$0xff] }
 0x124   : > { %v1306_v17 = vpop.f32.mrf.mxu0  ;;  %v1395_v45 = vpop.f32.mrf.mxu1  ;;  %v12352_v42 = vld [vmem:[#allocation27_spill] sm:$0xff] }
 0x125   : > { %v1414_v56 = vadd.f32 %v1306_v17, %v1187_v13  ;;  %v1416_v4 = vadd.f32 %v1395_v45, %v1189_v61 }
 0x126   : > { %v1308_v3 = vpop.f32.mrf.mxu0  ;;  %v1397_v53 = vpop.f32.mrf.mxu1 }
 0x127   : > { %v1415_v43 = vadd.f32 %v1308_v3, %v1188_v15  ;;  %v1417_v5 = vadd.f32 %v1397_v53, %v1190_v19 }
 0x128   : > { %v1312_v8 = vpop.f32.mrf.mxu0  ;;  %v1401_v59 = vpop.f32.mrf.mxu1 }
 0x129   : > { %v8034_v44 = vadd.f32 %v1312_v8, %v1191_v18  ;;  %v8036_v58 = vadd.f32 %v1401_v59, %v1193_v25 }
 0x12a   : > { %v8016_v14 = vpop.f32.mrf.mxu0  ;;  %v8018_v62 = vpop.f32.mrf.mxu1 }
 0x12c   : > { %v1521_v31 = vpop.f32.mrf.mxu0  ;;  %v1610_v32 = vpop.f32.mrf.mxu1 }
 0x12d   : > { %v1633_v23 = vadd.f32 %v1521_v31, %v1406_v20  ;;  %v1635_v47 = vadd.f32 %v1610_v32, %v1408_v21  ;;  %v12354_v20 = vlaneseq }
 0x12e   : > { %v1523_v52 = vpop.f32.mrf.mxu0  ;;  %v1612_v39 = vpop.f32.mrf.mxu1 }
 0x12f   : > { %v1671_v2 = vadd.f32 %v12352_v42, %v1633_v23  ;;  %v1673_v6 = vadd.f32 %v7990_v36, %v1635_v47  ;;  %v1634_v54 = vadd.f32 %v1523_v52, %v1407_v34  ;;  %v1636_v55 = vadd.f32 %v1612_v39, %v1409_v35 }
 0x130   : > { %v1527_v28 = vpop.f32.mrf.mxu0  ;;  %v1616_v46 = vpop.f32.mrf.mxu1  ;;  %vm8041_vm5 = vcmp.lt.s32.totalorder %v12354_v20, 448 }
 0x131   : > { %v1687_v57 = vmax.f32 %v1671_v2, 0.0  ;;  %v1689_v7 = vmax.f32 %v1673_v6, 0.0  ;;  %v1672_v51 = vadd.f32 %v12353_v50, %v1634_v54  ;;  %v1674_v33 = vadd.f32 %v8000_v0, %v1636_v55 }
 0x132   : > { %v1637_v9 = vadd.f32 %v1527_v28, %v1410_v48  ;;  %v1639_v60 = vadd.f32 %v1616_v46, %v1412_v49  ;;  %v1529_v10 = vpop.f32.mrf.mxu0  ;;  %v1618_v11 = vpop.f32.mrf.mxu1 }
 0x133   : > { %v1707_v17 = vrot.slane %v1687_v57, 1  ;;  %v1709_v45 = vrot.slane %v1689_v7, 1  ;;  %v1688_v3 = vmax.f32 %v1672_v51, 0.0  ;;  %v1690_v53 = vmax.f32 %v1674_v33, 0.0 }
 0x134   : > { %v1675_v12 = vadd.f32 %v12352_v42, %v1637_v9  ;;  %v1677_v38 = vadd.f32 %v7990_v36, %v1639_v60  ;;  %v1638_v13 = vadd.f32 %v1529_v10, %v1411_v40  ;;  %v1640_v61 = vadd.f32 %v1618_v11, %v1413_v41  ;;  %v1533_v63 = vpop.f32.mrf.mxu0  ;;  %v1622_v15 = vpop.f32.mrf.mxu1 }
 0x135   : > { %v1715_v8 = vmax.f32 %v1687_v57, %v1707_v17  ;;  %v1717_v16 = vmax.f32 %v1689_v7, %v1709_v45  ;;  %v1708_v59 = vrot.slane %v1688_v3, 1  ;;  %v1710_v19 = vrot.slane %v1690_v53, 1 }
 0x136   : > { %v1691_v22 = vmax.f32 %v1675_v12, 0.0  ;;  %v1693_v18 = vmax.f32 %v1677_v38, 0.0  ;;  %v1676_v24 = vadd.f32 %v12353_v50, %v1638_v13  ;;  %v1678_v25 = vadd.f32 %v8000_v0, %v1640_v61  ;;  %v1535_v54 = vpop.f32.mrf.mxu0  ;;  %v1624_v55 = vpop.f32.mrf.mxu1 }
 0x137   : > { %v1716_v26 = vmax.f32 %v1688_v3, %v1708_v59  ;;  %v1718_v29 = vmax.f32 %v1690_v53, %v1710_v19  ;;  %v1641_v31 = vadd.f32 %v1533_v63, %v1414_v56  ;;  %v1643_v32 = vadd.f32 %v1622_v15, %v1416_v4 }
 0x138   : > { %v1796_v34 = vrot.slane %v1691_v22, 1  ;;  %v1798_v35 = vrot.slane %v1693_v18, 1  ;;  %v1692_v23 = vmax.f32 %v1676_v24, 0.0  ;;  %v1694_v47 = vmax.f32 %v1678_v25, 0.0  ;;  %v1539_v12 = vpop.f32.mrf.mxu0  ;;  %v1628_v38 = vpop.f32.mrf.mxu1 }
 0x139   : > { %v1723_v48 = vcombine.low %v1715_v8, %v1716_v26  ;;  %v1759_v49 = vcombine.high %v1715_v8, %v1716_v26  ;;  %v1724_v40 = vcombine.low %v1717_v16, %v1718_v29  ;;  %v1760_v41 = vcombine.high %v1717_v16, %v1718_v29 }
 0x13a   : > { %v1804_v52 = vmax.f32 %v1691_v22, %v1796_v34  ;;  %v1806_v39 = vmax.f32 %v1693_v18, %v1798_v35  ;;  %v1797_v2 = vrot.slane %v1692_v23, 1  ;;  %v1799_v6 = vrot.slane %v1694_v47, 1 }
 0x13b   : > { %v1731_v28 = vrot.slane %v1723_v48, %v7998_v1  ;;  %v1767_v46 = vrot.slane %v1759_v49, %v7998_v1  ;;  %v1738_v56 = vrot.slane %v1724_v40, %v7998_v1  ;;  %v1774_v4 = vrot.slane %v1760_v41, %v7998_v1 }
 0x13c   : > { %v1805_v57 = vmax.f32 %v1692_v23, %v1797_v2  ;;  %v1807_v7 = vmax.f32 %v1694_v47, %v1799_v6  ;;  %v1679_v51 = vadd.f32 %v12352_v42, %v1641_v31  ;;  %v1681_v33 = vadd.f32 %v7990_v36, %v1643_v32  ;;  %v1541_v31 = vpop.f32.mrf.mxu0  ;;  %v1630_v32 = vpop.f32.mrf.mxu1 }
 0x13d   : > { %v1739_v9 = vcombine.low %v1731_v28, %v1738_v56  ;;  %v1775_v60 = vcombine.low %v1767_v46, %v1774_v4  ;;  %v1642_v10 = vadd.f32 %v1535_v54, %v1415_v43  ;;  %v1644_v11 = vadd.f32 %v1624_v55, %v1417_v5 }
 0x13e   : > { %v1812_v17 = vcombine.low %v1804_v52, %v1805_v57  ;;  %v1845_v45 = vcombine.high %v1804_v52, %v1805_v57  ;;  %v1813_v3 = vcombine.low %v1806_v39, %v1807_v7  ;;  %v1846_v53 = vcombine.high %v1806_v39, %v1807_v7 }
 0x13f   : > { %v1746_v13 = vrot.slane %v1739_v9, %v7998_v1  ;;  %v1782_v61 = vrot.slane %v1775_v60, %v7998_v1  ;;  %v1695_v63 = vmax.f32 %v1679_v51, 0.0  ;;  %v1697_v15 = vmax.f32 %v1681_v33, 0.0 }
 0x140   : > { %v1820_v8 = vrot.slane %v1812_v17, %v7998_v1  ;;  %v1853_v16 = vrot.slane %v1845_v45, %v7998_v1  ;;  %v1827_v59 = vrot.slane %v1813_v3, %v7998_v1  ;;  %v1860_v43 = vrot.slane %v1846_v53, %v7998_v1 }
 0x141   : > { %v1419_v5 = vadd.f32 %v8016_v14, %v8025_v27  ;;  %v1421_v19 = vadd.f32 %v8018_v62, %v8028_v30  ;;  %1752 = vst.msk [vmem:[#allocation4] ss:$8 sm:$0xf] %vm8041_vm5, %v1746_v13  ;;  %v1754_v22 = vcombine.high %v1746_v13, %v1746_v13  ;;  %1785 = vst.msk [vmem:[#allocation4 + $0x2] ss:$8 sm:$0xf] %vm8041_vm5, %v1782_v61 }
 0x142   : > { %v1787_v18 = vcombine.high %v1782_v61, %v1782_v61  ;;  %v1828_v24 = vcombine.low %v1820_v8, %v1827_v59  ;;  %v1861_v25 = vcombine.low %v1853_v16, %v1860_v43  ;;  %v1680_v26 = vadd.f32 %v12353_v50, %v1642_v10 }
 0x143   : > { %v1682_v29 = vadd.f32 %v8000_v0, %v1644_v11  ;;  %1757 = vst.msk [vmem:[#allocation4 + $0x1] ss:$8 sm:$0xf] %vm8041_vm5, %v1754_v22  ;;  %v1882_v14 = vrot.slane %v1695_v63, 1  ;;  %v1884_v62 = vrot.slane %v1697_v15, 1  ;;  %v1645_v27 = vadd.f32 %v1539_v12, %v8034_v44 }
 0x144   : > { %1790 = vst.msk [vmem:[#allocation4 + $0x3] ss:$8 sm:$0xf] %vm8041_vm5, %v1787_v18  ;;  %v1647_v30 = vadd.f32 %v1628_v38, %v8036_v58  ;;  %v1835_v34 = vrot.slane %v1828_v24, %v7998_v1  ;;  %v1868_v35 = vrot.slane %v1861_v25, %v7998_v1  ;;  %v1696_v23 = vmax.f32 %v1680_v26, 0.0 }
 0x145   : > { %v1698_v47 = vmax.f32 %v1682_v29, 0.0  ;;  %v1683_v48 = vadd.f32 %v12352_v42, %v1645_v27  ;;  %v1646_v40 = vadd.f32 %v1541_v31, %v1419_v5  ;;  %v1648_v41 = vadd.f32 %v1630_v32, %v1421_v19 }
 0x146   : > { %v1685_v49 = vadd.f32 %v7990_v36, %v1647_v30  ;;  %1838 = vst.msk [vmem:[#allocation4 + $0x4] ss:$8 sm:$0xf] %vm8041_vm5, %v1835_v34  ;;  %v1840_v52 = vcombine.high %v1835_v34, %v1835_v34  ;;  %1871 = vst.msk [vmem:[#allocation4 + $0x6] ss:$8 sm:$0xf] %vm8041_vm5, %v1868_v35  ;;  %v1873_v44 = vcombine.high %v1868_v35, %v1868_v35 }
 0x147   : > { %v1883_v58 = vrot.slane %v1696_v23, 1  ;;  %v1885_v39 = vrot.slane %v1698_v47, 1  ;;  %v1699_v2 = vmax.f32 %v1683_v48, 0.0  ;;  %v1684_v54 = vadd.f32 %v12353_v50, %v1646_v40 }
 0x148   : > { %v1701_v6 = vmax.f32 %v1685_v49, 0.0  ;;  %v1686_v42 = vadd.f32 %v8000_v0, %v1648_v41  ;;  %1843 = vst.msk [vmem:[#allocation4 + $0x5] ss:$8 sm:$0xf] %vm8041_vm5, %v1840_v52  ;;  %v1890_v36 = vmax.f32 %v1695_v63, %v1882_v14  ;;  %v1892_v55 = vmax.f32 %v1697_v15, %v1884_v62 }
 0x149   : > { %1876 = vst.msk [vmem:[#allocation4 + $0x7] ss:$8 sm:$0xf] %vm8041_vm5, %v1873_v44  ;;  %v1891_v28 = vmax.f32 %v1696_v23, %v1883_v58  ;;  %v1893_v46 = vmax.f32 %v1698_v47, %v1885_v39  ;;  %v1968_v56 = vrot.slane %v1699_v2, 1  ;;  %v1700_v57 = vmax.f32 %v1684_v54, 0.0  ;;  %v2265_v54 = vld [vmem:[%s12281_s3 + $0xf8] sm:$0xff] }
 0x14a   : > { %v1970_v4 = vrot.slane %v1701_v6, 1  ;;  %v1702_v7 = vmax.f32 %v1686_v42, 0.0  ;;  %v2264_v42 = vld [vmem:[%s12281_s3 + $0xf0] sm:$0xff]  ;;  %2458 = vmatprep.subr.mxu1 %v2265_v54  ;;  %v2297_v54 = vld [vmem:[%s12281_s3 + $0x1f8] sm:$0xff] }
 0x14b   : > { %v1898_v51 = vcombine.low %v1890_v36, %v1891_v28  ;;  %v1931_v33 = vcombine.high %v1890_v36, %v1891_v28  ;;  %v1899_v9 = vcombine.low %v1892_v55, %v1893_v46  ;;  %v1932_v50 = vcombine.high %v1892_v55, %v1893_v46  ;;  %v2263_v36 = vld [vmem:[%s12281_s3 + $0xe8] sm:$0xff]  ;;  %v2262_v55 = vld [vmem:[%s12281_s3 + $0xe0] sm:$0xff]  ;;  %2459 = vmatpush1.msra.mxu1 %v2264_v42  ;;  %v2261_v28 = vld [vmem:[%s12281_s3 + $0xd8] sm:$0xff] }
 0x14c   : > { %v1969_v60 = vrot.slane %v1700_v57, 1  ;;  %v1971_v0 = vrot.slane %v1702_v7, 1  ;;  %v1976_v3 = vmax.f32 %v1699_v2, %v1968_v56  ;;  %v1978_v53 = vmax.f32 %v1701_v6, %v1970_v4  ;;  %2460 = vmatprep.subr.mxu1 %v2263_v36  ;;  %v2260_v46 = vld [vmem:[%s12281_s3 + $0xd0] sm:$0xff]  ;;  %v6328_v56 = vld [vmem:[%s12281_s3 + $0x2f8] sm:$0xff]  ;;  %v2259_v4 = vld [vmem:[%s12281_s3 + $0xc8] sm:$0xff] }
 0x14d   : > { %v1906_v10 = vrot.slane %v1898_v51, %v7998_v1  ;;  %v1939_v11 = vrot.slane %v1931_v33, %v7998_v1  ;;  %v1913_v17 = vrot.slane %v1899_v9, %v7998_v1  ;;  %v1946_v45 = vrot.slane %v1932_v50, %v7998_v1  ;;  %2461 = vmatpush1.msra.mxu1 %v2262_v55  ;;  %v6326_v51 = vld [vmem:[%s12281_s3 + $0x2e8] sm:$0xff]  ;;  %v6325_v33 = vld [vmem:[%s12281_s3 + $0x2e0] sm:$0xff]  ;;  %v2257_v9 = vld [vmem:[%s12281_s3 + $0xb8] sm:$0xff] }
 0x14e   : > { %v1977_v12 = vmax.f32 %v1700_v57, %v1969_v60  ;;  %v1979_v38 = vmax.f32 %v1702_v7, %v1971_v0  ;;  %2381 = vmatprep.subr.mxu0 %v6328_v56  ;;  %v6327_v57 = vld [vmem:[%s12281_s3 + $0x2f0] sm:$0xff]  ;;  %2462 = vmatprep.subr.mxu1 %v2261_v28  ;;  %v2258_v7 = vld [vmem:[%s12281_s3 + $0xc0] sm:$0xff]  ;;  %v6324_v50 = vld [vmem:[%s12281_s3 + $0x2d8] sm:$0xff] }
 0x14f   : > { %v1914_v13 = vcombine.low %v1906_v10, %v1913_v17  ;;  %v1947_v61 = vcombine.low %v1939_v11, %v1946_v45  ;;  %2382 = vmatpush1.msra.mxu0 %v6327_v57  ;;  %2463 = vmatpush1.msra.mxu1 %v2260_v46  ;;  %v2256_v60 = vld [vmem:[%s12281_s3 + $0xb0] sm:$0xff]  ;;  %v6322_v10 = vld [vmem:[%s12281_s3 + $0x2c8] sm:$0xff]  ;;  %v6321_v17 = vld [vmem:[%s12281_s3 + $0x2c0] sm:$0xff] }
 0x150   : > { %v1984_v63 = vcombine.low %v1976_v3, %v1977_v12  ;;  %v1985_v15 = vcombine.low %v1978_v53, %v1979_v38  ;;  %v2019_v8 = vld [vmem:[#allocation4 + $0x10] sm:$0xff]  ;;  %v2017_v16 = vld [vmem:[#allocation4] sm:$0xff]  ;;  %v2018_v14 = vld [vmem:[#allocation4 + $0x8] sm:$0xff]  ;;  %2383 = vmatprep.subr.mxu0 %v6326_v51  ;;  %2464 = vmatprep.subr.mxu1 %v2259_v4 }
 0x151   : > { %v1921_v59 = vrot.slane %v1914_v13, %v7998_v1  ;;  %v1954_v43 = vrot.slane %v1947_v61, %v7998_v1  ;;  %2125 = vrot.lane.b32.xlu1 %v2019_v8, %s7387_s21  ;;  %2027 = vrot.lane.b32.xlu0 %v2017_v16, %s7387_s21  ;;  %v2020_v27 = vld [vmem:[#allocation4 + $0x18] sm:$0xff]  ;;  %v6323_v0 = vld [vmem:[%s12281_s3 + $0x2d0] sm:$0xff]  ;;  %v2255_v11 = vld [vmem:[%s12281_s3 + $0xa8] sm:$0xff] }
 0x152   : > { %v1992_v5 = vrot.slane %v1984_v63, %v7998_v1  ;;  %v1999_v19 = vrot.slane %v1985_v15, %v7998_v1  ;;  %2384 = vmatpush1.msra.mxu0 %v6325_v33  ;;  %2465 = vmatpush1.msra.mxu1 %v2258_v7  ;;  %v2254_v45 = vld [vmem:[%s12281_s3 + $0xa0] sm:$0xff]  ;;  %v6320_v3 = vld [vmem:[%s12281_s3 + $0x2b8] sm:$0xff]  ;;  %v6319_v12 = vld [vmem:[%s12281_s3 + $0x2b0] sm:$0xff] }
 0x153   : > { %1924 = vst.msk [vmem:[#allocation4 + $0x20] ss:$8 sm:$0xf] %vm8041_vm5, %v1921_v59  ;;  %v1926_v22 = vcombine.high %v1921_v59, %v1921_v59  ;;  %1957 = vst.msk [vmem:[#allocation4 + $0x22] ss:$8 sm:$0xf] %vm8041_vm5, %v1954_v43  ;;  %v1959_v18 = vcombine.high %v1954_v43, %v1954_v43  ;;  %2385 = vmatprep.subr.mxu0 %v6324_v50  ;;  %2466 = vmatprep.subr.mxu1 %v2257_v9 }
 0x154   : > { %v2000_v24 = vcombine.low %v1992_v5, %v1999_v19  ;;  %2386 = vmatpush1.msra.mxu0 %v6323_v0  ;;  %2467 = vmatpush1.msra.mxu1 %v2256_v60  ;;  %v2253_v53 = vld [vmem:[%s12281_s3 + $0x98] sm:$0xff]  ;;  %v2252_v38 = vld [vmem:[%s12281_s3 + $0x90] sm:$0xff]  ;;  %v6318_v13 = vld [vmem:[%s12281_s3 + $0x2a8] sm:$0xff] }
 0x155   : > { %1929 = vst.msk [vmem:[#allocation4 + $0x21] ss:$8 sm:$0xf] %vm8041_vm5, %v1926_v22  ;;  %1962 = vst.msk [vmem:[#allocation4 + $0x23] ss:$8 sm:$0xf] %vm8041_vm5, %v1959_v18  ;;  %2387 = vmatprep.subr.mxu0 %v6322_v10  ;;  %2468 = vmatprep.subr.mxu1 %v2255_v11 }
 0x156   : > { %v2007_v25 = vrot.slane %v2000_v24, %v7998_v1  ;;  %2388 = vmatpush1.msra.mxu0 %v6321_v17  ;;  %2469 = vmatpush1.msra.mxu1 %v2254_v45  ;;  %v2251_v61 = vld [vmem:[%s12281_s3 + $0x88] sm:$0xff]  ;;  %v6317_v63 = vld [vmem:[%s12281_s3 + $0x2a0] sm:$0xff]  ;;  %v6315_v59 = vld [vmem:[%s12281_s3 + $0x290] sm:$0xff] }
 0x157   : > { %2389 = vmatprep.subr.mxu0 %v6320_v3  ;;  %2470 = vmatprep.subr.mxu1 %v2253_v53  ;;  %v2250_v15 = vld [vmem:[%s12281_s3 + $0x80] sm:$0xff]  ;;  %v2248_v43 = vld [vmem:[%s12281_s3 + $0x70] sm:$0xff]  ;;  %v6314_v5 = vld [vmem:[%s12281_s3 + $0x288] sm:$0xff] }
 0x158   : > { %2010 = vst.msk [vmem:[#allocation4 + $0x24] ss:$8 sm:$0xf] %vm8041_vm5, %v2007_v25  ;;  %v2012_v26 = vcombine.high %v2007_v25, %v2007_v25  ;;  %2390 = vmatpush1.msra.mxu0 %v6319_v12  ;;  %2471 = vmatpush1.msra.mxu1 %v2252_v38  ;;  %v2247_v19 = vld [vmem:[%s12281_s3 + $0x68] sm:$0xff]  ;;  %v6313_v22 = vld [vmem:[%s12281_s3 + $0x280] sm:$0xff]  ;;  %v6312_v24 = vld [vmem:[%s12281_s3 + $0x278] sm:$0xff] }
 0x159   : > { %2391 = vmatprep.subr.mxu0 %v6318_v13  ;;  %2472 = vmatprep.subr.mxu1 %v2251_v61  ;;  %v2246_v18 = vld [vmem:[%s12281_s3 + $0x60] sm:$0xff]  ;;  %v2245_v25 = vld [vmem:[%s12281_s3 + $0x58] sm:$0xff]  ;;  %v6299_v42 = vld [vmem:[%s12281_s3 + $0x210] sm:$0xff] }
 0x15a   : > { %2015 = vst.msk [vmem:[#allocation4 + $0x25] ss:$8 sm:$0xf] %vm8041_vm5, %v2012_v26  ;;  %2392 = vmatpush1.msra.mxu0 %v6317_v63  ;;  %2473 = vmatpush1.msra.mxu1 %v2250_v15  ;;  %v6311_v26 = vld [vmem:[%s12281_s3 + $0x270] sm:$0xff]  ;;  %v6298_v55 = vld [vmem:[%s12281_s3 + $0x208] sm:$0xff]  ;;  %v6297_v46 = vld [vmem:[%s12281_s3 + $0x200] sm:$0xff] }
 0x15b   : > { %v2296_v36 = vld [vmem:[%s12281_s3 + $0x1f0] sm:$0xff]  ;;  %v2295_v28 = vld [vmem:[%s12281_s3 + $0x1e8] sm:$0xff]  ;;  %v2294_v56 = vld [vmem:[%s12281_s3 + $0x1e0] sm:$0xff]  ;;  %vm2091_vm5 = vcmask 652800  }
 0x15c   : > { %v6360_v4 = vld [vmem:[%s12281_s3 + $0x3f8] sm:$0xff]  ;;  %v6359_v7 = vld [vmem:[%s12281_s3 + $0x3f0] sm:$0xff]  ;;  %v6358_v33 = vld [vmem:[%s12281_s3 + $0x3e8] sm:$0xff] }
 0x15d   : > { %v2293_v57 = vld [vmem:[%s12281_s3 + $0x1d8] sm:$0xff]  ;;  %v2292_v51 = vld [vmem:[%s12281_s3 + $0x1d0] sm:$0xff]  ;;  %v2291_v9 = vld [vmem:[%s12281_s3 + $0x1c8] sm:$0xff] }
 0x15e   : > { %v6357_v50 = vld [vmem:[%s12281_s3 + $0x3e0] sm:$0xff]  ;;  %v6356_v0 = vld [vmem:[%s12281_s3 + $0x3d8] sm:$0xff]  ;;  %v6355_v11 = vld [vmem:[%s12281_s3 + $0x3d0] sm:$0xff] }
 0x15f   : > { %v2290_v60 = vld [vmem:[%s12281_s3 + $0x1c0] sm:$0xff]  ;;  %v2289_v10 = vld [vmem:[%s12281_s3 + $0x1b8] sm:$0xff]  ;;  %v2288_v17 = vld [vmem:[%s12281_s3 + $0x1b0] sm:$0xff] }
 0x160   : > { %v6354_v45 = vld [vmem:[%s12281_s3 + $0x3c8] sm:$0xff]  ;;  %v2286_v53 = vld [vmem:[%s12281_s3 + $0x1a0] sm:$0xff]  ;;  %v2285_v12 = vld [vmem:[%s12281_s3 + $0x198] sm:$0xff] }
 0x161   : > { %v2023_v29 = vld [vmem:[#allocation4 + $0x30] sm:$0x3f]  ;;  %v2021_v31 = vld [vmem:[#allocation4 + $0x20] sm:$0x3f]  ;;  %v2022_v32 = vld [vmem:[#allocation4 + $0x28] sm:$0x3f] }
 0x162   : > { %2127 = vrot.lane.b32.xlu1 %v2023_v29, %s7387_s21  ;;  %2029 = vrot.lane.b32.xlu0 %v2021_v31, %s7387_s21  ;;  %v2024_v62 = vld [vmem:[#allocation4 + $0x38] sm:$0x3f]  ;;  %v2287_v3 = vld [vmem:[%s12281_s3 + $0x1a8] sm:$0xff]  ;;  %v2284_v38 = vld [vmem:[%s12281_s3 + $0x190] sm:$0xff] }
 0x163   : > { %v2283_v13 = vld [vmem:[%s12281_s3 + $0x188] sm:$0xff]  ;;  %v2282_v61 = vld [vmem:[%s12281_s3 + $0x180] sm:$0xff]  ;;  %v2281_v63 = vld [vmem:[%s12281_s3 + $0x178] sm:$0xff] }
 0x164   : > { %v2280_v15 = vld [vmem:[%s12281_s3 + $0x170] sm:$0xff] }
 0x166   : > { %2075 = vrot.lane.b32.xlu1 %v2022_v32, %s7387_s21  ;;  %2073 = vrot.lane.b32.xlu0 %v2018_v14, %s7387_s21 }
 0x16a   : > { %2165 = vrot.lane.b32.xlu1 %v2024_v62, %s7387_s21  ;;  %2163 = vrot.lane.b32.xlu0 %v2020_v27, %s7387_s21 }
 0x1c3   : > { %v2126_v21 = vpop.permute.xlu1 %2125  ;;  %v2028_v30 = vpop.permute.xlu0 %2027 }
 0x1c4   : > { %v2131_v34 = vmax.f32 %v2019_v8, %v2126_v21  ;;  %v2033_v35 = vmax.f32 %v2017_v16, %v2028_v30  ;;  %v6316_v8 = vld [vmem:[%s12281_s3 + $0x298] sm:$0xff]  ;;  %v6307_v30 = vld [vmem:[%s12281_s3 + $0x250] sm:$0xff] }
 0x1c5   : > { %v2249_v16 = vld [vmem:[%s12281_s3 + $0x78] sm:$0xff]  ;;  %2393 = vmatprep.subr.mxu0 %v6316_v8 }
 0x1c6   : > { %2041 = vrot.lane.b32.xlu0 %v2033_v35, %s7387_s21  ;;  %2036 = vst.msk [vmem:[#allocation2] sm:$0xff] %vm2035_vm6, %v2033_v35  ;;  %2133 = vst.msk [vmem:[#allocation2 + $0x8] sm:$0xff] %vm2035_vm6, %v2131_v34  ;;  %2474 = vmatprep.subr.mxu1 %v2249_v16  ;;  %v2241_v21 = vld [vmem:[%s12281_s3 + $0x38] sm:$0xff] }
 0x1c7   : > { %2394 = vmatpush1.msra.mxu0 %v6315_v59  ;;  %2475 = vmatpush1.msra.mxu1 %v2248_v43 }
 0x1c8   : > { %2395 = vmatprep.subr.mxu0 %v6314_v5  ;;  %2476 = vmatprep.subr.mxu1 %v2247_v19 }
 0x1c9   : > { %2396 = vmatpush1.msra.mxu0 %v6313_v22  ;;  %2477 = vmatpush1.msra.mxu1 %v2246_v18 }
 0x1ca   : > { %2051 = vrot.lane.b32.xlu0 %v2033_v35, %s7388_s20  ;;  %2397 = vmatprep.subr.mxu0 %v6312_v24 }
 0x1cb   : > { %2478 = vmatprep.subr.mxu1 %v2245_v25  ;;  %2398 = vmatpush1.msra.mxu0 %v6311_v26 }
 0x1ce   : > { %2061 = vrot.lane.b32.xlu0 %v2033_v35, %s7389_s30  ;;  %v6306_v35 = vld [vmem:[%s12281_s3 + $0x248] sm:$0xff] }
 0x1d2   : > { %2137 = vrot.lane.b32.xlu0 %v2131_v34, %s7387_s21 }
 0x1d4   : > { %v2128_v23 = vpop.permute.xlu1 %2127  ;;  %v2030_v47 = vpop.permute.xlu0 %2029 }
 0x1d5   : > { %v2132_v48 = vmax.f32 %v2023_v29, %v2128_v23  ;;  %v2034_v49 = vmax.f32 %v2021_v31, %v2030_v47  ;;  %v2244_v29 = vld [vmem:[%s12281_s3 + $0x50] sm:$0xff]  ;;  %v6310_v31 = vld [vmem:[%s12281_s3 + $0x268] sm:$0xff]  ;;  %v6305_v47 = vld [vmem:[%s12281_s3 + $0x240] sm:$0xff] }
 0x1d6   : > { %2479 = vmatpush1.msra.mxu1 %v2244_v29  ;;  %2399 = vmatprep.subr.mxu0 %v6310_v31  ;;  %v2239_v23 = vld [vmem:[%s12281_s3 + $0x28] sm:$0xff] }
 0x1d7   : > { %2043 = vrot.lane.b32.xlu1 %v2034_v49, %s7387_s21  ;;  %2038 = vst.msk [vmem:[#allocation2 + $0x10] sm:$0x3f] %vm2037_vm7, %v2034_v49  ;;  %2134 = vst.msk [vmem:[#allocation2 + $0x18] sm:$0x3f] %vm2037_vm7, %v2132_v48  ;;  %vm2109_vm7 = vcmask 917248  }
 0x1d8   : > { %v2074_v40 = vpop.permute.xlu0 %2073  ;;  %v2076_v52 = vpop.permute.xlu1 %2075 }
 0x1d9   : > { %v2079_v41 = vmax.f32 %v2018_v14, %v2074_v40  ;;  %v2080_v44 = vmax.f32 %v2022_v32, %v2076_v52  ;;  %v2243_v32 = vld [vmem:[%s12281_s3 + $0x48] sm:$0xff]  ;;  %v6309_v14 = vld [vmem:[%s12281_s3 + $0x260] sm:$0xff]  ;;  %v2237_v40 = vld [vmem:[%s12281_s3 + $0x18] sm:$0xff] }
 0x1da   : > { %2480 = vmatprep.subr.mxu1 %v2243_v32  ;;  %2400 = vmatpush1.msra.mxu0 %v6309_v14  ;;  %v2236_v52 = vld [vmem:[%s12281_s3 + $0x10] sm:$0xff] }
 0x1db   : > { %2053 = vrot.lane.b32.xlu1 %v2034_v49, %s7388_s20  ;;  %2083 = vrot.lane.b32.xlu0 %v2079_v41, %s12315_s18 }
 0x1dc   : > { %v2164_v58 = vpop.permute.xlu0 %2163  ;;  %v2166_v2 = vpop.permute.xlu1 %2165 }
 0x1dd   : > { %v2169_v39 = vmax.f32 %v2020_v27, %v2164_v58  ;;  %v2170_v6 = vmax.f32 %v2024_v62, %v2166_v2  ;;  %v2242_v62 = vld [vmem:[%s12281_s3 + $0x40] sm:$0xff]  ;;  %v6308_v27 = vld [vmem:[%s12281_s3 + $0x258] sm:$0xff]  ;;  %v2235_v58 = vld [vmem:[%s12281_s3 + $0x8] sm:$0xff] }
 0x1de   : > { %2481 = vmatpush1.msra.mxu1 %v2242_v62  ;;  %2401 = vmatprep.subr.mxu0 %v6308_v27  ;;  %v2234_v2 = vld [vmem:[%s12281_s3] sm:$0xff] }
 0x1df   : > { %2063 = vrot.lane.b32.xlu1 %v2034_v49, %s7389_s30  ;;  %2145 = vrot.lane.b32.xlu0 %v2131_v34, %s7388_s20  ;;  %v6304_v49 = vld [vmem:[%s12281_s3 + $0x238] sm:$0xff] }
 0x1e0   : > { %2482 = vmatprep.subr.mxu1 %v2241_v21  ;;  %2402 = vmatpush1.msra.mxu0 %v6307_v30  ;;  %v6353_v21 = vld [vmem:[%s12281_s3 + $0x3c0] sm:$0xff]  ;;  %v2279_v30 = vld [vmem:[%s12281_s3 + $0x168] sm:$0xff] }
 0x1e1   : > { %2403 = vmatprep.subr.mxu0 %v6306_v35  ;;  %v2278_v35 = vld [vmem:[%s12281_s3 + $0x160] sm:$0xff] }
 0x1e2   : > { %2404 = vmatpush1.msra.mxu0 %v6305_v47  ;;  %v2277_v47 = vld [vmem:[%s12281_s3 + $0x158] sm:$0xff] }
 0x1e3   : > { %2139 = vrot.lane.b32.xlu1 %v2132_v48, %s7387_s21  ;;  %2093 = vrot.lane.b32.xlu0 %v2079_v41, %s7391_s16  ;;  %s540_s21 = scalar_lea.vmem [#allocation8], %s539_s26 }
 0x1e4   : > { %2405 = vmatprep.subr.mxu0 %v6304_v49 }
 0x1e7   : > { %2085 = vrot.lane.b32.xlu1 %v2080_v44, %s12315_s18  ;;  %2153 = vrot.lane.b32.xlu0 %v2131_v34, %s7389_s30  ;;  %v2240_v34 = vld [vmem:[%s12281_s3 + $0x30] sm:$0xff] }
 0x1e8   : > { %2483 = vmatpush1.msra.mxu1 %v2240_v34  ;;  %v6352_v34 = vld [vmem:[%s12281_s3 + $0x3b8] sm:$0xff] }
 0x1e9   : > { %2484 = vmatprep.subr.mxu1 %v2239_v23  ;;  %v6351_v23 = vld [vmem:[%s12281_s3 + $0x3b0] sm:$0xff] }
 0x1eb   : > { %2147 = vrot.lane.b32.xlu1 %v2132_v48, %s7388_s20  ;;  %2103 = vrot.lane.b32.xlu0 %v2079_v41, %s12316_s17 }
 0x1ef   : > { %2095 = vrot.lane.b32.xlu1 %v2080_v44, %s7391_s16  ;;  %2173 = vrot.lane.b32.xlu0 %v2169_v39, %s12315_s18 }
 0x1f3   : > { %2155 = vrot.lane.b32.xlu1 %v2132_v48, %s7389_s30  ;;  %2113 = vrot.lane.b32.xlu0 %v2079_v41, %s7393_s22  ;;  %v2238_v48 = vld [vmem:[%s12281_s3 + $0x20] sm:$0xff]  ;;  %v6303_v41 = vld [vmem:[%s12281_s3 + $0x230] sm:$0xff] }
 0x1f4   : > { %2485 = vmatpush1.msra.mxu1 %v2238_v48  ;;  %2406 = vmatpush1.msra.mxu0 %v6303_v41  ;;  %v2276_v41 = vld [vmem:[%s12281_s3 + $0x150] sm:$0xff] }
 0x1f5   : > { %2486 = vmatprep.subr.mxu1 %v2237_v40  ;;  %v6350_v40 = vld [vmem:[%s12281_s3 + $0x3a8] sm:$0xff] }
 0x1f6   : > { %2487 = vmatpush1.msra.mxu1 %v2236_v52  ;;  %v6349_v52 = vld [vmem:[%s12281_s3 + $0x3a0] sm:$0xff] }
 0x1f7   : > { %2105 = vrot.lane.b32.xlu1 %v2080_v44, %s12316_s17  ;;  %2181 = vrot.lane.b32.xlu0 %v2169_v39, %s7391_s16  ;;  %v6301_v39 = vld [vmem:[%s12281_s3 + $0x220] sm:$0xff] }
 0x1f8   : > { %2488 = vmatprep.subr.mxu1 %v2235_v58  ;;  %v6348_v58 = vld [vmem:[%s12281_s3 + $0x398] sm:$0xff] }
 0x1f9   : > { %2489 = vmatpush1.msra.mxu1 %v2234_v2 }
 0x1fa   : > { %2490 = vmatprep.subr.mxu1 %v2297_v54  ;;  %v6347_v54 = vld [vmem:[%s12281_s3 + $0x390] sm:$0xff] }
 0x1fb   : > { %2175 = vrot.lane.b32.xlu1 %v2170_v6, %s12315_s18  ;;  %2491 = vmatpush2.msra.mxu1 %v2296_v36  ;;  %v6346_v36 = vld [vmem:[%s12281_s3 + $0x388] sm:$0xff]  ;;  %s6132_s18 = sshll.u32 %s540_s21, 4  ;;  %s6133_s18 = int_to_ptr.vmem [resolvable:$true] %s6132_s18 }
 0x1fc   : > { %2492 = vmatprep.subr.mxu1 %v2295_v28  ;;  %v6345_v28 = vld [vmem:[%s12281_s3 + $0x380] sm:$0xff]  ;;  %s7323_s27 = scalar_lea.vmem %s6133_s18, 16 }
 0x1fd   : > { %2493 = vmatpush2.msra.mxu1 %v2294_v56  ;;  %p7324_p11 = scmp.ne.s32.totalorder %s6133_s18, %s7323_s27 }
 0x1fe   : > { %2494 = vmatprep.subr.mxu1 %v2293_v57 }
 0x1ff   : > { %2115 = vrot.lane.b32.xlu1 %v2080_v44, %s7393_s22  ;;  %v6302_v44 = vld [vmem:[%s12281_s3 + $0x228] sm:$0xff]  ;;  %2495 = vmatpush2.msra.mxu1 %v2292_v51  ;;  %v2270_v51 = vld [vmem:[%s12281_s3 + $0x120] sm:$0xff]  ;;  %p7325_p12 = pnand %p7324_p11, %p7524_p5 }
 0x200   : > { %2407 = vmatprep.subr.mxu0 %v6302_v44  ;;  %2496 = vmatprep.subr.mxu1 %v2291_v9  ;;  %v2275_v44 = vld [vmem:[%s12281_s3 + $0x148] sm:$0xff] }
 0x201   : > { %2408 = vmatpush1.msra.mxu0 %v6301_v39  ;;  %2497 = vmatpush2.msra.mxu1 %v2290_v60  ;;  %v2269_v60 = vld [vmem:[%s12281_s3 + $0x118] sm:$0xff]  ;;  %p7326_p13 = pneg %p7325_p12 }
 0x202   : > { %2498 = vmatprep.subr.mxu1 %v2289_v10 }
 0x203   : > { %2183 = vrot.lane.b32.xlu1 %v2170_v6, %s7391_s16  ;;  %v6300_v6 = vld [vmem:[%s12281_s3 + $0x218] sm:$0xff]  ;;  %2499 = vmatpush2.msra.mxu1 %v2288_v17  ;;  %v6341_v17 = vld [vmem:[%s12281_s3 + $0x360] sm:$0xff]  ;;  %s12362_s16 = smov 64  }
 0x204   : > { %2409 = vmatprep.subr.mxu0 %v6300_v6  ;;  %2500 = vmatprep.subr.mxu1 %v2287_v3  ;;  %v2274_v6 = vld [vmem:[%s12281_s3 + $0x140] sm:$0xff]  ;;  %v6340_v3 = vld [vmem:[%s12281_s3 + $0x358] sm:$0xff] }
 0x205   : > { %2410 = vmatpush1.msra.mxu0 %v6299_v42  ;;  %2501 = vmatpush2.msra.mxu1 %v2286_v53  ;;  %v2273_v42 = vld [vmem:[%s12281_s3 + $0x138] sm:$0xff]  ;;  %v2266_v53 = vld [vmem:[%s12281_s3 + $0x100] sm:$0xff] }
 0x206   : > { %2411 = vmatprep.subr.mxu0 %v6298_v55  ;;  %2502 = vmatprep.subr.mxu1 %v2285_v12  ;;  %v2272_v55 = vld [vmem:[%s12281_s3 + $0x130] sm:$0xff] }
 0x207   : > { %2412 = vmatpush1.msra.mxu0 %v6297_v46  ;;  %2503 = vmatpush2.msra.mxu1 %v2284_v38  ;;  %v2271_v46 = vld [vmem:[%s12281_s3 + $0x128] sm:$0xff]  ;;  %v6339_v38 = vld [vmem:[%s12281_s3 + $0x350] sm:$0xff] }
 0x208   : > { %2413 = vmatprep.subr.mxu0 %v6360_v4  ;;  %2504 = vmatprep.subr.mxu1 %v2283_v13  ;;  %v6338_v13 = vld [vmem:[%s12281_s3 + $0x348] sm:$0xff] }
 0x209   : > { %2414 = vmatpush2.msra.mxu0 %v6359_v7  ;;  %2505 = vmatpush2.msra.mxu1 %v2282_v61  ;;  %v6344_v7 = vld [vmem:[%s12281_s3 + $0x378] sm:$0xff]  ;;  %v6337_v61 = vld [vmem:[%s12281_s3 + $0x340] sm:$0xff] }
 0x20a   : > { %2415 = vmatprep.subr.mxu0 %v6358_v33  ;;  %2506 = vmatprep.subr.mxu1 %v2281_v63  ;;  %v6343_v33 = vld [vmem:[%s12281_s3 + $0x370] sm:$0xff]  ;;  %v6336_v63 = vld [vmem:[%s12281_s3 + $0x338] sm:$0xff] }
 0x20b   : > { %2416 = vmatpush2.msra.mxu0 %v6357_v50  ;;  %2507 = vmatpush2.msra.mxu1 %v2280_v15  ;;  %v6335_v15 = vld [vmem:[%s12281_s3 + $0x330] sm:$0xff] }
 0x20c   : > { %2417 = vmatprep.subr.mxu0 %v6356_v0  ;;  %2508 = vmatprep.subr.mxu1 %v2279_v30  ;;  %v6342_v0 = vld [vmem:[%s12281_s3 + $0x368] sm:$0xff] }
 0x20d   : > { %2418 = vmatpush2.msra.mxu0 %v6355_v11  ;;  %2509 = vmatpush2.msra.mxu1 %v2278_v35  ;;  %v2268_v11 = vld [vmem:[%s12281_s3 + $0x110] sm:$0xff] }
 0x20e   : > { %2419 = vmatprep.subr.mxu0 %v6354_v45  ;;  %2510 = vmatprep.subr.mxu1 %v2277_v47  ;;  %v2267_v45 = vld [vmem:[%s12281_s3 + $0x108] sm:$0xff] }
 0x20f   : > { %2420 = vmatpush2.msra.mxu0 %v6353_v21  ;;  %2511 = vmatpush2.msra.mxu1 %v2276_v41 }
 0x210   : > { %2421 = vmatprep.subr.mxu0 %v6352_v34  ;;  %2512 = vmatprep.subr.mxu1 %v2275_v44 }
 0x211   : > { %2422 = vmatpush2.msra.mxu0 %v6351_v23  ;;  %2513 = vmatpush2.msra.mxu1 %v2274_v6 }
 0x212   : > { %2423 = vmatprep.subr.mxu0 %v6350_v40  ;;  %2514 = vmatprep.subr.mxu1 %v2273_v42 }
 0x213   : > { %2424 = vmatpush2.msra.mxu0 %v6349_v52  ;;  %2515 = vmatpush2.msra.mxu1 %v2272_v55 }
 0x214   : > { %2425 = vmatprep.subr.mxu0 %v6348_v58  ;;  %2516 = vmatprep.subr.mxu1 %v2271_v46 }
 0x215   : > { %2426 = vmatpush2.msra.mxu0 %v6347_v54  ;;  %2517 = vmatpush2.msra.mxu1 %v2270_v51  ;;  %v6391_v54 = vld [vmem:[%s12281_s3 + $0x4f0] sm:$0xff] }
 0x216   : > { %2427 = vmatprep.subr.mxu0 %v6346_v36  ;;  %2518 = vmatprep.subr.mxu1 %v2269_v60  ;;  %v6390_v36 = vld [vmem:[%s12281_s3 + $0x4e8] sm:$0xff] }
 0x217   : > { %2428 = vmatpush2.msra.mxu0 %v6345_v28  ;;  %2519 = vmatpush2.msra.mxu1 %v2268_v11  ;;  %v6389_v28 = vld [vmem:[%s12281_s3 + $0x4e0] sm:$0xff]  ;;  %v6382_v60 = vld [vmem:[%s12281_s3 + $0x4a8] sm:$0xff]  ;;  %v6379_v11 = vld [vmem:[%s12281_s3 + $0x490] sm:$0xff] }
 0x218   : > { %2429 = vmatprep.subr.mxu0 %v6344_v7  ;;  %2520 = vmatprep.subr.mxu1 %v2267_v45  ;;  %v6386_v7 = vld [vmem:[%s12281_s3 + $0x4c8] sm:$0xff]  ;;  %v6377_v45 = vld [vmem:[%s12281_s3 + $0x480] sm:$0xff] }
 0x219   : > { %2430 = vmatpush2.msra.mxu0 %v6343_v33  ;;  %2521 = vmatpush2.msra.mxu1 %v2266_v53  ;;  %v6385_v33 = vld [vmem:[%s12281_s3 + $0x4c0] sm:$0xff]  ;;  %v6375_v53 = vld [vmem:[%s12281_s3 + $0x470] sm:$0xff] }
 0x21a   : > { %2431 = vmatprep.subr.mxu0 %v6342_v0  ;;  %v6381_v0 = vld [vmem:[%s12281_s3 + $0x4a0] sm:$0xff] }
 0x21b   : > { %2432 = vmatpush2.msra.mxu0 %v6341_v17  ;;  %v6378_v17 = vld [vmem:[%s12281_s3 + $0x488] sm:$0xff] }
 0x21c   : > { %2433 = vmatprep.subr.mxu0 %v6340_v3  ;;  %v6376_v3 = vld [vmem:[%s12281_s3 + $0x478] sm:$0xff] }
 0x21d   : > { %2434 = vmatpush2.msra.mxu0 %v6339_v38  ;;  %v6373_v38 = vld [vmem:[%s12281_s3 + $0x460] sm:$0xff] }
 0x21e   : > { %2435 = vmatprep.subr.mxu0 %v6338_v13  ;;  %v6372_v13 = vld [vmem:[%s12281_s3 + $0x458] sm:$0xff] }
 0x21f   : > { %2436 = vmatpush2.msra.mxu0 %v6337_v61  ;;  %v6371_v61 = vld [vmem:[%s12281_s3 + $0x450] sm:$0xff] }
 0x220   : > { %2437 = vmatprep.subr.mxu0 %v6336_v63  ;;  %v6370_v63 = vld [vmem:[%s12281_s3 + $0x448] sm:$0xff] }
 0x221   : > { %2438 = vmatpush2.msra.mxu0 %v6335_v15  ;;  %v6369_v15 = vld [vmem:[%s12281_s3 + $0x440] sm:$0xff] }
 0x238   : > { %v2042_v8 = vpop.permute.xlu0 %2041 }
 0x239   : > { %2048 = vst.msk [vmem:[#allocation2] sm:$0xff] %vm2047_vm8, %v2042_v8  ;;  %v6334_v8 = vld [vmem:[%s12281_s3 + $0x328] sm:$0xff] }
 0x23a   : > { %2439 = vmatprep.subr.mxu0 %v6334_v8  ;;  %v6368_v8 = vld [vmem:[%s12281_s3 + $0x438] sm:$0xff] }
 0x23c   : > { %v2052_v16 = vpop.permute.xlu0 %2051 }
 0x23d   : > { %2058 = vst.msk [vmem:[#allocation2] sm:$0xff] %vm2057_vm9, %v2052_v16 }
 0x240   : > { %v2062_v59 = vpop.permute.xlu0 %2061 }
 0x241   : > { %2068 = vst.msk [vmem:[#allocation2] sm:$0xff] %vm2067_vm10, %v2062_v59  ;;  %v6333_v59 = vld [vmem:[%s12281_s3 + $0x320] sm:$0xff] }
 0x242   : > { %2440 = vmatpush2.msra.mxu0 %v6333_v59  ;;  %v6366_v59 = vld [vmem:[%s12281_s3 + $0x428] sm:$0xff] }
 0x244   : > { %v2138_v43 = vpop.permute.xlu0 %2137 }
 0x245   : > { %2143 = vst.msk [vmem:[#allocation2 + $0x8] sm:$0xff] %vm2047_vm8, %v2138_v43  ;;  %vm2101_vm8 = vcmask 784000  }
 0x249   : > { %v2044_v5 = vpop.permute.xlu1 %2043 }
 0x24a   : > { %2050 = vst.msk [vmem:[#allocation2 + $0x10] sm:$0x3f] %vm2049_vm11, %v2044_v5  ;;  %v6332_v5 = vld [vmem:[%s12281_s3 + $0x318] sm:$0xff] }
 0x24b   : > { %2441 = vmatprep.subr.mxu0 %v6332_v5  ;;  %v6364_v5 = vld [vmem:[%s12281_s3 + $0x418] sm:$0xff] }
 0x24d   : > { %v2054_v19 = vpop.permute.xlu1 %2053  ;;  %v2084_v22 = vpop.permute.xlu0 %2083 }
 0x24e   : > { %2060 = vst.msk [vmem:[#allocation2 + $0x10] sm:$0x3f] %vm2059_vm12, %v2054_v19  ;;  %v6331_v19 = vld [vmem:[%s12281_s3 + $0x310] sm:$0xff] }
 0x24f   : > { %2090 = vst.msk [vmem:[#allocation2] sm:$0xff] %vm2089_vm13, %v2084_v22  ;;  %2442 = vmatpush2.msra.mxu0 %v6331_v19  ;;  %v6363_v19 = vld [vmem:[%s12281_s3 + $0x410] sm:$0xff] }
 0x251   : > { %v2064_v18 = vpop.permute.xlu1 %2063  ;;  %v2146_v24 = vpop.permute.xlu0 %2145 }
 0x252   : > { %2070 = vst.msk [vmem:[#allocation2 + $0x10] sm:$0x3f] %vm2069_vm14, %v2064_v18 }
 0x253   : > { %2151 = vst.msk [vmem:[#allocation2 + $0x8] sm:$0xff] %vm2057_vm9, %v2146_v24  ;;  %vm2119_vm9 = vcmask 1048448   ;;  %v6330_v24 = vld [vmem:[%s12281_s3 + $0x308] sm:$0xff] }
 0x254   : > { %2443 = vmatprep.subr.mxu0 %v6330_v24  ;;  %v6424_v24 = vld [vmem:[%s12281_s3 + $0x5f8] sm:$0xff] }
 0x255   : > { %v2140_v25 = vpop.permute.xlu1 %2139  ;;  %v2094_v26 = vpop.permute.xlu0 %2093 }
 0x256   : > { %2144 = vst.msk [vmem:[#allocation2 + $0x18] sm:$0x3f] %vm2049_vm11, %v2140_v25  ;;  %vm2121_vm11 = vcmask 1046400  }
 0x257   : > { %2100 = vst.msk [vmem:[#allocation2] sm:$0xff] %vm2099_vm15, %v2094_v26  ;;  %v6329_v26 = vld [vmem:[%s12281_s3 + $0x300] sm:$0xff] }
 0x258   : > { %2444 = vmatpush2.msra.mxu0 %v6329_v26  ;;  %v6422_v26 = vld [vmem:[%s12281_s3 + $0x5e8] sm:$0xff] }
 0x259   : > { %v2086_v29 = vpop.permute.xlu1 %2085  ;;  %v2154_v31 = vpop.permute.xlu0 %2153 }
 0x25a   : > { %2092 = vst.msk [vmem:[#allocation2 + $0x10] sm:$0x3f] %vm2091_vm5, %v2086_v29 }
 0x25b   : > { %2159 = vst.msk [vmem:[#allocation2 + $0x8] sm:$0xff] %vm2067_vm10, %v2154_v31  ;;  %vm2111_vm10 = vcmask 915200   ;;  %v6392_v31 = vld [vmem:[%s12281_s3 + $0x4f8] sm:$0xff] }
 0x25c   : > { %2618 = vmatprep.subr.mxu0 %v6392_v31  ;;  %v6420_v31 = vld [vmem:[%s12281_s3 + $0x5d8] sm:$0xff] }
 0x25d   : > { %v2148_v32 = vpop.permute.xlu1 %2147  ;;  %v2104_v14 = vpop.permute.xlu0 %2103 }
 0x25e   : > { %2152 = vst.msk [vmem:[#allocation2 + $0x18] sm:$0x3f] %vm2059_vm12, %v2148_v32  ;;  %vm2201_vm12 = vcmask 1040384  }
 0x25f   : > { %2110 = vst.msk [vmem:[#allocation2] sm:$0xff] %vm2109_vm7, %v2104_v14  ;;  %vm4680_vm7 = vcmask 782848  }
 0x261   : > { %v2096_v62 = vpop.permute.xlu1 %2095  ;;  %v2174_v27 = vpop.permute.xlu0 %2173 }
 0x262   : > { %2102 = vst.msk [vmem:[#allocation2 + $0x10] sm:$0x3f] %vm2101_vm8, %v2096_v62 }
 0x263   : > { %2179 = vst.msk [vmem:[#allocation2 + $0x8] sm:$0xff] %vm2089_vm13, %v2174_v27  ;;  %vm2222_vm13 = vcmask 1047681  }
 0x265   : > { %v2156_v48 = vpop.permute.xlu1 %2155  ;;  %v2114_v49 = vpop.permute.xlu0 %2113 }
 0x266   : > { %2160 = vst.msk [vmem:[#allocation2 + $0x18] sm:$0x3f] %vm2069_vm14, %v2156_v48  ;;  %vm2224_vm14 = vcmask 916481  }
 0x267   : > { %2120 = vst.msk [vmem:[#allocation2] sm:$0xff] %vm2119_vm9, %v2114_v49  ;;  %vm4709_vm9 = vcmask 1045761  }
 0x269   : > { %v2106_v39 = vpop.permute.xlu1 %2105  ;;  %v2182_v2 = vpop.permute.xlu0 %2181 }
 0x26a   : > { %2112 = vst.msk [vmem:[#allocation2 + $0x10] sm:$0x3f] %vm2111_vm10, %v2106_v39  ;;  %vm4711_vm10 = vcmask 521217  }
 0x26b   : > { %2187 = vst.msk [vmem:[#allocation2 + $0x8] sm:$0xff] %vm2099_vm15, %v2182_v2  ;;  %vm2226_vm15 = vcmask 1046656  }
 0x26d   : > { %v2176_v56 = vpop.permute.xlu1 %2175 }
 0x26e   : > { %v2189_v4 = vld [vmem:[#allocation2] sm:$0xff]  ;;  %2180 = vst.msk [vmem:[#allocation2 + $0x18] sm:$0x3f] %vm2091_vm5, %v2176_v56  ;;  %vm2228_vm5 = vcmask 915456   ;;  %v6388_v56 = vld [vmem:[%s12281_s3 + $0x4d8] sm:$0xff] }
 0x26f   : > { %v2202_v57 = vrot.slane %v2189_v4, 7  ;;  %v6387_v4 = vld [vmem:[%s12281_s3 + $0x4d0] sm:$0xff] }
 0x271   : > { %2208 = vrot.lane.b32.xlu0 %v2202_v57, %s7393_s22  ;;  %v2116_v9 = vpop.permute.xlu1 %2115 }
 0x272   : > { %v2190_v50 = vld [vmem:[#allocation2 + $0x8] sm:$0xff]  ;;  %2122 = vst.msk [vmem:[#allocation2 + $0x10] sm:$0x3f] %vm2121_vm11, %v2116_v9  ;;  %v6384_v9 = vld [vmem:[%s12281_s3 + $0x4b8] sm:$0xff]  ;;  %vm5889_vm11 = vcmask 392192  }
 0x273   : > { %v2203_v10 = vrot.slane %v2190_v50, 7  ;;  %v6383_v50 = vld [vmem:[%s12281_s3 + $0x4b0] sm:$0xff] }
 0x275   : > { %2210 = vrot.lane.b32.xlu1 %v2203_v10, %s7393_s22  ;;  %v2184_v12 = vpop.permute.xlu1 %2183 }
 0x276   : > { %2188 = vst.msk [vmem:[#allocation2 + $0x18] sm:$0x3f] %vm2101_vm8, %v2184_v12  ;;  %v6374_v12 = vld [vmem:[%s12281_s3 + $0x468] sm:$0xff]  ;;  %vm4685_vm8 = vcmask 1045248  }
 0x279   : > { %v2191_v16 = vld [vmem:[#allocation2 + $0x10] sm:$0x3f] }
 0x27a   : > { %v2204_v43 = vrot.slane %v2191_v16, 7  ;;  %v6367_v16 = vld [vmem:[%s12281_s3 + $0x430] sm:$0xff] }
 0x27c   : > { %v2205_v22 = vsel %vm2201_vm12, %v2202_v57, %v2204_v43  ;;  %v6365_v43 = vld [vmem:[%s12281_s3 + $0x420] sm:$0xff] }
 0x27d   : > { %2212 = vrot.lane.b32.xlu0 %v2205_v22, %s7393_s22  ;;  %v2192_v18 = vld [vmem:[#allocation2 + $0x18] sm:$0x3f]  ;;  %v6362_v22 = vld [vmem:[%s12281_s3 + $0x408] sm:$0xff] }
 0x27e   : > { %v2206_v25 = vrot.slane %v2192_v18, 7  ;;  %v6361_v18 = vld [vmem:[%s12281_s3 + $0x400] sm:$0xff] }
 0x280   : > { %v2207_v29 = vsel %vm2201_vm12, %v2203_v10, %v2206_v25  ;;  %v6380_v10 = vld [vmem:[%s12281_s3 + $0x498] sm:$0xff]  ;;  %v6423_v25 = vld [vmem:[%s12281_s3 + $0x5f0] sm:$0xff] }
 0x281   : > { %2214 = vrot.lane.b32.xlu1 %v2207_v29, %s7393_s22  ;;  %v6421_v29 = vld [vmem:[%s12281_s3 + $0x5e0] sm:$0xff] }
 0x2e3   : > { %v2209_v32 = vpop.permute.xlu0 %2208 }
 0x2e4   : > { %2223 = vst.msk [vmem:[#allocation3] sm:$0xfe] %vm2222_vm13, %v2209_v32 }
 0x2e7   : > { %v2211_v14 = vpop.permute.xlu1 %2210 }
 0x2e8   : > { %v2216_v62 = vsel %vm2035_vm6, %v2209_v32, %v2211_v14  ;;  %v6419_v32 = vld [vmem:[%s12281_s3 + $0x5d0] sm:$0xff]  ;;  %v6418_v14 = vld [vmem:[%s12281_s3 + $0x5c8] sm:$0xff] }
 0x2e9   : > { %2225 = vst.msk [vmem:[#allocation3 + $0x8] sm:$0xfe] %vm2224_vm14, %v2216_v62  ;;  %v6417_v62 = vld [vmem:[%s12281_s3 + $0x5c0] sm:$0xff] }
 0x2eb   : > { %v2230_v30 = vld [vmem:[#allocation3] sm:$0xff] }
 0x2ec   : > { %v2298_v48 = vld [vmem:[#allocation3] sm:$0xfe] }
 0x2ed   : > { %v2371_v39 = vrot.slane %v2298_v48, 1  ;;  %v6409_v48 = vld [vmem:[%s12281_s3 + $0x580] sm:$0xff] }
 0x2ef   : > { %v2213_v27 = vpop.permute.xlu0 %2212 }
 0x2f0   : > { %v2231_v21 = vld [vmem:[#allocation3 + $0x8] sm:$0xff]  ;;  %2227 = vst.msk [vmem:[#allocation3 + $0x10] sm:$0x7f] %vm2226_vm15, %v2213_v27 }
 0x2f1   : > { %2522 = vmatprep.mubr.f32.mxu1 %v2231_v21  ;;  %v2299_v47 = vld [vmem:[#allocation3 + $0x8] sm:$0xfe]  ;;  %v6415_v21 = vld [vmem:[%s12281_s3 + $0x5b0] sm:$0xff] }
 0x2f2   : > { %2523 = vmatmul.mubr.f32.vlgmr.msra.gmra.mxu1 %v2230_v30  ;;  %v2374_v44 = vrot.slane %v2299_v47, 1  ;;  %v2536_v55 = vld [vmem:[#allocation3 + $0x8] sm:$0xfc] }
 0x2f3   : > { %v2215_v34 = vpop.permute.xlu1 %2214  ;;  %v2611_v57 = vrot.slane %v2536_v55, 2  ;;  %v6414_v30 = vld [vmem:[%s12281_s3 + $0x5a8] sm:$0xff]  ;;  %v6397_v55 = vld [vmem:[%s12281_s3 + $0x520] sm:$0xff] }
 0x2f4   : > { %v2217_v35 = vsel %vm2035_vm6, %v2213_v27, %v2215_v34  ;;  %v6416_v27 = vld [vmem:[%s12281_s3 + $0x5b8] sm:$0xff]  ;;  %v6413_v34 = vld [vmem:[%s12281_s3 + $0x5a0] sm:$0xff]  ;;  %v6410_v47 = vld [vmem:[%s12281_s3 + $0x588] sm:$0xff] }
 0x2f5   : > { %2229 = vst.msk [vmem:[#allocation3 + $0x18] sm:$0x7f] %vm2228_vm5, %v2217_v35  ;;  %v6412_v35 = vld [vmem:[%s12281_s3 + $0x598] sm:$0xff] }
 0x2f7   : > { %v2300_v23 = vld [vmem:[#allocation3 + $0x10] sm:$0x7f] }
 0x2f8   : > { %v2372_v41 = vrot.slane %v2300_v23, 1  ;;  %v2232_v52 = vld [vmem:[#allocation3 + $0x10] sm:$0x3f] }
 0x2f9   : > { %v6411_v23 = vld [vmem:[%s12281_s3 + $0x590] sm:$0xff] }
 0x2fa   : > { %v2373_v42 = vsel %vm587_vm0, %v2371_v39, %v2372_v41  ;;  %v6402_v39 = vld [vmem:[%s12281_s3 + $0x548] sm:$0xff] }
 0x2fc   : > { %v2233_v49 = vld [vmem:[#allocation3 + $0x18] sm:$0x3f] }
 0x2fd   : > { %v2301_v40 = vld [vmem:[#allocation3 + $0x18] sm:$0x7f]  ;;  %2528 = vmatprep.mubr.f32.mxu1 %v2233_v49 }
 0x2fe   : > { %v2375_v58 = vrot.slane %v2301_v40, 1  ;;  %2529 = vmatmul.mubr.f32.gmra.mxu1 %v2232_v52  ;;  %v8558_v2 = vld [vmem:[#allocation3 + $0x18] sm:$0xff]  ;;  %v6407_v40 = vld [vmem:[%s12281_s3 + $0x570] sm:$0xff]  ;;  %v6405_v52 = vld [vmem:[%s12281_s3 + $0x560] sm:$0xff] }
 0x2ff   : > { %v2612_v46 = vrot.slane %v8558_v2, 2  ;;  %v6408_v49 = vld [vmem:[%s12281_s3 + $0x578] sm:$0xff] }
 0x300   : > { %v2376_v6 = vsel %vm587_vm0, %v2374_v44, %v2375_v58  ;;  %v6404_v44 = vld [vmem:[%s12281_s3 + $0x558] sm:$0xff] }
 0x301   : > { %2445 = vmatprep.mubr.f32.mxu0 %v2376_v6  ;;  %v2613_v51 = vsel %vm985_vm3, %v2611_v57, %v2612_v46  ;;  %v6401_v6 = vld [vmem:[%s12281_s3 + $0x540] sm:$0xff]  ;;  %v2778_v2 = vld [vmem:[%s12283_s5 + $0xd8] sm:$0xff] }
 0x302   : > { %2446 = vmatmul.mubr.f32.vlgmr.msra.gmra.mxu0 %v2373_v42  ;;  %v6399_v42 = vld [vmem:[%s12281_s3 + $0x530] sm:$0xff]  ;;  %v2535_v57 = vld [vmem:[#allocation3] sm:$0xfc] }
 0x303   : > { %2619 = vmatpush1.msra.mxu0 %v6391_v54  ;;  %2451 = vmatprep.mubr.f32.mxu0 %v2375_v58  ;;  %v6403_v58 = vld [vmem:[%s12281_s3 + $0x550] sm:$0xff]  ;;  %v6400_v54 = vld [vmem:[%s12281_s3 + $0x538] sm:$0xff] }
 0x304   : > { %2620 = vmatprep.subr.mxu0 %v6390_v36  ;;  %v6398_v36 = vld [vmem:[%s12281_s3 + $0x528] sm:$0xff] }
 0x305   : > { %2621 = vmatpush1.msra.mxu0 %v6389_v28  ;;  %v2537_v28 = vld [vmem:[#allocation3 + $0x10] sm:$0xff] }
 0x306   : > { %2622 = vmatprep.subr.mxu0 %v6388_v56  ;;  %2452 = vmatmul.mubr.f32.gmra.mxu0 %v2372_v41  ;;  %v6406_v41 = vld [vmem:[%s12281_s3 + $0x568] sm:$0xff]  ;;  %v6396_v56 = vld [vmem:[%s12281_s3 + $0x518] sm:$0xff] }
 0x307   : > { %2623 = vmatpush1.msra.mxu0 %v6387_v4  ;;  %2682 = vmatprep.mubr.f32.mxu0 %v2613_v51  ;;  %v6395_v4 = vld [vmem:[%s12281_s3 + $0x510] sm:$0xff]  ;;  %v2609_v51 = vrot.slane %v2537_v28, 2  ;;  %v2755_v28 = vld [vmem:[%s12283_s5 + $0x20] sm:$0xff] }
 0x308   : > { %2624 = vmatprep.subr.mxu0 %v6386_v7  ;;  %v6394_v7 = vld [vmem:[%s12281_s3 + $0x508] sm:$0xff] }
 0x309   : > { %2625 = vmatpush1.msra.mxu0 %v6385_v33  ;;  %v6393_v33 = vld [vmem:[%s12281_s3 + $0x500] sm:$0xff] }
 0x30a   : > { %2626 = vmatprep.subr.mxu0 %v6384_v9  ;;  %v2608_v9 = vrot.slane %v2535_v57, 2  ;;  %v6430_v57 = vld [vmem:[%s12283_s5 + $0x228] sm:$0xff] }
 0x30b   : > { %2627 = vmatpush1.msra.mxu0 %v6383_v50 }
 0x30c   : > { %2628 = vmatprep.subr.mxu0 %v6382_v60  ;;  %v2610_v50 = vsel %vm985_vm3, %v2608_v9, %v2609_v51  ;;  %v2782_v60 = vld [vmem:[%s12283_s5 + $0xf8] sm:$0xff] }
 0x30d   : > { %2629 = vmatpush1.msra.mxu0 %v6381_v0  ;;  %v2781_v0 = vld [vmem:[%s12283_s5 + $0xf0] sm:$0xff]  ;;  %v6428_v9 = vld [vmem:[%s12283_s5 + $0x218] sm:$0xff] }
 0x30e   : > { %2630 = vmatprep.subr.mxu0 %v6380_v10  ;;  %v2780_v10 = vld [vmem:[%s12283_s5 + $0xe8] sm:$0xff] }
 0x30f   : > { %2631 = vmatpush1.msra.mxu0 %v6379_v11  ;;  %v2779_v11 = vld [vmem:[%s12283_s5 + $0xe0] sm:$0xff] }
 0x310   : > { %2632 = vmatprep.subr.mxu0 %v6378_v17  ;;  %v2777_v17 = vld [vmem:[%s12283_s5 + $0xd0] sm:$0xff] }
 0x311   : > { %2633 = vmatpush1.msra.mxu0 %v6377_v45  ;;  %v6455_v45 = vld [vmem:[%s12283_s5 + $0x2f0] sm:$0xff] }
 0x312   : > { %2634 = vmatprep.subr.mxu0 %v6376_v3  ;;  %v6454_v3 = vld [vmem:[%s12283_s5 + $0x2e8] sm:$0xff] }
 0x313   : > { %2635 = vmatpush1.msra.mxu0 %v6375_v53  ;;  %v2776_v53 = vld [vmem:[%s12283_s5 + $0xc8] sm:$0xff] }
 0x314   : > { %2636 = vmatprep.subr.mxu0 %v6374_v12  ;;  %v6453_v12 = vld [vmem:[%s12283_s5 + $0x2e0] sm:$0xff] }
 0x315   : > { %2637 = vmatpush1.msra.mxu0 %v6373_v38  ;;  %v2775_v38 = vld [vmem:[%s12283_s5 + $0xc0] sm:$0xff] }
 0x316   : > { %2638 = vmatprep.subr.mxu0 %v6372_v13  ;;  %v6452_v13 = vld [vmem:[%s12283_s5 + $0x2d8] sm:$0xff] }
 0x317   : > { %2639 = vmatpush1.msra.mxu0 %v6371_v61  ;;  %v6451_v61 = vld [vmem:[%s12283_s5 + $0x2d0] sm:$0xff] }
 0x318   : > { %2640 = vmatprep.subr.mxu0 %v6370_v63  ;;  %v2774_v63 = vld [vmem:[%s12283_s5 + $0xb8] sm:$0xff] }
 0x319   : > { %2641 = vmatpush1.msra.mxu0 %v6369_v15  ;;  %v6450_v15 = vld [vmem:[%s12283_s5 + $0x2c8] sm:$0xff] }
 0x31a   : > { %2642 = vmatprep.subr.mxu0 %v6368_v8  ;;  %v2773_v8 = vld [vmem:[%s12283_s5 + $0xb0] sm:$0xff] }
 0x31b   : > { %2643 = vmatpush1.msra.mxu0 %v6367_v16  ;;  %v6449_v16 = vld [vmem:[%s12283_s5 + $0x2c0] sm:$0xff] }
 0x31c   : > { %2644 = vmatprep.subr.mxu0 %v6366_v59  ;;  %v2772_v59 = vld [vmem:[%s12283_s5 + $0xa8] sm:$0xff] }
 0x31d   : > { %2645 = vmatpush1.msra.mxu0 %v6365_v43  ;;  %v6448_v43 = vld [vmem:[%s12283_s5 + $0x2b8] sm:$0xff] }
 0x31e   : > { %2646 = vmatprep.subr.mxu0 %v6364_v5  ;;  %v2771_v5 = vld [vmem:[%s12283_s5 + $0xa0] sm:$0xff] }
 0x31f   : > { %2647 = vmatpush1.msra.mxu0 %v6363_v19  ;;  %v6447_v19 = vld [vmem:[%s12283_s5 + $0x2b0] sm:$0xff] }
 0x320   : > { %2648 = vmatprep.subr.mxu0 %v6362_v22  ;;  %v2770_v22 = vld [vmem:[%s12283_s5 + $0x98] sm:$0xff] }
 0x321   : > { %2649 = vmatpush1.msra.mxu0 %v6361_v18  ;;  %v6446_v18 = vld [vmem:[%s12283_s5 + $0x2a8] sm:$0xff] }
 0x322   : > { %2650 = vmatprep.subr.mxu0 %v6424_v24  ;;  %v2769_v24 = vld [vmem:[%s12283_s5 + $0x90] sm:$0xff] }
 0x323   : > { %2651 = vmatpush2.msra.mxu0 %v6423_v25  ;;  %v6445_v25 = vld [vmem:[%s12283_s5 + $0x2a0] sm:$0xff] }
 0x324   : > { %2652 = vmatprep.subr.mxu0 %v6422_v26  ;;  %v2768_v26 = vld [vmem:[%s12283_s5 + $0x88] sm:$0xff] }
 0x325   : > { %2653 = vmatpush2.msra.mxu0 %v6421_v29  ;;  %v6444_v29 = vld [vmem:[%s12283_s5 + $0x298] sm:$0xff] }
 0x326   : > { %2654 = vmatprep.subr.mxu0 %v6420_v31  ;;  %v2767_v31 = vld [vmem:[%s12283_s5 + $0x80] sm:$0xff] }
 0x327   : > { %2655 = vmatpush2.msra.mxu0 %v6419_v32  ;;  %v6443_v32 = vld [vmem:[%s12283_s5 + $0x290] sm:$0xff] }
 0x328   : > { %2656 = vmatprep.subr.mxu0 %v6418_v14  ;;  %v2766_v14 = vld [vmem:[%s12283_s5 + $0x78] sm:$0xff] }
 0x329   : > { %2657 = vmatpush2.msra.mxu0 %v6417_v62  ;;  %v6442_v62 = vld [vmem:[%s12283_s5 + $0x288] sm:$0xff] }
 0x32a   : > { %2658 = vmatprep.subr.mxu0 %v6416_v27  ;;  %v2765_v27 = vld [vmem:[%s12283_s5 + $0x70] sm:$0xff] }
 0x32b   : > { %2659 = vmatpush2.msra.mxu0 %v6415_v21  ;;  %v6441_v21 = vld [vmem:[%s12283_s5 + $0x280] sm:$0xff] }
 0x32c   : > { %2660 = vmatprep.subr.mxu0 %v6414_v30  ;;  %v2764_v30 = vld [vmem:[%s12283_s5 + $0x68] sm:$0xff] }
 0x32d   : > { %2661 = vmatpush2.msra.mxu0 %v6413_v34  ;;  %v6440_v34 = vld [vmem:[%s12283_s5 + $0x278] sm:$0xff] }
 0x32e   : > { %2662 = vmatprep.subr.mxu0 %v6412_v35  ;;  %v2763_v35 = vld [vmem:[%s12283_s5 + $0x60] sm:$0xff] }
 0x32f   : > { %2663 = vmatpush2.msra.mxu0 %v6411_v23  ;;  %v6439_v23 = vld [vmem:[%s12283_s5 + $0x270] sm:$0xff] }
 0x330   : > { %2664 = vmatprep.subr.mxu0 %v6410_v47  ;;  %v2762_v47 = vld [vmem:[%s12283_s5 + $0x58] sm:$0xff] }
 0x331   : > { %2665 = vmatpush2.msra.mxu0 %v6409_v48  ;;  %v6438_v48 = vld [vmem:[%s12283_s5 + $0x268] sm:$0xff] }
 0x332   : > { %2666 = vmatprep.subr.mxu0 %v6408_v49  ;;  %v2761_v49 = vld [vmem:[%s12283_s5 + $0x50] sm:$0xff] }
 0x333   : > { %2667 = vmatpush2.msra.mxu0 %v6407_v40  ;;  %v6437_v40 = vld [vmem:[%s12283_s5 + $0x260] sm:$0xff] }
 0x334   : > { %2668 = vmatprep.subr.mxu0 %v6406_v41  ;;  %v2760_v41 = vld [vmem:[%s12283_s5 + $0x48] sm:$0xff] }
 0x335   : > { %2669 = vmatpush2.msra.mxu0 %v6405_v52  ;;  %v6436_v52 = vld [vmem:[%s12283_s5 + $0x258] sm:$0xff] }
 0x336   : > { %2670 = vmatprep.subr.mxu0 %v6404_v44  ;;  %v2759_v44 = vld [vmem:[%s12283_s5 + $0x40] sm:$0xff] }
 0x337   : > { %2671 = vmatpush2.msra.mxu0 %v6403_v58  ;;  %v6435_v58 = vld [vmem:[%s12283_s5 + $0x250] sm:$0xff] }
 0x338   : > { %2672 = vmatprep.subr.mxu0 %v6402_v39  ;;  %v2758_v39 = vld [vmem:[%s12283_s5 + $0x38] sm:$0xff] }
 0x339   : > { %2673 = vmatpush2.msra.mxu0 %v6401_v6  ;;  %v6434_v6 = vld [vmem:[%s12283_s5 + $0x248] sm:$0xff] }
 0x33a   : > { %2674 = vmatprep.subr.mxu0 %v6400_v54  ;;  %v2757_v54 = vld [vmem:[%s12283_s5 + $0x30] sm:$0xff] }
 0x33b   : > { %2675 = vmatpush2.msra.mxu0 %v6399_v42  ;;  %v6433_v42 = vld [vmem:[%s12283_s5 + $0x240] sm:$0xff] }
 0x33c   : > { %2676 = vmatprep.subr.mxu0 %v6398_v36  ;;  %v2756_v36 = vld [vmem:[%s12283_s5 + $0x28] sm:$0xff] }
 0x33d   : > { %2677 = vmatpush2.msra.mxu0 %v6397_v55  ;;  %v6432_v55 = vld [vmem:[%s12283_s5 + $0x238] sm:$0xff] }
 0x33e   : > { %2678 = vmatprep.subr.mxu0 %v6396_v56  ;;  %v6431_v56 = vld [vmem:[%s12283_s5 + $0x230] sm:$0xff] }
 0x33f   : > { %2679 = vmatpush2.msra.mxu0 %v6395_v4  ;;  %v2754_v4 = vld [vmem:[%s12283_s5 + $0x18] sm:$0xff] }
 0x340   : > { %2680 = vmatprep.subr.mxu0 %v6394_v7  ;;  %v2753_v7 = vld [vmem:[%s12283_s5 + $0x10] sm:$0xff] }
 0x341   : > { %2681 = vmatpush2.msra.mxu0 %v6393_v33  ;;  %v2752_v33 = vld [vmem:[%s12283_s5 + $0x8] sm:$0xff] }
 0x342   : > { %2683 = vmatmul.mubr.f32.vlgmr.msra.gmra.mxu0 %v2610_v50  ;;  %2975 = vmatprep.subr.mxu0 %v2782_v60  ;;  %v2751_v50 = vld [vmem:[%s12283_s5] sm:$0xff]  ;;  %v6427_v60 = vld [vmem:[%s12283_s5 + $0x210] sm:$0xff] }
 0x343   : > { %2688 = vmatprep.mubr.f32.mxu0 %v2612_v46  ;;  %2976 = vmatpush1.msra.mxu0 %v2781_v0  ;;  %v6456_v46 = vld [vmem:[%s12283_s5 + $0x2f8] sm:$0xff] }
 0x344   : > { %2977 = vmatprep.subr.mxu0 %v2780_v10  ;;  %2898 = vmatprep.subr.mxu1 %v6456_v46  ;;  %v2814_v0 = vld [vmem:[%s12283_s5 + $0x1f8] sm:$0xff]  ;;  %v6426_v10 = vld [vmem:[%s12283_s5 + $0x208] sm:$0xff] }
 0x345   : > { %2978 = vmatpush1.msra.mxu0 %v2779_v11  ;;  %2899 = vmatpush1.msra.mxu1 %v6455_v45  ;;  %v2813_v11 = vld [vmem:[%s12283_s5 + $0x1f0] sm:$0xff]  ;;  %v2812_v46 = vld [vmem:[%s12283_s5 + $0x1e8] sm:$0xff]  ;;  %v2811_v45 = vld [vmem:[%s12283_s5 + $0x1e0] sm:$0xff] }
 0x346   : > { %2689 = vmatmul.mubr.f32.gmra.mxu0 %v2609_v51  ;;  %2979 = vmatprep.subr.mxu0 %v2778_v2  ;;  %v6429_v51 = vld [vmem:[%s12283_s5 + $0x220] sm:$0xff] }
 0x347   : > { %2900 = vmatprep.subr.mxu1 %v6454_v3  ;;  %2980 = vmatpush1.msra.mxu0 %v2777_v17  ;;  %v6425_v2 = vld [vmem:[%s12283_s5 + $0x200] sm:$0xff]  ;;  %v6488_v17 = vld [vmem:[%s12283_s5 + $0x3f8] sm:$0xff]  ;;  %v6487_v3 = vld [vmem:[%s12283_s5 + $0x3f0] sm:$0xff] }
 0x348   : > { %2901 = vmatpush1.msra.mxu1 %v6453_v12  ;;  %2981 = vmatprep.subr.mxu0 %v2776_v53  ;;  %v2810_v53 = vld [vmem:[%s12283_s5 + $0x1d8] sm:$0xff]  ;;  %v6486_v12 = vld [vmem:[%s12283_s5 + $0x3e8] sm:$0xff] }
 0x349   : > { %2902 = vmatprep.subr.mxu1 %v6452_v13  ;;  %2982 = vmatpush1.msra.mxu0 %v2775_v38  ;;  %v2809_v38 = vld [vmem:[%s12283_s5 + $0x1d0] sm:$0xff]  ;;  %v6485_v13 = vld [vmem:[%s12283_s5 + $0x3e0] sm:$0xff] }
 0x34a   : > { %2903 = vmatpush1.msra.mxu1 %v6451_v61  ;;  %2983 = vmatprep.subr.mxu0 %v2774_v63  ;;  %v2808_v61 = vld [vmem:[%s12283_s5 + $0x1c8] sm:$0xff]  ;;  %v6484_v63 = vld [vmem:[%s12283_s5 + $0x3d8] sm:$0xff] }
 0x34b   : > { %2904 = vmatprep.subr.mxu1 %v6450_v15  ;;  %2984 = vmatpush1.msra.mxu0 %v2773_v8  ;;  %v2807_v15 = vld [vmem:[%s12283_s5 + $0x1c0] sm:$0xff]  ;;  %v6483_v8 = vld [vmem:[%s12283_s5 + $0x3d0] sm:$0xff] }
 0x34c   : > { %2905 = vmatpush1.msra.mxu1 %v6449_v16  ;;  %2985 = vmatprep.subr.mxu0 %v2772_v59  ;;  %v2806_v16 = vld [vmem:[%s12283_s5 + $0x1b8] sm:$0xff]  ;;  %v6482_v59 = vld [vmem:[%s12283_s5 + $0x3c8] sm:$0xff] }
 0x34d   : > { %2906 = vmatprep.subr.mxu1 %v6448_v43  ;;  %2986 = vmatpush1.msra.mxu0 %v2771_v5  ;;  %v2805_v43 = vld [vmem:[%s12283_s5 + $0x1b0] sm:$0xff]  ;;  %v6481_v5 = vld [vmem:[%s12283_s5 + $0x3c0] sm:$0xff] }
 0x34e   : > { %2907 = vmatpush1.msra.mxu1 %v6447_v19  ;;  %2987 = vmatprep.subr.mxu0 %v2770_v22  ;;  %v2804_v19 = vld [vmem:[%s12283_s5 + $0x1a8] sm:$0xff]  ;;  %v6480_v22 = vld [vmem:[%s12283_s5 + $0x3b8] sm:$0xff] }
 0x34f   : > { %2908 = vmatprep.subr.mxu1 %v6446_v18  ;;  %2988 = vmatpush1.msra.mxu0 %v2769_v24  ;;  %v2803_v18 = vld [vmem:[%s12283_s5 + $0x1a0] sm:$0xff]  ;;  %v6479_v24 = vld [vmem:[%s12283_s5 + $0x3b0] sm:$0xff] }
 0x350   : > { %2909 = vmatpush1.msra.mxu1 %v6445_v25  ;;  %2989 = vmatprep.subr.mxu0 %v2768_v26  ;;  %v2802_v25 = vld [vmem:[%s12283_s5 + $0x198] sm:$0xff]  ;;  %v6478_v26 = vld [vmem:[%s12283_s5 + $0x3a8] sm:$0xff] }
 0x351   : > { %2910 = vmatprep.subr.mxu1 %v6444_v29  ;;  %2990 = vmatpush1.msra.mxu0 %v2767_v31  ;;  %v2801_v29 = vld [vmem:[%s12283_s5 + $0x190] sm:$0xff]  ;;  %v6477_v31 = vld [vmem:[%s12283_s5 + $0x3a0] sm:$0xff] }
 0x352   : > { %2911 = vmatpush1.msra.mxu1 %v6443_v32  ;;  %2991 = vmatprep.subr.mxu0 %v2766_v14  ;;  %v2800_v32 = vld [vmem:[%s12283_s5 + $0x188] sm:$0xff]  ;;  %v6476_v14 = vld [vmem:[%s12283_s5 + $0x398] sm:$0xff] }
 0x353   : > { %2912 = vmatprep.subr.mxu1 %v6442_v62  ;;  %2992 = vmatpush1.msra.mxu0 %v2765_v27  ;;  %v2799_v62 = vld [vmem:[%s12283_s5 + $0x180] sm:$0xff]  ;;  %v2798_v27 = vld [vmem:[%s12283_s5 + $0x178] sm:$0xff] }
 0x354   : > { %2913 = vmatpush1.msra.mxu1 %v6441_v21  ;;  %2993 = vmatprep.subr.mxu0 %v2764_v30  ;;  %v2797_v21 = vld [vmem:[%s12283_s5 + $0x170] sm:$0xff]  ;;  %v2796_v30 = vld [vmem:[%s12283_s5 + $0x168] sm:$0xff] }
 0x355   : > { %2914 = vmatprep.subr.mxu1 %v6440_v34  ;;  %2994 = vmatpush1.msra.mxu0 %v2763_v35  ;;  %v2795_v34 = vld [vmem:[%s12283_s5 + $0x160] sm:$0xff] }
 0x356   : > { %2915 = vmatpush1.msra.mxu1 %v6439_v23  ;;  %2995 = vmatprep.subr.mxu0 %v2762_v47 }
 0x357   : > { %2916 = vmatprep.subr.mxu1 %v6438_v48  ;;  %2996 = vmatpush1.msra.mxu0 %v2761_v49  ;;  %v6475_v49 = vld [vmem:[%s12283_s5 + $0x390] sm:$0xff] }
 0x358   : > { %2917 = vmatpush1.msra.mxu1 %v6437_v40  ;;  %2997 = vmatprep.subr.mxu0 %v2760_v41  ;;  %v2794_v40 = vld [vmem:[%s12283_s5 + $0x158] sm:$0xff]  ;;  %v2699_v41 = vld [vmem:[%s12282_s4] sm:$0x3] }
 0x359   : > { %2918 = vmatprep.subr.mxu1 %v6436_v52  ;;  %2998 = vmatpush1.msra.mxu0 %v2759_v44  ;;  %v6474_v52 = vld [vmem:[%s12283_s5 + $0x388] sm:$0xff]  ;;  %v2793_v44 = vld [vmem:[%s12283_s5 + $0x150] sm:$0xff] }
 0x35a   : > { %2919 = vmatpush1.msra.mxu1 %v6435_v58  ;;  %2999 = vmatprep.subr.mxu0 %v2758_v39  ;;  %v6473_v58 = vld [vmem:[%s12283_s5 + $0x380] sm:$0xff]  ;;  %v2792_v39 = vld [vmem:[%s12283_s5 + $0x148] sm:$0xff] }
 0x35b   : > { %2920 = vmatprep.subr.mxu1 %v6434_v6  ;;  %3000 = vmatpush1.msra.mxu0 %v2757_v54 }
 0x35c   : > { %2921 = vmatpush1.msra.mxu1 %v6433_v42  ;;  %3001 = vmatprep.subr.mxu0 %v2756_v36  ;;  %v6472_v42 = vld [vmem:[%s12283_s5 + $0x378] sm:$0xff]  ;;  %v2791_v36 = vld [vmem:[%s12283_s5 + $0x140] sm:$0xff] }
 0x35d   : > { %2922 = vmatprep.subr.mxu1 %v6432_v55  ;;  %3002 = vmatpush1.msra.mxu0 %v2755_v28  ;;  %v12357_v28 = vld [vmem:[#allocation25_spill] sm:$0xff] }
 0x35e   : > { %2923 = vmatpush1.msra.mxu1 %v6431_v56  ;;  %3003 = vmatprep.subr.mxu0 %v2754_v4  ;;  %v2704_v56 = vrot.slane %v2699_v41, %v12357_v28  ;;  %v6471_v4 = vld [vmem:[%s12283_s5 + $0x370] sm:$0xff] }
 0x35f   : > { %2924 = vmatprep.subr.mxu1 %v6430_v57  ;;  %3004 = vmatpush1.msra.mxu0 %v2753_v7  ;;  %v2790_v57 = vld [vmem:[%s12283_s5 + $0x138] sm:$0xff] }
 0x360   : > { %2925 = vmatpush1.msra.mxu1 %v6429_v51  ;;  %3005 = vmatprep.subr.mxu0 %v2752_v33  ;;  %v6470_v33 = vld [vmem:[%s12283_s5 + $0x368] sm:$0xff] }
 0x361   : > { %2926 = vmatprep.subr.mxu1 %v6428_v9  ;;  %3006 = vmatpush1.msra.mxu0 %v2751_v50  ;;  %v2789_v9 = vld [vmem:[%s12283_s5 + $0x130] sm:$0xff] }
 0x362   : > { %2927 = vmatpush1.msra.mxu1 %v6427_v60  ;;  %3007 = vmatprep.subr.mxu0 %v2814_v0  ;;  %v12358_v0 = vld [vmem:[#allocation26_spill] sm:$0xff] }
 0x363   : > { %2928 = vmatprep.subr.mxu1 %v6426_v10  ;;  %3008 = vmatpush2.msra.mxu0 %v2813_v11  ;;  %v2708_v10 = vrot.slane %v2699_v41, %v12358_v0  ;;  %v6469_v11 = vld [vmem:[%s12283_s5 + $0x360] sm:$0xff] }
 0x364   : > { %2929 = vmatpush1.msra.mxu1 %v6425_v2  ;;  %3009 = vmatprep.subr.mxu0 %v2812_v46  ;;  %v2788_v2 = vld [vmem:[%s12283_s5 + $0x128] sm:$0xff] }
 0x365   : > { %2930 = vmatprep.subr.mxu1 %v6488_v17  ;;  %3010 = vmatpush2.msra.mxu0 %v2811_v45  ;;  %v6468_v17 = vld [vmem:[%s12283_s5 + $0x358] sm:$0xff]  ;;  %v2787_v45 = vld [vmem:[%s12283_s5 + $0x120] sm:$0xff] }
 0x366   : > { %2931 = vmatpush2.msra.mxu1 %v6487_v3  ;;  %3011 = vmatprep.subr.mxu0 %v2810_v53 }
 0x367   : > { %2932 = vmatprep.subr.mxu1 %v6486_v12  ;;  %3012 = vmatpush2.msra.mxu0 %v2809_v38  ;;  %v6467_v38 = vld [vmem:[%s12283_s5 + $0x350] sm:$0xff] }
 0x368   : > { %2933 = vmatpush2.msra.mxu1 %v6485_v13  ;;  %3013 = vmatprep.subr.mxu0 %v2808_v61  ;;  %v2786_v13 = vld [vmem:[%s12283_s5 + $0x118] sm:$0xff] }
 0x369   : > { %2934 = vmatprep.subr.mxu1 %v6484_v63  ;;  %3014 = vmatpush2.msra.mxu0 %v2807_v15  ;;  %v6466_v15 = vld [vmem:[%s12283_s5 + $0x348] sm:$0xff] }
 0x36a   : > { %2935 = vmatpush2.msra.mxu1 %v6483_v8  ;;  %3015 = vmatprep.subr.mxu0 %v2806_v16  ;;  %v2785_v8 = vld [vmem:[%s12283_s5 + $0x110] sm:$0xff]  ;;  %v6465_v16 = vld [vmem:[%s12283_s5 + $0x340] sm:$0xff] }
 0x36b   : > { %2936 = vmatprep.subr.mxu1 %v6482_v59  ;;  %3016 = vmatpush2.msra.mxu0 %v2805_v43 }
 0x36c   : > { %2937 = vmatpush2.msra.mxu1 %v6481_v5  ;;  %3017 = vmatprep.subr.mxu0 %v2804_v19 }
 0x36d   : > { %2938 = vmatprep.subr.mxu1 %v6480_v22  ;;  %3018 = vmatpush2.msra.mxu0 %v2803_v18  ;;  %v2784_v22 = vld [vmem:[%s12283_s5 + $0x108] sm:$0xff]  ;;  %v6464_v18 = vld [vmem:[%s12283_s5 + $0x338] sm:$0xff] }
 0x36e   : > { %2939 = vmatpush2.msra.mxu1 %v6479_v24  ;;  %3019 = vmatprep.subr.mxu0 %v2802_v25  ;;  %v2783_v24 = vld [vmem:[%s12283_s5 + $0x100] sm:$0xff] }
 0x36f   : > { %2940 = vmatprep.subr.mxu1 %v6478_v26  ;;  %3020 = vmatpush2.msra.mxu0 %v2801_v29 }
 0x370   : > { %2941 = vmatpush2.msra.mxu1 %v6477_v31  ;;  %3021 = vmatprep.subr.mxu0 %v2800_v32 }
 0x371   : > { %2942 = vmatprep.subr.mxu1 %v6476_v14  ;;  %3022 = vmatpush2.msra.mxu0 %v2799_v62  ;;  %v6463_v14 = vld [vmem:[%s12283_s5 + $0x330] sm:$0xff]  ;;  %v6462_v62 = vld [vmem:[%s12283_s5 + $0x328] sm:$0xff] }
 0x372   : > { %3023 = vmatprep.subr.mxu0 %v2798_v27  ;;  %2943 = vmatpush2.msra.mxu1 %v6475_v49  ;;  %v6461_v27 = vld [vmem:[%s12283_s5 + $0x320] sm:$0xff]  ;;  %v6458_v49 = vld [vmem:[%s12283_s5 + $0x308] sm:$0xff] }
 0x373   : > { %3024 = vmatpush2.msra.mxu0 %v2797_v21  ;;  %2944 = vmatprep.subr.mxu1 %v6474_v52  ;;  %v6460_v21 = vld [vmem:[%s12283_s5 + $0x318] sm:$0xff]  ;;  %v6457_v52 = vld [vmem:[%s12283_s5 + $0x300] sm:$0xff] }
 0x374   : > { %3025 = vmatprep.subr.mxu0 %v2796_v30  ;;  %2945 = vmatpush2.msra.mxu1 %v6473_v58 }
 0x375   : > { %3026 = vmatpush2.msra.mxu0 %v2795_v34  ;;  %2946 = vmatprep.subr.mxu1 %v6472_v42 }
 0x376   : > { %3027 = vmatprep.subr.mxu0 %v2794_v40  ;;  %2947 = vmatpush2.msra.mxu1 %v6471_v4 }
 0x377   : > { %3028 = vmatpush2.msra.mxu0 %v2793_v44  ;;  %2948 = vmatprep.subr.mxu1 %v6470_v33  ;;  %v6520_v44 = vld [vmem:[%s12283_s5 + $0x4f8] sm:$0xff] }
 0x378   : > { %3029 = vmatprep.subr.mxu0 %v2792_v39  ;;  %2949 = vmatpush2.msra.mxu1 %v6469_v11 }
 0x379   : > { %3030 = vmatpush2.msra.mxu0 %v2791_v36  ;;  %2950 = vmatprep.subr.mxu1 %v6468_v17 }
 0x37a   : > { %3031 = vmatprep.subr.mxu0 %v2790_v57  ;;  %2951 = vmatpush2.msra.mxu1 %v6467_v38  ;;  %v6517_v38 = vld [vmem:[%s12283_s5 + $0x4e0] sm:$0xff] }
 0x37b   : > { %3032 = vmatpush2.msra.mxu0 %v2789_v9  ;;  %2952 = vmatprep.subr.mxu1 %v6466_v15 }
 0x37c   : > { %3033 = vmatprep.subr.mxu0 %v2788_v2  ;;  %2953 = vmatpush2.msra.mxu1 %v6465_v16 }
 0x37d   : > { %3034 = vmatpush2.msra.mxu0 %v2787_v45  ;;  %2954 = vmatprep.subr.mxu1 %v6464_v18  ;;  %v6519_v45 = vld [vmem:[%s12283_s5 + $0x4f0] sm:$0xff]  ;;  %v6508_v18 = vld [vmem:[%s12283_s5 + $0x498] sm:$0xff] }
 0x37e   : > { %3035 = vmatprep.subr.mxu0 %v2786_v13  ;;  %2955 = vmatpush2.msra.mxu1 %v6463_v14  ;;  %v6501_v14 = vld [vmem:[%s12283_s5 + $0x460] sm:$0xff] }
 0x37f   : > { %3036 = vmatpush2.msra.mxu0 %v2785_v8  ;;  %2956 = vmatprep.subr.mxu1 %v6462_v62  ;;  %v6514_v8 = vld [vmem:[%s12283_s5 + $0x4c8] sm:$0xff]  ;;  %v6500_v62 = vld [vmem:[%s12283_s5 + $0x458] sm:$0xff] }
 0x380   : > { %3037 = vmatprep.subr.mxu0 %v2784_v22  ;;  %2957 = vmatpush2.msra.mxu1 %v6461_v27  ;;  %v6509_v22 = vld [vmem:[%s12283_s5 + $0x4a0] sm:$0xff]  ;;  %v6499_v27 = vld [vmem:[%s12283_s5 + $0x450] sm:$0xff] }
 0x381   : > { %3038 = vmatpush2.msra.mxu0 %v2783_v24  ;;  %2958 = vmatprep.subr.mxu1 %v6460_v21  ;;  %v6507_v24 = vld [vmem:[%s12283_s5 + $0x490] sm:$0xff]  ;;  %v6498_v21 = vld [vmem:[%s12283_s5 + $0x448] sm:$0xff] }
 0x3b2   : > { %v2524_v47 = vpop.f32.mrf.mxu1 }
 0x3b4   : > { %v2526_v6 = vpop.f32.mrf.mxu1 }
 0x3be   : > { %v2530_v7 = vpop.f32.mrf.mxu1 }
 0x3c0   : > { %v2532_v61 = vpop.f32.mrf.mxu1 }
 0x3c2   : > { %v2447_v35 = vpop.f32.mrf.mxu0 }
 0x3c3   : > { %v2525_v55 = vadd.f32 %v2524_v47, %v2447_v35 }
 0x3c4   : > { %v2449_v23 = vpop.f32.mrf.mxu0 }
 0x3c5   : > { %v2527_v50 = vadd.f32 %v2526_v6, %v2449_v23  ;;  %v6459_v23 = vld [vmem:[%s12283_s5 + $0x310] sm:$0xff] }
 0x3c6   : > { %v2453_v48 = vpop.f32.mrf.mxu0  ;;  %2959 = vmatpush2.msra.mxu1 %v6459_v23  ;;  %v6494_v23 = vld [vmem:[%s12283_s5 + $0x428] sm:$0xff] }
 0x3c7   : > { %v2531_v3 = vadd.f32 %v2530_v7, %v2453_v48  ;;  %2960 = vmatprep.subr.mxu1 %v6458_v49  ;;  %v6491_v49 = vld [vmem:[%s12283_s5 + $0x410] sm:$0xff] }
 0x3c8   : > { %v2455_v54 = vpop.f32.mrf.mxu0  ;;  %2961 = vmatpush2.msra.mxu1 %v6457_v52  ;;  %v6552_v52 = vld [vmem:[%s12283_s5 + $0x5f8] sm:$0xff] }
 0x3c9   : > { %v2533_v59 = vadd.f32 %v2532_v61, %v2455_v54  ;;  %3135 = vmatprep.subr.mxu1 %v6520_v44  ;;  %v6516_v61 = vld [vmem:[%s12283_s5 + $0x4d8] sm:$0xff]  ;;  %v6551_v44 = vld [vmem:[%s12283_s5 + $0x5f0] sm:$0xff] }
 0x402   : > { %v2684_v51 = vpop.f32.mrf.mxu0 }
 0x403   : > { %v2695_v60 = vadd.f32 %v2684_v51, %v2525_v55 }
 0x404   : > { %v2686_v46 = vpop.f32.mrf.mxu0 }
 0x405   : > { %v2711_v53 = vadd.f32 %v2704_v56, %v2695_v60  ;;  %v2696_v12 = vadd.f32 %v2686_v46, %v2527_v50 }
 0x406   : > { %v2690_v63 = vpop.f32.mrf.mxu0 }
 0x407   : > { %v2715_v43 = vmax.f32 %v2711_v53, 0.0  ;;  %v2712_v5 = vadd.f32 %v2708_v10, %v2696_v12  ;;  %v2697_v19 = vadd.f32 %v2690_v63, %v2531_v3  ;;  %v6518_v53 = vld [vmem:[%s12283_s5 + $0x4e8] sm:$0xff]  ;;  %v6515_v63 = vld [vmem:[%s12283_s5 + $0x4d0] sm:$0xff] }
 0x408   : > { %v2692_v25 = vpop.f32.mrf.mxu0 }
 0x409   : > { %v2723_v26 = vrot.slane %v2715_v43, 7  ;;  %v2716_v29 = vmax.f32 %v2712_v5, 0.0  ;;  %v2713_v31 = vadd.f32 %v2704_v56, %v2697_v19  ;;  %v2698_v32 = vadd.f32 %v2692_v25, %v2533_v59  ;;  %v6513_v59 = vld [vmem:[%s12283_s5 + $0x4c0] sm:$0xff]  ;;  %v6512_v43 = vld [vmem:[%s12283_s5 + $0x4b8] sm:$0xff]  ;;  %v6511_v5 = vld [vmem:[%s12283_s5 + $0x4b0] sm:$0xff] }
 0x40a   : > { %v6510_v19 = vld [vmem:[%s12283_s5 + $0x4a8] sm:$0xff] }
 0x40b   : > { %v2724_v30 = vrot.slane %v2716_v29, 7  ;;  %v2717_v34 = vmax.f32 %v2713_v31, 0.0  ;;  %v2714_v35 = vadd.f32 %v2708_v10, %v2698_v32  ;;  %2729 = vrot.lane.b32.xlu0 %v2723_v26, %s7393_s22  ;;  %v6506_v25 = vld [vmem:[%s12283_s5 + $0x488] sm:$0xff]  ;;  %v6504_v29 = vld [vmem:[%s12283_s5 + $0x478] sm:$0xff]  ;;  %v6503_v31 = vld [vmem:[%s12283_s5 + $0x470] sm:$0xff] }
 0x40c   : > { %v6502_v32 = vld [vmem:[%s12283_s5 + $0x468] sm:$0xff] }
 0x40d   : > { %v2725_v47 = vrot.slane %v2717_v34, 7  ;;  %v2718_v48 = vmax.f32 %v2714_v35, 0.0  ;;  %2731 = vrot.lane.b32.xlu1 %v2724_v30, %s7393_s22  ;;  %v6496_v34 = vld [vmem:[%s12283_s5 + $0x438] sm:$0xff]  ;;  %v6495_v35 = vld [vmem:[%s12283_s5 + $0x430] sm:$0xff] }
 0x40f   : > { %v2727_v40 = vrot.slane %v2718_v48, 7  ;;  %v2726_v41 = vsel %vm2201_vm12, %v2723_v26, %v2725_v47  ;;  %v6505_v26 = vld [vmem:[%s12283_s5 + $0x480] sm:$0xff]  ;;  %v6492_v48 = vld [vmem:[%s12283_s5 + $0x418] sm:$0xff] }
 0x410   : > { %2733 = vrot.lane.b32.xlu0 %v2726_v41, %s7393_s22  ;;  %v6493_v47 = vld [vmem:[%s12283_s5 + $0x420] sm:$0xff] }
 0x411   : > { %v2728_v58 = vsel %vm2201_vm12, %v2724_v30, %v2727_v40  ;;  %v6497_v30 = vld [vmem:[%s12283_s5 + $0x440] sm:$0xff]  ;;  %v6490_v40 = vld [vmem:[%s12283_s5 + $0x408] sm:$0xff]  ;;  %vm6117_vm12 = vcmask 73728  }
 0x412   : > { %2735 = vrot.lane.b32.xlu1 %v2728_v58, %s7393_s22  ;;  %v6489_v41 = vld [vmem:[%s12283_s5 + $0x400] sm:$0xff]  ;;  %v6550_v58 = vld [vmem:[%s12283_s5 + $0x5e8] sm:$0xff]  ;;  %s12363_s22 = sld [smem:[#allocation31_spill]] }
 0x47d   : > { %v2730_v39 = vpop.permute.xlu0 %2729 }
 0x47e   : > { %2743 = vst.msk [vmem:[#allocation3] sm:$0xfe] %vm2222_vm13, %v2730_v39 }
 0x47f   : > { %v2732_v6 = vpop.permute.xlu1 %2731 }
 0x480   : > { %v2737_v54 = vsel %vm2035_vm6, %v2730_v39, %v2732_v6  ;;  %v6549_v39 = vld [vmem:[%s12283_s5 + $0x5e0] sm:$0xff]  ;;  %v6548_v6 = vld [vmem:[%s12283_s5 + $0x5d8] sm:$0xff] }
 0x481   : > { %2744 = vst.msk [vmem:[#allocation3 + $0x8] sm:$0xfe] %vm2224_vm14, %v2737_v54  ;;  %v6547_v54 = vld [vmem:[%s12283_s5 + $0x5d0] sm:$0xff] }
 0x482   : > { %v2734_v42 = vpop.permute.xlu0 %2733 }
 0x483   : > { %2745 = vst.msk [vmem:[#allocation3 + $0x10] sm:$0x7f] %vm2226_vm15, %v2734_v42 }
 0x484   : > { %v2736_v36 = vpop.permute.xlu1 %2735 }
 0x485   : > { %v2738_v55 = vsel %vm2035_vm6, %v2734_v42, %v2736_v36  ;;  %v2747_v4 = vld [vmem:[#allocation3] sm:$0xff]  ;;  %v6546_v42 = vld [vmem:[%s12283_s5 + $0x5c8] sm:$0xff]  ;;  %vm3425_vm6 = vcmask 785408  }
 0x486   : > { %2746 = vst.msk [vmem:[#allocation3 + $0x18] sm:$0x7f] %vm2228_vm5, %v2738_v55  ;;  %v2815_v51 = vld [vmem:[#allocation3] sm:$0xfe]  ;;  %v6544_v55 = vld [vmem:[%s12283_s5 + $0x5b8] sm:$0xff] }
 0x487   : > { %v2888_v2 = vrot.slane %v2815_v51, 1  ;;  %v6545_v36 = vld [vmem:[%s12283_s5 + $0x5c0] sm:$0xff]  ;;  %v6539_v51 = vld [vmem:[%s12283_s5 + $0x590] sm:$0xff] }
 0x488   : > { %v2748_v56 = vld [vmem:[#allocation3 + $0x8] sm:$0xff] }
 0x489   : > { %3039 = vmatprep.mubr.f32.mxu0 %v2748_v56  ;;  %v2816_v7 = vld [vmem:[#allocation3 + $0x8] sm:$0xfe]  ;;  %v6543_v56 = vld [vmem:[%s12283_s5 + $0x5b0] sm:$0xff] }
 0x48a   : > { %3040 = vmatmul.mubr.f32.vlgmr.msra.gmra.mxu0 %v2747_v4  ;;  %v2817_v57 = vld [vmem:[#allocation3 + $0x10] sm:$0x7f]  ;;  %v2891_v10 = vrot.slane %v2816_v7, 1  ;;  %v3053_v12 = vld [vmem:[#allocation3 + $0x8] sm:$0xfc]  ;;  %v6540_v7 = vld [vmem:[%s12283_s5 + $0x598] sm:$0xff] }
 0x48b   : > { %v2889_v50 = vrot.slane %v2817_v57, 1  ;;  %v2749_v60 = vld [vmem:[#allocation3 + $0x10] sm:$0x3f]  ;;  %v3128_v15 = vrot.slane %v3053_v12, 2  ;;  %v6542_v4 = vld [vmem:[%s12283_s5 + $0x5a8] sm:$0xff]  ;;  %v6541_v57 = vld [vmem:[%s12283_s5 + $0x5a0] sm:$0xff] }
 0x48c   : > { %v6527_v12 = vld [vmem:[%s12283_s5 + $0x530] sm:$0xff] }
 0x48d   : > { %v2750_v33 = vld [vmem:[#allocation3 + $0x18] sm:$0x3f]  ;;  %v2890_v3 = vsel %vm587_vm0, %v2888_v2, %v2889_v50 }
 0x48e   : > { %v2818_v9 = vld [vmem:[#allocation3 + $0x18] sm:$0x7f]  ;;  %3045 = vmatprep.mubr.f32.mxu0 %v2750_v33  ;;  %v6538_v33 = vld [vmem:[%s12283_s5 + $0x588] sm:$0xff] }
 0x48f   : > { %v2892_v11 = vrot.slane %v2818_v9, 1  ;;  %3046 = vmatmul.mubr.f32.gmra.mxu0 %v2749_v60  ;;  %v9162_v46 = vld [vmem:[#allocation3 + $0x18] sm:$0xff]  ;;  %v6537_v9 = vld [vmem:[%s12283_s5 + $0x580] sm:$0xff]  ;;  %v6535_v60 = vld [vmem:[%s12283_s5 + $0x570] sm:$0xff] }
 0x490   : > { %v3129_v13 = vrot.slane %v9162_v46, 2  ;;  %v6532_v2 = vld [vmem:[%s12283_s5 + $0x558] sm:$0xff] }
 0x491   : > { %v2893_v17 = vsel %vm587_vm0, %v2891_v10, %v2892_v11  ;;  %v6534_v10 = vld [vmem:[%s12283_s5 + $0x568] sm:$0xff]  ;;  %v6596_v46 = vld [vmem:[%s12285_s7 + $0x3f8] sm:$0xff] }
 0x492   : > { %2962 = vmatprep.mubr.f32.mxu1 %v2893_v17  ;;  %v3130_v16 = vsel %vm985_vm3, %v3128_v15, %v3129_v13  ;;  %v6531_v17 = vld [vmem:[%s12283_s5 + $0x550] sm:$0xff]  ;;  %v6524_v15 = vld [vmem:[%s12283_s5 + $0x518] sm:$0xff] }
 0x493   : > { %2963 = vmatmul.mubr.f32.vlgmr.msra.gmra.mxu1 %v2890_v3  ;;  %v6529_v3 = vld [vmem:[%s12283_s5 + $0x540] sm:$0xff] }
 0x494   : > { %3136 = vmatpush1.msra.mxu1 %v6519_v45  ;;  %2968 = vmatprep.mubr.f32.mxu1 %v2892_v11  ;;  %v6533_v11 = vld [vmem:[%s12283_s5 + $0x560] sm:$0xff]  ;;  %v6530_v45 = vld [vmem:[%s12283_s5 + $0x548] sm:$0xff] }
 0x495   : > { %3137 = vmatprep.subr.mxu1 %v6518_v53  ;;  %v6528_v53 = vld [vmem:[%s12283_s5 + $0x538] sm:$0xff] }
 0x496   : > { %3138 = vmatpush1.msra.mxu1 %v6517_v38  ;;  %v6526_v38 = vld [vmem:[%s12283_s5 + $0x528] sm:$0xff] }
 0x497   : > { %3139 = vmatprep.subr.mxu1 %v6516_v61  ;;  %2969 = vmatmul.mubr.f32.gmra.mxu1 %v2889_v50  ;;  %v6536_v50 = vld [vmem:[%s12283_s5 + $0x578] sm:$0xff]  ;;  %v6525_v61 = vld [vmem:[%s12283_s5 + $0x520] sm:$0xff] }
 0x498   : > { %3140 = vmatpush1.msra.mxu1 %v6515_v63  ;;  %3199 = vmatprep.mubr.f32.mxu1 %v3130_v16  ;;  %v3054_v63 = vld [vmem:[#allocation3 + $0x10] sm:$0xff]  ;;  %v3052_v16 = vld [vmem:[#allocation3] sm:$0xfc] }
 0x499   : > { %3141 = vmatprep.subr.mxu1 %v6514_v8  ;;  %v6523_v8 = vld [vmem:[%s12283_s5 + $0x510] sm:$0xff] }
 0x49a   : > { %3142 = vmatpush1.msra.mxu1 %v6513_v59  ;;  %v6522_v59 = vld [vmem:[%s12283_s5 + $0x508] sm:$0xff] }
 0x49b   : > { %3143 = vmatprep.subr.mxu1 %v6512_v43  ;;  %v3126_v43 = vrot.slane %v3054_v63, 2  ;;  %v6636_v63 = vld [vmem:[%s12285_s7 + $0x538] sm:$0xff] }
 0x49c   : > { %3144 = vmatpush1.msra.mxu1 %v6511_v5  ;;  %v6521_v5 = vld [vmem:[%s12283_s5 + $0x500] sm:$0xff] }
 0x49d   : > { %3145 = vmatprep.subr.mxu1 %v6510_v19  ;;  %v3125_v19 = vrot.slane %v3052_v16, 2  ;;  %v6633_v16 = vld [vmem:[%s12285_s7 + $0x520] sm:$0xff] }
 0x49e   : > { %3146 = vmatpush1.msra.mxu1 %v6509_v22 }
 0x49f   : > { %3147 = vmatprep.subr.mxu1 %v6508_v18  ;;  %v3127_v22 = vsel %vm985_vm3, %v3125_v19, %v3126_v43  ;;  %v12359_v18 = vmov 0.0   ;;  %v6630_v19 = vld [vmem:[%s12285_s7 + $0x508] sm:$0xff] }
 0x4a0   : > { %3148 = vmatpush1.msra.mxu1 %v6507_v24  ;;  %v6599_v24 = vld [vmem:[%s12285_s7 + $0x410] sm:$0xff] }
 0x4a1   : > { %3149 = vmatprep.subr.mxu1 %v6506_v25  ;;  %v6598_v25 = vld [vmem:[%s12285_s7 + $0x408] sm:$0xff]  ;;  %3430 = vmatprep.subr.mxu0 %v6599_v24  ;;  %v6625_v24 = vld [vmem:[%s12285_s7 + $0x4e0] sm:$0xff] }
 0x4a2   : > { %3150 = vmatpush1.msra.mxu1 %v6505_v26  ;;  %v6600_v26 = vld [vmem:[%s12285_s7 + $0x418] sm:$0xff]  ;;  %3431 = vmatpush1.msra.mxu0 %v6598_v25  ;;  %v6627_v25 = vld [vmem:[%s12285_s7 + $0x4f0] sm:$0xff] }
 0x4a3   : > { %3151 = vmatprep.subr.mxu1 %v6504_v29  ;;  %v6597_v29 = vld [vmem:[%s12285_s7 + $0x400] sm:$0xff]  ;;  %3432 = vmatprep.subr.mxu0 %v6596_v46  ;;  %v6622_v46 = vld [vmem:[%s12285_s7 + $0x4c8] sm:$0xff] }
 0x4a4   : > { %3152 = vmatpush1.msra.mxu1 %v6503_v31  ;;  %v6593_v31 = vld [vmem:[%s12285_s7 + $0x3e0] sm:$0xff] }
 0x4a5   : > { %3153 = vmatprep.subr.mxu1 %v6502_v32  ;;  %v6594_v32 = vld [vmem:[%s12285_s7 + $0x3e8] sm:$0xff] }
 0x4a6   : > { %3154 = vmatpush1.msra.mxu1 %v6501_v14  ;;  %v6592_v14 = vld [vmem:[%s12285_s7 + $0x3d8] sm:$0xff] }
 0x4a7   : > { %3155 = vmatprep.subr.mxu1 %v6500_v62  ;;  %v6590_v62 = vld [vmem:[%s12285_s7 + $0x3c8] sm:$0xff] }
 0x4a8   : > { %3156 = vmatpush1.msra.mxu1 %v6499_v27  ;;  %v6591_v27 = vld [vmem:[%s12285_s7 + $0x3d0] sm:$0xff] }
 0x4a9   : > { %3157 = vmatprep.subr.mxu1 %v6498_v21  ;;  %v6589_v21 = vld [vmem:[%s12285_s7 + $0x3c0] sm:$0xff] }
 0x4aa   : > { %3158 = vmatpush1.msra.mxu1 %v6497_v30  ;;  %v6587_v30 = vld [vmem:[%s12285_s7 + $0x3b0] sm:$0xff] }
 0x4ab   : > { %3159 = vmatprep.subr.mxu1 %v6496_v34  ;;  %v6588_v34 = vld [vmem:[%s12285_s7 + $0x3b8] sm:$0xff] }
 0x4ac   : > { %3160 = vmatpush1.msra.mxu1 %v6495_v35  ;;  %v6586_v35 = vld [vmem:[%s12285_s7 + $0x3a8] sm:$0xff] }
 0x4ad   : > { %3161 = vmatprep.subr.mxu1 %v6494_v23  ;;  %v6584_v23 = vld [vmem:[%s12285_s7 + $0x398] sm:$0xff] }
 0x4ae   : > { %3162 = vmatpush1.msra.mxu1 %v6493_v47  ;;  %v6585_v47 = vld [vmem:[%s12285_s7 + $0x3a0] sm:$0xff] }
 0x4af   : > { %3163 = vmatprep.subr.mxu1 %v6492_v48  ;;  %v6583_v48 = vld [vmem:[%s12285_s7 + $0x390] sm:$0xff] }
 0x4b0   : > { %3164 = vmatpush1.msra.mxu1 %v6491_v49  ;;  %v6581_v49 = vld [vmem:[%s12285_s7 + $0x380] sm:$0xff] }
 0x4b1   : > { %3165 = vmatprep.subr.mxu1 %v6490_v40  ;;  %v6582_v40 = vld [vmem:[%s12285_s7 + $0x388] sm:$0xff] }
 0x4b2   : > { %3166 = vmatpush1.msra.mxu1 %v6489_v41  ;;  %v6580_v41 = vld [vmem:[%s12285_s7 + $0x378] sm:$0xff] }
 0x4b3   : > { %3167 = vmatprep.subr.mxu1 %v6552_v52  ;;  %v6578_v52 = vld [vmem:[%s12285_s7 + $0x368] sm:$0xff] }
 0x4b4   : > { %3168 = vmatpush2.msra.mxu1 %v6551_v44  ;;  %v6579_v44 = vld [vmem:[%s12285_s7 + $0x370] sm:$0xff] }
 0x4b5   : > { %3169 = vmatprep.subr.mxu1 %v6550_v58  ;;  %v6577_v58 = vld [vmem:[%s12285_s7 + $0x360] sm:$0xff] }
 0x4b6   : > { %3170 = vmatpush2.msra.mxu1 %v6549_v39  ;;  %v6575_v39 = vld [vmem:[%s12285_s7 + $0x350] sm:$0xff] }
 0x4b7   : > { %3171 = vmatprep.subr.mxu1 %v6548_v6  ;;  %v6576_v6 = vld [vmem:[%s12285_s7 + $0x358] sm:$0xff] }
 0x4b8   : > { %3172 = vmatpush2.msra.mxu1 %v6547_v54  ;;  %v6574_v54 = vld [vmem:[%s12285_s7 + $0x348] sm:$0xff] }
 0x4b9   : > { %3173 = vmatprep.subr.mxu1 %v6546_v42  ;;  %v6572_v42 = vld [vmem:[%s12285_s7 + $0x338] sm:$0xff] }
 0x4ba   : > { %3174 = vmatpush2.msra.mxu1 %v6545_v36  ;;  %v6573_v36 = vld [vmem:[%s12285_s7 + $0x340] sm:$0xff] }
 0x4bb   : > { %3175 = vmatprep.subr.mxu1 %v6544_v55  ;;  %v6571_v55 = vld [vmem:[%s12285_s7 + $0x330] sm:$0xff] }
 0x4bc   : > { %3176 = vmatpush2.msra.mxu1 %v6543_v56  ;;  %v6569_v56 = vld [vmem:[%s12285_s7 + $0x320] sm:$0xff] }
 0x4bd   : > { %3177 = vmatprep.subr.mxu1 %v6542_v4  ;;  %v6570_v4 = vld [vmem:[%s12285_s7 + $0x328] sm:$0xff] }
 0x4be   : > { %3178 = vmatpush2.msra.mxu1 %v6541_v57  ;;  %v6568_v57 = vld [vmem:[%s12285_s7 + $0x318] sm:$0xff] }
 0x4bf   : > { %3179 = vmatprep.subr.mxu1 %v6540_v7  ;;  %v6566_v7 = vld [vmem:[%s12285_s7 + $0x308] sm:$0xff] }
 0x4c0   : > { %3180 = vmatpush2.msra.mxu1 %v6539_v51  ;;  %v6567_v51 = vld [vmem:[%s12285_s7 + $0x310] sm:$0xff] }
 0x4c1   : > { %3181 = vmatprep.subr.mxu1 %v6538_v33  ;;  %v6565_v33 = vld [vmem:[%s12285_s7 + $0x300] sm:$0xff] }
 0x4c2   : > { %3182 = vmatpush2.msra.mxu1 %v6537_v9  ;;  %v6563_v9 = vld [vmem:[%s12285_s7 + $0x2f0] sm:$0xff] }
 0x4c3   : > { %3183 = vmatprep.subr.mxu1 %v6536_v50  ;;  %v6564_v50 = vld [vmem:[%s12285_s7 + $0x2f8] sm:$0xff] }
 0x4c4   : > { %3184 = vmatpush2.msra.mxu1 %v6535_v60  ;;  %v6562_v60 = vld [vmem:[%s12285_s7 + $0x2e8] sm:$0xff] }
 0x4c5   : > { %3185 = vmatprep.subr.mxu1 %v6534_v10  ;;  %v6560_v10 = vld [vmem:[%s12285_s7 + $0x2d8] sm:$0xff] }
 0x4c6   : > { %3186 = vmatpush2.msra.mxu1 %v6533_v11  ;;  %v6561_v11 = vld [vmem:[%s12285_s7 + $0x2e0] sm:$0xff] }
 0x4c7   : > { %3187 = vmatprep.subr.mxu1 %v6532_v2  ;;  %v6559_v2 = vld [vmem:[%s12285_s7 + $0x2d0] sm:$0xff] }
 0x4c8   : > { %3188 = vmatpush2.msra.mxu1 %v6531_v17  ;;  %v6557_v17 = vld [vmem:[%s12285_s7 + $0x2c0] sm:$0xff] }
 0x4c9   : > { %3189 = vmatprep.subr.mxu1 %v6530_v45  ;;  %v6558_v45 = vld [vmem:[%s12285_s7 + $0x2c8] sm:$0xff] }
 0x4ca   : > { %3190 = vmatpush2.msra.mxu1 %v6529_v3  ;;  %v6556_v3 = vld [vmem:[%s12285_s7 + $0x2b8] sm:$0xff] }
 0x4cb   : > { %3191 = vmatprep.subr.mxu1 %v6528_v53  ;;  %v6554_v53 = vld [vmem:[%s12285_s7 + $0x2a8] sm:$0xff] }
 0x4cc   : > { %3192 = vmatpush2.msra.mxu1 %v6527_v12  ;;  %v6555_v12 = vld [vmem:[%s12285_s7 + $0x2b0] sm:$0xff] }
 0x4cd   : > { %3193 = vmatprep.subr.mxu1 %v6526_v38  ;;  %v6553_v38 = vld [vmem:[%s12285_s7 + $0x2a0] sm:$0xff] }
 0x4ce   : > { %3194 = vmatpush2.msra.mxu1 %v6525_v61  ;;  %v6635_v61 = vld [vmem:[%s12285_s7 + $0x530] sm:$0xff] }
 0x4cf   : > { %3195 = vmatprep.subr.mxu1 %v6524_v15  ;;  %v6634_v15 = vld [vmem:[%s12285_s7 + $0x528] sm:$0xff] }
 0x4d0   : > { %3196 = vmatpush2.msra.mxu1 %v6523_v8  ;;  %v6632_v8 = vld [vmem:[%s12285_s7 + $0x518] sm:$0xff] }
 0x4d1   : > { %3197 = vmatprep.subr.mxu1 %v6522_v59  ;;  %v6631_v59 = vld [vmem:[%s12285_s7 + $0x510] sm:$0xff] }
 0x4d2   : > { %3198 = vmatpush2.msra.mxu1 %v6521_v5  ;;  %v6628_v5 = vld [vmem:[%s12285_s7 + $0x4f8] sm:$0xff] }
 0x4d3   : > { %3200 = vmatmul.mubr.f32.vlgmr.msra.gmra.mxu1 %v3127_v22  ;;  %3507 = vmatprep.subr.mxu1 %v12359_v18  ;;  %v6626_v22 = vld [vmem:[%s12285_s7 + $0x4e8] sm:$0xff] }
 0x4d4   : > { %3205 = vmatprep.mubr.f32.mxu1 %v3129_v13  ;;  %3508 = vmatpush1.msra.mxu1 %v6600_v26  ;;  %v6595_v13 = vld [vmem:[%s12285_s7 + $0x3f0] sm:$0xff] }
 0x4d5   : > { %3509 = vmatprep.subr.mxu1 %v12359_v18  ;;  %3433 = vmatpush1.msra.mxu0 %v6595_v13  ;;  %v6623_v26 = vld [vmem:[%s12285_s7 + $0x4d0] sm:$0xff]  ;;  %v6624_v13 = vld [vmem:[%s12285_s7 + $0x4d8] sm:$0xff] }
 0x4d6   : > { %3510 = vmatpush1.msra.mxu1 %v6597_v29  ;;  %3434 = vmatprep.subr.mxu0 %v6593_v31  ;;  %v6620_v29 = vld [vmem:[%s12285_s7 + $0x4b8] sm:$0xff]  ;;  %v6619_v31 = vld [vmem:[%s12285_s7 + $0x4b0] sm:$0xff] }
 0x4d7   : > { %3206 = vmatmul.mubr.f32.gmra.mxu1 %v3126_v43  ;;  %3511 = vmatprep.subr.mxu1 %v12359_v18  ;;  %v6629_v43 = vld [vmem:[%s12285_s7 + $0x500] sm:$0xff] }
 0x4d8   : > { %3512 = vmatpush1.msra.mxu1 %v6594_v32  ;;  %3435 = vmatpush1.msra.mxu0 %v6592_v14  ;;  %v6621_v32 = vld [vmem:[%s12285_s7 + $0x4c0] sm:$0xff] }
 0x4d9   : > { %3513 = vmatprep.subr.mxu1 %v12359_v18  ;;  %3436 = vmatprep.subr.mxu0 %v6590_v62  ;;  %v6617_v14 = vld [vmem:[%s12285_s7 + $0x4a0] sm:$0xff]  ;;  %v6616_v62 = vld [vmem:[%s12285_s7 + $0x498] sm:$0xff] }
 0x4da   : > { %3514 = vmatpush1.msra.mxu1 %v6591_v27  ;;  %3437 = vmatpush1.msra.mxu0 %v6589_v21  ;;  %v6618_v27 = vld [vmem:[%s12285_s7 + $0x4a8] sm:$0xff] }
 0x4db   : > { %3515 = vmatprep.subr.mxu1 %v12359_v18  ;;  %3438 = vmatprep.subr.mxu0 %v6587_v30  ;;  %v6614_v21 = vld [vmem:[%s12285_s7 + $0x488] sm:$0xff]  ;;  %v6613_v30 = vld [vmem:[%s12285_s7 + $0x480] sm:$0xff] }
 0x4dc   : > { %3516 = vmatpush1.msra.mxu1 %v6588_v34  ;;  %3439 = vmatpush1.msra.mxu0 %v6586_v35  ;;  %v6615_v34 = vld [vmem:[%s12285_s7 + $0x490] sm:$0xff] }
 0x4dd   : > { %3517 = vmatprep.subr.mxu1 %v12359_v18  ;;  %3440 = vmatprep.subr.mxu0 %v6584_v23  ;;  %v6611_v35 = vld [vmem:[%s12285_s7 + $0x470] sm:$0xff]  ;;  %v6610_v23 = vld [vmem:[%s12285_s7 + $0x468] sm:$0xff] }
 0x4de   : > { %3518 = vmatpush1.msra.mxu1 %v6585_v47  ;;  %3441 = vmatpush1.msra.mxu0 %v6583_v48  ;;  %v6612_v47 = vld [vmem:[%s12285_s7 + $0x478] sm:$0xff] }
 0x4df   : > { %3519 = vmatprep.subr.mxu1 %v12359_v18  ;;  %3442 = vmatprep.subr.mxu0 %v6581_v49  ;;  %v6608_v48 = vld [vmem:[%s12285_s7 + $0x458] sm:$0xff]  ;;  %v6607_v49 = vld [vmem:[%s12285_s7 + $0x450] sm:$0xff] }
 0x4e0   : > { %3520 = vmatpush1.msra.mxu1 %v6582_v40  ;;  %3443 = vmatpush1.msra.mxu0 %v6580_v41  ;;  %v6609_v40 = vld [vmem:[%s12285_s7 + $0x460] sm:$0xff] }
 0x4e1   : > { %3521 = vmatprep.subr.mxu1 %v12359_v18  ;;  %3444 = vmatprep.subr.mxu0 %v6578_v52  ;;  %v6605_v41 = vld [vmem:[%s12285_s7 + $0x440] sm:$0xff]  ;;  %v6604_v52 = vld [vmem:[%s12285_s7 + $0x438] sm:$0xff] }
 0x4e2   : > { %3522 = vmatpush1.msra.mxu1 %v6579_v44  ;;  %3445 = vmatpush1.msra.mxu0 %v6577_v58  ;;  %v6606_v44 = vld [vmem:[%s12285_s7 + $0x448] sm:$0xff] }
 0x4e3   : > { %3523 = vmatprep.subr.mxu1 %v12359_v18  ;;  %3446 = vmatprep.subr.mxu0 %v6575_v39  ;;  %v6602_v58 = vld [vmem:[%s12285_s7 + $0x428] sm:$0xff]  ;;  %v6601_v39 = vld [vmem:[%s12285_s7 + $0x420] sm:$0xff] }
 0x4e4   : > { %3524 = vmatpush1.msra.mxu1 %v6576_v6  ;;  %3447 = vmatpush1.msra.mxu0 %v6574_v54  ;;  %v6603_v6 = vld [vmem:[%s12285_s7 + $0x430] sm:$0xff] }
 0x4e5   : > { %3525 = vmatprep.subr.mxu1 %v12359_v18  ;;  %3448 = vmatprep.subr.mxu0 %v6572_v42  ;;  %v3290_v54 = vld [vmem:[%s12285_s7 + $0x170] sm:$0xff] }
 0x4e6   : > { %3526 = vmatpush1.msra.mxu1 %v6573_v36  ;;  %3449 = vmatpush1.msra.mxu0 %v6571_v55 }
 0x4e7   : > { %3527 = vmatprep.subr.mxu1 %v12359_v18  ;;  %3450 = vmatprep.subr.mxu0 %v6569_v56 }
 0x4e8   : > { %3528 = vmatpush1.msra.mxu1 %v6570_v4  ;;  %3451 = vmatpush1.msra.mxu0 %v6568_v57  ;;  %v3216_v57 = vld [vmem:[%s12284_s6] sm:$0x3] }
 0x4e9   : > { %3529 = vmatprep.subr.mxu1 %v12359_v18  ;;  %3452 = vmatprep.subr.mxu0 %v6566_v7 }
 0x4ea   : > { %3530 = vmatpush1.msra.mxu1 %v6567_v51  ;;  %3453 = vmatpush1.msra.mxu0 %v6565_v33  ;;  %v3221_v33 = vrot.slane %v3216_v57, %v12357_v28 }
 0x4eb   : > { %3531 = vmatprep.subr.mxu1 %v12359_v18  ;;  %3454 = vmatprep.subr.mxu0 %v6563_v9 }
 0x4ec   : > { %3532 = vmatpush1.msra.mxu1 %v6564_v50  ;;  %3455 = vmatpush1.msra.mxu0 %v6562_v60 }
 0x4ed   : > { %3533 = vmatprep.subr.mxu1 %v12359_v18  ;;  %3456 = vmatprep.subr.mxu0 %v6560_v10 }
 0x4ee   : > { %3534 = vmatpush1.msra.mxu1 %v6561_v11  ;;  %3457 = vmatpush1.msra.mxu0 %v6559_v2  ;;  %v3225_v11 = vrot.slane %v3216_v57, %v12358_v0  ;;  %v3275_v57 = vld [vmem:[%s12285_s7 + $0xf8] sm:$0xff] }
 0x4ef   : > { %3535 = vmatprep.subr.mxu1 %v12359_v18  ;;  %3458 = vmatprep.subr.mxu0 %v6557_v17 }
 0x4f0   : > { %3536 = vmatpush1.msra.mxu1 %v6558_v45  ;;  %3459 = vmatpush1.msra.mxu0 %v6556_v3 }
 0x4f1   : > { %3537 = vmatprep.subr.mxu1 %v12359_v18  ;;  %3460 = vmatprep.subr.mxu0 %v6554_v53 }
 0x4f2   : > { %3538 = vmatpush1.msra.mxu1 %v6555_v12  ;;  %3461 = vmatpush1.msra.mxu0 %v6553_v38 }
 0x4f3   : > { %3547 = vmatprep.subr.mxu1 %v12359_v18  ;;  %3470 = vmatprep.subr.mxu0 %v6635_v61 }
 0x4f4   : > { %3548 = vmatpush2.msra.mxu1 %v6636_v63  ;;  %3471 = vmatpush2.msra.mxu0 %v6634_v15 }
 0x4f5   : > { %3549 = vmatprep.subr.mxu1 %v12359_v18  ;;  %3472 = vmatprep.subr.mxu0 %v6632_v8 }
 0x4f6   : > { %3550 = vmatpush2.msra.mxu1 %v6633_v16  ;;  %3473 = vmatpush2.msra.mxu0 %v6631_v59 }
 0x4f7   : > { %3551 = vmatprep.subr.mxu1 %v12359_v18  ;;  %3474 = vmatprep.subr.mxu0 %v6629_v43 }
 0x4f8   : > { %3475 = vmatpush2.msra.mxu0 %v6628_v5  ;;  %3552 = vmatpush2.msra.mxu1 %v6630_v19  ;;  %v7317_v5 = vld [vmem:[#allocation2 + $0x8] sm:$0xff] }
 0x4f9   : > { %3476 = vmatprep.subr.mxu0 %v6626_v22  ;;  %3553 = vmatprep.subr.mxu1 %v12359_v18 }
 0x4fa   : > { %3477 = vmatpush2.msra.mxu0 %v6625_v24  ;;  %3554 = vmatpush2.msra.mxu1 %v6627_v25  ;;  %v7318_v25 = vld [vmem:[#allocation2] sm:$0xff] }
 0x4fb   : > { %3478 = vmatprep.subr.mxu0 %v6623_v26  ;;  %3555 = vmatprep.subr.mxu1 %v12359_v18 }
 0x4fc   : > { %3479 = vmatpush2.msra.mxu0 %v6622_v46  ;;  %3556 = vmatpush2.msra.mxu1 %v6624_v13  ;;  %v7319_v46 = vld [vmem:[#allocation2 + $0x10] sm:$0x3f] }
 0x4fd   : > { %3480 = vmatprep.subr.mxu0 %v6620_v29  ;;  %3557 = vmatprep.subr.mxu1 %v12359_v18 }
 0x4fe   : > { %3481 = vmatpush2.msra.mxu0 %v6619_v31  ;;  %3558 = vmatpush2.msra.mxu1 %v6621_v32 }
 0x4ff   : > { %3482 = vmatprep.subr.mxu0 %v6617_v14  ;;  %3559 = vmatprep.subr.mxu1 %v12359_v18  ;;  %v7320_v14 = vld [vmem:[#allocation2 + $0x18] sm:$0x3f] }
 0x500   : > { %3483 = vmatpush2.msra.mxu0 %v6616_v62  ;;  %3560 = vmatpush2.msra.mxu1 %v6618_v27 }
 0x501   : > { %3484 = vmatprep.subr.mxu0 %v6614_v21  ;;  %3561 = vmatprep.subr.mxu1 %v12359_v18 }
 0x502   : > { %3485 = vmatpush2.msra.mxu0 %v6613_v30  ;;  %3562 = vmatpush2.msra.mxu1 %v6615_v34 }
 0x503   : > { %3486 = vmatprep.subr.mxu0 %v6611_v35  ;;  %3563 = vmatprep.subr.mxu1 %v12359_v18 }
 0x504   : > { %3487 = vmatpush2.msra.mxu0 %v6610_v23  ;;  %3564 = vmatpush2.msra.mxu1 %v6612_v47 }
 0x505   : > { %3488 = vmatprep.subr.mxu0 %v6608_v48  ;;  %3565 = vmatprep.subr.mxu1 %v12359_v18  ;;  %v3289_v48 = vld [vmem:[%s12285_s7 + $0x168] sm:$0xff] }
 0x506   : > { %3489 = vmatpush2.msra.mxu0 %v6607_v49  ;;  %3566 = vmatpush2.msra.mxu1 %v6609_v40  ;;  %v3291_v49 = vld [vmem:[%s12285_s7 + $0x178] sm:$0xff] }
 0x507   : > { %3490 = vmatprep.subr.mxu0 %v6605_v41  ;;  %3567 = vmatprep.subr.mxu1 %v12359_v18  ;;  %v3287_v41 = vld [vmem:[%s12285_s7 + $0x158] sm:$0xff] }
 0x508   : > { %3491 = vmatpush2.msra.mxu0 %v6604_v52  ;;  %3568 = vmatpush2.msra.mxu1 %v6606_v44  ;;  %v3286_v52 = vld [vmem:[%s12285_s7 + $0x150] sm:$0xff]  ;;  %v3288_v44 = vld [vmem:[%s12285_s7 + $0x160] sm:$0xff] }
 0x509   : > { %3492 = vmatprep.subr.mxu0 %v6602_v58  ;;  %3569 = vmatprep.subr.mxu1 %v12359_v18  ;;  %v3284_v58 = vld [vmem:[%s12285_s7 + $0x140] sm:$0xff] }
 0x50a   : > { %3493 = vmatpush2.msra.mxu0 %v6601_v39  ;;  %3570 = vmatpush2.msra.mxu1 %v6603_v6  ;;  %v3283_v39 = vld [vmem:[%s12285_s7 + $0x138] sm:$0xff]  ;;  %v3285_v6 = vld [vmem:[%s12285_s7 + $0x148] sm:$0xff] }
 0x50b   : > { %3586 = vmatprep.subr.mxu0 %v3290_v54  ;;  %3663 = vmatprep.subr.mxu1 %v12359_v18  ;;  %v3281_v54 = vld [vmem:[%s12285_s7 + $0x128] sm:$0xff] }
 0x54a   : > { %v3041_v55 = vpop.f32.mrf.mxu0 }
 0x54c   : > { %v3043_v4 = vpop.f32.mrf.mxu0 }
 0x54f   : > { %v3047_v9 = vpop.f32.mrf.mxu0 }
 0x551   : > { %v3049_v53 = vpop.f32.mrf.mxu0 }
 0x553   : > { %v2964_v42 = vpop.f32.mrf.mxu1 }
 0x554   : > { %v3042_v51 = vadd.f32 %v3041_v55, %v2964_v42  ;;  %v3280_v42 = vld [vmem:[%s12285_s7 + $0x120] sm:$0xff]  ;;  %v3278_v55 = vld [vmem:[%s12285_s7 + $0x110] sm:$0xff] }
 0x555   : > { %v2966_v36 = vpop.f32.mrf.mxu1 }
 0x556   : > { %v3044_v60 = vadd.f32 %v3043_v4, %v2966_v36  ;;  %v3282_v36 = vld [vmem:[%s12285_s7 + $0x130] sm:$0xff]  ;;  %v3279_v4 = vld [vmem:[%s12285_s7 + $0x118] sm:$0xff] }
 0x557   : > { %v2970_v56 = vpop.f32.mrf.mxu1 }
 0x558   : > { %v3048_v17 = vadd.f32 %v3047_v9, %v2970_v56  ;;  %v3277_v56 = vld [vmem:[%s12285_s7 + $0x108] sm:$0xff]  ;;  %v3271_v9 = vld [vmem:[%s12285_s7 + $0xd8] sm:$0xff] }
 0x559   : > { %v2972_v7 = vpop.f32.mrf.mxu1 }
 0x55a   : > { %v3050_v38 = vadd.f32 %v3049_v53, %v2972_v7  ;;  %v3274_v7 = vld [vmem:[%s12285_s7 + $0xf0] sm:$0xff] }
 0x55b   : > { %v3262_v53 = vld [vmem:[%s12285_s7 + $0x90] sm:$0xff] }
 0x593   : > { %v3201_v50 = vpop.f32.mrf.mxu1 }
 0x594   : > { %v3212_v10 = vadd.f32 %v3201_v50, %v3042_v51  ;;  %v3276_v51 = vld [vmem:[%s12285_s7 + $0x100] sm:$0xff]  ;;  %v3273_v50 = vld [vmem:[%s12285_s7 + $0xe8] sm:$0xff] }
 0x595   : > { %v3203_v2 = vpop.f32.mrf.mxu1 }
 0x596   : > { %v3228_v45 = vadd.f32 %v3221_v33, %v3212_v10  ;;  %v3213_v3 = vadd.f32 %v3203_v2, %v3044_v60  ;;  %v3269_v60 = vld [vmem:[%s12285_s7 + $0xc8] sm:$0xff]  ;;  %v3268_v10 = vld [vmem:[%s12285_s7 + $0xc0] sm:$0xff]  ;;  %v3266_v2 = vld [vmem:[%s12285_s7 + $0xb0] sm:$0xff] }
 0x597   : > { %v3207_v12 = vpop.f32.mrf.mxu1 }
 0x598   : > { %v3229_v61 = vadd.f32 %v3225_v11, %v3213_v3  ;;  %v3214_v63 = vadd.f32 %v3207_v12, %v3048_v17  ;;  %v3232_v15 = vmax.f32 %v3228_v45, 0.0  ;;  %v3265_v17 = vld [vmem:[%s12285_s7 + $0xa8] sm:$0xff]  ;;  %v3267_v45 = vld [vmem:[%s12285_s7 + $0xb8] sm:$0xff]  ;;  %v3264_v12 = vld [vmem:[%s12285_s7 + $0xa0] sm:$0xff] }
 0x599   : > { %v3209_v8 = vpop.f32.mrf.mxu1  ;;  %v3263_v3 = vld [vmem:[%s12285_s7 + $0x98] sm:$0xff] }
 0x59a   : > { %v3233_v16 = vmax.f32 %v3229_v61, 0.0  ;;  %v3230_v59 = vadd.f32 %v3221_v33, %v3214_v63  ;;  %v3215_v43 = vadd.f32 %v3209_v8, %v3050_v38  ;;  %v3236_v26 = vadd.f32 %v7318_v25, %v3232_v15  ;;  %v3272_v33 = vld [vmem:[%s12285_s7 + $0xe0] sm:$0xff]  ;;  %v3259_v61 = vld [vmem:[%s12285_s7 + $0x78] sm:$0xff]  ;;  %v3261_v63 = vld [vmem:[%s12285_s7 + $0x88] sm:$0xff] }
 0x59b   : > { %v3260_v38 = vld [vmem:[%s12285_s7 + $0x80] sm:$0xff]  ;;  %v3257_v15 = vld [vmem:[%s12285_s7 + $0x68] sm:$0xff] }
 0x59c   : > { %v3237_v19 = vadd.f32 %v7317_v5, %v3233_v16  ;;  %v3234_v22 = vmax.f32 %v3230_v59, 0.0  ;;  %v3231_v24 = vadd.f32 %v3225_v11, %v3215_v43  ;;  %v9655_v27 = vmax.f32 %v3236_v26, 0.0  ;;  %v3270_v11 = vld [vmem:[%s12285_s7 + $0xd0] sm:$0xff]  ;;  %v3256_v8 = vld [vmem:[%s12285_s7 + $0x60] sm:$0xff]  ;;  %v3253_v43 = vld [vmem:[%s12285_s7 + $0x48] sm:$0xff] }
 0x59d   : > { %v3258_v16 = vld [vmem:[%s12285_s7 + $0x70] sm:$0xff]  ;;  %v3255_v5 = vld [vmem:[%s12285_s7 + $0x58] sm:$0xff]  ;;  %v3248_v25 = vld [vmem:[%s12285_s7 + $0x20] sm:$0xff] }
 0x59e   : > { %v3238_v13 = vadd.f32 %v7319_v46, %v3234_v22  ;;  %v3235_v29 = vmax.f32 %v3231_v24, 0.0  ;;  %v9651_v31 = vmax.f32 %v3237_v19, 0.0  ;;  %v3417_v23 = vrot.slane %v9655_v27, 1  ;;  %v3254_v59 = vld [vmem:[%s12285_s7 + $0x50] sm:$0xff]  ;;  %v3251_v19 = vld [vmem:[%s12285_s7 + $0x38] sm:$0xff]  ;;  %v3252_v24 = vld [vmem:[%s12285_s7 + $0x40] sm:$0xff] }
 0x59f   : > { %v3250_v22 = vld [vmem:[%s12285_s7 + $0x30] sm:$0xff]  ;;  %v3247_v26 = vld [vmem:[%s12285_s7 + $0x18] sm:$0xff]  ;;  %v3249_v46 = vld [vmem:[%s12285_s7 + $0x28] sm:$0xff] }
 0x5a0   : > { %v9653_v32 = vmax.f32 %v3238_v13, 0.0  ;;  %v3239_v62 = vadd.f32 %v7320_v14, %v3235_v29  ;;  %v3420_v34 = vrot.slane %v9651_v31, 1  ;;  %v3245_v13 = vld [vmem:[%s12285_s7 + $0x8] sm:$0xff]  ;;  %v3244_v29 = vld [vmem:[%s12285_s7] sm:$0xff]  ;;  %v3246_v14 = vld [vmem:[%s12285_s7 + $0x10] sm:$0xff] }
 0x5a2   : > { %v9657_v21 = vmax.f32 %v3239_v62, 0.0  ;;  %v3418_v30 = vrot.slane %v9653_v32, 1  ;;  %v3326_v62 = vld [vmem:[%s12285_s7 + $0x290] sm:$0xff] }
 0x5a4   : > { %v3421_v35 = vrot.slane %v9657_v21, 1  ;;  %v3419_v40 = vsel %vm587_vm0, %v3417_v23, %v3418_v30  ;;  %v3322_v23 = vld [vmem:[%s12285_s7 + $0x270] sm:$0xff] }
 0x5a6   : > { %v3422_v47 = vsel %vm587_vm0, %v3420_v34, %v3421_v35  ;;  %v3327_v34 = vld [vmem:[%s12285_s7 + $0x298] sm:$0xff]  ;;  %vm4571_vm0 = vcmp.lt.s32.totalorder %v12354_v20, 320 }
 0x5a7   : > { %6637 = vmatprep.mubr.msk.f32.mxu0 %vm3425_vm6, %v3422_v47  ;;  %6639 = vmatprep.mubr.msk.f32.mxu1 %vm3425_vm6, %v3422_v47  ;;  %v3324_v47 = vld [vmem:[%s12285_s7 + $0x280] sm:$0xff] }
 0x5a8   : > { %3495 = vmatmul.mubr.f32.vlgmr.msra.gmra.mxu0 %v3419_v40  ;;  %3572 = vmatmul.mubr.f32.vlgmr.msra.gmra.mxu1 %v3419_v40  ;;  %v3321_v40 = vld [vmem:[%s12285_s7 + $0x268] sm:$0xff] }
 0x5a9   : > { %3587 = vmatpush1.msra.mxu0 %v3289_v48  ;;  %3664 = vmatpush1.msra.mxu1 %v3291_v49  ;;  %v3320_v48 = vld [vmem:[%s12285_s7 + $0x260] sm:$0xff]  ;;  %v3319_v49 = vld [vmem:[%s12285_s7 + $0x258] sm:$0xff] }
 0x5aa   : > { %6638 = vmatprep.mubr.msk.f32.mxu0 %vm3425_vm6, %v3421_v35  ;;  %6640 = vmatprep.mubr.msk.f32.mxu1 %vm3425_vm6, %v3421_v35  ;;  %v3323_v35 = vld [vmem:[%s12285_s7 + $0x278] sm:$0xff] }
 0x5ab   : > { %3588 = vmatprep.subr.mxu0 %v3287_v41  ;;  %3665 = vmatprep.subr.mxu1 %v12359_v18  ;;  %v3317_v41 = vld [vmem:[%s12285_s7 + $0x248] sm:$0xff] }
 0x5ac   : > { %3589 = vmatpush1.msra.mxu0 %v3286_v52  ;;  %3666 = vmatpush1.msra.mxu1 %v3288_v44  ;;  %v3316_v52 = vld [vmem:[%s12285_s7 + $0x240] sm:$0xff]  ;;  %v3318_v44 = vld [vmem:[%s12285_s7 + $0x250] sm:$0xff] }
 0x5ad   : > { %3590 = vmatprep.subr.mxu0 %v3284_v58  ;;  %3667 = vmatprep.subr.mxu1 %v12359_v18  ;;  %v3314_v58 = vld [vmem:[%s12285_s7 + $0x230] sm:$0xff] }
 0x5ae   : > { %3501 = vmatmul.mubr.f32.gmra.mxu0 %v3418_v30  ;;  %3577 = vmatmul.mubr.f32.gmra.mxu1 %v3418_v30  ;;  %v3325_v30 = vld [vmem:[%s12285_s7 + $0x288] sm:$0xff] }
 0x5af   : > { %3591 = vmatpush1.msra.mxu0 %v3283_v39  ;;  %3668 = vmatpush1.msra.mxu1 %v3285_v6  ;;  %v3313_v39 = vld [vmem:[%s12285_s7 + $0x228] sm:$0xff]  ;;  %v3315_v6 = vld [vmem:[%s12285_s7 + $0x238] sm:$0xff] }
 0x5b0   : > { %3592 = vmatprep.subr.mxu0 %v3281_v54  ;;  %6641 = vmatprep.mubr.msk.f32.mxu0 %vm3425_vm6, %v9651_v31  ;;  %v3311_v54 = vld [vmem:[%s12285_s7 + $0x218] sm:$0xff] }
 0x5b1   : > { %3669 = vmatprep.subr.mxu1 %v12359_v18  ;;  %6643 = vmatprep.mubr.msk.f32.mxu1 %vm3425_vm6, %v9651_v31 }
 0x5b2   : > { %3593 = vmatpush1.msra.mxu0 %v3280_v42  ;;  %3670 = vmatpush1.msra.mxu1 %v3282_v36  ;;  %v3310_v42 = vld [vmem:[%s12285_s7 + $0x210] sm:$0xff]  ;;  %v3312_v36 = vld [vmem:[%s12285_s7 + $0x220] sm:$0xff] }
 0x5b3   : > { %3594 = vmatprep.subr.mxu0 %v3278_v55  ;;  %3671 = vmatprep.subr.mxu1 %v12359_v18  ;;  %v3308_v55 = vld [vmem:[%s12285_s7 + $0x200] sm:$0xff] }
 0x5b4   : > { %3595 = vmatpush1.msra.mxu0 %v3277_v56  ;;  %3672 = vmatpush1.msra.mxu1 %v3279_v4  ;;  %v3307_v56 = vld [vmem:[%s12285_s7 + $0x1f8] sm:$0xff]  ;;  %v3309_v4 = vld [vmem:[%s12285_s7 + $0x208] sm:$0xff] }
 0x5b5   : > { %3596 = vmatprep.subr.mxu0 %v3275_v57  ;;  %3673 = vmatprep.subr.mxu1 %v12359_v18  ;;  %v3305_v57 = vld [vmem:[%s12285_s7 + $0x1e8] sm:$0xff] }
 0x5b6   : > { %3597 = vmatpush1.msra.mxu0 %v3274_v7  ;;  %3674 = vmatpush1.msra.mxu1 %v3276_v51  ;;  %v3304_v7 = vld [vmem:[%s12285_s7 + $0x1e0] sm:$0xff]  ;;  %v3306_v51 = vld [vmem:[%s12285_s7 + $0x1f0] sm:$0xff] }
 0x5b7   : > { %3598 = vmatprep.subr.mxu0 %v3272_v33  ;;  %3675 = vmatprep.subr.mxu1 %v12359_v18  ;;  %v3302_v33 = vld [vmem:[%s12285_s7 + $0x1d0] sm:$0xff] }
 0x5b8   : > { %3599 = vmatpush1.msra.mxu0 %v3271_v9  ;;  %3676 = vmatpush1.msra.mxu1 %v3273_v50  ;;  %v3301_v9 = vld [vmem:[%s12285_s7 + $0x1c8] sm:$0xff]  ;;  %v3303_v50 = vld [vmem:[%s12285_s7 + $0x1d8] sm:$0xff] }
 0x5b9   : > { %3600 = vmatprep.subr.mxu0 %v3269_v60  ;;  %3677 = vmatprep.subr.mxu1 %v12359_v18  ;;  %v3299_v60 = vld [vmem:[%s12285_s7 + $0x1b8] sm:$0xff] }
 0x5ba   : > { %3601 = vmatpush1.msra.mxu0 %v3268_v10  ;;  %3678 = vmatpush1.msra.mxu1 %v3270_v11  ;;  %v3298_v10 = vld [vmem:[%s12285_s7 + $0x1b0] sm:$0xff]  ;;  %v3300_v11 = vld [vmem:[%s12285_s7 + $0x1c0] sm:$0xff] }
 0x5bb   : > { %3602 = vmatprep.subr.mxu0 %v3266_v2  ;;  %3679 = vmatprep.subr.mxu1 %v12359_v18  ;;  %v3296_v2 = vld [vmem:[%s12285_s7 + $0x1a0] sm:$0xff] }
 0x5bc   : > { %3603 = vmatpush1.msra.mxu0 %v3265_v17  ;;  %3680 = vmatpush1.msra.mxu1 %v3267_v45  ;;  %v3295_v17 = vld [vmem:[%s12285_s7 + $0x198] sm:$0xff]  ;;  %v3297_v45 = vld [vmem:[%s12285_s7 + $0x1a8] sm:$0xff] }
 0x5bd   : > { %3604 = vmatprep.subr.mxu0 %v3263_v3  ;;  %3681 = vmatprep.subr.mxu1 %v12359_v18  ;;  %v3293_v3 = vld [vmem:[%s12285_s7 + $0x188] sm:$0xff] }
 0x5be   : > { %3605 = vmatpush1.msra.mxu0 %v3262_v53  ;;  %3682 = vmatpush1.msra.mxu1 %v3264_v12  ;;  %v3292_v53 = vld [vmem:[%s12285_s7 + $0x180] sm:$0xff]  ;;  %v3294_v12 = vld [vmem:[%s12285_s7 + $0x190] sm:$0xff] }
 0x5bf   : > { %3606 = vmatprep.subr.mxu0 %v3260_v38  ;;  %3683 = vmatprep.subr.mxu1 %v12359_v18  ;;  %v6691_v38 = vld [vmem:[%s12285_s7 + $0x6b0] sm:$0xff] }
 0x5c0   : > { %3607 = vmatpush1.msra.mxu0 %v3259_v61  ;;  %3684 = vmatpush1.msra.mxu1 %v3261_v63  ;;  %v6690_v61 = vld [vmem:[%s12285_s7 + $0x6a8] sm:$0xff]  ;;  %v6692_v63 = vld [vmem:[%s12285_s7 + $0x6b8] sm:$0xff] }
 0x5c1   : > { %3608 = vmatprep.subr.mxu0 %v3257_v15  ;;  %3685 = vmatprep.subr.mxu1 %v12359_v18  ;;  %v6688_v15 = vld [vmem:[%s12285_s7 + $0x698] sm:$0xff] }
 0x5c2   : > { %3609 = vmatpush1.msra.mxu0 %v3256_v8  ;;  %3686 = vmatpush1.msra.mxu1 %v3258_v16  ;;  %v6687_v8 = vld [vmem:[%s12285_s7 + $0x690] sm:$0xff]  ;;  %v6689_v16 = vld [vmem:[%s12285_s7 + $0x6a0] sm:$0xff] }
 0x5c3   : > { %3610 = vmatprep.subr.mxu0 %v3254_v59  ;;  %3687 = vmatprep.subr.mxu1 %v12359_v18  ;;  %v9975_v59 = vrot.slane %v9657_v21, 2 }
 0x5c4   : > { %3611 = vmatpush1.msra.mxu0 %v3253_v43  ;;  %3688 = vmatpush1.msra.mxu1 %v3255_v5  ;;  %v6685_v43 = vld [vmem:[%s12285_s7 + $0x680] sm:$0xff]  ;;  %v6684_v5 = vld [vmem:[%s12285_s7 + $0x678] sm:$0xff] }
 0x5c5   : > { %3612 = vmatprep.subr.mxu0 %v3251_v19  ;;  %3689 = vmatprep.subr.mxu1 %v12359_v18  ;;  %v3826_v19 = vrot.slane %v9651_v31, 2 }
 0x5c6   : > { %3613 = vmatpush1.msra.mxu0 %v3250_v22  ;;  %3690 = vmatpush1.msra.mxu1 %v3252_v24  ;;  %v6686_v22 = vld [vmem:[%s12285_s7 + $0x688] sm:$0xff] }
 0x5c7   : > { %3614 = vmatprep.subr.mxu0 %v3248_v25  ;;  %3691 = vmatprep.subr.mxu1 %v12359_v18  ;;  %v3828_v24 = vsel %vm985_vm3, %v3826_v19, %v9975_v59  ;;  %v6682_v25 = vld [vmem:[%s12285_s7 + $0x668] sm:$0xff]  ;;  %v6719_v19 = vld [vmem:[%s12285_s7 + $0x790] sm:$0xff] }
 0x5c8   : > { %3615 = vmatpush1.msra.mxu0 %v3247_v26  ;;  %3692 = vmatpush1.msra.mxu1 %v3249_v46  ;;  %v6681_v26 = vld [vmem:[%s12285_s7 + $0x660] sm:$0xff]  ;;  %v6683_v46 = vld [vmem:[%s12285_s7 + $0x670] sm:$0xff] }
 0x5c9   : > { %3616 = vmatprep.subr.mxu0 %v3245_v13  ;;  %3693 = vmatprep.subr.mxu1 %v12359_v18  ;;  %v6679_v13 = vld [vmem:[%s12285_s7 + $0x650] sm:$0xff] }
 0x5ca   : > { %3617 = vmatpush1.msra.mxu0 %v3244_v29  ;;  %3694 = vmatpush1.msra.mxu1 %v3246_v14  ;;  %v6678_v29 = vld [vmem:[%s12285_s7 + $0x648] sm:$0xff]  ;;  %v6680_v14 = vld [vmem:[%s12285_s7 + $0x658] sm:$0xff] }
 0x5cb   : > { %3626 = vmatprep.subr.mxu0 %v3326_v62  ;;  %3703 = vmatprep.subr.mxu1 %v12359_v18  ;;  %v6676_v62 = vld [vmem:[%s12285_s7 + $0x638] sm:$0xff] }
 0x5cc   : > { %3627 = vmatpush2.msra.mxu0 %v3325_v30  ;;  %3704 = vmatpush2.msra.mxu1 %v3327_v34  ;;  %v6675_v30 = vld [vmem:[%s12285_s7 + $0x630] sm:$0xff]  ;;  %v6677_v34 = vld [vmem:[%s12285_s7 + $0x640] sm:$0xff] }
 0x5cd   : > { %3628 = vmatprep.subr.mxu0 %v3323_v35  ;;  %3705 = vmatprep.subr.mxu1 %v12359_v18  ;;  %v6673_v35 = vld [vmem:[%s12285_s7 + $0x620] sm:$0xff] }
 0x5ce   : > { %3629 = vmatpush2.msra.mxu0 %v3322_v23  ;;  %3706 = vmatpush2.msra.mxu1 %v3324_v47  ;;  %v6672_v23 = vld [vmem:[%s12285_s7 + $0x618] sm:$0xff]  ;;  %v6674_v47 = vld [vmem:[%s12285_s7 + $0x628] sm:$0xff] }
 0x5cf   : > { %3630 = vmatprep.subr.mxu0 %v3320_v48  ;;  %3707 = vmatprep.subr.mxu1 %v12359_v18  ;;  %v6670_v48 = vld [vmem:[%s12285_s7 + $0x608] sm:$0xff] }
 0x5d0   : > { %3631 = vmatpush2.msra.mxu0 %v3319_v49  ;;  %3708 = vmatpush2.msra.mxu1 %v3321_v40  ;;  %v6669_v49 = vld [vmem:[%s12285_s7 + $0x600] sm:$0xff]  ;;  %v6671_v40 = vld [vmem:[%s12285_s7 + $0x610] sm:$0xff] }
 0x5d1   : > { %3632 = vmatprep.subr.mxu0 %v3317_v41  ;;  %3709 = vmatprep.subr.mxu1 %v12359_v18  ;;  %v6667_v41 = vld [vmem:[%s12285_s7 + $0x5f0] sm:$0xff] }
 0x5d2   : > { %3633 = vmatpush2.msra.mxu0 %v3316_v52  ;;  %3710 = vmatpush2.msra.mxu1 %v3318_v44  ;;  %v6666_v52 = vld [vmem:[%s12285_s7 + $0x5e8] sm:$0xff]  ;;  %v6668_v44 = vld [vmem:[%s12285_s7 + $0x5f8] sm:$0xff] }
 0x5d3   : > { %3634 = vmatprep.subr.mxu0 %v3314_v58  ;;  %3711 = vmatprep.subr.mxu1 %v12359_v18  ;;  %v6664_v58 = vld [vmem:[%s12285_s7 + $0x5d8] sm:$0xff] }
 0x5d4   : > { %3635 = vmatpush2.msra.mxu0 %v3313_v39  ;;  %3712 = vmatpush2.msra.mxu1 %v3315_v6  ;;  %v6663_v39 = vld [vmem:[%s12285_s7 + $0x5d0] sm:$0xff]  ;;  %v6665_v6 = vld [vmem:[%s12285_s7 + $0x5e0] sm:$0xff] }
 0x5d5   : > { %3636 = vmatprep.subr.mxu0 %v3311_v54  ;;  %3713 = vmatprep.subr.mxu1 %v12359_v18  ;;  %v6661_v54 = vld [vmem:[%s12285_s7 + $0x5c0] sm:$0xff] }
 0x5d6   : > { %3637 = vmatpush2.msra.mxu0 %v3310_v42  ;;  %3714 = vmatpush2.msra.mxu1 %v3312_v36  ;;  %v6660_v42 = vld [vmem:[%s12285_s7 + $0x5b8] sm:$0xff]  ;;  %v6662_v36 = vld [vmem:[%s12285_s7 + $0x5c8] sm:$0xff] }
 0x5d7   : > { %3638 = vmatprep.subr.mxu0 %v3308_v55  ;;  %3715 = vmatprep.subr.mxu1 %v12359_v18  ;;  %v6658_v55 = vld [vmem:[%s12285_s7 + $0x5a8] sm:$0xff] }
 0x5d8   : > { %3639 = vmatpush2.msra.mxu0 %v3307_v56  ;;  %3716 = vmatpush2.msra.mxu1 %v3309_v4  ;;  %v6657_v56 = vld [vmem:[%s12285_s7 + $0x5a0] sm:$0xff]  ;;  %v6659_v4 = vld [vmem:[%s12285_s7 + $0x5b0] sm:$0xff] }
 0x5d9   : > { %3640 = vmatprep.subr.mxu0 %v3305_v57  ;;  %3717 = vmatprep.subr.mxu1 %v12359_v18  ;;  %v6655_v57 = vld [vmem:[%s12285_s7 + $0x590] sm:$0xff] }
 0x5da   : > { %3641 = vmatpush2.msra.mxu0 %v3304_v7  ;;  %3718 = vmatpush2.msra.mxu1 %v3306_v51  ;;  %v6654_v7 = vld [vmem:[%s12285_s7 + $0x588] sm:$0xff]  ;;  %v6656_v51 = vld [vmem:[%s12285_s7 + $0x598] sm:$0xff] }
 0x5db   : > { %3642 = vmatprep.subr.mxu0 %v3302_v33  ;;  %3719 = vmatprep.subr.mxu1 %v12359_v18  ;;  %v6652_v33 = vld [vmem:[%s12285_s7 + $0x578] sm:$0xff] }
 0x5dc   : > { %3643 = vmatpush2.msra.mxu0 %v3301_v9  ;;  %3720 = vmatpush2.msra.mxu1 %v3303_v50  ;;  %v6651_v9 = vld [vmem:[%s12285_s7 + $0x570] sm:$0xff]  ;;  %v6653_v50 = vld [vmem:[%s12285_s7 + $0x580] sm:$0xff] }
 0x5dd   : > { %3644 = vmatprep.subr.mxu0 %v3299_v60  ;;  %3721 = vmatprep.subr.mxu1 %v12359_v18  ;;  %v6649_v60 = vld [vmem:[%s12285_s7 + $0x560] sm:$0xff] }
 0x5de   : > { %3645 = vmatpush2.msra.mxu0 %v3298_v10  ;;  %3722 = vmatpush2.msra.mxu1 %v3300_v11  ;;  %v6648_v10 = vld [vmem:[%s12285_s7 + $0x558] sm:$0xff]  ;;  %v6650_v11 = vld [vmem:[%s12285_s7 + $0x568] sm:$0xff] }
 0x5df   : > { %3646 = vmatprep.subr.mxu0 %v3296_v2  ;;  %3723 = vmatprep.subr.mxu1 %v12359_v18  ;;  %v6646_v2 = vld [vmem:[%s12285_s7 + $0x548] sm:$0xff] }
 0x5e0   : > { %3647 = vmatpush2.msra.mxu0 %v3295_v17  ;;  %3724 = vmatpush2.msra.mxu1 %v3297_v45  ;;  %v6645_v17 = vld [vmem:[%s12285_s7 + $0x540] sm:$0xff]  ;;  %v6647_v45 = vld [vmem:[%s12285_s7 + $0x550] sm:$0xff] }
 0x5e1   : > { %3648 = vmatprep.subr.mxu0 %v3293_v3  ;;  %3725 = vmatprep.subr.mxu1 %v12359_v18  ;;  %v6727_v3 = vld [vmem:[%s12285_s7 + $0x7d0] sm:$0xff] }
 0x5e2   : > { %3649 = vmatpush2.msra.mxu0 %v3292_v53  ;;  %3726 = vmatpush2.msra.mxu1 %v3294_v12  ;;  %v6726_v53 = vld [vmem:[%s12285_s7 + $0x7c8] sm:$0xff]  ;;  %v6728_v12 = vld [vmem:[%s12285_s7 + $0x7d8] sm:$0xff] }
 0x5e3   : > { %3651 = vmatmul.mubr.f32.vlgmr.msra.gmra.mxu0 %v9655_v27  ;;  %3728 = vmatmul.mubr.f32.vlgmr.msra.gmra.mxu1 %v9655_v27 }
 0x5e4   : > { %3835 = vmatprep.subr.mxu0 %v6691_v38  ;;  %3912 = vmatprep.subr.mxu1 %v12359_v18  ;;  %v6724_v38 = vld [vmem:[%s12285_s7 + $0x7b8] sm:$0xff] }
 0x5e5   : > { %6642 = vmatprep.mubr.msk.f32.mxu0 %vm3425_vm6, %v9657_v21  ;;  %6644 = vmatprep.mubr.msk.f32.mxu1 %vm3425_vm6, %v9657_v21 }
 0x5e6   : > { %3836 = vmatpush1.msra.mxu0 %v6690_v61  ;;  %3913 = vmatpush1.msra.mxu1 %v6692_v63  ;;  %v6723_v61 = vld [vmem:[%s12285_s7 + $0x7b0] sm:$0xff]  ;;  %v6725_v63 = vld [vmem:[%s12285_s7 + $0x7c0] sm:$0xff] }
 0x5e7   : > { %3837 = vmatprep.subr.mxu0 %v6688_v15  ;;  %3914 = vmatprep.subr.mxu1 %v12359_v18  ;;  %v6721_v15 = vld [vmem:[%s12285_s7 + $0x7a0] sm:$0xff] }
 0x5e8   : > { %3838 = vmatpush1.msra.mxu0 %v6687_v8  ;;  %3915 = vmatpush1.msra.mxu1 %v6689_v16  ;;  %v6720_v8 = vld [vmem:[%s12285_s7 + $0x798] sm:$0xff]  ;;  %v6722_v16 = vld [vmem:[%s12285_s7 + $0x7a8] sm:$0xff] }
 0x5e9   : > { %3657 = vmatmul.mubr.f32.gmra.mxu0 %v9653_v32  ;;  %3733 = vmatmul.mubr.f32.gmra.mxu1 %v9653_v32 }
 0x5ea   : > { %3839 = vmatprep.subr.mxu0 %v6685_v43  ;;  %3916 = vmatprep.subr.mxu1 %v12359_v18  ;;  %v6718_v43 = vld [vmem:[%s12285_s7 + $0x788] sm:$0xff] }
 0x5eb   : > { %3840 = vmatpush1.msra.mxu0 %v6684_v5  ;;  %6729 = vmatprep.mubr.msk.f32.mxu0 %vm3425_vm6, %v3828_v24  ;;  %v6717_v5 = vld [vmem:[%s12285_s7 + $0x780] sm:$0xff] }
 0x5ec   : > { %3917 = vmatpush1.msra.mxu1 %v6686_v22  ;;  %6731 = vmatprep.mubr.msk.f32.mxu1 %vm3425_vm6, %v3828_v24  ;;  %v6715_v22 = vld [vmem:[%s12285_s7 + $0x770] sm:$0xff]  ;;  %v6714_v24 = vld [vmem:[%s12285_s7 + $0x768] sm:$0xff] }
 0x5ed   : > { %3841 = vmatprep.subr.mxu0 %v6682_v25  ;;  %3918 = vmatprep.subr.mxu1 %v12359_v18  ;;  %v6716_v25 = vld [vmem:[%s12285_s7 + $0x778] sm:$0xff] }
 0x5ee   : > { %3842 = vmatpush1.msra.mxu0 %v6681_v26  ;;  %3919 = vmatpush1.msra.mxu1 %v6683_v46  ;;  %v6712_v26 = vld [vmem:[%s12285_s7 + $0x758] sm:$0xff]  ;;  %v6711_v46 = vld [vmem:[%s12285_s7 + $0x750] sm:$0xff] }
 0x5ef   : > { %3843 = vmatprep.subr.mxu0 %v6679_v13  ;;  %3920 = vmatprep.subr.mxu1 %v12359_v18  ;;  %v6713_v13 = vld [vmem:[%s12285_s7 + $0x760] sm:$0xff] }
 0x5f0   : > { %3844 = vmatpush1.msra.mxu0 %v6678_v29  ;;  %3921 = vmatpush1.msra.mxu1 %v6680_v14  ;;  %v6709_v29 = vld [vmem:[%s12285_s7 + $0x740] sm:$0xff]  ;;  %v6708_v14 = vld [vmem:[%s12285_s7 + $0x738] sm:$0xff] }
 0x5f1   : > { %3845 = vmatprep.subr.mxu0 %v6676_v62  ;;  %3922 = vmatprep.subr.mxu1 %v12359_v18  ;;  %v6710_v62 = vld [vmem:[%s12285_s7 + $0x748] sm:$0xff] }
 0x5f2   : > { %3846 = vmatpush1.msra.mxu0 %v6675_v30  ;;  %3923 = vmatpush1.msra.mxu1 %v6677_v34  ;;  %v6706_v30 = vld [vmem:[%s12285_s7 + $0x728] sm:$0xff]  ;;  %v6705_v34 = vld [vmem:[%s12285_s7 + $0x720] sm:$0xff] }
 0x5f3   : > { %3847 = vmatprep.subr.mxu0 %v6673_v35  ;;  %3924 = vmatprep.subr.mxu1 %v12359_v18  ;;  %v6707_v35 = vld [vmem:[%s12285_s7 + $0x730] sm:$0xff] }
 0x5f4   : > { %3848 = vmatpush1.msra.mxu0 %v6672_v23  ;;  %3925 = vmatpush1.msra.mxu1 %v6674_v47  ;;  %v6703_v23 = vld [vmem:[%s12285_s7 + $0x710] sm:$0xff]  ;;  %v6702_v47 = vld [vmem:[%s12285_s7 + $0x708] sm:$0xff] }
 0x5f5   : > { %3849 = vmatprep.subr.mxu0 %v6670_v48  ;;  %3926 = vmatprep.subr.mxu1 %v12359_v18  ;;  %v6704_v48 = vld [vmem:[%s12285_s7 + $0x718] sm:$0xff] }
 0x5f6   : > { %3850 = vmatpush1.msra.mxu0 %v6669_v49  ;;  %3927 = vmatpush1.msra.mxu1 %v6671_v40  ;;  %v6700_v49 = vld [vmem:[%s12285_s7 + $0x6f8] sm:$0xff]  ;;  %v6699_v40 = vld [vmem:[%s12285_s7 + $0x6f0] sm:$0xff] }
 0x5f7   : > { %3851 = vmatprep.subr.mxu0 %v6667_v41  ;;  %3928 = vmatprep.subr.mxu1 %v12359_v18  ;;  %v6701_v41 = vld [vmem:[%s12285_s7 + $0x700] sm:$0xff] }
 0x5f8   : > { %3852 = vmatpush1.msra.mxu0 %v6666_v52  ;;  %3929 = vmatpush1.msra.mxu1 %v6668_v44  ;;  %v6697_v52 = vld [vmem:[%s12285_s7 + $0x6e0] sm:$0xff]  ;;  %v6696_v44 = vld [vmem:[%s12285_s7 + $0x6d8] sm:$0xff] }
 0x5f9   : > { %3853 = vmatprep.subr.mxu0 %v6664_v58  ;;  %3930 = vmatprep.subr.mxu1 %v12359_v18  ;;  %v6698_v58 = vld [vmem:[%s12285_s7 + $0x6e8] sm:$0xff] }
 0x5fa   : > { %3854 = vmatpush1.msra.mxu0 %v6663_v39  ;;  %3931 = vmatpush1.msra.mxu1 %v6665_v6  ;;  %v6694_v39 = vld [vmem:[%s12285_s7 + $0x6c8] sm:$0xff]  ;;  %v3824_v6 = vrot.slane %v9653_v32, 2 }
 0x5fb   : > { %3855 = vmatprep.subr.mxu0 %v6661_v54  ;;  %3932 = vmatprep.subr.mxu1 %v12359_v18  ;;  %v6693_v54 = vld [vmem:[%s12285_s7 + $0x6c0] sm:$0xff] }
 0x5fc   : > { %3856 = vmatpush1.msra.mxu0 %v6660_v42  ;;  %3933 = vmatpush1.msra.mxu1 %v6662_v36  ;;  %v6695_v42 = vld [vmem:[%s12285_s7 + $0x6d0] sm:$0xff]  ;;  %v3823_v36 = vrot.slane %v9655_v27, 2 }
 0x5fd   : > { %3857 = vmatprep.subr.mxu0 %v6658_v55  ;;  %3934 = vmatprep.subr.mxu1 %v12359_v18  ;;  %v6779_v55 = vld [vmem:[%s12285_s7 + $0x950] sm:$0xff] }
 0x5fe   : > { %3858 = vmatpush1.msra.mxu0 %v6657_v56  ;;  %3935 = vmatpush1.msra.mxu1 %v6659_v4  ;;  %v3825_v56 = vsel %vm985_vm3, %v3823_v36, %v3824_v6  ;;  %v6778_v4 = vld [vmem:[%s12285_s7 + $0x948] sm:$0xff]  ;;  %vm4696_vm3 = vcmask 784384  }
 0x5ff   : > { %3859 = vmatprep.subr.mxu0 %v6655_v57  ;;  %3936 = vmatprep.subr.mxu1 %v12359_v18  ;;  %v6780_v57 = vld [vmem:[%s12285_s7 + $0x958] sm:$0xff]  ;;  %v6814_v36 = vld [vmem:[%s12285_s7 + $0xa68] sm:$0xff]  ;;  %4697 = vst.msk [vmem:[#allocation6 + $0x8] sm:$0x7f] %vm4696_vm3, %v12359_v18 }
 0x600   : > { %3860 = vmatpush1.msra.mxu0 %v6654_v7  ;;  %3937 = vmatpush1.msra.mxu1 %v6656_v51  ;;  %v6776_v7 = vld [vmem:[%s12285_s7 + $0x938] sm:$0xff]  ;;  %v6775_v51 = vld [vmem:[%s12285_s7 + $0x930] sm:$0xff] }
 0x601   : > { %3861 = vmatprep.subr.mxu0 %v6652_v33  ;;  %3938 = vmatprep.subr.mxu1 %v12359_v18  ;;  %v6777_v33 = vld [vmem:[%s12285_s7 + $0x940] sm:$0xff] }
 0x602   : > { %3862 = vmatpush1.msra.mxu0 %v6651_v9  ;;  %3939 = vmatpush1.msra.mxu1 %v6653_v50  ;;  %v10272_v9 = vrot.slane %v9657_v21, 3  ;;  %v6772_v50 = vld [vmem:[%s12285_s7 + $0x918] sm:$0xff] }
 0x603   : > { %3863 = vmatprep.subr.mxu0 %v6649_v60  ;;  %3940 = vmatprep.subr.mxu1 %v12359_v18  ;;  %v4081_v60 = vrot.slane %v9651_v31, 3 }
 0x604   : > { %3864 = vmatpush1.msra.mxu0 %v6648_v10  ;;  %3941 = vmatpush1.msra.mxu1 %v6650_v11  ;;  %v6774_v10 = vld [vmem:[%s12285_s7 + $0x928] sm:$0xff] }
 0x605   : > { %3865 = vmatprep.subr.mxu0 %v6646_v2  ;;  %3942 = vmatprep.subr.mxu1 %v12359_v18  ;;  %v4083_v11 = vsel %vm1212_vm4, %v4081_v60, %v10272_v9  ;;  %v6770_v2 = vld [vmem:[%s12285_s7 + $0x908] sm:$0xff]  ;;  %v6807_v60 = vld [vmem:[%s12285_s7 + $0xa30] sm:$0xff] }
 0x606   : > { %3866 = vmatpush1.msra.mxu0 %v6645_v17  ;;  %3943 = vmatpush1.msra.mxu1 %v6647_v45  ;;  %v6769_v17 = vld [vmem:[%s12285_s7 + $0x900] sm:$0xff]  ;;  %v6771_v45 = vld [vmem:[%s12285_s7 + $0x910] sm:$0xff] }
 0x607   : > { %3875 = vmatprep.subr.mxu0 %v6727_v3  ;;  %3952 = vmatprep.subr.mxu1 %v12359_v18  ;;  %v6767_v3 = vld [vmem:[%s12285_s7 + $0x8f0] sm:$0xff] }
 0x608   : > { %3876 = vmatpush2.msra.mxu0 %v6726_v53  ;;  %3953 = vmatpush2.msra.mxu1 %v6728_v12  ;;  %v6766_v53 = vld [vmem:[%s12285_s7 + $0x8e8] sm:$0xff]  ;;  %v6768_v12 = vld [vmem:[%s12285_s7 + $0x8f8] sm:$0xff] }
 0x609   : > { %3877 = vmatprep.subr.mxu0 %v6724_v38  ;;  %3954 = vmatprep.subr.mxu1 %v12359_v18  ;;  %v6764_v38 = vld [vmem:[%s12285_s7 + $0x8d8] sm:$0xff] }
 0x60a   : > { %3878 = vmatpush2.msra.mxu0 %v6723_v61  ;;  %3955 = vmatpush2.msra.mxu1 %v6725_v63  ;;  %v6763_v61 = vld [vmem:[%s12285_s7 + $0x8d0] sm:$0xff]  ;;  %v6765_v63 = vld [vmem:[%s12285_s7 + $0x8e0] sm:$0xff] }
 0x60b   : > { %3879 = vmatprep.subr.mxu0 %v6721_v15  ;;  %3956 = vmatprep.subr.mxu1 %v12359_v18  ;;  %v6761_v15 = vld [vmem:[%s12285_s7 + $0x8c0] sm:$0xff] }
 0x60c   : > { %3880 = vmatpush2.msra.mxu0 %v6720_v8  ;;  %3957 = vmatpush2.msra.mxu1 %v6722_v16  ;;  %v6760_v8 = vld [vmem:[%s12285_s7 + $0x8b8] sm:$0xff]  ;;  %v6762_v16 = vld [vmem:[%s12285_s7 + $0x8c8] sm:$0xff] }
 0x60d   : > { %3881 = vmatprep.subr.mxu0 %v6718_v43  ;;  %3958 = vmatprep.subr.mxu1 %v12359_v18  ;;  %v6758_v43 = vld [vmem:[%s12285_s7 + $0x8a8] sm:$0xff] }
 0x60e   : > { %3882 = vmatpush2.msra.mxu0 %v6717_v5  ;;  %3959 = vmatpush2.msra.mxu1 %v6719_v19  ;;  %v6757_v5 = vld [vmem:[%s12285_s7 + $0x8a0] sm:$0xff]  ;;  %v6759_v19 = vld [vmem:[%s12285_s7 + $0x8b0] sm:$0xff] }
 0x60f   : > { %3883 = vmatprep.subr.mxu0 %v6715_v22  ;;  %3960 = vmatprep.subr.mxu1 %v12359_v18  ;;  %v6755_v22 = vld [vmem:[%s12285_s7 + $0x890] sm:$0xff] }
 0x610   : > { %3884 = vmatpush2.msra.mxu0 %v6714_v24  ;;  %3961 = vmatpush2.msra.mxu1 %v6716_v25  ;;  %v6754_v24 = vld [vmem:[%s12285_s7 + $0x888] sm:$0xff]  ;;  %v6756_v25 = vld [vmem:[%s12285_s7 + $0x898] sm:$0xff] }
 0x611   : > { %3885 = vmatprep.subr.mxu0 %v6712_v26  ;;  %3962 = vmatprep.subr.mxu1 %v12359_v18  ;;  %v6752_v26 = vld [vmem:[%s12285_s7 + $0x878] sm:$0xff] }
 0x612   : > { %3886 = vmatpush2.msra.mxu0 %v6711_v46  ;;  %3963 = vmatpush2.msra.mxu1 %v6713_v13  ;;  %v6751_v46 = vld [vmem:[%s12285_s7 + $0x870] sm:$0xff]  ;;  %v6753_v13 = vld [vmem:[%s12285_s7 + $0x880] sm:$0xff] }
 0x613   : > { %3887 = vmatprep.subr.mxu0 %v6709_v29  ;;  %3964 = vmatprep.subr.mxu1 %v12359_v18  ;;  %v6749_v29 = vld [vmem:[%s12285_s7 + $0x860] sm:$0xff] }
 0x614   : > { %3888 = vmatpush2.msra.mxu0 %v6708_v14  ;;  %3965 = vmatpush2.msra.mxu1 %v6710_v62  ;;  %v6748_v14 = vld [vmem:[%s12285_s7 + $0x858] sm:$0xff]  ;;  %v6750_v62 = vld [vmem:[%s12285_s7 + $0x868] sm:$0xff] }
 0x615   : > { %3889 = vmatprep.subr.mxu0 %v6706_v30  ;;  %3966 = vmatprep.subr.mxu1 %v12359_v18  ;;  %v6746_v30 = vld [vmem:[%s12285_s7 + $0x848] sm:$0xff] }
 0x616   : > { %3890 = vmatpush2.msra.mxu0 %v6705_v34  ;;  %3967 = vmatpush2.msra.mxu1 %v6707_v35  ;;  %v6745_v34 = vld [vmem:[%s12285_s7 + $0x840] sm:$0xff]  ;;  %v6747_v35 = vld [vmem:[%s12285_s7 + $0x850] sm:$0xff] }
 0x617   : > { %3891 = vmatprep.subr.mxu0 %v6703_v23  ;;  %3968 = vmatprep.subr.mxu1 %v12359_v18  ;;  %v6743_v23 = vld [vmem:[%s12285_s7 + $0x830] sm:$0xff] }
 0x618   : > { %3892 = vmatpush2.msra.mxu0 %v6702_v47  ;;  %3969 = vmatpush2.msra.mxu1 %v6704_v48  ;;  %v6742_v47 = vld [vmem:[%s12285_s7 + $0x828] sm:$0xff]  ;;  %v6744_v48 = vld [vmem:[%s12285_s7 + $0x838] sm:$0xff] }
 0x619   : > { %3893 = vmatprep.subr.mxu0 %v6700_v49  ;;  %3970 = vmatprep.subr.mxu1 %v12359_v18  ;;  %v6740_v49 = vld [vmem:[%s12285_s7 + $0x818] sm:$0xff] }
 0x61a   : > { %3894 = vmatpush2.msra.mxu0 %v6699_v40  ;;  %3971 = vmatpush2.msra.mxu1 %v6701_v41  ;;  %v6739_v40 = vld [vmem:[%s12285_s7 + $0x810] sm:$0xff]  ;;  %v6741_v41 = vld [vmem:[%s12285_s7 + $0x820] sm:$0xff] }
 0x61b   : > { %3895 = vmatprep.subr.mxu0 %v6697_v52  ;;  %3972 = vmatprep.subr.mxu1 %v12359_v18  ;;  %v6737_v52 = vld [vmem:[%s12285_s7 + $0x800] sm:$0xff] }
 0x61c   : > { %3896 = vmatpush2.msra.mxu0 %v6696_v44  ;;  %3973 = vmatpush2.msra.mxu1 %v6698_v58  ;;  %v6736_v44 = vld [vmem:[%s12285_s7 + $0x7f8] sm:$0xff]  ;;  %v6738_v58 = vld [vmem:[%s12285_s7 + $0x808] sm:$0xff] }
 0x61d   : > { %3897 = vmatprep.subr.mxu0 %v6694_v39  ;;  %3974 = vmatprep.subr.mxu1 %v12359_v18  ;;  %v6734_v39 = vld [vmem:[%s12285_s7 + $0x7e8] sm:$0xff] }
 0x61e   : > { %3898 = vmatpush2.msra.mxu0 %v6693_v54  ;;  %3975 = vmatpush2.msra.mxu1 %v6695_v42  ;;  %v6735_v54 = vld [vmem:[%s12285_s7 + $0x7f0] sm:$0xff] }
 0x61f   : > { %3900 = vmatmul.mubr.f32.vlgmr.msra.gmra.mxu0 %v3825_v56  ;;  %3977 = vmatmul.mubr.f32.vlgmr.msra.gmra.mxu1 %v3825_v56  ;;  %v6815_v42 = vld [vmem:[%s12285_s7 + $0xa70] sm:$0xff]  ;;  %v6812_v56 = vld [vmem:[%s12285_s7 + $0xa58] sm:$0xff] }
 0x620   : > { %4090 = vmatprep.subr.mxu0 %v6779_v55  ;;  %4167 = vmatprep.subr.mxu1 %v12359_v18  ;;  %v6816_v55 = vld [vmem:[%s12285_s7 + $0xa78] sm:$0xff] }
 0x621   : > { %6730 = vmatprep.mubr.msk.f32.mxu0 %vm3425_vm6, %v9975_v59  ;;  %6732 = vmatprep.mubr.msk.f32.mxu1 %vm3425_vm6, %v9975_v59  ;;  %v6773_v59 = vld [vmem:[%s12285_s7 + $0x920] sm:$0xff] }
 0x622   : > { %4091 = vmatpush1.msra.mxu0 %v6778_v4  ;;  %4168 = vmatpush1.msra.mxu1 %v6780_v57  ;;  %v6811_v4 = vld [vmem:[%s12285_s7 + $0xa50] sm:$0xff]  ;;  %v6813_v57 = vld [vmem:[%s12285_s7 + $0xa60] sm:$0xff] }
 0x623   : > { %4092 = vmatprep.subr.mxu0 %v6776_v7  ;;  %4169 = vmatprep.subr.mxu1 %v12359_v18  ;;  %v6809_v7 = vld [vmem:[%s12285_s7 + $0xa40] sm:$0xff] }
 0x624   : > { %4093 = vmatpush1.msra.mxu0 %v6775_v51  ;;  %4170 = vmatpush1.msra.mxu1 %v6777_v33  ;;  %v6808_v51 = vld [vmem:[%s12285_s7 + $0xa38] sm:$0xff]  ;;  %v6810_v33 = vld [vmem:[%s12285_s7 + $0xa48] sm:$0xff] }
 0x625   : > { %3906 = vmatmul.mubr.f32.gmra.mxu0 %v3824_v6  ;;  %3982 = vmatmul.mubr.f32.gmra.mxu1 %v3824_v6  ;;  %v6733_v6 = vld [vmem:[%s12285_s7 + $0x7e0] sm:$0xff] }
 0x626   : > { %4094 = vmatprep.subr.mxu0 %v6773_v59  ;;  %4171 = vmatprep.subr.mxu1 %v12359_v18  ;;  %v6806_v59 = vld [vmem:[%s12285_s7 + $0xa28] sm:$0xff] }
 0x627   : > { %4095 = vmatpush1.msra.mxu0 %v6772_v50  ;;  %6817 = vmatprep.mubr.msk.f32.mxu0 %vm3425_vm6, %v4083_v11  ;;  %v6805_v50 = vld [vmem:[%s12285_s7 + $0xa20] sm:$0xff] }
 0x628   : > { %4172 = vmatpush1.msra.mxu1 %v6774_v10  ;;  %6819 = vmatprep.mubr.msk.f32.mxu1 %vm3425_vm6, %v4083_v11  ;;  %v6803_v10 = vld [vmem:[%s12285_s7 + $0xa10] sm:$0xff]  ;;  %v6802_v11 = vld [vmem:[%s12285_s7 + $0xa08] sm:$0xff] }
 0x629   : > { %4096 = vmatprep.subr.mxu0 %v6770_v2  ;;  %4173 = vmatprep.subr.mxu1 %v12359_v18  ;;  %v6804_v2 = vld [vmem:[%s12285_s7 + $0xa18] sm:$0xff] }
 0x62a   : > { %4097 = vmatpush1.msra.mxu0 %v6769_v17  ;;  %4174 = vmatpush1.msra.mxu1 %v6771_v45  ;;  %v6800_v17 = vld [vmem:[%s12285_s7 + $0x9f8] sm:$0xff]  ;;  %v6799_v45 = vld [vmem:[%s12285_s7 + $0x9f0] sm:$0xff] }
 0x62b   : > { %4098 = vmatprep.subr.mxu0 %v6767_v3  ;;  %4175 = vmatprep.subr.mxu1 %v12359_v18  ;;  %v6801_v3 = vld [vmem:[%s12285_s7 + $0xa00] sm:$0xff] }
 0x62c   : > { %4099 = vmatpush1.msra.mxu0 %v6766_v53  ;;  %4176 = vmatpush1.msra.mxu1 %v6768_v12  ;;  %v6797_v53 = vld [vmem:[%s12285_s7 + $0x9e0] sm:$0xff]  ;;  %v6796_v12 = vld [vmem:[%s12285_s7 + $0x9d8] sm:$0xff] }
 0x62d   : > { %4100 = vmatprep.subr.mxu0 %v6764_v38  ;;  %4177 = vmatprep.subr.mxu1 %v12359_v18  ;;  %v6798_v38 = vld [vmem:[%s12285_s7 + $0x9e8] sm:$0xff] }
 0x62e   : > { %4101 = vmatpush1.msra.mxu0 %v6763_v61  ;;  %4178 = vmatpush1.msra.mxu1 %v6765_v63  ;;  %v6794_v61 = vld [vmem:[%s12285_s7 + $0x9c8] sm:$0xff]  ;;  %v6793_v63 = vld [vmem:[%s12285_s7 + $0x9c0] sm:$0xff] }
 0x62f   : > { %4102 = vmatprep.subr.mxu0 %v6761_v15  ;;  %4179 = vmatprep.subr.mxu1 %v12359_v18  ;;  %v6795_v15 = vld [vmem:[%s12285_s7 + $0x9d0] sm:$0xff] }
 0x630   : > { %4103 = vmatpush1.msra.mxu0 %v6760_v8  ;;  %4180 = vmatpush1.msra.mxu1 %v6762_v16  ;;  %v6791_v8 = vld [vmem:[%s12285_s7 + $0x9b0] sm:$0xff]  ;;  %v6790_v16 = vld [vmem:[%s12285_s7 + $0x9a8] sm:$0xff] }
 0x631   : > { %4104 = vmatprep.subr.mxu0 %v6758_v43  ;;  %4181 = vmatprep.subr.mxu1 %v12359_v18  ;;  %v6792_v43 = vld [vmem:[%s12285_s7 + $0x9b8] sm:$0xff] }
 0x632   : > { %4105 = vmatpush1.msra.mxu0 %v6757_v5  ;;  %4182 = vmatpush1.msra.mxu1 %v6759_v19  ;;  %v6788_v5 = vld [vmem:[%s12285_s7 + $0x998] sm:$0xff]  ;;  %v6787_v19 = vld [vmem:[%s12285_s7 + $0x990] sm:$0xff] }
 0x633   : > { %4106 = vmatprep.subr.mxu0 %v6755_v22  ;;  %4183 = vmatprep.subr.mxu1 %v12359_v18  ;;  %v6789_v22 = vld [vmem:[%s12285_s7 + $0x9a0] sm:$0xff] }
 0x634   : > { %4107 = vmatpush1.msra.mxu0 %v6754_v24  ;;  %4184 = vmatpush1.msra.mxu1 %v6756_v25  ;;  %v6785_v24 = vld [vmem:[%s12285_s7 + $0x980] sm:$0xff]  ;;  %v6784_v25 = vld [vmem:[%s12285_s7 + $0x978] sm:$0xff] }
 0x635   : > { %4108 = vmatprep.subr.mxu0 %v6752_v26  ;;  %4185 = vmatprep.subr.mxu1 %v12359_v18  ;;  %v6786_v26 = vld [vmem:[%s12285_s7 + $0x988] sm:$0xff] }
 0x636   : > { %4109 = vmatpush1.msra.mxu0 %v6751_v46  ;;  %4186 = vmatpush1.msra.mxu1 %v6753_v13  ;;  %v6782_v46 = vld [vmem:[%s12285_s7 + $0x968] sm:$0xff]  ;;  %v4079_v13 = vrot.slane %v9653_v32, 3 }
 0x637   : > { %4110 = vmatprep.subr.mxu0 %v6749_v29  ;;  %4187 = vmatprep.subr.mxu1 %v12359_v18  ;;  %v6781_v29 = vld [vmem:[%s12285_s7 + $0x960] sm:$0xff] }
 0x638   : > { %4111 = vmatpush1.msra.mxu0 %v6748_v14  ;;  %4188 = vmatpush1.msra.mxu1 %v6750_v62  ;;  %v6783_v14 = vld [vmem:[%s12285_s7 + $0x970] sm:$0xff]  ;;  %v4078_v62 = vrot.slane %v9655_v27, 3 }
 0x639   : > { %4112 = vmatprep.subr.mxu0 %v6746_v30  ;;  %4189 = vmatprep.subr.mxu1 %v12359_v18  ;;  %v6867_v30 = vld [vmem:[%s12285_s7 + $0xbf0] sm:$0xff] }
 0x63a   : > { %4113 = vmatpush1.msra.mxu0 %v6745_v34  ;;  %4190 = vmatpush1.msra.mxu1 %v6747_v35  ;;  %v4080_v34 = vsel %vm1212_vm4, %v4078_v62, %v4079_v13  ;;  %v6866_v35 = vld [vmem:[%s12285_s7 + $0xbe8] sm:$0xff]  ;;  %v6823_v62 = vld [vmem:[%s12285_s7 + $0xa90] sm:$0xff]  ;;  %vm4669_vm4 = vcmask 520448  }
 0x63b   : > { %4114 = vmatprep.subr.mxu0 %v6743_v23  ;;  %4191 = vmatprep.subr.mxu1 %v12359_v18  ;;  %v6868_v23 = vld [vmem:[%s12285_s7 + $0xbf8] sm:$0xff] }
 0x63c   : > { %4115 = vmatpush1.msra.mxu0 %v6742_v47  ;;  %4192 = vmatpush1.msra.mxu1 %v6744_v48  ;;  %v6864_v47 = vld [vmem:[%s12285_s7 + $0xbd8] sm:$0xff]  ;;  %v6863_v48 = vld [vmem:[%s12285_s7 + $0xbd0] sm:$0xff] }
 0x63d   : > { %4116 = vmatprep.subr.mxu0 %v6740_v49  ;;  %4193 = vmatprep.subr.mxu1 %v12359_v18  ;;  %v6865_v49 = vld [vmem:[%s12285_s7 + $0xbe0] sm:$0xff] }
 0x63e   : > { %4117 = vmatpush1.msra.mxu0 %v6739_v40  ;;  %4194 = vmatpush1.msra.mxu1 %v6741_v41  ;;  %v10567_v40 = vrot.slane %v9657_v21, 4  ;;  %v6860_v41 = vld [vmem:[%s12285_s7 + $0xbb8] sm:$0xff]  ;;  %v6862_v21 = vld [vmem:[%s12285_s7 + $0xbc8] sm:$0xff] }
 0x63f   : > { %4118 = vmatprep.subr.mxu0 %v6737_v52  ;;  %4195 = vmatprep.subr.mxu1 %v12359_v18  ;;  %v4336_v52 = vrot.slane %v9651_v31, 4  ;;  %v6857_v31 = vld [vmem:[%s12285_s7 + $0xba0] sm:$0xff] }
 0x640   : > { %4119 = vmatpush1.msra.mxu0 %v6736_v44  ;;  %4196 = vmatpush1.msra.mxu1 %v6738_v58  ;;  %v6858_v58 = vld [vmem:[%s12285_s7 + $0xba8] sm:$0xff] }
 0x641   : > { %4120 = vmatprep.subr.mxu0 %v6734_v39  ;;  %4197 = vmatprep.subr.mxu1 %v12359_v18  ;;  %v4338_v44 = vsel %vm1439_vm2, %v4336_v52, %v10567_v40  ;;  %v6859_v39 = vld [vmem:[%s12285_s7 + $0xbb0] sm:$0xff]  ;;  %v6894_v52 = vld [vmem:[%s12285_s7 + $0xcc8] sm:$0xff] }
 0x642   : > { %4121 = vmatpush1.msra.mxu0 %v6733_v6  ;;  %4198 = vmatpush1.msra.mxu1 %v6735_v54  ;;  %v6855_v6 = vld [vmem:[%s12285_s7 + $0xb90] sm:$0xff]  ;;  %v6854_v54 = vld [vmem:[%s12285_s7 + $0xb88] sm:$0xff] }
 0x643   : > { %4130 = vmatprep.subr.mxu0 %v6815_v42  ;;  %4207 = vmatprep.subr.mxu1 %v12359_v18  ;;  %v6856_v42 = vld [vmem:[%s12285_s7 + $0xb98] sm:$0xff] }
 0x644   : > { %4131 = vmatpush2.msra.mxu0 %v6814_v36  ;;  %4208 = vmatpush2.msra.mxu1 %v6816_v55  ;;  %v6852_v36 = vld [vmem:[%s12285_s7 + $0xb78] sm:$0xff]  ;;  %v6851_v55 = vld [vmem:[%s12285_s7 + $0xb70] sm:$0xff] }
 0x645   : > { %4132 = vmatprep.subr.mxu0 %v6812_v56  ;;  %4209 = vmatprep.subr.mxu1 %v12359_v18  ;;  %v6853_v56 = vld [vmem:[%s12285_s7 + $0xb80] sm:$0xff] }
 0x646   : > { %4133 = vmatpush2.msra.mxu0 %v6811_v4  ;;  %4210 = vmatpush2.msra.mxu1 %v6813_v57  ;;  %v6849_v4 = vld [vmem:[%s12285_s7 + $0xb60] sm:$0xff] }
 0x647   : > { %4134 = vmatprep.subr.mxu0 %v6809_v7  ;;  %4211 = vmatprep.subr.mxu1 %v12359_v18  ;;  %v6848_v7 = vld [vmem:[%s12285_s7 + $0xb58] sm:$0xff] }
 0x648   : > { %4135 = vmatpush2.msra.mxu0 %v6808_v51  ;;  %4212 = vmatpush2.msra.mxu1 %v6810_v33  ;;  %v6850_v51 = vld [vmem:[%s12285_s7 + $0xb68] sm:$0xff] }
 0x649   : > { %4136 = vmatprep.subr.mxu0 %v6806_v59  ;;  %4213 = vmatprep.subr.mxu1 %v12359_v18  ;;  %v6846_v33 = vld [vmem:[%s12285_s7 + $0xb48] sm:$0xff] }
 0x64a   : > { %4137 = vmatpush2.msra.mxu0 %v6805_v50  ;;  %4214 = vmatpush2.msra.mxu1 %v6807_v60  ;;  %v6845_v50 = vld [vmem:[%s12285_s7 + $0xb40] sm:$0xff]  ;;  %v6847_v60 = vld [vmem:[%s12285_s7 + $0xb50] sm:$0xff] }
 0x64b   : > { %4138 = vmatprep.subr.mxu0 %v6803_v10  ;;  %4215 = vmatprep.subr.mxu1 %v12359_v18  ;;  %v6843_v10 = vld [vmem:[%s12285_s7 + $0xb30] sm:$0xff] }
 0x64c   : > { %4139 = vmatpush2.msra.mxu0 %v6802_v11  ;;  %4216 = vmatpush2.msra.mxu1 %v6804_v2  ;;  %v6842_v11 = vld [vmem:[%s12285_s7 + $0xb28] sm:$0xff]  ;;  %v6844_v2 = vld [vmem:[%s12285_s7 + $0xb38] sm:$0xff] }
 0x64d   : > { %4140 = vmatprep.subr.mxu0 %v6800_v17  ;;  %4217 = vmatprep.subr.mxu1 %v12359_v18  ;;  %v6840_v17 = vld [vmem:[%s12285_s7 + $0xb18] sm:$0xff] }
 0x64e   : > { %4141 = vmatpush2.msra.mxu0 %v6799_v45  ;;  %4218 = vmatpush2.msra.mxu1 %v6801_v3  ;;  %v6839_v3 = vld [vmem:[%s12285_s7 + $0xb10] sm:$0xff] }
 0x64f   : > { %4142 = vmatprep.subr.mxu0 %v6797_v53  ;;  %4219 = vmatprep.subr.mxu1 %v12359_v18  ;;  %v6841_v53 = vld [vmem:[%s12285_s7 + $0xb20] sm:$0xff] }
 0x650   : > { %4143 = vmatpush2.msra.mxu0 %v6796_v12  ;;  %4220 = vmatpush2.msra.mxu1 %v6798_v38  ;;  %v6837_v12 = vld [vmem:[%s12285_s7 + $0xb00] sm:$0xff] }
 0x651   : > { %4144 = vmatprep.subr.mxu0 %v6794_v61  ;;  %4221 = vmatprep.subr.mxu1 %v12359_v18  ;;  %v6836_v61 = vld [vmem:[%s12285_s7 + $0xaf8] sm:$0xff] }
 0x652   : > { %4145 = vmatpush2.msra.mxu0 %v6793_v63  ;;  %4222 = vmatpush2.msra.mxu1 %v6795_v15  ;;  %v6838_v63 = vld [vmem:[%s12285_s7 + $0xb08] sm:$0xff] }
 0x653   : > { %4146 = vmatprep.subr.mxu0 %v6791_v8  ;;  %4223 = vmatprep.subr.mxu1 %v12359_v18  ;;  %v6834_v15 = vld [vmem:[%s12285_s7 + $0xae8] sm:$0xff]  ;;  %v6833_v8 = vld [vmem:[%s12285_s7 + $0xae0] sm:$0xff] }
 0x654   : > { %4147 = vmatpush2.msra.mxu0 %v6790_v16  ;;  %4224 = vmatpush2.msra.mxu1 %v6792_v43  ;;  %v6835_v16 = vld [vmem:[%s12285_s7 + $0xaf0] sm:$0xff] }
 0x655   : > { %4148 = vmatprep.subr.mxu0 %v6788_v5  ;;  %4225 = vmatprep.subr.mxu1 %v12359_v18  ;;  %v6831_v43 = vld [vmem:[%s12285_s7 + $0xad0] sm:$0xff]  ;;  %v6830_v5 = vld [vmem:[%s12285_s7 + $0xac8] sm:$0xff] }
 0x656   : > { %4149 = vmatpush2.msra.mxu0 %v6787_v19  ;;  %4226 = vmatpush2.msra.mxu1 %v6789_v22  ;;  %v6832_v19 = vld [vmem:[%s12285_s7 + $0xad8] sm:$0xff] }
 0x657   : > { %4150 = vmatprep.subr.mxu0 %v6785_v24  ;;  %4227 = vmatprep.subr.mxu1 %v12359_v18  ;;  %v6828_v22 = vld [vmem:[%s12285_s7 + $0xab8] sm:$0xff]  ;;  %v6827_v24 = vld [vmem:[%s12285_s7 + $0xab0] sm:$0xff] }
 0x658   : > { %4151 = vmatpush2.msra.mxu0 %v6784_v25  ;;  %4228 = vmatpush2.msra.mxu1 %v6786_v26  ;;  %v6829_v25 = vld [vmem:[%s12285_s7 + $0xac0] sm:$0xff] }
 0x659   : > { %4152 = vmatprep.subr.mxu0 %v6782_v46  ;;  %4229 = vmatprep.subr.mxu1 %v12359_v18  ;;  %v6825_v26 = vld [vmem:[%s12285_s7 + $0xaa0] sm:$0xff]  ;;  %v6824_v46 = vld [vmem:[%s12285_s7 + $0xa98] sm:$0xff] }
 0x65a   : > { %4153 = vmatpush2.msra.mxu0 %v6781_v29  ;;  %4230 = vmatpush2.msra.mxu1 %v6783_v14  ;;  %v6822_v29 = vld [vmem:[%s12285_s7 + $0xa88] sm:$0xff]  ;;  %v6821_v14 = vld [vmem:[%s12285_s7 + $0xa80] sm:$0xff] }
 0x65b   : > { %4155 = vmatmul.mubr.f32.vlgmr.msra.gmra.mxu0 %v4080_v34  ;;  %4232 = vmatmul.mubr.f32.vlgmr.msra.gmra.mxu1 %v4080_v34  ;;  %v6902_v34 = vld [vmem:[%s12285_s7 + $0xd08] sm:$0xff] }
 0x65c   : > { %4345 = vmatprep.subr.mxu0 %v6867_v30  ;;  %4422 = vmatprep.subr.mxu1 %v12359_v18  ;;  %v6903_v30 = vld [vmem:[%s12285_s7 + $0xd10] sm:$0xff] }
 0x65d   : > { %6818 = vmatprep.mubr.msk.f32.mxu0 %vm3425_vm6, %v10272_v9  ;;  %6820 = vmatprep.mubr.msk.f32.mxu1 %vm3425_vm6, %v10272_v9  ;;  %v6861_v9 = vld [vmem:[%s12285_s7 + $0xbc0] sm:$0xff] }
 0x65e   : > { %4346 = vmatpush1.msra.mxu0 %v6866_v35  ;;  %4423 = vmatpush1.msra.mxu1 %v6868_v23  ;;  %v6904_v35 = vld [vmem:[%s12285_s7 + $0xd18] sm:$0xff] }
 0x65f   : > { %4347 = vmatprep.subr.mxu0 %v6864_v47  ;;  %4424 = vmatprep.subr.mxu1 %v12359_v18  ;;  %v6900_v23 = vld [vmem:[%s12285_s7 + $0xcf8] sm:$0xff]  ;;  %v6899_v47 = vld [vmem:[%s12285_s7 + $0xcf0] sm:$0xff] }
 0x660   : > { %4348 = vmatpush1.msra.mxu0 %v6863_v48  ;;  %4425 = vmatpush1.msra.mxu1 %v6865_v49  ;;  %v6901_v48 = vld [vmem:[%s12285_s7 + $0xd00] sm:$0xff] }
 0x661   : > { %4161 = vmatmul.mubr.f32.gmra.mxu0 %v4079_v13  ;;  %4237 = vmatmul.mubr.f32.gmra.mxu1 %v4079_v13  ;;  %v6826_v13 = vld [vmem:[%s12285_s7 + $0xaa8] sm:$0xff]  ;;  %v6897_v49 = vld [vmem:[%s12285_s7 + $0xce0] sm:$0xff] }
 0x662   : > { %4349 = vmatprep.subr.mxu0 %v6861_v9  ;;  %4426 = vmatprep.subr.mxu1 %v12359_v18  ;;  %v6896_v9 = vld [vmem:[%s12285_s7 + $0xcd8] sm:$0xff] }
 0x663   : > { %4350 = vmatpush1.msra.mxu0 %v6860_v41  ;;  %6905 = vmatprep.mubr.msk.f32.mxu0 %vm3425_vm6, %v4338_v44  ;;  %v6898_v41 = vld [vmem:[%s12285_s7 + $0xce8] sm:$0xff] }
 0x664   : > { %4427 = vmatpush1.msra.mxu1 %v6862_v21  ;;  %6907 = vmatprep.mubr.msk.f32.mxu1 %vm3425_vm6, %v4338_v44  ;;  %v6893_v21 = vld [vmem:[%s12285_s7 + $0xcc0] sm:$0xff]  ;;  %v6895_v44 = vld [vmem:[%s12285_s7 + $0xcd0] sm:$0xff] }
 0x665   : > { %4351 = vmatprep.subr.mxu0 %v6858_v58  ;;  %4428 = vmatprep.subr.mxu1 %v12359_v18  ;;  %v6891_v58 = vld [vmem:[%s12285_s7 + $0xcb0] sm:$0xff] }
 0x666   : > { %4352 = vmatpush1.msra.mxu0 %v6857_v31  ;;  %4429 = vmatpush1.msra.mxu1 %v6859_v39  ;;  %v6890_v31 = vld [vmem:[%s12285_s7 + $0xca8] sm:$0xff]  ;;  %v6892_v39 = vld [vmem:[%s12285_s7 + $0xcb8] sm:$0xff] }
 0x667   : > { %4353 = vmatprep.subr.mxu0 %v6855_v6  ;;  %4430 = vmatprep.subr.mxu1 %v12359_v18  ;;  %v6888_v6 = vld [vmem:[%s12285_s7 + $0xc98] sm:$0xff] }
 0x668   : > { %4354 = vmatpush1.msra.mxu0 %v6854_v54  ;;  %4431 = vmatpush1.msra.mxu1 %v6856_v42  ;;  %v10617_v57 = vpop.f32.mrf.mxu1  ;;  %v6887_v54 = vld [vmem:[%s12285_s7 + $0xc90] sm:$0xff]  ;;  %v6889_v42 = vld [vmem:[%s12285_s7 + $0xca0] sm:$0xff] }
 0x669   : > { %4355 = vmatprep.subr.mxu0 %v6852_v36  ;;  %4432 = vmatprep.subr.mxu1 %v12359_v18  ;;  %v6885_v36 = vld [vmem:[%s12285_s7 + $0xc80] sm:$0xff] }
 0x66a   : > { %4356 = vmatpush1.msra.mxu0 %v6851_v55  ;;  %4433 = vmatpush1.msra.mxu1 %v6853_v56  ;;  %v3575_v59 = vpop.f32.mrf.mxu1  ;;  %v6884_v55 = vld [vmem:[%s12285_s7 + $0xc78] sm:$0xff]  ;;  %v6886_v56 = vld [vmem:[%s12285_s7 + $0xc88] sm:$0xff] }
 0x66b   : > { %4357 = vmatprep.subr.mxu0 %v6849_v4  ;;  %4434 = vmatprep.subr.mxu1 %v12359_v18  ;;  %v6882_v4 = vld [vmem:[%s12285_s7 + $0xc68] sm:$0xff] }
 0x66c   : > { %4358 = vmatpush1.msra.mxu0 %v6848_v7  ;;  %4435 = vmatpush1.msra.mxu1 %v6850_v51  ;;  %v6881_v7 = vld [vmem:[%s12285_s7 + $0xc60] sm:$0xff]  ;;  %v6883_v51 = vld [vmem:[%s12285_s7 + $0xc70] sm:$0xff]  ;;  %v6878_v59 = vld [vmem:[%s12285_s7 + $0xc48] sm:$0xff] }
 0x66d   : > { %4359 = vmatprep.subr.mxu0 %v6846_v33  ;;  %4436 = vmatprep.subr.mxu1 %v12359_v18  ;;  %v6879_v33 = vld [vmem:[%s12285_s7 + $0xc50] sm:$0xff] }
 0x66e   : > { %4360 = vmatpush1.msra.mxu0 %v6845_v50  ;;  %4437 = vmatpush1.msra.mxu1 %v6847_v60  ;;  %v10649_v45 = vpop.f32.mrf.mxu1  ;;  %v6880_v50 = vld [vmem:[%s12285_s7 + $0xc58] sm:$0xff] }
 0x66f   : > { %4361 = vmatprep.subr.mxu0 %v6843_v10  ;;  %4438 = vmatprep.subr.mxu1 %v12359_v18  ;;  %v6876_v60 = vld [vmem:[%s12285_s7 + $0xc38] sm:$0xff]  ;;  %v6875_v10 = vld [vmem:[%s12285_s7 + $0xc30] sm:$0xff] }
 0x670   : > { %4362 = vmatpush1.msra.mxu0 %v6842_v11  ;;  %4439 = vmatpush1.msra.mxu1 %v6844_v2  ;;  %v3580_v38 = vpop.f32.mrf.mxu1  ;;  %v6877_v11 = vld [vmem:[%s12285_s7 + $0xc40] sm:$0xff] }
 0x671   : > { %4363 = vmatprep.subr.mxu0 %v6840_v17  ;;  %4440 = vmatprep.subr.mxu1 %v12359_v18  ;;  %v6873_v2 = vld [vmem:[%s12285_s7 + $0xc20] sm:$0xff]  ;;  %v6872_v17 = vld [vmem:[%s12285_s7 + $0xc18] sm:$0xff] }
 0x672   : > { %4364 = vmatpush1.msra.mxu0 %v6839_v3  ;;  %4441 = vmatpush1.msra.mxu1 %v6841_v53  ;;  %v6874_v3 = vld [vmem:[%s12285_s7 + $0xc28] sm:$0xff]  ;;  %v6869_v38 = vld [vmem:[%s12285_s7 + $0xc00] sm:$0xff] }
 0x673   : > { %4365 = vmatprep.subr.mxu0 %v6837_v12  ;;  %4442 = vmatprep.subr.mxu1 %v12359_v18  ;;  %v6870_v53 = vld [vmem:[%s12285_s7 + $0xc08] sm:$0xff]  ;;  %v4334_v12 = vrot.slane %v9653_v32, 4 }
 0x674   : > { %4366 = vmatpush1.msra.mxu0 %v6836_v61  ;;  %4443 = vmatpush1.msra.mxu1 %v6838_v63  ;;  %v6871_v61 = vld [vmem:[%s12285_s7 + $0xc10] sm:$0xff]  ;;  %v4333_v63 = vrot.slane %v9655_v27, 4 }
 0x675   : > { %4367 = vmatprep.subr.mxu0 %v6834_v15  ;;  %4444 = vmatprep.subr.mxu1 %v12359_v18 }
 0x676   : > { %4368 = vmatpush1.msra.mxu0 %v6833_v8  ;;  %4445 = vmatpush1.msra.mxu1 %v6835_v16  ;;  %v4335_v32 = vsel %vm1439_vm2, %v4333_v63, %v4334_v12  ;;  %vm4663_vm2 = vcmask 258048  }
 0x677   : > { %4369 = vmatprep.subr.mxu0 %v6831_v43  ;;  %4446 = vmatprep.subr.mxu1 %v12359_v18 }
 0x678   : > { %4370 = vmatpush1.msra.mxu0 %v6830_v5  ;;  %4447 = vmatpush1.msra.mxu1 %v6832_v19 }
 0x679   : > { %4371 = vmatprep.subr.mxu0 %v6828_v22  ;;  %4448 = vmatprep.subr.mxu1 %v12359_v18 }
 0x67a   : > { %4372 = vmatpush1.msra.mxu0 %v6827_v24  ;;  %4449 = vmatpush1.msra.mxu1 %v6829_v25 }
 0x67b   : > { %4373 = vmatprep.subr.mxu0 %v6825_v26  ;;  %4450 = vmatprep.subr.mxu1 %v12359_v18 }
 0x67c   : > { %4374 = vmatpush1.msra.mxu0 %v6824_v46  ;;  %4451 = vmatpush1.msra.mxu1 %v6826_v13 }
 0x67d   : > { %4375 = vmatprep.subr.mxu0 %v6822_v29  ;;  %4452 = vmatprep.subr.mxu1 %v12359_v18 }
 0x67e   : > { %4376 = vmatpush1.msra.mxu0 %v6821_v14  ;;  %4453 = vmatpush1.msra.mxu1 %v6823_v62  ;;  %v3496_v14 = vpop.f32.mrf.mxu0 }
 0x67f   : > { %4385 = vmatprep.subr.mxu0 %v6903_v30  ;;  %4462 = vmatprep.subr.mxu1 %v12359_v18 }
 0x680   : > { %4386 = vmatpush2.msra.mxu0 %v6902_v34  ;;  %4463 = vmatpush2.msra.mxu1 %v6904_v35  ;;  %v3498_v62 = vpop.f32.mrf.mxu0 }
 0x681   : > { %4387 = vmatprep.subr.mxu0 %v6900_v23  ;;  %4464 = vmatprep.subr.mxu1 %v12359_v18 }
 0x682   : > { %4388 = vmatpush2.msra.mxu0 %v6899_v47  ;;  %4465 = vmatpush2.msra.mxu1 %v6901_v48  ;;  %v3502_v34 = vpop.f32.mrf.mxu0 }
 0x683   : > { %4389 = vmatprep.subr.mxu0 %v6897_v49  ;;  %4466 = vmatprep.subr.mxu1 %v12359_v18 }
 0x684   : > { %4390 = vmatpush2.msra.mxu0 %v6896_v9  ;;  %4467 = vmatpush2.msra.mxu1 %v6898_v41  ;;  %v3504_v35 = vpop.f32.mrf.mxu0 }
 0x685   : > { %4391 = vmatprep.subr.mxu0 %v6894_v52  ;;  %4468 = vmatprep.subr.mxu1 %v12359_v18 }
 0x686   : > { %4392 = vmatpush2.msra.mxu0 %v6893_v21  ;;  %4469 = vmatpush2.msra.mxu1 %v6895_v44 }
 0x687   : > { %4393 = vmatprep.subr.mxu0 %v6891_v58  ;;  %4470 = vmatprep.subr.mxu1 %v12359_v18 }
 0x688   : > { %4394 = vmatpush2.msra.mxu0 %v6890_v31  ;;  %4471 = vmatpush2.msra.mxu1 %v6892_v39  ;;  %v4503_v31 = vld [vmem:[%s12286_s8] sm:$0x7] }
 0x689   : > { %4395 = vmatprep.subr.mxu0 %v6888_v6  ;;  %4472 = vmatprep.subr.mxu1 %v12359_v18 }
 0x68a   : > { %4396 = vmatpush2.msra.mxu0 %v6887_v54  ;;  %4473 = vmatpush2.msra.mxu1 %v6889_v42 }
 0x68b   : > { %4397 = vmatprep.subr.mxu0 %v6885_v36  ;;  %4474 = vmatprep.subr.mxu1 %v12359_v18  ;;  %v4508_v36 = vrot.slane %v4503_v31, %v12357_v28 }
 0x68c   : > { %4398 = vmatpush2.msra.mxu0 %v6884_v55  ;;  %4475 = vmatpush2.msra.mxu1 %v6886_v56 }
 0x68d   : > { %4399 = vmatprep.subr.mxu0 %v6882_v4  ;;  %4476 = vmatprep.subr.mxu1 %v12359_v18 }
 0x68e   : > { %4400 = vmatpush2.msra.mxu0 %v6881_v7  ;;  %4477 = vmatpush2.msra.mxu1 %v6883_v51  ;;  %v12360_v7 = vsub.s32 2, %v7972_v37 }
 0x68f   : > { %4401 = vmatprep.subr.mxu0 %v6879_v33  ;;  %4478 = vmatprep.subr.mxu1 %v12359_v18 }
 0x690   : > { %4402 = vmatpush2.msra.mxu0 %v6878_v59  ;;  %4479 = vmatpush2.msra.mxu1 %v6880_v50  ;;  %v4516_v51 = vrot.slane %v4503_v31, %v12360_v7  ;;  %v4512_v50 = vrot.slane %v4503_v31, %v12358_v0 }
 0x691   : > { %4403 = vmatprep.subr.mxu0 %v6876_v60  ;;  %4480 = vmatprep.subr.mxu1 %v12359_v18 }
 0x692   : > { %4404 = vmatpush2.msra.mxu0 %v6875_v10  ;;  %4481 = vmatpush2.msra.mxu1 %v6877_v11 }
 0x693   : > { %4405 = vmatprep.subr.mxu0 %v6873_v2  ;;  %4482 = vmatprep.subr.mxu1 %v12359_v18 }
 0x694   : > { %4406 = vmatpush2.msra.mxu0 %v6872_v17  ;;  %4483 = vmatpush2.msra.mxu1 %v6874_v3 }
 0x695   : > { %4407 = vmatprep.subr.mxu0 %v6870_v53  ;;  %4484 = vmatprep.subr.mxu1 %v12359_v18 }
 0x696   : > { %4408 = vmatpush2.msra.mxu0 %v6869_v38  ;;  %4485 = vmatpush2.msra.mxu1 %v6871_v61 }
 0x697   : > { %4410 = vmatmul.mubr.f32.vlgmr.msra.gmra.mxu0 %v4335_v32  ;;  %4487 = vmatmul.mubr.f32.vlgmr.msra.gmra.mxu1 %v4335_v32 }
 0x698   : > { %6906 = vmatprep.mubr.msk.f32.mxu0 %vm3425_vm6, %v10567_v40  ;;  %6908 = vmatprep.mubr.msk.f32.mxu1 %vm3425_vm6, %v10567_v40 }
 0x69b   : > { %4416 = vmatmul.mubr.f32.gmra.mxu0 %v4334_v12  ;;  %4492 = vmatmul.mubr.f32.gmra.mxu1 %v4334_v12 }
 0x6a3   : > { %v3729_v15 = vpop.f32.mrf.mxu1 }
 0x6a4   : > { %v3730_v27 = vadd.f32 %v3729_v15, %v10617_v57  ;;  %v3652_v57 = vpop.f32.mrf.mxu0 }
 0x6a5   : > { %v3731_v8 = vpop.f32.mrf.mxu1  ;;  %v3653_v58 = vadd.f32 %v3652_v57, %v3496_v14 }
 0x6a6   : > { %v3654_v23 = vpop.f32.mrf.mxu0 }
 0x6a7   : > { %v3655_v39 = vadd.f32 %v3654_v23, %v3498_v62 }
 0x6a9   : > { %v3734_v16 = vpop.f32.mrf.mxu1  ;;  %v3658_v47 = vpop.f32.mrf.mxu0 }
 0x6aa   : > { %v3735_v43 = vadd.f32 %v3734_v16, %v10649_v45  ;;  %v3659_v54 = vadd.f32 %v3658_v47, %v3502_v34 }
 0x6ab   : > { %v3736_v5 = vpop.f32.mrf.mxu1  ;;  %v3660_v48 = vpop.f32.mrf.mxu0 }
 0x6ac   : > { %v3661_v17 = vadd.f32 %v3660_v48, %v3504_v35 }
 0x6df   : > { %v3978_v19 = vpop.f32.mrf.mxu1  ;;  %v3901_v45 = vpop.f32.mrf.mxu0 }
 0x6e0   : > { %v3989_v22 = vadd.f32 %v3978_v19, %v3730_v27  ;;  %v3987_v6 = vadd.f32 %v3901_v45, %v3653_v58 }
 0x6e1   : > { %v3980_v24 = vpop.f32.mrf.mxu1  ;;  %v3903_v49 = vpop.f32.mrf.mxu0 }
 0x6e2   : > { %v3988_v55 = vadd.f32 %v3903_v49, %v3655_v39 }
 0x6e5   : > { %v3983_v25 = vpop.f32.mrf.mxu1  ;;  %v3907_v9 = vpop.f32.mrf.mxu0 }
 0x6e6   : > { %v3992_v26 = vadd.f32 %v3983_v25, %v3735_v43  ;;  %v3990_v60 = vadd.f32 %v3907_v9, %v3659_v54 }
 0x6e7   : > { %v3985_v46 = vpop.f32.mrf.mxu1  ;;  %v3909_v41 = vpop.f32.mrf.mxu0 }
 0x6e8   : > { %v3991_v32 = vadd.f32 %v3909_v41, %v3661_v17 }
 0x71b   : > { %v4233_v13 = vpop.f32.mrf.mxu1  ;;  %v4156_v52 = vpop.f32.mrf.mxu0 }
 0x71c   : > { %v4242_v56 = vadd.f32 %v4156_v52, %v3987_v6  ;;  %v4244_v4 = vadd.f32 %v4233_v13, %v3989_v22 }
 0x71d   : > { %v4235_v29 = vpop.f32.mrf.mxu1  ;;  %v4158_v21 = vpop.f32.mrf.mxu0 }
 0x71e   : > { %v4243_v10 = vadd.f32 %v4158_v21, %v3988_v55 }
 0x721   : > { %v4238_v40 = vpop.f32.mrf.mxu1  ;;  %v4162_v44 = vpop.f32.mrf.mxu0 }
 0x722   : > { %v4245_v12 = vadd.f32 %v4162_v44, %v3990_v60  ;;  %v4247_v15 = vadd.f32 %v4238_v40, %v3992_v26 }
 0x723   : > { %v4240_v30 = vpop.f32.mrf.mxu1  ;;  %v4164_v42 = vpop.f32.mrf.mxu0 }
 0x724   : > { %v4246_v19 = vadd.f32 %v4164_v42, %v3991_v32  ;;  %v4745_v32 = vld [vmem:[%s12287_s9 + $0xf0] sm:$0xff] }
 0x757   : > { %v4411_v33 = vpop.f32.mrf.mxu0  ;;  %v4488_v59 = vpop.f32.mrf.mxu1 }
 0x758   : > { %v4497_v11 = vadd.f32 %v4411_v33, %v4242_v56  ;;  %v4499_v2 = vadd.f32 %v4488_v59, %v4244_v4 }
 0x759   : > { %v4413_v3 = vpop.f32.mrf.mxu0  ;;  %v4490_v53 = vpop.f32.mrf.mxu1 }
 0x75a   : > { %v4520_v38 = vadd.f32 %v4508_v36, %v4497_v11  ;;  %v4522_v61 = vadd.f32 %v4516_v51, %v4499_v2  ;;  %v4498_v63 = vadd.f32 %v4413_v3, %v4243_v10 }
 0x75b   : > { %v4417_v27 = vpop.f32.mrf.mxu0  ;;  %v4493_v37 = vpop.f32.mrf.mxu1 }
 0x75c   : > { %v4526_v8 = vmax.f32 %v4520_v38, 0.0  ;;  %v4528_v16 = vmax.f32 %v4522_v61, 0.0  ;;  %v4521_v43 = vadd.f32 %v4512_v50, %v4498_v63  ;;  %v4500_v5 = vadd.f32 %v4417_v27, %v4245_v12  ;;  %v4746_v61 = vld [vmem:[%s12287_s9 + $0xf8] sm:$0xff]  ;;  %v4744_v27 = vld [vmem:[%s12287_s9 + $0xe8] sm:$0xff] }
 0x75d   : > { %v4502_v22 = vadd.f32 %v4493_v37, %v4247_v15  ;;  %v4419_v24 = vpop.f32.mrf.mxu0  ;;  %v4495_v25 = vpop.f32.mrf.mxu1  ;;  %v6940_v63 = vld [vmem:[%s12287_s9 + $0x2b8] sm:$0xff]  ;;  %4911 = vmatprep.subr.mxu1 %v4746_v61  ;;  %v6939_v15 = vld [vmem:[%s12287_s9 + $0x2b0] sm:$0xff]  ;;  %v6938_v37 = vld [vmem:[%s12287_s9 + $0x2a8] sm:$0xff] }
 0x75e   : > { %v4535_v46 = vrot.slane %v4526_v8, 1  ;;  %v4537_v13 = vrot.slane %v4528_v16, 1  ;;  %v4527_v29 = vmax.f32 %v4521_v43, 0.0  ;;  %v4523_v14 = vadd.f32 %v4508_v36, %v4500_v5  ;;  %4837 = vmatprep.subr.mxu0 %v6940_v63  ;;  %4912 = vmatpush1.msra.mxu1 %v4745_v32  ;;  %v4742_v43 = vld [vmem:[%s12287_s9 + $0xd8] sm:$0xff]  ;;  %v6934_v25 = vld [vmem:[%s12287_s9 + $0x288] sm:$0xff]  ;;  %v6911_v61 = vld [vmem:[%s12287_s9 + $0x1d0] sm:$0xff] }
 0x75f   : > { %v4525_v62 = vadd.f32 %v4516_v51, %v4502_v22  ;;  %v4501_v30 = vadd.f32 %v4419_v24, %v4246_v19  ;;  %4838 = vmatpush1.msra.mxu0 %v6939_v15  ;;  %4913 = vmatprep.subr.mxu1 %v4744_v27  ;;  %v6936_v5 = vld [vmem:[%s12287_s9 + $0x298] sm:$0xff]  ;;  %v4741_v19 = vld [vmem:[%s12287_s9 + $0xd0] sm:$0xff]  ;;  %v4740_v24 = vld [vmem:[%s12287_s9 + $0xc8] sm:$0xff] }
 0x760   : > { %v4543_v34 = vmax.f32 %v4528_v16, %v4537_v13  ;;  %v4536_v35 = vrot.slane %v4527_v29, 1  ;;  %v4529_v57 = vmax.f32 %v4523_v14, 0.0  ;;  %v4541_v23 = vmax.f32 %v4526_v8, %v4535_v46  ;;  %v4743_v8 = vld [vmem:[%s12287_s9 + $0xe0] sm:$0xff]  ;;  %4839 = vmatprep.subr.mxu0 %v6938_v37  ;;  %v6935_v22 = vld [vmem:[%s12287_s9 + $0x290] sm:$0xff]  ;;  %v6932_v14 = vld [vmem:[%s12287_s9 + $0x278] sm:$0xff] }
 0x761   : > { %v4531_v26 = vmax.f32 %v4525_v62, 0.0  ;;  %v4524_v40 = vadd.f32 %v4512_v50, %v4501_v30  ;;  %v6937_v16 = vld [vmem:[%s12287_s9 + $0x2a0] sm:$0xff]  ;;  %4914 = vmatpush1.msra.mxu1 %v4743_v8  ;;  %v4737_v62 = vld [vmem:[%s12287_s9 + $0xb0] sm:$0xff]  ;;  %v4716_v63 = vld [vmem:[%s12287_s9 + $0x8] sm:$0xff] }
 0x762   : > { %v4581_v47 = vcombine.high %v4543_v34, %v4543_v34  ;;  %v4542_v48 = vmax.f32 %v4527_v29, %v4536_v35  ;;  %v4616_v45 = vrot.slane %v4529_v57, 1  ;;  %v4561_v44 = vrot.slane %v4543_v34, %v7998_v1  ;;  %4840 = vmatpush1.msra.mxu0 %v6937_v16  ;;  %4915 = vmatprep.subr.mxu1 %v4742_v43  ;;  %v4739_v46 = vld [vmem:[%s12287_s9 + $0xc0] sm:$0xff]  ;;  %v4738_v29 = vld [vmem:[%s12287_s9 + $0xb8] sm:$0xff]  ;;  %v6931_v30 = vld [vmem:[%s12287_s9 + $0x270] sm:$0xff] }
 0x763   : > { %v4618_v49 = vrot.slane %v4531_v26, 1  ;;  %v4530_v9 = vmax.f32 %v4524_v40, 0.0  ;;  %4841 = vmatprep.subr.mxu0 %v6936_v5  ;;  %4916 = vmatpush1.msra.mxu1 %v4741_v19  ;;  %v6933_v13 = vld [vmem:[%s12287_s9 + $0x280] sm:$0xff]  ;;  %v4736_v34 = vld [vmem:[%s12287_s9 + $0xa8] sm:$0xff]  ;;  %v4770_v37 = vld [vmem:[%s12287_s9 + $0x1b8] sm:$0xff] }
 0x764   : > { %v4547_v41 = vcombine.low %v4541_v23, %v4542_v48  ;;  %v4580_v52 = vcombine.high %v4541_v23, %v4542_v48  ;;  %v4595_v58 = vrot.slane %v4581_v47, %v7998_v1  ;;  %v4622_v6 = vmax.f32 %v4529_v57, %v4616_v45  ;;  %4842 = vmatpush1.msra.mxu0 %v6935_v22  ;;  %v6930_v57 = vld [vmem:[%s12287_s9 + $0x268] sm:$0xff]  ;;  %v4735_v40 = vld [vmem:[%s12287_s9 + $0xa0] sm:$0xff]  ;;  %v4734_v47 = vld [vmem:[%s12287_s9 + $0x98] sm:$0xff] }
 0x765   : > { %v4617_v21 = vrot.slane %v4530_v9, 1  ;;  %v4624_v54 = vmax.f32 %v4531_v26, %v4618_v49  ;;  %4917 = vmatprep.subr.mxu1 %v4740_v24  ;;  %4843 = vmatprep.subr.mxu0 %v6934_v25  ;;  %v6929_v23 = vld [vmem:[%s12287_s9 + $0x260] sm:$0xff]  ;;  %v6928_v48 = vld [vmem:[%s12287_s9 + $0x258] sm:$0xff]  ;;  %v4733_v45 = vld [vmem:[%s12287_s9 + $0x90] sm:$0xff] }
 0x766   : > { %v4554_v31 = vrot.slane %v4547_v41, %v7998_v1  ;;  %v4588_v39 = vrot.slane %v4580_v52, %v7998_v1  ;;  %4918 = vmatpush1.msra.mxu1 %v4739_v46  ;;  %4844 = vmatpush1.msra.mxu0 %v6933_v13  ;;  %v6927_v49 = vld [vmem:[%s12287_s9 + $0x250] sm:$0xff]  ;;  %v6926_v41 = vld [vmem:[%s12287_s9 + $0x248] sm:$0xff]  ;;  %v4731_v52 = vld [vmem:[%s12287_s9 + $0x80] sm:$0xff] }
 0x767   : > { %v4623_v42 = vmax.f32 %v4530_v9, %v4617_v21  ;;  %v4642_v51 = vrot.slane %v4624_v54, %v7998_v1  ;;  %4919 = vmatprep.subr.mxu1 %v4738_v29  ;;  %4845 = vmatprep.subr.mxu0 %v6932_v14  ;;  %v4732_v9 = vld [vmem:[%s12287_s9 + $0x88] sm:$0xff]  ;;  %v6925_v21 = vld [vmem:[%s12287_s9 + $0x240] sm:$0xff]  ;;  %v6964_v8 = vld [vmem:[%s12287_s9 + $0x378] sm:$0xff] }
 0x768   : > { %v4562_v36 = vcombine.low %v4554_v31, %v4561_v44  ;;  %v4596_v55 = vcombine.low %v4588_v39, %v4595_v58  ;;  %4920 = vmatpush1.msra.mxu1 %v4737_v62  ;;  %4846 = vmatpush1.msra.mxu0 %v6931_v30  ;;  %v4730_v44 = vld [vmem:[%s12287_s9 + $0x78] sm:$0xff]  ;;  %v4729_v31 = vld [vmem:[%s12287_s9 + $0x70] sm:$0xff]  ;;  %v6922_v54 = vld [vmem:[%s12287_s9 + $0x228] sm:$0xff] }
 0x769   : > { %v4628_v56 = vcombine.low %v4622_v6, %v4623_v42  ;;  %4921 = vmatprep.subr.mxu1 %v4736_v34  ;;  %4847 = vmatprep.subr.mxu0 %v6930_v57  ;;  %v6924_v58 = vld [vmem:[%s12287_s9 + $0x238] sm:$0xff]  ;;  %v6923_v39 = vld [vmem:[%s12287_s9 + $0x230] sm:$0xff]  ;;  %v4728_v6 = vld [vmem:[%s12287_s9 + $0x68] sm:$0xff] }
 0x76a   : > { %v4569_v4 = vrot.slane %v4562_v36, %v7998_v1  ;;  %v4603_v7 = vrot.slane %v4596_v55, %v7998_v1  ;;  %4922 = vmatpush1.msra.mxu1 %v4735_v40  ;;  %4848 = vmatpush1.msra.mxu0 %v6929_v23  ;;  %v4727_v42 = vld [vmem:[%s12287_s9 + $0x60] sm:$0xff]  ;;  %v4726_v55 = vld [vmem:[%s12287_s9 + $0x58] sm:$0xff]  ;;  %v6910_v32 = vld [vmem:[%s12287_s9 + $0x1c8] sm:$0xff] }
 0x76b   : > { %v4635_v33 = vrot.slane %v4628_v56, %v7998_v1  ;;  %4923 = vmatprep.subr.mxu1 %v4734_v47  ;;  %4849 = vmatprep.subr.mxu0 %v6928_v48  ;;  %v6921_v36 = vld [vmem:[%s12287_s9 + $0x220] sm:$0xff]  ;;  %v6920_v56 = vld [vmem:[%s12287_s9 + $0x218] sm:$0xff]  ;;  %v4769_v16 = vld [vmem:[%s12287_s9 + $0x1b0] sm:$0xff] }
 0x76c   : > { %4573 = vst.msk [vmem:[#allocation7] ss:$8 sm:$0x7] %vm4571_vm0, %v4569_v4  ;;  %v4575_v59 = vcombine.high %v4569_v4, %v4569_v4  ;;  %4606 = vst.msk [vmem:[#allocation7 + $0x2] ss:$8 sm:$0x7] %vm4571_vm0, %v4603_v7  ;;  %v4608_v50 = vcombine.high %v4603_v7, %v4603_v7  ;;  %4924 = vmatpush1.msra.mxu1 %v4733_v45  ;;  %4850 = vmatpush1.msra.mxu0 %v6927_v49 }
 0x76d   : > { %v4643_v60 = vcombine.low %v4635_v33, %v4642_v51  ;;  %4925 = vmatprep.subr.mxu1 %v4732_v9  ;;  %4851 = vmatprep.subr.mxu0 %v6926_v41  ;;  %v4725_v4 = vld [vmem:[%s12287_s9 + $0x50] sm:$0xff]  ;;  %v4724_v51 = vld [vmem:[%s12287_s9 + $0x48] sm:$0xff]  ;;  %v4715_v15 = vld [vmem:[%s12287_s9] sm:$0xff] }
 0x76e   : > { %4578 = vst.msk [vmem:[#allocation7 + $0x1] ss:$8 sm:$0x7] %vm4571_vm0, %v4575_v59  ;;  %4611 = vst.msk [vmem:[#allocation7 + $0x3] ss:$8 sm:$0x7] %vm4571_vm0, %v4608_v50  ;;  %4926 = vmatpush1.msra.mxu1 %v4731_v52  ;;  %4852 = vmatpush1.msra.mxu0 %v6925_v21 }
 0x76f   : > { %v4650_v10 = vrot.slane %v4643_v60, %v7998_v1  ;;  %4927 = vmatprep.subr.mxu1 %v4730_v44  ;;  %4853 = vmatprep.subr.mxu0 %v6924_v58  ;;  %v6919_v7 = vld [vmem:[%s12287_s9 + $0x210] sm:$0xff]  ;;  %v6918_v33 = vld [vmem:[%s12287_s9 + $0x208] sm:$0xff]  ;;  %v4723_v59 = vld [vmem:[%s12287_s9 + $0x40] sm:$0xff] }
 0x770   : > { %4928 = vmatpush1.msra.mxu1 %v4729_v31  ;;  %4854 = vmatpush1.msra.mxu0 %v6923_v39  ;;  %v6917_v50 = vld [vmem:[%s12287_s9 + $0x200] sm:$0xff]  ;;  %v4722_v60 = vld [vmem:[%s12287_s9 + $0x38] sm:$0xff]  ;;  %v6963_v43 = vld [vmem:[%s12287_s9 + $0x370] sm:$0xff] }
 0x771   : > { %4653 = vst.msk [vmem:[#allocation7 + $0x4] ss:$8 sm:$0x7] %vm4571_vm0, %v4650_v10  ;;  %4929 = vmatprep.subr.mxu1 %v4728_v6  ;;  %4855 = vmatprep.subr.mxu0 %v6922_v54  ;;  %v6916_v10 = vld [vmem:[%s12287_s9 + $0x1f8] sm:$0xff]  ;;  %v6909_v27 = vld [vmem:[%s12287_s9 + $0x1c0] sm:$0xff]  ;;  %v4768_v5 = vld [vmem:[%s12287_s9 + $0x1a8] sm:$0xff] }
 0x772   : > { %4930 = vmatpush1.msra.mxu1 %v4727_v42  ;;  %4856 = vmatpush1.msra.mxu0 %v6921_v36  ;;  %v6962_v19 = vld [vmem:[%s12287_s9 + $0x368] sm:$0xff]  ;;  %v4767_v22 = vld [vmem:[%s12287_s9 + $0x1a0] sm:$0xff]  ;;  %v4766_v25 = vld [vmem:[%s12287_s9 + $0x198] sm:$0xff] }
 0x773   : > { %4931 = vmatprep.subr.mxu1 %v4726_v55  ;;  %4857 = vmatprep.subr.mxu0 %v6920_v56  ;;  %v6961_v24 = vld [vmem:[%s12287_s9 + $0x360] sm:$0xff]  ;;  %v6960_v46 = vld [vmem:[%s12287_s9 + $0x358] sm:$0xff]  ;;  %v4765_v13 = vld [vmem:[%s12287_s9 + $0x190] sm:$0xff] }
 0x774   : > { %4932 = vmatpush1.msra.mxu1 %v4725_v4  ;;  %4858 = vmatpush1.msra.mxu0 %v6919_v7  ;;  %v6959_v29 = vld [vmem:[%s12287_s9 + $0x350] sm:$0xff]  ;;  %v4764_v14 = vld [vmem:[%s12287_s9 + $0x188] sm:$0xff]  ;;  %v4763_v30 = vld [vmem:[%s12287_s9 + $0x180] sm:$0xff] }
 0x775   : > { %4933 = vmatprep.subr.mxu1 %v4724_v51  ;;  %4859 = vmatprep.subr.mxu0 %v6918_v33  ;;  %v6958_v62 = vld [vmem:[%s12287_s9 + $0x348] sm:$0xff]  ;;  %v6957_v34 = vld [vmem:[%s12287_s9 + $0x340] sm:$0xff]  ;;  %v6956_v57 = vld [vmem:[%s12287_s9 + $0x338] sm:$0xff] }
 0x776   : > { %4934 = vmatpush1.msra.mxu1 %v4723_v59  ;;  %4860 = vmatpush1.msra.mxu0 %v6917_v50  ;;  %v6955_v40 = vld [vmem:[%s12287_s9 + $0x330] sm:$0xff]  ;;  %v4760_v23 = vld [vmem:[%s12287_s9 + $0x168] sm:$0xff]  ;;  %v4759_v48 = vld [vmem:[%s12287_s9 + $0x160] sm:$0xff] }
 0x777   : > { %4935 = vmatprep.subr.mxu1 %v4722_v60  ;;  %4861 = vmatprep.subr.mxu0 %v6916_v10  ;;  %v6954_v47 = vld [vmem:[%s12287_s9 + $0x328] sm:$0xff]  ;;  %v6953_v45 = vld [vmem:[%s12287_s9 + $0x320] sm:$0xff]  ;;  %v4758_v49 = vld [vmem:[%s12287_s9 + $0x158] sm:$0xff] }
 0x778   : > { %v4656_v20 = vld [vmem:[#allocation7 + $0x8] sm:$0x1f]  ;;  %v4655_v11 = vld [vmem:[#allocation7] sm:$0x1f]  ;;  %v4657_v2 = vld [vmem:[#allocation7 + $0x10] sm:$0x1f] }
 0x779   : > { %4672 = vrot.lane.b32.xlu1 %v4656_v20, %s7388_s20  ;;  %4659 = vrot.lane.b32.xlu0 %v4655_v11, %s7388_s20  ;;  %v6952_v9 = vld [vmem:[%s12287_s9 + $0x318] sm:$0xff]  ;;  %v4757_v41 = vld [vmem:[%s12287_s9 + $0x150] sm:$0xff] }
 0x77a   : > { %v6951_v21 = vld [vmem:[%s12287_s9 + $0x310] sm:$0xff]  ;;  %v4756_v44 = vld [vmem:[%s12287_s9 + $0x148] sm:$0xff]  ;;  %v4755_v31 = vld [vmem:[%s12287_s9 + $0x140] sm:$0xff] }
 0x77b   : > { %v6950_v58 = vld [vmem:[%s12287_s9 + $0x308] sm:$0xff]  ;;  %v6949_v6 = vld [vmem:[%s12287_s9 + $0x300] sm:$0xff]  ;;  %v4754_v54 = vld [vmem:[%s12287_s9 + $0x138] sm:$0xff] }
 0x77c   : > { %v6948_v42 = vld [vmem:[%s12287_s9 + $0x2f8] sm:$0xff]  ;;  %v4753_v55 = vld [vmem:[%s12287_s9 + $0x130] sm:$0xff]  ;;  %v4752_v4 = vld [vmem:[%s12287_s9 + $0x128] sm:$0xff] }
 0x77d   : > { %4688 = vrot.lane.b32.xlu1 %v4657_v2, %s7388_s20  ;;  %v6947_v56 = vld [vmem:[%s12287_s9 + $0x2f0] sm:$0xff]  ;;  %v6946_v7 = vld [vmem:[%s12287_s9 + $0x2e8] sm:$0xff]  ;;  %v4751_v51 = vld [vmem:[%s12287_s9 + $0x120] sm:$0xff] }
 0x77e   : > { %v6945_v33 = vld [vmem:[%s12287_s9 + $0x2e0] sm:$0xff]  ;;  %v4750_v59 = vld [vmem:[%s12287_s9 + $0x118] sm:$0xff]  ;;  %v4749_v60 = vld [vmem:[%s12287_s9 + $0x110] sm:$0xff] }
 0x77f   : > { %v6944_v50 = vld [vmem:[%s12287_s9 + $0x2d8] sm:$0xff]  ;;  %v6943_v10 = vld [vmem:[%s12287_s9 + $0x2d0] sm:$0xff] }
 0x7eb   : > { %v4673_v17 = vpop.permute.xlu1 %4672  ;;  %v4660_v3 = vpop.permute.xlu0 %4659 }
 0x7ec   : > { %v4675_v53 = vmax.f32 %v4656_v20, %v4673_v17  ;;  %v4662_v12 = vmax.f32 %v4655_v11, %v4660_v3  ;;  %v4721_v20 = vld [vmem:[%s12287_s9 + $0x30] sm:$0xff]  ;;  %v6914_v17 = vld [vmem:[%s12287_s9 + $0x1e8] sm:$0xff]  ;;  %v4719_v3 = vld [vmem:[%s12287_s9 + $0x20] sm:$0xff] }
 0x7ed   : > { %v6915_v11 = vld [vmem:[%s12287_s9 + $0x1f0] sm:$0xff]  ;;  %4936 = vmatpush1.msra.mxu1 %v4721_v20  ;;  %v4748_v20 = vld [vmem:[%s12287_s9 + $0x108] sm:$0xff] }
 0x7ee   : > { %4664 = vst.msk [vmem:[#allocation5] sm:$0x1f] %vm4663_vm2, %v4662_v12  ;;  %4682 = vrot.lane.b32.xlu1 %v4675_v53, %s12361_s19  ;;  %4666 = vrot.lane.b32.xlu0 %v4662_v12, %s7388_s20  ;;  %v4718_v12 = vld [vmem:[%s12287_s9 + $0x18] sm:$0xff]  ;;  %s6120_s20 = scalar_lea.sflag [#allocation9], %s539_s26 }
 0x7ef   : > { %v4689_v1 = vpop.permute.xlu1 %4688  ;;  %4862 = vmatpush1.msra.mxu0 %v6915_v11  ;;  %v6942_v11 = vld [vmem:[%s12287_s9 + $0x2c8] sm:$0xff] }
 0x7f0   : > { %v4691_v38 = vmax.f32 %v4657_v2, %v4689_v1  ;;  %v4720_v2 = vld [vmem:[%s12287_s9 + $0x28] sm:$0xff]  ;;  %v6912_v1 = vld [vmem:[%s12287_s9 + $0x1d8] sm:$0xff]  ;;  %4863 = vmatprep.subr.mxu0 %v6914_v17  ;;  %v6941_v17 = vld [vmem:[%s12287_s9 + $0x2c0] sm:$0xff] }
 0x7f1   : > { %4937 = vmatprep.subr.mxu1 %v4720_v2  ;;  %v4747_v2 = vld [vmem:[%s12287_s9 + $0x100] sm:$0xff] }
 0x7f2   : > { %4692 = vst.msk [vmem:[#allocation5 + $0x8] sm:$0x1f] %vm4663_vm2, %v4691_v38  ;;  %4677 = vrot.lane.b32.xlu0 %v4675_v53, %s12362_s16  ;;  %v6913_v53 = vld [vmem:[%s12287_s9 + $0x1e0] sm:$0xff]  ;;  %v4717_v38 = vld [vmem:[%s12287_s9 + $0x10] sm:$0xff]  ;;  %4938 = vmatpush1.msra.mxu1 %v4719_v3 }
 0x7f3   : > { %4864 = vmatpush1.msra.mxu0 %v6913_v53  ;;  %4939 = vmatprep.subr.mxu1 %v4718_v12  ;;  %v6998_v53 = vld [vmem:[%s12287_s9 + $0x478] sm:$0xff] }
 0x7f4   : > { %4865 = vmatprep.subr.mxu0 %v6912_v1  ;;  %4940 = vmatpush1.msra.mxu1 %v4717_v38 }
 0x7f5   : > { %4866 = vmatpush1.msra.mxu0 %v6911_v61  ;;  %4941 = vmatprep.subr.mxu1 %v4716_v63 }
 0x7f6   : > { %4867 = vmatprep.subr.mxu0 %v6910_v32  ;;  %4942 = vmatpush1.msra.mxu1 %v4715_v15 }
 0x7f7   : > { %4868 = vmatpush1.msra.mxu0 %v6909_v27  ;;  %4951 = vmatprep.subr.mxu1 %v4770_v37 }
 0x7f8   : > { %4877 = vmatprep.subr.mxu0 %v6964_v8  ;;  %4952 = vmatpush2.msra.mxu1 %v4769_v16 }
 0x7f9   : > { %v4694_v35 = vld [vmem:[#allocation5 + $0x8] sm:$0x1f]  ;;  %4878 = vmatpush2.msra.mxu0 %v6963_v43  ;;  %4953 = vmatprep.subr.mxu1 %v4768_v5  ;;  %v6997_v43 = vld [vmem:[%s12287_s9 + $0x470] sm:$0xff] }
 0x7fa   : > { %v4701_v26 = vrot.slane %v4694_v35, 7  ;;  %4879 = vmatprep.subr.mxu0 %v6962_v19  ;;  %4954 = vmatpush2.msra.mxu1 %v4767_v22  ;;  %v4762_v35 = vld [vmem:[%s12287_s9 + $0x178] sm:$0xff]  ;;  %v6996_v5 = vld [vmem:[%s12287_s9 + $0x468] sm:$0xff]  ;;  %v6995_v22 = vld [vmem:[%s12287_s9 + $0x460] sm:$0xff] }
 0x7fb   : > { %4880 = vmatpush2.msra.mxu0 %v6961_v24  ;;  %4955 = vmatprep.subr.mxu1 %v4766_v25  ;;  %v6994_v24 = vld [vmem:[%s12287_s9 + $0x458] sm:$0xff]  ;;  %v6993_v25 = vld [vmem:[%s12287_s9 + $0x450] sm:$0xff] }
 0x7fc   : > { %4704 = vrot.lane.b32.xlu1 %v4701_v26, %s12361_s19  ;;  %4881 = vmatprep.subr.mxu0 %v6960_v46  ;;  %v4761_v26 = vld [vmem:[%s12287_s9 + $0x170] sm:$0xff]  ;;  %v6992_v46 = vld [vmem:[%s12287_s9 + $0x448] sm:$0xff] }
 0x7fd   : > { %4956 = vmatpush2.msra.mxu1 %v4765_v13  ;;  %4882 = vmatpush2.msra.mxu0 %v6959_v29  ;;  %v6991_v13 = vld [vmem:[%s12287_s9 + $0x440] sm:$0xff]  ;;  %v6990_v29 = vld [vmem:[%s12287_s9 + $0x438] sm:$0xff] }
 0x7fe   : > { %4957 = vmatprep.subr.mxu1 %v4764_v14  ;;  %4883 = vmatprep.subr.mxu0 %v6958_v62  ;;  %v6989_v14 = vld [vmem:[%s12287_s9 + $0x430] sm:$0xff]  ;;  %v6988_v62 = vld [vmem:[%s12287_s9 + $0x428] sm:$0xff] }
 0x7ff   : > { %4958 = vmatpush2.msra.mxu1 %v4763_v30  ;;  %4884 = vmatpush2.msra.mxu0 %v6957_v34  ;;  %v6987_v30 = vld [vmem:[%s12287_s9 + $0x420] sm:$0xff]  ;;  %v6986_v34 = vld [vmem:[%s12287_s9 + $0x418] sm:$0xff] }
 0x800   : > { %4959 = vmatprep.subr.mxu1 %v4762_v35  ;;  %4885 = vmatprep.subr.mxu0 %v6956_v57  ;;  %v6985_v35 = vld [vmem:[%s12287_s9 + $0x410] sm:$0xff]  ;;  %v6984_v57 = vld [vmem:[%s12287_s9 + $0x408] sm:$0xff] }
 0x801   : > { %4960 = vmatpush2.msra.mxu1 %v4761_v26  ;;  %4886 = vmatpush2.msra.mxu0 %v6955_v40  ;;  %v6983_v26 = vld [vmem:[%s12287_s9 + $0x400] sm:$0xff]  ;;  %v6982_v40 = vld [vmem:[%s12287_s9 + $0x3f8] sm:$0xff] }
 0x802   : > { %4961 = vmatprep.subr.mxu1 %v4760_v23  ;;  %4887 = vmatprep.subr.mxu0 %v6954_v47  ;;  %v6981_v23 = vld [vmem:[%s12287_s9 + $0x3f0] sm:$0xff]  ;;  %v6980_v47 = vld [vmem:[%s12287_s9 + $0x3e8] sm:$0xff] }
 0x803   : > { %4962 = vmatpush2.msra.mxu1 %v4759_v48  ;;  %4888 = vmatpush2.msra.mxu0 %v6953_v45  ;;  %v6979_v48 = vld [vmem:[%s12287_s9 + $0x3e0] sm:$0xff]  ;;  %v6978_v45 = vld [vmem:[%s12287_s9 + $0x3d8] sm:$0xff] }
 0x804   : > { %4963 = vmatprep.subr.mxu1 %v4758_v49  ;;  %4889 = vmatprep.subr.mxu0 %v6952_v9  ;;  %v6977_v49 = vld [vmem:[%s12287_s9 + $0x3d0] sm:$0xff]  ;;  %v6976_v9 = vld [vmem:[%s12287_s9 + $0x3c8] sm:$0xff] }
 0x805   : > { %4964 = vmatpush2.msra.mxu1 %v4757_v41  ;;  %4890 = vmatpush2.msra.mxu0 %v6951_v21  ;;  %v6975_v41 = vld [vmem:[%s12287_s9 + $0x3c0] sm:$0xff]  ;;  %v6973_v21 = vld [vmem:[%s12287_s9 + $0x3b0] sm:$0xff] }
 0x806   : > { %4965 = vmatprep.subr.mxu1 %v4756_v44  ;;  %4891 = vmatprep.subr.mxu0 %v6950_v58  ;;  %v6972_v44 = vld [vmem:[%s12287_s9 + $0x3a8] sm:$0xff]  ;;  %v6971_v58 = vld [vmem:[%s12287_s9 + $0x3a0] sm:$0xff] }
 0x807   : > { %4966 = vmatpush2.msra.mxu1 %v4755_v31  ;;  %4892 = vmatpush2.msra.mxu0 %v6949_v6  ;;  %v6970_v31 = vld [vmem:[%s12287_s9 + $0x398] sm:$0xff]  ;;  %v6968_v6 = vld [vmem:[%s12287_s9 + $0x388] sm:$0xff] }
 0x808   : > { %4967 = vmatprep.subr.mxu1 %v4754_v54  ;;  %4893 = vmatprep.subr.mxu0 %v6948_v42  ;;  %v6967_v54 = vld [vmem:[%s12287_s9 + $0x380] sm:$0xff]  ;;  %v7022_v42 = vld [vmem:[%s12287_s9 + $0x538] sm:$0xff] }
 0x809   : > { %4968 = vmatpush2.msra.mxu1 %v4753_v55  ;;  %4894 = vmatpush2.msra.mxu0 %v6947_v56  ;;  %v7020_v55 = vld [vmem:[%s12287_s9 + $0x528] sm:$0xff]  ;;  %v7019_v56 = vld [vmem:[%s12287_s9 + $0x520] sm:$0xff] }
 0x80a   : > { %4969 = vmatprep.subr.mxu1 %v4752_v4  ;;  %4895 = vmatprep.subr.mxu0 %v6946_v7  ;;  %v7018_v4 = vld [vmem:[%s12287_s9 + $0x518] sm:$0xff]  ;;  %v7017_v7 = vld [vmem:[%s12287_s9 + $0x510] sm:$0xff] }
 0x80b   : > { %4970 = vmatpush2.msra.mxu1 %v4751_v51  ;;  %4896 = vmatpush2.msra.mxu0 %v6945_v33  ;;  %v7016_v51 = vld [vmem:[%s12287_s9 + $0x508] sm:$0xff]  ;;  %v7015_v33 = vld [vmem:[%s12287_s9 + $0x500] sm:$0xff] }
 0x80c   : > { %4971 = vmatprep.subr.mxu1 %v4750_v59  ;;  %4897 = vmatprep.subr.mxu0 %v6944_v50  ;;  %v7014_v59 = vld [vmem:[%s12287_s9 + $0x4f8] sm:$0xff]  ;;  %v7013_v50 = vld [vmem:[%s12287_s9 + $0x4f0] sm:$0xff] }
 0x80d   : > { %4972 = vmatpush2.msra.mxu1 %v4749_v60  ;;  %4898 = vmatpush2.msra.mxu0 %v6943_v10  ;;  %v7012_v60 = vld [vmem:[%s12287_s9 + $0x4e8] sm:$0xff]  ;;  %v7011_v10 = vld [vmem:[%s12287_s9 + $0x4e0] sm:$0xff] }
 0x80e   : > { %4973 = vmatprep.subr.mxu1 %v4748_v20  ;;  %4899 = vmatprep.subr.mxu0 %v6942_v11  ;;  %v7010_v20 = vld [vmem:[%s12287_s9 + $0x4d8] sm:$0xff]  ;;  %v7009_v11 = vld [vmem:[%s12287_s9 + $0x4d0] sm:$0xff] }
 0x80f   : > { %4974 = vmatpush2.msra.mxu1 %v4747_v2  ;;  %4900 = vmatpush2.msra.mxu0 %v6941_v17  ;;  %v7008_v2 = vld [vmem:[%s12287_s9 + $0x4c8] sm:$0xff]  ;;  %v7007_v17 = vld [vmem:[%s12287_s9 + $0x4c0] sm:$0xff] }
 0x810   : > { %5048 = vmatprep.subr.mxu0 %v6998_v53  ;;  %v7005_v53 = vld [vmem:[%s12287_s9 + $0x4b0] sm:$0xff] }
 0x860   : > { %v4667_v52 = vpop.permute.xlu0 %4666  ;;  %v4683_v36 = vpop.permute.xlu1 %4682 }
 0x861   : > { %4670 = vst.msk [vmem:[#allocation5] sm:$0x1f] %vm4669_vm4, %v4667_v52  ;;  %v6974_v52 = vld [vmem:[%s12287_s9 + $0x3b8] sm:$0xff] }
 0x864   : > { %v4678_v39 = vpop.permute.xlu0 %4677 }
 0x865   : > { %4681 = vst.msk [vmem:[#allocation5] sm:$0x1f] %vm4680_vm7, %v4678_v39  ;;  %v6969_v39 = vld [vmem:[%s12287_s9 + $0x390] sm:$0xff] }
 0x866   : > { %4686 = vst.msk [vmem:[#allocation5] sm:$0x1f] %vm4685_vm8, %v4683_v36  ;;  %v7021_v36 = vld [vmem:[%s12287_s9 + $0x530] sm:$0xff] }
 0x86d   : > { %v4693_v3 = vld [vmem:[#allocation5] sm:$0x1f] }
 0x86e   : > { %v4700_v12 = vrot.slane %v4693_v3, 7  ;;  %v4705_v1 = vpop.permute.xlu1 %4704  ;;  %v7006_v3 = vld [vmem:[%s12287_s9 + $0x4b8] sm:$0xff] }
 0x870   : > { %4702 = vrot.lane.b32.xlu0 %v4700_v12, %s12361_s19  ;;  %v7004_v12 = vld [vmem:[%s12287_s9 + $0x4a8] sm:$0xff] }
 0x8e2   : > { %v4703_v38 = vpop.permute.xlu0 %4702 }
 0x8e3   : > { %v4706_v61 = vsel %vm595_vm1, %v4703_v38, %v4705_v1  ;;  %4710 = vst.msk [vmem:[#allocation6] sm:$0x3e] %vm4709_vm9, %v4703_v38  ;;  %v7003_v1 = vld [vmem:[%s12287_s9 + $0x4a0] sm:$0xff]  ;;  %v7002_v38 = vld [vmem:[%s12287_s9 + $0x498] sm:$0xff] }
 0x8e4   : > { %4712 = vst.msk [vmem:[#allocation6 + $0x8] sm:$0x3e] %vm4711_vm10, %v4706_v61  ;;  %v7001_v61 = vld [vmem:[%s12287_s9 + $0x490] sm:$0xff] }
 0x8ea   : > { %v4771_v63 = vld [vmem:[#allocation6] sm:$0x3e] }
 0x8eb   : > { %v4714_v32 = vld [vmem:[#allocation6 + $0x8] sm:$0x1f]  ;;  %v4713_v27 = vld [vmem:[#allocation6] sm:$0x1f]  ;;  %v4832_v16 = vrot.slane %v4771_v63, 1  ;;  %v7000_v63 = vld [vmem:[%s12287_s9 + $0x488] sm:$0xff] }
 0x8ec   : > { %v4772_v15 = vld [vmem:[#allocation6 + $0x8] sm:$0x3e]  ;;  %6966 = vmatprep.mubr.msk.f32.mxu1 %vm3425_vm6, %v4714_v32  ;;  %v4982_v32 = vld [vmem:[#allocation6] sm:$0x7c] }
 0x8ed   : > { %v4833_v37 = vrot.slane %v4772_v15, 1  ;;  %v4983_v8 = vld [vmem:[#allocation6 + $0x8] sm:$0x7c]  ;;  %4976 = vmatmul.mubr.f32.vlgmr.msra.gmra.mxu1 %v4713_v27  ;;  %v6999_v15 = vld [vmem:[%s12287_s9 + $0x480] sm:$0xff]  ;;  %v5043_v27 = vrot.slane %v4982_v32, 2  ;;  %v5154_v32 = vld [vmem:[%s12289_s11 + $0x10] sm:$0xff] }
 0x8ee   : > { %v5044_v19 = vrot.slane %v4983_v8, 2  ;;  %v7055_v8 = vld [vmem:[%s12289_s11 + $0x2b8] sm:$0xff] }
 0x8ef   : > { %6965 = vmatprep.mubr.msk.f32.mxu0 %vm3425_vm6, %v4833_v37  ;;  %v5183_v37 = vld [vmem:[%s12289_s11 + $0xf8] sm:$0xff]  ;;  %5274 = vmatprep.subr.mxu1 %v7055_v8  ;;  %v5152_v8 = vld [vmem:[%s12289_s11] sm:$0xff] }
 0x8f0   : > { %4902 = vmatmul.mubr.f32.vlgmr.msra.gmra.mxu0 %v4832_v16  ;;  %v5182_v16 = vld [vmem:[%s12289_s11 + $0xf0] sm:$0xff] }
 0x8f1   : > { %5049 = vmatpush1.msra.mxu0 %v6997_v43  ;;  %7023 = vmatprep.mubr.msk.f32.mxu0 %vm3425_vm6, %v5044_v19  ;;  %v7054_v43 = vld [vmem:[%s12289_s11 + $0x2b0] sm:$0xff]  ;;  %v7053_v19 = vld [vmem:[%s12289_s11 + $0x2a8] sm:$0xff] }
 0x8f2   : > { %5050 = vmatprep.subr.mxu0 %v6996_v5  ;;  %v5181_v5 = vld [vmem:[%s12289_s11 + $0xe8] sm:$0xff]  ;;  %5275 = vmatpush1.msra.mxu1 %v7054_v43  ;;  %v5207_v43 = vld [vmem:[%s12289_s11 + $0x1b8] sm:$0xff] }
 0x8f3   : > { %5051 = vmatpush1.msra.mxu0 %v6995_v22  ;;  %v5180_v22 = vld [vmem:[%s12289_s11 + $0xe0] sm:$0xff]  ;;  %5276 = vmatprep.subr.mxu1 %v7053_v19  ;;  %v5206_v19 = vld [vmem:[%s12289_s11 + $0x1b0] sm:$0xff] }
 0x8f4   : > { %5052 = vmatprep.subr.mxu0 %v6994_v24  ;;  %v7052_v24 = vld [vmem:[%s12289_s11 + $0x2a0] sm:$0xff] }
 0x8f5   : > { %5053 = vmatpush1.msra.mxu0 %v6993_v25  ;;  %v5179_v25 = vld [vmem:[%s12289_s11 + $0xd8] sm:$0xff]  ;;  %5277 = vmatpush1.msra.mxu1 %v7052_v24  ;;  %v5205_v24 = vld [vmem:[%s12289_s11 + $0x1a8] sm:$0xff] }
 0x8f6   : > { %5054 = vmatprep.subr.mxu0 %v6992_v46  ;;  %v7051_v46 = vld [vmem:[%s12289_s11 + $0x298] sm:$0xff] }
 0x8f7   : > { %5055 = vmatpush1.msra.mxu0 %v6991_v13  ;;  %v5178_v13 = vld [vmem:[%s12289_s11 + $0xd0] sm:$0xff]  ;;  %5278 = vmatprep.subr.mxu1 %v7051_v46  ;;  %v5204_v46 = vld [vmem:[%s12289_s11 + $0x1a0] sm:$0xff] }
 0x8f8   : > { %5056 = vmatprep.subr.mxu0 %v6990_v29  ;;  %v7050_v29 = vld [vmem:[%s12289_s11 + $0x290] sm:$0xff] }
 0x8f9   : > { %5057 = vmatpush1.msra.mxu0 %v6989_v14  ;;  %v5177_v14 = vld [vmem:[%s12289_s11 + $0xc8] sm:$0xff]  ;;  %5279 = vmatpush1.msra.mxu1 %v7050_v29  ;;  %v5203_v29 = vld [vmem:[%s12289_s11 + $0x198] sm:$0xff] }
 0x8fa   : > { %5058 = vmatprep.subr.mxu0 %v6988_v62  ;;  %v7049_v62 = vld [vmem:[%s12289_s11 + $0x288] sm:$0xff] }
 0x8fb   : > { %5059 = vmatpush1.msra.mxu0 %v6987_v30  ;;  %v5176_v30 = vld [vmem:[%s12289_s11 + $0xc0] sm:$0xff]  ;;  %5280 = vmatprep.subr.mxu1 %v7049_v62  ;;  %v5202_v62 = vld [vmem:[%s12289_s11 + $0x190] sm:$0xff] }
 0x8fc   : > { %5060 = vmatprep.subr.mxu0 %v6986_v34  ;;  %v7048_v34 = vld [vmem:[%s12289_s11 + $0x280] sm:$0xff] }
 0x8fd   : > { %5061 = vmatpush1.msra.mxu0 %v6985_v35  ;;  %v5175_v35 = vld [vmem:[%s12289_s11 + $0xb8] sm:$0xff]  ;;  %5281 = vmatpush1.msra.mxu1 %v7048_v34  ;;  %v5201_v34 = vld [vmem:[%s12289_s11 + $0x188] sm:$0xff] }
 0x8fe   : > { %5062 = vmatprep.subr.mxu0 %v6984_v57  ;;  %v7047_v57 = vld [vmem:[%s12289_s11 + $0x278] sm:$0xff] }
 0x8ff   : > { %5063 = vmatpush1.msra.mxu0 %v6983_v26  ;;  %v5174_v26 = vld [vmem:[%s12289_s11 + $0xb0] sm:$0xff]  ;;  %5282 = vmatprep.subr.mxu1 %v7047_v57  ;;  %v5200_v57 = vld [vmem:[%s12289_s11 + $0x180] sm:$0xff] }
 0x900   : > { %5064 = vmatprep.subr.mxu0 %v6982_v40  ;;  %v7046_v40 = vld [vmem:[%s12289_s11 + $0x270] sm:$0xff] }
 0x901   : > { %5065 = vmatpush1.msra.mxu0 %v6981_v23  ;;  %v5173_v23 = vld [vmem:[%s12289_s11 + $0xa8] sm:$0xff]  ;;  %5283 = vmatpush1.msra.mxu1 %v7046_v40  ;;  %v5199_v40 = vld [vmem:[%s12289_s11 + $0x178] sm:$0xff] }
 0x902   : > { %5066 = vmatprep.subr.mxu0 %v6980_v47  ;;  %v7045_v47 = vld [vmem:[%s12289_s11 + $0x268] sm:$0xff] }
 0x903   : > { %5067 = vmatpush1.msra.mxu0 %v6979_v48  ;;  %v5172_v48 = vld [vmem:[%s12289_s11 + $0xa0] sm:$0xff]  ;;  %5284 = vmatprep.subr.mxu1 %v7045_v47  ;;  %v5198_v47 = vld [vmem:[%s12289_s11 + $0x170] sm:$0xff] }
 0x904   : > { %5068 = vmatprep.subr.mxu0 %v6978_v45  ;;  %v7044_v45 = vld [vmem:[%s12289_s11 + $0x260] sm:$0xff] }
 0x905   : > { %5069 = vmatpush1.msra.mxu0 %v6977_v49  ;;  %v5171_v49 = vld [vmem:[%s12289_s11 + $0x98] sm:$0xff]  ;;  %5285 = vmatpush1.msra.mxu1 %v7044_v45  ;;  %v5197_v45 = vld [vmem:[%s12289_s11 + $0x168] sm:$0xff] }
 0x906   : > { %5070 = vmatprep.subr.mxu0 %v6976_v9  ;;  %v7043_v9 = vld [vmem:[%s12289_s11 + $0x258] sm:$0xff] }
 0x907   : > { %5071 = vmatpush1.msra.mxu0 %v6975_v41  ;;  %v5170_v41 = vld [vmem:[%s12289_s11 + $0x90] sm:$0xff]  ;;  %5286 = vmatprep.subr.mxu1 %v7043_v9  ;;  %v5196_v9 = vld [vmem:[%s12289_s11 + $0x160] sm:$0xff] }
 0x908   : > { %5072 = vmatprep.subr.mxu0 %v6974_v52  ;;  %v7042_v52 = vld [vmem:[%s12289_s11 + $0x250] sm:$0xff] }
 0x909   : > { %5073 = vmatpush1.msra.mxu0 %v6973_v21  ;;  %v5169_v21 = vld [vmem:[%s12289_s11 + $0x88] sm:$0xff]  ;;  %5287 = vmatpush1.msra.mxu1 %v7042_v52  ;;  %v7068_v52 = vld [vmem:[%s12289_s11 + $0x320] sm:$0xff] }
 0x90a   : > { %5074 = vmatprep.subr.mxu0 %v6972_v44  ;;  %v7041_v44 = vld [vmem:[%s12289_s11 + $0x248] sm:$0xff] }
 0x90b   : > { %5075 = vmatpush1.msra.mxu0 %v6971_v58  ;;  %v5168_v58 = vld [vmem:[%s12289_s11 + $0x80] sm:$0xff]  ;;  %5288 = vmatprep.subr.mxu1 %v7041_v44 }
 0x90c   : > { %5076 = vmatprep.subr.mxu0 %v6970_v31  ;;  %v7040_v31 = vld [vmem:[%s12289_s11 + $0x240] sm:$0xff] }
 0x90d   : > { %5077 = vmatpush1.msra.mxu0 %v6969_v39  ;;  %v5167_v39 = vld [vmem:[%s12289_s11 + $0x78] sm:$0xff]  ;;  %5289 = vmatpush1.msra.mxu1 %v7040_v31 }
 0x90e   : > { %5078 = vmatprep.subr.mxu0 %v6968_v6  ;;  %v7039_v6 = vld [vmem:[%s12289_s11 + $0x238] sm:$0xff] }
 0x90f   : > { %5079 = vmatpush1.msra.mxu0 %v6967_v54  ;;  %v5166_v54 = vld [vmem:[%s12289_s11 + $0x70] sm:$0xff]  ;;  %5290 = vmatprep.subr.mxu1 %v7039_v6  ;;  %v7067_v31 = vld [vmem:[%s12289_s11 + $0x318] sm:$0xff] }
 0x910   : > { %5088 = vmatprep.subr.mxu0 %v7022_v42  ;;  %v7038_v42 = vld [vmem:[%s12289_s11 + $0x230] sm:$0xff] }
 0x911   : > { %5089 = vmatpush2.msra.mxu0 %v7021_v36  ;;  %v5165_v36 = vld [vmem:[%s12289_s11 + $0x68] sm:$0xff]  ;;  %5291 = vmatpush1.msra.mxu1 %v7038_v42  ;;  %v7066_v6 = vld [vmem:[%s12289_s11 + $0x310] sm:$0xff] }
 0x912   : > { %5090 = vmatprep.subr.mxu0 %v7020_v55  ;;  %v7037_v55 = vld [vmem:[%s12289_s11 + $0x228] sm:$0xff] }
 0x913   : > { %5091 = vmatpush2.msra.mxu0 %v7019_v56  ;;  %v5164_v56 = vld [vmem:[%s12289_s11 + $0x60] sm:$0xff]  ;;  %5292 = vmatprep.subr.mxu1 %v7037_v55 }
 0x914   : > { %5092 = vmatprep.subr.mxu0 %v7018_v4  ;;  %v7036_v4 = vld [vmem:[%s12289_s11 + $0x220] sm:$0xff] }
 0x915   : > { %5093 = vmatpush2.msra.mxu0 %v7017_v7  ;;  %v5163_v7 = vld [vmem:[%s12289_s11 + $0x58] sm:$0xff]  ;;  %5293 = vmatpush1.msra.mxu1 %v7036_v4  ;;  %v5192_v55 = vld [vmem:[%s12289_s11 + $0x140] sm:$0xff] }
 0x916   : > { %5094 = vmatprep.subr.mxu0 %v7016_v51  ;;  %v7035_v51 = vld [vmem:[%s12289_s11 + $0x218] sm:$0xff] }
 0x917   : > { %5095 = vmatpush2.msra.mxu0 %v7015_v33  ;;  %v5162_v33 = vld [vmem:[%s12289_s11 + $0x50] sm:$0xff]  ;;  %5294 = vmatprep.subr.mxu1 %v7035_v51  ;;  %v5191_v51 = vld [vmem:[%s12289_s11 + $0x138] sm:$0xff] }
 0x918   : > { %5096 = vmatprep.subr.mxu0 %v7014_v59  ;;  %v7034_v59 = vld [vmem:[%s12289_s11 + $0x210] sm:$0xff] }
 0x919   : > { %5097 = vmatpush2.msra.mxu0 %v7013_v50  ;;  %v5161_v50 = vld [vmem:[%s12289_s11 + $0x48] sm:$0xff]  ;;  %5295 = vmatpush1.msra.mxu1 %v7034_v59 }
 0x91a   : > { %5098 = vmatprep.subr.mxu0 %v7012_v60  ;;  %v7033_v60 = vld [vmem:[%s12289_s11 + $0x208] sm:$0xff] }
 0x91b   : > { %5099 = vmatpush2.msra.mxu0 %v7011_v10  ;;  %v5160_v10 = vld [vmem:[%s12289_s11 + $0x40] sm:$0xff]  ;;  %5296 = vmatprep.subr.mxu1 %v7033_v60  ;;  %v5190_v60 = vld [vmem:[%s12289_s11 + $0x130] sm:$0xff] }
 0x91c   : > { %5100 = vmatprep.subr.mxu0 %v7010_v20  ;;  %v7032_v20 = vld [vmem:[%s12289_s11 + $0x200] sm:$0xff] }
 0x91d   : > { %5101 = vmatpush2.msra.mxu0 %v7009_v11  ;;  %v5159_v11 = vld [vmem:[%s12289_s11 + $0x38] sm:$0xff]  ;;  %5297 = vmatpush1.msra.mxu1 %v7032_v20  ;;  %v5189_v20 = vld [vmem:[%s12289_s11 + $0x128] sm:$0xff] }
 0x91e   : > { %5102 = vmatprep.subr.mxu0 %v7008_v2  ;;  %v7031_v2 = vld [vmem:[%s12289_s11 + $0x1f8] sm:$0xff] }
 0x91f   : > { %5103 = vmatpush2.msra.mxu0 %v7007_v17  ;;  %v5158_v17 = vld [vmem:[%s12289_s11 + $0x30] sm:$0xff]  ;;  %5298 = vmatprep.subr.mxu1 %v7031_v2 }
 0x920   : > { %5104 = vmatprep.subr.mxu0 %v7006_v3  ;;  %v7030_v3 = vld [vmem:[%s12289_s11 + $0x1f0] sm:$0xff] }
 0x921   : > { %5105 = vmatpush2.msra.mxu0 %v7005_v53  ;;  %v5157_v53 = vld [vmem:[%s12289_s11 + $0x28] sm:$0xff]  ;;  %5299 = vmatpush1.msra.mxu1 %v7030_v3 }
 0x922   : > { %5106 = vmatprep.subr.mxu0 %v7004_v12  ;;  %v7029_v12 = vld [vmem:[%s12289_s11 + $0x1e8] sm:$0xff] }
 0x923   : > { %5107 = vmatpush2.msra.mxu0 %v7003_v1  ;;  %v5156_v1 = vld [vmem:[%s12289_s11 + $0x20] sm:$0xff]  ;;  %5300 = vmatprep.subr.mxu1 %v7029_v12  ;;  %v7061_v3 = vld [vmem:[%s12289_s11 + $0x2e8] sm:$0xff] }
 0x924   : > { %5108 = vmatprep.subr.mxu0 %v7002_v38  ;;  %v7028_v38 = vld [vmem:[%s12289_s11 + $0x1e0] sm:$0xff] }
 0x925   : > { %5109 = vmatpush2.msra.mxu0 %v7001_v61  ;;  %v5155_v61 = vld [vmem:[%s12289_s11 + $0x18] sm:$0xff]  ;;  %5301 = vmatpush1.msra.mxu1 %v7028_v38  ;;  %v7060_v12 = vld [vmem:[%s12289_s11 + $0x2e0] sm:$0xff] }
 0x926   : > { %5110 = vmatprep.subr.mxu0 %v7000_v63  ;;  %v7027_v63 = vld [vmem:[%s12289_s11 + $0x1d8] sm:$0xff] }
 0x927   : > { %5111 = vmatpush2.msra.mxu0 %v6999_v15  ;;  %v7026_v15 = vld [vmem:[%s12289_s11 + $0x1d0] sm:$0xff]  ;;  %5302 = vmatprep.subr.mxu1 %v7027_v63  ;;  %v5187_v38 = vld [vmem:[%s12289_s11 + $0x118] sm:$0xff] }
 0x928   : > { %5113 = vmatmul.mubr.f32.vlgmr.msra.gmra.mxu0 %v5043_v27  ;;  %5348 = vmatprep.subr.mxu0 %v5183_v37  ;;  %v5153_v27 = vld [vmem:[%s12289_s11 + $0x8] sm:$0xff]  ;;  %v5186_v63 = vld [vmem:[%s12289_s11 + $0x110] sm:$0xff] }
 0x929   : > { %5349 = vmatpush1.msra.mxu0 %v5182_v16  ;;  %v7025_v37 = vld [vmem:[%s12289_s11 + $0x1c8] sm:$0xff]  ;;  %v7024_v16 = vld [vmem:[%s12289_s11 + $0x1c0] sm:$0xff]  ;;  %5303 = vmatpush1.msra.mxu1 %v7026_v15 }
 0x92a   : > { %5350 = vmatprep.subr.mxu0 %v5181_v5  ;;  %v7079_v5 = vld [vmem:[%s12289_s11 + $0x378] sm:$0xff]  ;;  %5304 = vmatprep.subr.mxu1 %v7025_v37  ;;  %v5185_v37 = vld [vmem:[%s12289_s11 + $0x108] sm:$0xff] }
 0x92b   : > { %5351 = vmatpush1.msra.mxu0 %v5180_v22  ;;  %v7078_v22 = vld [vmem:[%s12289_s11 + $0x370] sm:$0xff]  ;;  %5305 = vmatpush1.msra.mxu1 %v7024_v16  ;;  %v5184_v16 = vld [vmem:[%s12289_s11 + $0x100] sm:$0xff] }
 0x92c   : > { %5352 = vmatprep.subr.mxu0 %v5179_v25  ;;  %v7077_v25 = vld [vmem:[%s12289_s11 + $0x368] sm:$0xff]  ;;  %5314 = vmatprep.subr.mxu1 %v7079_v5 }
 0x92d   : > { %5353 = vmatpush1.msra.mxu0 %v5178_v13  ;;  %v7076_v13 = vld [vmem:[%s12289_s11 + $0x360] sm:$0xff]  ;;  %5315 = vmatpush2.msra.mxu1 %v7078_v22 }
 0x92e   : > { %5354 = vmatprep.subr.mxu0 %v5177_v14  ;;  %v7075_v14 = vld [vmem:[%s12289_s11 + $0x358] sm:$0xff]  ;;  %5316 = vmatprep.subr.mxu1 %v7077_v25 }
 0x92f   : > { %5355 = vmatpush1.msra.mxu0 %v5176_v30  ;;  %v7074_v30 = vld [vmem:[%s12289_s11 + $0x350] sm:$0xff]  ;;  %5317 = vmatpush2.msra.mxu1 %v7076_v13  ;;  %v7113_v25 = vld [vmem:[%s12289_s11 + $0x478] sm:$0xff] }
 0x930   : > { %5356 = vmatprep.subr.mxu0 %v5175_v35  ;;  %v7073_v35 = vld [vmem:[%s12289_s11 + $0x348] sm:$0xff]  ;;  %5318 = vmatprep.subr.mxu1 %v7075_v14 }
 0x931   : > { %5357 = vmatpush1.msra.mxu0 %v5174_v26  ;;  %v7072_v26 = vld [vmem:[%s12289_s11 + $0x340] sm:$0xff]  ;;  %5319 = vmatpush2.msra.mxu1 %v7074_v30 }
 0x932   : > { %5358 = vmatprep.subr.mxu0 %v5173_v23  ;;  %v7071_v23 = vld [vmem:[%s12289_s11 + $0x338] sm:$0xff]  ;;  %5320 = vmatprep.subr.mxu1 %v7073_v35 }
 0x933   : > { %5359 = vmatpush1.msra.mxu0 %v5172_v48  ;;  %v7070_v48 = vld [vmem:[%s12289_s11 + $0x330] sm:$0xff]  ;;  %5321 = vmatpush2.msra.mxu1 %v7072_v26 }
 0x934   : > { %5360 = vmatprep.subr.mxu0 %v5171_v49  ;;  %v7069_v49 = vld [vmem:[%s12289_s11 + $0x328] sm:$0xff]  ;;  %5322 = vmatprep.subr.mxu1 %v7071_v23  ;;  %v7112_v23 = vld [vmem:[%s12289_s11 + $0x470] sm:$0xff] }
 0x935   : > { %5361 = vmatpush1.msra.mxu0 %v5170_v41  ;;  %5323 = vmatpush2.msra.mxu1 %v7070_v48 }
 0x936   : > { %5362 = vmatprep.subr.mxu0 %v5169_v21  ;;  %5324 = vmatprep.subr.mxu1 %v7069_v49  ;;  %v5195_v21 = vld [vmem:[%s12289_s11 + $0x158] sm:$0xff] }
 0x937   : > { %5363 = vmatpush1.msra.mxu0 %v5168_v58  ;;  %v5121_v58 = vld [vmem:[%s12288_s10] sm:$0x3]  ;;  %5325 = vmatpush2.msra.mxu1 %v7068_v52  ;;  %v7109_v49 = vld [vmem:[%s12289_s11 + $0x458] sm:$0xff] }
 0x938   : > { %5364 = vmatprep.subr.mxu0 %v5167_v39  ;;  %v5194_v39 = vld [vmem:[%s12289_s11 + $0x150] sm:$0xff]  ;;  %5326 = vmatprep.subr.mxu1 %v7067_v31  ;;  %v5126_v4 = vrot.slane %v5121_v58, %v12357_v28  ;;  %v7106_v52 = vld [vmem:[%s12289_s11 + $0x440] sm:$0xff] }
 0x939   : > { %5365 = vmatpush1.msra.mxu0 %v5166_v54  ;;  %v5193_v54 = vld [vmem:[%s12289_s11 + $0x148] sm:$0xff]  ;;  %5327 = vmatpush2.msra.mxu1 %v7066_v6  ;;  %v7102_v31 = vld [vmem:[%s12289_s11 + $0x420] sm:$0xff]  ;;  %v7100_v6 = vld [vmem:[%s12289_s11 + $0x410] sm:$0xff] }
 0x93a   : > { %5366 = vmatprep.subr.mxu0 %v5165_v36  ;;  %v7065_v36 = vld [vmem:[%s12289_s11 + $0x308] sm:$0xff] }
 0x93b   : > { %5367 = vmatpush1.msra.mxu0 %v5164_v56  ;;  %5328 = vmatprep.subr.mxu1 %v7065_v36  ;;  %v7097_v36 = vld [vmem:[%s12289_s11 + $0x3f8] sm:$0xff] }
 0x93c   : > { %5368 = vmatprep.subr.mxu0 %v5163_v7  ;;  %v7064_v7 = vld [vmem:[%s12289_s11 + $0x300] sm:$0xff] }
 0x93d   : > { %5369 = vmatpush1.msra.mxu0 %v5162_v33  ;;  %v7063_v33 = vld [vmem:[%s12289_s11 + $0x2f8] sm:$0xff]  ;;  %5329 = vmatpush2.msra.mxu1 %v7064_v7 }
 0x93e   : > { %5370 = vmatprep.subr.mxu0 %v5161_v50  ;;  %5330 = vmatprep.subr.mxu1 %v7063_v33  ;;  %v7093_v7 = vld [vmem:[%s12289_s11 + $0x3d8] sm:$0xff]  ;;  %v7091_v33 = vld [vmem:[%s12289_s11 + $0x3c8] sm:$0xff] }
 0x93f   : > { %5371 = vmatpush1.msra.mxu0 %v5160_v10  ;;  %v7062_v10 = vld [vmem:[%s12289_s11 + $0x2f0] sm:$0xff] }
 0x940   : > { %5372 = vmatprep.subr.mxu0 %v5159_v11  ;;  %5331 = vmatpush2.msra.mxu1 %v7062_v10  ;;  %v7087_v10 = vld [vmem:[%s12289_s11 + $0x3a8] sm:$0xff] }
 0x941   : > { %5373 = vmatpush1.msra.mxu0 %v5158_v17  ;;  %v5130_v17 = vrot.slane %v5121_v58, %v12358_v0  ;;  %5332 = vmatprep.subr.mxu1 %v7061_v3  ;;  %v7103_v58 = vld [vmem:[%s12289_s11 + $0x428] sm:$0xff]  ;;  %v7082_v3 = vld [vmem:[%s12289_s11 + $0x380] sm:$0xff] }
 0x942   : > { %5374 = vmatprep.subr.mxu0 %v5157_v53  ;;  %v5188_v53 = vld [vmem:[%s12289_s11 + $0x120] sm:$0xff]  ;;  %5333 = vmatpush2.msra.mxu1 %v7060_v12  ;;  %v7136_v12 = vld [vmem:[%s12289_s11 + $0x530] sm:$0xff] }
 0x943   : > { %5375 = vmatpush1.msra.mxu0 %v5156_v1 }
 0x944   : > { %5376 = vmatprep.subr.mxu0 %v5155_v61  ;;  %v7059_v61 = vld [vmem:[%s12289_s11 + $0x2d8] sm:$0xff] }
 0x945   : > { %5377 = vmatpush1.msra.mxu0 %v5154_v32  ;;  %5334 = vmatprep.subr.mxu1 %v7059_v61  ;;  %v7133_v61 = vld [vmem:[%s12289_s11 + $0x518] sm:$0xff] }
 0x946   : > { %5378 = vmatprep.subr.mxu0 %v5153_v27  ;;  %v7058_v27 = vld [vmem:[%s12289_s11 + $0x2d0] sm:$0xff] }
 0x947   : > { %5379 = vmatpush1.msra.mxu0 %v5152_v8  ;;  %v7057_v8 = vld [vmem:[%s12289_s11 + $0x2c8] sm:$0xff]  ;;  %5335 = vmatpush2.msra.mxu1 %v7058_v27  ;;  %v7129_v27 = vld [vmem:[%s12289_s11 + $0x4f8] sm:$0xff] }
 0x948   : > { %5388 = vmatprep.subr.mxu0 %v5207_v43  ;;  %5336 = vmatprep.subr.mxu1 %v7057_v8  ;;  %v7127_v8 = vld [vmem:[%s12289_s11 + $0x4e8] sm:$0xff] }
 0x949   : > { %5389 = vmatpush2.msra.mxu0 %v5206_v19 }
 0x94a   : > { %5390 = vmatprep.subr.mxu0 %v5205_v24  ;;  %v7056_v24 = vld [vmem:[%s12289_s11 + $0x2c0] sm:$0xff] }
 0x94b   : > { %5391 = vmatpush2.msra.mxu0 %v5204_v46  ;;  %5337 = vmatpush2.msra.mxu1 %v7056_v24  ;;  %v7121_v24 = vld [vmem:[%s12289_s11 + $0x4b8] sm:$0xff] }
 0x94c   : > { %5392 = vmatprep.subr.mxu0 %v5203_v29  ;;  %5485 = vmatprep.subr.mxu1 %v7113_v25  ;;  %v7120_v25 = vld [vmem:[%s12289_s11 + $0x4b0] sm:$0xff] }
 0x94d   : > { %5393 = vmatpush2.msra.mxu0 %v5202_v62 }
 0x94e   : > { %5394 = vmatprep.subr.mxu0 %v5201_v34 }
 0x94f   : > { %5395 = vmatpush2.msra.mxu0 %v5200_v57 }
 0x950   : > { %5396 = vmatprep.subr.mxu0 %v5199_v40 }
 0x951   : > { %5397 = vmatpush2.msra.mxu0 %v5198_v47  ;;  %v7111_v47 = vld [vmem:[%s12289_s11 + $0x468] sm:$0xff] }
 0x952   : > { %5398 = vmatprep.subr.mxu0 %v5197_v45  ;;  %v7110_v45 = vld [vmem:[%s12289_s11 + $0x460] sm:$0xff] }
 0x953   : > { %5399 = vmatpush2.msra.mxu0 %v5196_v9  ;;  %v7108_v9 = vld [vmem:[%s12289_s11 + $0x450] sm:$0xff] }
 0x954   : > { %5400 = vmatprep.subr.mxu0 %v5195_v21  ;;  %v7105_v21 = vld [vmem:[%s12289_s11 + $0x438] sm:$0xff] }
 0x955   : > { %5401 = vmatpush2.msra.mxu0 %v5194_v39  ;;  %v7101_v39 = vld [vmem:[%s12289_s11 + $0x418] sm:$0xff] }
 0x956   : > { %5402 = vmatprep.subr.mxu0 %v5193_v54  ;;  %v7099_v54 = vld [vmem:[%s12289_s11 + $0x408] sm:$0xff] }
 0x957   : > { %5403 = vmatpush2.msra.mxu0 %v5192_v55  ;;  %v7096_v55 = vld [vmem:[%s12289_s11 + $0x3f0] sm:$0xff] }
 0x958   : > { %5404 = vmatprep.subr.mxu0 %v5191_v51  ;;  %v7092_v51 = vld [vmem:[%s12289_s11 + $0x3d0] sm:$0xff] }
 0x959   : > { %5405 = vmatpush2.msra.mxu0 %v5190_v60  ;;  %v7088_v60 = vld [vmem:[%s12289_s11 + $0x3b0] sm:$0xff] }
 0x95a   : > { %5406 = vmatprep.subr.mxu0 %v5189_v20  ;;  %v7086_v20 = vld [vmem:[%s12289_s11 + $0x3a0] sm:$0xff] }
 0x95b   : > { %5407 = vmatpush2.msra.mxu0 %v5188_v53  ;;  %v7137_v53 = vld [vmem:[%s12289_s11 + $0x538] sm:$0xff] }
 0x95c   : > { %5408 = vmatprep.subr.mxu0 %v5187_v38  ;;  %v7134_v38 = vld [vmem:[%s12289_s11 + $0x520] sm:$0xff] }
 0x95d   : > { %5409 = vmatpush2.msra.mxu0 %v5186_v63  ;;  %v7132_v63 = vld [vmem:[%s12289_s11 + $0x510] sm:$0xff] }
 0x95e   : > { %5410 = vmatprep.subr.mxu0 %v5185_v37  ;;  %v7128_v37 = vld [vmem:[%s12289_s11 + $0x4f0] sm:$0xff] }
 0x95f   : > { %5411 = vmatpush2.msra.mxu0 %v5184_v16  ;;  %v7126_v16 = vld [vmem:[%s12289_s11 + $0x4e0] sm:$0xff] }
 0x960   : > { %5626 = vmatprep.subr.mxu0 %v12359_v18 }
 0x9ad   : > { %v4977_v44 = vpop.f32.mrf.mxu1 }
 0x9af   : > { %v4979_v59 = vpop.f32.mrf.mxu1 }
 0x9b0   : > { %v4903_v41 = vpop.f32.mrf.mxu0 }
 0x9b1   : > { %v4978_v56 = vadd.f32 %v4977_v44, %v4903_v41  ;;  %v7107_v41 = vld [vmem:[%s12289_s11 + $0x448] sm:$0xff]  ;;  %v7104_v44 = vld [vmem:[%s12289_s11 + $0x430] sm:$0xff] }
 0x9b2   : > { %v4905_v42 = vpop.f32.mrf.mxu0 }
 0x9b3   : > { %v4980_v11 = vadd.f32 %v4979_v59, %v4905_v42  ;;  %v7098_v42 = vld [vmem:[%s12289_s11 + $0x400] sm:$0xff] }
 0x9b4   : > { %v7090_v59 = vld [vmem:[%s12289_s11 + $0x3c0] sm:$0xff] }
 0x9e8   : > { %v5114_v50 = vpop.f32.mrf.mxu0 }
 0x9e9   : > { %v5119_v2 = vadd.f32 %v5114_v50, %v4978_v56  ;;  %v7095_v56 = vld [vmem:[%s12289_s11 + $0x3e8] sm:$0xff]  ;;  %v7089_v50 = vld [vmem:[%s12289_s11 + $0x3b8] sm:$0xff] }
 0x9ea   : > { %v5116_v1 = vpop.f32.mrf.mxu0 }
 0x9eb   : > { %v5133_v32 = vadd.f32 %v5126_v4, %v5119_v2  ;;  %v5120_v15 = vadd.f32 %v5116_v1, %v4980_v11  ;;  %v7094_v4 = vld [vmem:[%s12289_s11 + $0x3e0] sm:$0xff]  ;;  %v7085_v11 = vld [vmem:[%s12289_s11 + $0x398] sm:$0xff]  ;;  %v7084_v2 = vld [vmem:[%s12289_s11 + $0x390] sm:$0xff] }
 0x9ec   : > { %v7135_v1 = vld [vmem:[%s12289_s11 + $0x528] sm:$0xff] }
 0x9ed   : > { %v5135_v43 = vmax.f32 %v5133_v32, 0.0  ;;  %v5134_v5 = vadd.f32 %v5130_v17, %v5120_v15  ;;  %v7083_v17 = vld [vmem:[%s12289_s11 + $0x388] sm:$0xff]  ;;  %v7130_v15 = vld [vmem:[%s12289_s11 + $0x500] sm:$0xff] }
 0x9ee   : > { %v7131_v32 = vld [vmem:[%s12289_s11 + $0x508] sm:$0xff] }
 0x9ef   : > { %v5139_v19 = vrot.slane %v5135_v43, 7  ;;  %v5136_v22 = vmax.f32 %v5134_v5, 0.0  ;;  %v7125_v43 = vld [vmem:[%s12289_s11 + $0x4d8] sm:$0xff]  ;;  %v7124_v5 = vld [vmem:[%s12289_s11 + $0x4d0] sm:$0xff] }
 0x9f1   : > { %v5140_v46 = vrot.slane %v5136_v22, 7  ;;  %5141 = vrot.lane.b32.xlu0 %v5139_v19, %s12361_s19  ;;  %v7123_v19 = vld [vmem:[%s12289_s11 + $0x4c8] sm:$0xff]  ;;  %v7122_v22 = vld [vmem:[%s12289_s11 + $0x4c0] sm:$0xff] }
 0x9f3   : > { %5143 = vrot.lane.b32.xlu1 %v5140_v46, %s12361_s19  ;;  %v7119_v46 = vld [vmem:[%s12289_s11 + $0x4a8] sm:$0xff]  ;;  %s7198_s19 = sshll.u32 %s7507_s28, 4  ;;  %s7327_s28 = sshll.u32 %s7395_s0, 4  ;;  %s7328_s28 = int_to_ptr.vmem [resolvable:$false] %s7327_s28 }
 0x9f4   : > { %s6130_s24 = scalar_lea.hbm %s12364_s29, %s7198_s19  ;;  %s7329_s16 = scalar_lea.vmem %s7328_s28, 32 }
 0x9f5   : > { %p7330_p0 = scmp.lt.s32.totalorder %s6133_s18, %s7328_s28  ;;  %p7331_p1 = scmp.lt.s32.totalorder %s7329_s16, %s7323_s27 }
 0x9f7   : > { %p7332_p2 = por %p7331_p1, %p7330_p0 }
 0x9f9   : > { %p7333_p3 = pnand %p7332_p2, %p7326_p13 }
 0xa63   : > { %v5142_v13 = vpop.permute.xlu0 %5141 }
 0xa64   : > { %5148 = vst.msk [vmem:[#allocation6] sm:$0x3e] %vm4709_vm9, %v5142_v13 }
 0xa65   : > { %v5144_v29 = vpop.permute.xlu1 %5143 }
 0xa66   : > { %v5145_v14 = vsel %vm595_vm1, %v5142_v13, %v5144_v29  ;;  %v7118_v13 = vld [vmem:[%s12289_s11 + $0x4a0] sm:$0xff]  ;;  %v7117_v29 = vld [vmem:[%s12289_s11 + $0x498] sm:$0xff] }
 0xa67   : > { %5149 = vst.msk [vmem:[#allocation6 + $0x8] sm:$0x3e] %vm4711_vm10, %v5145_v14  ;;  %v7116_v14 = vld [vmem:[%s12289_s11 + $0x490] sm:$0xff] }
 0xa6b   : > { %v5208_v62 = vld [vmem:[#allocation6] sm:$0x3e] }
 0xa6c   : > { %v5150_v57 = vld [vmem:[#allocation6] sm:$0x1f]  ;;  %v5269_v40 = vrot.slane %v5208_v62, 1  ;;  %v7115_v62 = vld [vmem:[%s12289_s11 + $0x488] sm:$0xff] }
 0xa6e   : > { %v5151_v30 = vld [vmem:[#allocation6 + $0x8] sm:$0x1f] }
 0xa6f   : > { %v5209_v34 = vld [vmem:[#allocation6 + $0x8] sm:$0x3e]  ;;  %7081 = vmatprep.mubr.msk.f32.mxu0 %vm3425_vm6, %v5151_v30  ;;  %v5419_v30 = vld [vmem:[#allocation6] sm:$0x7c] }
 0xa70   : > { %v5420_v35 = vld [vmem:[#allocation6 + $0x8] sm:$0x7c]  ;;  %v5270_v26 = vrot.slane %v5209_v34, 1  ;;  %5413 = vmatmul.mubr.f32.vlgmr.msra.gmra.mxu0 %v5150_v57  ;;  %v7114_v34 = vld [vmem:[%s12289_s11 + $0x480] sm:$0xff] }
 0xa71   : > { %v5481_v48 = vrot.slane %v5420_v35, 2  ;;  %v5480_v35 = vrot.slane %v5419_v30, 2  ;;  %v5593_v57 = vld [vmem:[%s12291_s13 + $0x78] sm:$0xff] }
 0xa72   : > { %7080 = vmatprep.mubr.msk.f32.mxu1 %vm3425_vm6, %v5270_v26  ;;  %v7154_v26 = vld [vmem:[%s12291_s13 + $0x118] sm:$0xff] }
 0xa73   : > { %5339 = vmatmul.mubr.f32.vlgmr.msra.gmra.mxu1 %v5269_v40  ;;  %v5592_v40 = vld [vmem:[%s12291_s13 + $0x70] sm:$0xff]  ;;  %5627 = vmatpush1.msra.mxu0 %v7154_v26 }
 0xa74   : > { %5486 = vmatpush1.msra.mxu1 %v7112_v23  ;;  %7138 = vmatprep.mubr.msk.f32.mxu1 %vm3425_vm6, %v5481_v48  ;;  %v7153_v23 = vld [vmem:[%s12291_s13 + $0x110] sm:$0xff]  ;;  %v7152_v48 = vld [vmem:[%s12291_s13 + $0x108] sm:$0xff] }
 0xa75   : > { %5487 = vmatprep.subr.mxu1 %v7111_v47  ;;  %5628 = vmatprep.subr.mxu0 %v12359_v18  ;;  %v5591_v47 = vld [vmem:[%s12291_s13 + $0x68] sm:$0xff] }
 0xa76   : > { %5488 = vmatpush1.msra.mxu1 %v7110_v45  ;;  %5629 = vmatpush1.msra.mxu0 %v7153_v23  ;;  %v5590_v45 = vld [vmem:[%s12291_s13 + $0x60] sm:$0xff] }
 0xa77   : > { %5489 = vmatprep.subr.mxu1 %v7109_v49  ;;  %5630 = vmatprep.subr.mxu0 %v12359_v18  ;;  %v7151_v49 = vld [vmem:[%s12291_s13 + $0x100] sm:$0xff] }
 0xa78   : > { %5490 = vmatpush1.msra.mxu1 %v7108_v9  ;;  %5631 = vmatpush1.msra.mxu0 %v7152_v48  ;;  %v5589_v9 = vld [vmem:[%s12291_s13 + $0x58] sm:$0xff]  ;;  %v7174_v48 = vld [vmem:[%s12291_s13 + $0x1a8] sm:$0xff] }
 0xa79   : > { %5491 = vmatprep.subr.mxu1 %v7107_v41  ;;  %5632 = vmatprep.subr.mxu0 %v12359_v18  ;;  %v7150_v41 = vld [vmem:[%s12291_s13 + $0xf8] sm:$0xff] }
 0xa7a   : > { %5492 = vmatpush1.msra.mxu1 %v7106_v52  ;;  %5633 = vmatpush1.msra.mxu0 %v7151_v49  ;;  %v5588_v52 = vld [vmem:[%s12291_s13 + $0x50] sm:$0xff]  ;;  %v7172_v49 = vld [vmem:[%s12291_s13 + $0x198] sm:$0xff] }
 0xa7b   : > { %5493 = vmatprep.subr.mxu1 %v7105_v21  ;;  %5634 = vmatprep.subr.mxu0 %v12359_v18  ;;  %v7149_v21 = vld [vmem:[%s12291_s13 + $0xf0] sm:$0xff] }
 0xa7c   : > { %5494 = vmatpush1.msra.mxu1 %v7104_v44  ;;  %5635 = vmatpush1.msra.mxu0 %v7150_v41  ;;  %v5587_v44 = vld [vmem:[%s12291_s13 + $0x48] sm:$0xff] }
 0xa7d   : > { %5495 = vmatprep.subr.mxu1 %v7103_v58  ;;  %5636 = vmatprep.subr.mxu0 %v12359_v18  ;;  %v7148_v58 = vld [vmem:[%s12291_s13 + $0xe8] sm:$0xff] }
 0xa7e   : > { %5496 = vmatpush1.msra.mxu1 %v7102_v31  ;;  %5637 = vmatpush1.msra.mxu0 %v7149_v21  ;;  %v5586_v31 = vld [vmem:[%s12291_s13 + $0x40] sm:$0xff]  ;;  %v7170_v41 = vld [vmem:[%s12291_s13 + $0x188] sm:$0xff]  ;;  %v7168_v21 = vld [vmem:[%s12291_s13 + $0x178] sm:$0xff] }
 0xa7f   : > { %5497 = vmatprep.subr.mxu1 %v7101_v39  ;;  %5638 = vmatprep.subr.mxu0 %v12359_v18  ;;  %v7147_v39 = vld [vmem:[%s12291_s13 + $0xe0] sm:$0xff] }
 0xa80   : > { %5498 = vmatpush1.msra.mxu1 %v7100_v6  ;;  %5639 = vmatpush1.msra.mxu0 %v7148_v58  ;;  %v5585_v6 = vld [vmem:[%s12291_s13 + $0x38] sm:$0xff]  ;;  %v7166_v58 = vld [vmem:[%s12291_s13 + $0x168] sm:$0xff] }
 0xa81   : > { %5499 = vmatprep.subr.mxu1 %v7099_v54  ;;  %5640 = vmatprep.subr.mxu0 %v12359_v18  ;;  %v7146_v54 = vld [vmem:[%s12291_s13 + $0xd8] sm:$0xff] }
 0xa82   : > { %5500 = vmatpush1.msra.mxu1 %v7098_v42  ;;  %5641 = vmatpush1.msra.mxu0 %v7147_v39  ;;  %v5584_v42 = vld [vmem:[%s12291_s13 + $0x30] sm:$0xff]  ;;  %v7164_v39 = vld [vmem:[%s12291_s13 + $0x158] sm:$0xff] }
 0xa83   : > { %5501 = vmatprep.subr.mxu1 %v7097_v36  ;;  %5642 = vmatprep.subr.mxu0 %v12359_v18  ;;  %v7145_v36 = vld [vmem:[%s12291_s13 + $0xd0] sm:$0xff] }
 0xa84   : > { %5502 = vmatpush1.msra.mxu1 %v7096_v55  ;;  %5643 = vmatpush1.msra.mxu0 %v7146_v54  ;;  %v5583_v55 = vld [vmem:[%s12291_s13 + $0x28] sm:$0xff] }
 0xa85   : > { %5503 = vmatprep.subr.mxu1 %v7095_v56  ;;  %5644 = vmatprep.subr.mxu0 %v12359_v18  ;;  %v7144_v56 = vld [vmem:[%s12291_s13 + $0xc8] sm:$0xff] }
 0xa86   : > { %5504 = vmatpush1.msra.mxu1 %v7094_v4  ;;  %5645 = vmatpush1.msra.mxu0 %v7145_v36  ;;  %v5582_v4 = vld [vmem:[%s12291_s13 + $0x20] sm:$0xff]  ;;  %v7162_v54 = vld [vmem:[%s12291_s13 + $0x148] sm:$0xff]  ;;  %v7180_v36 = vld [vmem:[%s12291_s13 + $0x1d8] sm:$0xff] }
 0xa87   : > { %5505 = vmatprep.subr.mxu1 %v7093_v7  ;;  %5646 = vmatprep.subr.mxu0 %v12359_v18  ;;  %v7143_v7 = vld [vmem:[%s12291_s13 + $0xc0] sm:$0xff] }
 0xa88   : > { %5506 = vmatpush1.msra.mxu1 %v7092_v51  ;;  %5647 = vmatpush1.msra.mxu0 %v7144_v56  ;;  %v5581_v51 = vld [vmem:[%s12291_s13 + $0x18] sm:$0xff]  ;;  %v7178_v56 = vld [vmem:[%s12291_s13 + $0x1c8] sm:$0xff] }
 0xa89   : > { %5507 = vmatprep.subr.mxu1 %v7091_v33  ;;  %5648 = vmatprep.subr.mxu0 %v12359_v18  ;;  %v7142_v33 = vld [vmem:[%s12291_s13 + $0xb8] sm:$0xff] }
 0xa8a   : > { %5508 = vmatpush1.msra.mxu1 %v7090_v59  ;;  %5649 = vmatpush1.msra.mxu0 %v7143_v7  ;;  %v5580_v59 = vld [vmem:[%s12291_s13 + $0x10] sm:$0xff] }
 0xa8b   : > { %5509 = vmatprep.subr.mxu1 %v7089_v50  ;;  %5650 = vmatprep.subr.mxu0 %v12359_v18  ;;  %v7141_v50 = vld [vmem:[%s12291_s13 + $0xb0] sm:$0xff] }
 0xa8c   : > { %5510 = vmatpush1.msra.mxu1 %v7088_v60  ;;  %5651 = vmatpush1.msra.mxu0 %v7142_v33  ;;  %v5579_v60 = vld [vmem:[%s12291_s13 + $0x8] sm:$0xff]  ;;  %v7187_v33 = vld [vmem:[%s12293_s15 + $0x50] sm:$0xff] }
 0xa8d   : > { %5511 = vmatprep.subr.mxu1 %v7087_v10  ;;  %5652 = vmatprep.subr.mxu0 %v12359_v18  ;;  %v7140_v10 = vld [vmem:[%s12291_s13 + $0xa8] sm:$0xff] }
 0xa8e   : > { %5512 = vmatpush1.msra.mxu1 %v7086_v20  ;;  %5653 = vmatpush1.msra.mxu0 %v7141_v50  ;;  %v5578_v20 = vld [vmem:[%s12291_s13] sm:$0xff] }
 0xa8f   : > { %5513 = vmatprep.subr.mxu1 %v7085_v11  ;;  %5654 = vmatprep.subr.mxu0 %v12359_v18  ;;  %v7139_v11 = vld [vmem:[%s12291_s13 + $0xa0] sm:$0xff] }
 0xa90   : > { %5514 = vmatpush1.msra.mxu1 %v7084_v2  ;;  %5655 = vmatpush1.msra.mxu0 %v7140_v10  ;;  %v5597_v2 = vld [vmem:[%s12291_s13 + $0x98] sm:$0xff]  ;;  %v7185_v50 = vld [vmem:[%s12293_s15 + $0x40] sm:$0xff]  ;;  %v7183_v10 = vld [vmem:[%s12293_s15 + $0x30] sm:$0xff] }
 0xa91   : > { %5515 = vmatprep.subr.mxu1 %v7083_v17  ;;  %5656 = vmatprep.subr.mxu0 %v12359_v18  ;;  %v7158_v17 = vld [vmem:[%s12291_s13 + $0x138] sm:$0xff] }
 0xa92   : > { %5516 = vmatpush1.msra.mxu1 %v7082_v3  ;;  %5657 = vmatpush1.msra.mxu0 %v7139_v11  ;;  %v5596_v3 = vld [vmem:[%s12291_s13 + $0x90] sm:$0xff] }
 0xa93   : > { %5525 = vmatprep.subr.mxu1 %v7137_v53  ;;  %5682 = vmatprep.subr.mxu0 %v12359_v18  ;;  %v7157_v53 = vld [vmem:[%s12291_s13 + $0x130] sm:$0xff] }
 0xa94   : > { %5526 = vmatpush2.msra.mxu1 %v7136_v12  ;;  %5683 = vmatpush2.msra.mxu0 %v7158_v17  ;;  %v5595_v12 = vld [vmem:[%s12291_s13 + $0x88] sm:$0xff] }
 0xa95   : > { %5527 = vmatprep.subr.mxu1 %v7135_v1  ;;  %5684 = vmatprep.subr.mxu0 %v12359_v18  ;;  %v7156_v1 = vld [vmem:[%s12291_s13 + $0x128] sm:$0xff] }
 0xa96   : > { %5528 = vmatpush2.msra.mxu1 %v7134_v38  ;;  %5685 = vmatpush2.msra.mxu0 %v7157_v53  ;;  %v5594_v38 = vld [vmem:[%s12291_s13 + $0x80] sm:$0xff] }
 0xa97   : > { %5529 = vmatprep.subr.mxu1 %v7133_v61  ;;  %5686 = vmatprep.subr.mxu0 %v12359_v18  ;;  %v7155_v61 = vld [vmem:[%s12291_s13 + $0x120] sm:$0xff] }
 0xa98   : > { %5530 = vmatpush2.msra.mxu1 %v7132_v63  ;;  %5687 = vmatpush2.msra.mxu0 %v7156_v1 }
 0xa99   : > { %5531 = vmatprep.subr.mxu1 %v7131_v32  ;;  %5688 = vmatprep.subr.mxu0 %v12359_v18 }
 0xa9a   : > { %5532 = vmatpush2.msra.mxu1 %v7130_v15  ;;  %5689 = vmatpush2.msra.mxu0 %v7155_v61  ;;  %v5558_v15 = vld [vmem:[%s12290_s12] sm:$0x3] }
 0xa9b   : > { %5533 = vmatprep.subr.mxu1 %v7129_v27  ;;  %5794 = vmatprep.subr.mxu0 %v12359_v18 }
 0xa9c   : > { %5534 = vmatpush2.msra.mxu1 %v7128_v37 }
 0xa9d   : > { %5535 = vmatprep.subr.mxu1 %v7127_v8  ;;  %v5563_v8 = vrot.slane %v5558_v15, %v12357_v28 }
 0xa9e   : > { %5536 = vmatpush2.msra.mxu1 %v7126_v16 }
 0xa9f   : > { %5537 = vmatprep.subr.mxu1 %v7125_v43 }
 0xaa0   : > { %5538 = vmatpush2.msra.mxu1 %v7124_v5 }
 0xaa1   : > { %5539 = vmatprep.subr.mxu1 %v7123_v19 }
 0xaa2   : > { %5540 = vmatpush2.msra.mxu1 %v7122_v22  ;;  %v5567_v22 = vrot.slane %v5558_v15, %v12358_v0  ;;  %v5879_v15 = vld [vmem:[%s12293_s15 + $0x28] sm:$0xff] }
 0xaa3   : > { %5541 = vmatprep.subr.mxu1 %v7121_v24 }
 0xaa4   : > { %5542 = vmatpush2.msra.mxu1 %v7120_v25 }
 0xaa5   : > { %5543 = vmatprep.subr.mxu1 %v7119_v46 }
 0xaa6   : > { %5544 = vmatpush2.msra.mxu1 %v7118_v13 }
 0xaa7   : > { %5545 = vmatprep.subr.mxu1 %v7117_v29 }
 0xaa8   : > { %5546 = vmatpush2.msra.mxu1 %v7116_v14  ;;  %v7321_v14 = vld [vmem:[#allocation5] sm:$0x1f] }
 0xaa9   : > { %5547 = vmatprep.subr.mxu1 %v7115_v62 }
 0xaaa   : > { %5548 = vmatpush2.msra.mxu1 %v7114_v34  ;;  %v7322_v34 = vld [vmem:[#allocation5 + $0x8] sm:$0x1f] }
 0xaab   : > { %5550 = vmatmul.mubr.f32.vlgmr.msra.gmra.mxu1 %v5480_v35  ;;  %5698 = vmatprep.subr.mxu1 %v12359_v18 }
 0xaac   : > { %5699 = vmatpush1.msra.mxu1 %v5593_v57 }
 0xaad   : > { %5700 = vmatprep.subr.mxu1 %v12359_v18 }
 0xaae   : > { %5701 = vmatpush1.msra.mxu1 %v5592_v40  ;;  %v7176_v40 = vld [vmem:[%s12291_s13 + $0x1b8] sm:$0xff] }
 0xaaf   : > { %5702 = vmatprep.subr.mxu1 %v12359_v18 }
 0xab0   : > { %5703 = vmatpush1.msra.mxu1 %v5591_v47  ;;  %v7175_v47 = vld [vmem:[%s12291_s13 + $0x1b0] sm:$0xff] }
 0xab1   : > { %5704 = vmatprep.subr.mxu1 %v12359_v18 }
 0xab2   : > { %5705 = vmatpush1.msra.mxu1 %v5590_v45  ;;  %v7173_v45 = vld [vmem:[%s12291_s13 + $0x1a0] sm:$0xff] }
 0xab3   : > { %5706 = vmatprep.subr.mxu1 %v12359_v18 }
 0xab4   : > { %5707 = vmatpush1.msra.mxu1 %v5589_v9  ;;  %v7171_v9 = vld [vmem:[%s12291_s13 + $0x190] sm:$0xff] }
 0xab5   : > { %5708 = vmatprep.subr.mxu1 %v12359_v18 }
 0xab6   : > { %5709 = vmatpush1.msra.mxu1 %v5588_v52  ;;  %v7169_v52 = vld [vmem:[%s12291_s13 + $0x180] sm:$0xff] }
 0xab7   : > { %5710 = vmatprep.subr.mxu1 %v12359_v18 }
 0xab8   : > { %5711 = vmatpush1.msra.mxu1 %v5587_v44  ;;  %v7167_v44 = vld [vmem:[%s12291_s13 + $0x170] sm:$0xff] }
 0xab9   : > { %5712 = vmatprep.subr.mxu1 %v12359_v18 }
 0xaba   : > { %5713 = vmatpush1.msra.mxu1 %v5586_v31  ;;  %v7165_v31 = vld [vmem:[%s12291_s13 + $0x160] sm:$0xff] }
 0xabb   : > { %5714 = vmatprep.subr.mxu1 %v12359_v18 }
 0xabc   : > { %5715 = vmatpush1.msra.mxu1 %v5585_v6  ;;  %v7163_v6 = vld [vmem:[%s12291_s13 + $0x150] sm:$0xff] }
 0xabd   : > { %5716 = vmatprep.subr.mxu1 %v12359_v18 }
 0xabe   : > { %5717 = vmatpush1.msra.mxu1 %v5584_v42  ;;  %v7161_v42 = vld [vmem:[%s12291_s13 + $0x140] sm:$0xff] }
 0xabf   : > { %5718 = vmatprep.subr.mxu1 %v12359_v18 }
 0xac0   : > { %5719 = vmatpush1.msra.mxu1 %v5583_v55  ;;  %v7179_v55 = vld [vmem:[%s12291_s13 + $0x1d0] sm:$0xff] }
 0xac1   : > { %5720 = vmatprep.subr.mxu1 %v12359_v18 }
 0xac2   : > { %5721 = vmatpush1.msra.mxu1 %v5582_v4  ;;  %v7177_v4 = vld [vmem:[%s12291_s13 + $0x1c0] sm:$0xff] }
 0xac3   : > { %5722 = vmatprep.subr.mxu1 %v12359_v18 }
 0xac4   : > { %5723 = vmatpush1.msra.mxu1 %v5581_v51  ;;  %v7188_v51 = vld [vmem:[%s12293_s15 + $0x58] sm:$0xff] }
 0xac5   : > { %5724 = vmatprep.subr.mxu1 %v12359_v18 }
 0xac6   : > { %5725 = vmatpush1.msra.mxu1 %v5580_v59  ;;  %v7186_v59 = vld [vmem:[%s12293_s15 + $0x48] sm:$0xff] }
 0xac7   : > { %5726 = vmatprep.subr.mxu1 %v12359_v18 }
 0xac8   : > { %5727 = vmatpush1.msra.mxu1 %v5579_v60  ;;  %v7184_v60 = vld [vmem:[%s12293_s15 + $0x38] sm:$0xff] }
 0xac9   : > { %5728 = vmatprep.subr.mxu1 %v12359_v18 }
 0xaca   : > { %5729 = vmatpush1.msra.mxu1 %v5578_v20 }
 0xacb   : > { %5754 = vmatprep.subr.mxu1 %v12359_v18 }
 0xacc   : > { %5755 = vmatpush2.msra.mxu1 %v5597_v2 }
 0xacd   : > { %5756 = vmatprep.subr.mxu1 %v12359_v18 }
 0xace   : > { %5757 = vmatpush2.msra.mxu1 %v5596_v3 }
 0xacf   : > { %5758 = vmatprep.subr.mxu1 %v12359_v18 }
 0xad0   : > { %5759 = vmatpush2.msra.mxu1 %v5595_v12  ;;  %v7182_v12 = vld [vmem:[%s12292_s14] ss:$0 sm:$0xff] }
 0xad1   : > { %5760 = vmatprep.subr.mxu1 %v12359_v18 }
 0xad2   : > { %5761 = vmatpush2.msra.mxu1 %v5594_v38 }
 0xad3   : > { %7223 = vmatprep.subr.mxu1 %v12359_v18 }
 0xb30   : > { %v5414_v32 = vpop.f32.mrf.mxu0 }
 0xb32   : > { %v5416_v16 = vpop.f32.mrf.mxu0 }
 0xb33   : > { %v5340_v63 = vpop.f32.mrf.mxu1 }
 0xb34   : > { %v5415_v37 = vadd.f32 %v5414_v32, %v5340_v63 }
 0xb35   : > { %v5342_v27 = vpop.f32.mrf.mxu1 }
 0xb36   : > { %v5417_v5 = vadd.f32 %v5416_v16, %v5342_v27  ;;  %v5878_v27 = vld [vmem:[%s12293_s15 + $0x20] sm:$0xff]  ;;  %v5875_v16 = vld [vmem:[%s12293_s15 + $0x8] sm:$0xff] }
 0xb6b   : > { %v5551_v43 = vpop.f32.mrf.mxu1 }
 0xb6c   : > { %v5556_v19 = vadd.f32 %v5551_v43, %v5415_v37  ;;  %v5877_v37 = vld [vmem:[%s12293_s15 + $0x18] sm:$0xff]  ;;  %v5874_v43 = vld [vmem:[%s12293_s15] sm:$0xff] }
 0xb6d   : > { %v5553_v24 = vpop.f32.mrf.mxu1 }
 0xb6e   : > { %v5570_v25 = vadd.f32 %v5563_v8, %v5556_v19  ;;  %v5557_v46 = vadd.f32 %v5553_v24, %v5417_v5  ;;  %v5876_v8 = vld [vmem:[%s12293_s15 + $0x10] sm:$0xff]  ;;  %v7196_v5 = vld [vmem:[%s12293_s15 + $0x88] sm:$0xff]  ;;  %v7195_v19 = vld [vmem:[%s12293_s15 + $0x80] sm:$0xff] }
 0xb6f   : > { %v7193_v24 = vld [vmem:[%s12293_s15 + $0x70] sm:$0xff] }
 0xb70   : > { %v5572_v13 = vmax.f32 %v5570_v25, 0.0  ;;  %v5571_v29 = vadd.f32 %v5567_v22, %v5557_v46  ;;  %v7194_v22 = vld [vmem:[%s12293_s15 + $0x78] sm:$0xff]  ;;  %v7192_v25 = vld [vmem:[%s12293_s15 + $0x68] sm:$0xff]  ;;  %v7191_v46 = vld [vmem:[%s12293_s15 + $0x60] sm:$0xff] }
 0xb72   : > { %v5574_v62 = vadd.f32 %v7321_v14, %v5572_v13  ;;  %v5573_v30 = vmax.f32 %v5571_v29, 0.0 }
 0xb74   : > { %v5575_v35 = vadd.f32 %v7322_v34, %v5573_v30  ;;  %v12071_v57 = vmax.f32 %v5574_v62, 0.0 }
 0xb76   : > { %v5577_v26 = vmax.f32 %v5575_v35, 0.0  ;;  %v5621_v0 = vrot.slane %v12071_v57, 1  ;;  %v5789_v7 = vrot.slane %v12071_v57, 2 }
 0xb78   : > { %7160 = vmatprep.mubr.msk.f32.mxu1 %vm595_vm1, %v5577_v26  ;;  %v5622_v28 = vrot.slane %v5577_v26, 1  ;;  %v5790_v23 = vrot.slane %v5577_v26, 2 }
 0xb79   : > { %5763 = vmatmul.mubr.f32.vlgmr.msra.gmra.mxu1 %v12071_v57  ;;  %v6115_v57 = vld [vmem:[%s12363_s22] sm:$0x1] }
 0xb7a   : > { %7159 = vmatprep.mubr.msk.f32.mxu0 %vm595_vm1, %v5622_v28  ;;  %7224 = vmatpush3.msra.mxu1 %v7188_v51 }
 0xb7b   : > { %5691 = vmatmul.mubr.f32.vlgmr.msra.gmra.mxu0 %v5621_v0  ;;  %7225 = vmatprep.subr.mxu1 %v12359_v18 }
 0xb7c   : > { %5795 = vmatpush1.msra.mxu0 %v7176_v40  ;;  %7181 = vmatprep.mubr.msk.f32.mxu0 %vm595_vm1, %v5790_v23  ;;  %vm7394_vm1 = vmmov 0  }
 0xb7d   : > { %5796 = vmatprep.subr.mxu0 %v12359_v18  ;;  %7226 = vmatpush3.msra.mxu1 %v7187_v33 }
 0xb7e   : > { %5797 = vmatpush1.msra.mxu0 %v7175_v47  ;;  %7227 = vmatprep.subr.mxu1 %v12359_v18 }
 0xb7f   : > { %5798 = vmatprep.subr.mxu0 %v12359_v18  ;;  %7228 = vmatpush3.msra.mxu1 %v7186_v59 }
 0xb80   : > { %5799 = vmatpush1.msra.mxu0 %v7174_v48  ;;  %7229 = vmatprep.subr.mxu1 %v12359_v18 }
 0xb81   : > { %5800 = vmatprep.subr.mxu0 %v12359_v18  ;;  %7230 = vmatpush3.msra.mxu1 %v7185_v50 }
 0xb82   : > { %5801 = vmatpush1.msra.mxu0 %v7173_v45  ;;  %7231 = vmatprep.subr.mxu1 %v12359_v18 }
 0xb83   : > { %5802 = vmatprep.subr.mxu0 %v12359_v18  ;;  %7232 = vmatpush3.msra.mxu1 %v7184_v60 }
 0xb84   : > { %5803 = vmatpush1.msra.mxu0 %v7172_v49  ;;  %7233 = vmatprep.subr.mxu1 %v12359_v18 }
 0xb85   : > { %5804 = vmatprep.subr.mxu0 %v12359_v18  ;;  %7234 = vmatpush3.msra.mxu1 %v7183_v10 }
 0xb86   : > { %5805 = vmatpush1.msra.mxu0 %v7171_v9  ;;  %7235 = vmatprep.mubr.msk.f32.mxu1 %vm7394_vm1, %v12359_v18 }
 0xb87   : > { %5806 = vmatprep.subr.mxu0 %v12359_v18  ;;  %7238 = vmatprep.subr.mxu1 %v12359_v18 }
 0xb88   : > { %5807 = vmatpush1.msra.mxu0 %v7170_v41 }
 0xb89   : > { %5808 = vmatprep.subr.mxu0 %v12359_v18 }
 0xb8a   : > { %5809 = vmatpush1.msra.mxu0 %v7169_v52 }
 0xb8b   : > { %5810 = vmatprep.subr.mxu0 %v12359_v18 }
 0xb8c   : > { %5811 = vmatpush1.msra.mxu0 %v7168_v21 }
 0xb8d   : > { %5812 = vmatprep.subr.mxu0 %v12359_v18 }
 0xb8e   : > { %5813 = vmatpush1.msra.mxu0 %v7167_v44 }
 0xb8f   : > { %5814 = vmatprep.subr.mxu0 %v12359_v18 }
 0xb90   : > { %5815 = vmatpush1.msra.mxu0 %v7166_v58 }
 0xb91   : > { %5816 = vmatprep.subr.mxu0 %v12359_v18 }
 0xb92   : > { %5817 = vmatpush1.msra.mxu0 %v7165_v31 }
 0xb93   : > { %5818 = vmatprep.subr.mxu0 %v12359_v18 }
 0xb94   : > { %5819 = vmatpush1.msra.mxu0 %v7164_v39 }
 0xb95   : > { %5820 = vmatprep.subr.mxu0 %v12359_v18 }
 0xb96   : > { %5821 = vmatpush1.msra.mxu0 %v7163_v6 }
 0xb97   : > { %5822 = vmatprep.subr.mxu0 %v12359_v18 }
 0xb98   : > { %5823 = vmatpush1.msra.mxu0 %v7162_v54 }
 0xb99   : > { %5824 = vmatprep.subr.mxu0 %v12359_v18 }
 0xb9a   : > { %5825 = vmatpush1.msra.mxu0 %v7161_v42 }
 0xb9b   : > { %5850 = vmatprep.subr.mxu0 %v12359_v18 }
 0xb9c   : > { %5851 = vmatpush2.msra.mxu0 %v7180_v36 }
 0xb9d   : > { %5852 = vmatprep.subr.mxu0 %v12359_v18 }
 0xb9e   : > { %5853 = vmatpush2.msra.mxu0 %v7179_v55 }
 0xb9f   : > { %5854 = vmatprep.subr.mxu0 %v12359_v18 }
 0xba0   : > { %5855 = vmatpush2.msra.mxu0 %v7178_v56 }
 0xba1   : > { %5856 = vmatprep.subr.mxu0 %v12359_v18 }
 0xba2   : > { %5857 = vmatpush2.msra.mxu0 %v7177_v4 }
 0xba3   : > { %5859 = vmatmul.mubr.f32.vlgmr.msra.gmra.mxu0 %v5789_v7 }
 0xc39   : > { %v5764_v20 = vpop.f32.mrf.mxu1 }
 0xc3b   : > { %v5692_v11 = vpop.f32.mrf.mxu0  ;;  %v5766_v2 = vpop.f32.mrf.mxu1 }
 0xc3c   : > { %v5765_v3 = vadd.f32 %v5764_v20, %v5692_v11 }
 0xc3d   : > { %v5694_v17 = vpop.f32.mrf.mxu0 }
 0xc63   : > { %v5860_v53 = vpop.f32.mrf.mxu0 }
 0xc64   : > { %v5864_v1 = vadd.f32 %v5860_v53, %v5765_v3 }
 0xc65   : > { %v5862_v38 = vpop.f32.mrf.mxu0 }
 0xc66   : > { %v5872_v61 = vadd.f32 %v7182_v12, %v5864_v1 }
 0xc68   : > { %v5873_v63 = vmax.f32 %v5872_v61, 0.0 }
 0xc6a   : > { %v5888_v32 = vrot.slane %v5873_v63, 1  ;;  %v6041_v13 = vrot.slane %v5873_v63, 2 }
 0xc6c   : > { %7236 = vmatmul.mubr.msk.f32.vlgmr.msra.gmra.mxu1 %vm5889_vm11, %v5888_v32 }
 0xc6d   : > { %7239 = vmatpush3.msra.mxu1 %v5879_v15  ;;  %7250 = vmatprep.mubr.msk.f32.mxu1 %vm7394_vm1, %v12359_v18 }
 0xc6e   : > { %7240 = vmatprep.subr.mxu1 %v12359_v18 }
 0xc6f   : > { %7241 = vmatpush3.msra.mxu1 %v5878_v27 }
 0xc70   : > { %7242 = vmatprep.subr.mxu1 %v12359_v18 }
 0xc71   : > { %7243 = vmatpush3.msra.mxu1 %v5877_v37 }
 0xc72   : > { %7244 = vmatprep.subr.mxu1 %v12359_v18 }
 0xc73   : > { %7245 = vmatpush3.msra.mxu1 %v5876_v8 }
 0xc74   : > { %7246 = vmatprep.subr.mxu1 %v12359_v18 }
 0xc75   : > { %7247 = vmatpush3.msra.mxu1 %v5875_v16 }
 0xc76   : > { %7248 = vmatprep.subr.mxu1 %v12359_v18 }
 0xc77   : > { %7249 = vmatpush3.msra.mxu1 %v5874_v43 }
 0xc78   : > { %7251 = vmatmul.mubr.msk.f32.vlgmr.msra.gmra.mxu1 %vm5889_vm11, %v5873_v63  ;;  %7253 = vmatprep.subr.mxu1 %v12359_v18 }
 0xc79   : > { %7254 = vmatpush3.msra.mxu1 %v7196_v5  ;;  %7265 = vmatprep.mubr.msk.f32.mxu1 %vm7394_vm1, %v12359_v18 }
 0xc7a   : > { %7255 = vmatprep.subr.mxu1 %v12359_v18 }
 0xc7b   : > { %7256 = vmatpush3.msra.mxu1 %v7195_v19 }
 0xc7c   : > { %7257 = vmatprep.subr.mxu1 %v12359_v18 }
 0xc7d   : > { %7258 = vmatpush3.msra.mxu1 %v7194_v22 }
 0xc7e   : > { %7259 = vmatprep.subr.mxu1 %v12359_v18 }
 0xc7f   : > { %7260 = vmatpush3.msra.mxu1 %v7193_v24 }
 0xc80   : > { %7261 = vmatprep.subr.mxu1 %v12359_v18 }
 0xc81   : > { %7262 = vmatpush3.msra.mxu1 %v7192_v25 }
 0xc82   : > { %7263 = vmatprep.subr.mxu1 %v12359_v18 }
 0xc83   : > { %7264 = vmatpush3.msra.mxu1 %v7191_v46 }
 0xc84   : > { %7266 = vmatmul.mubr.msk.f32.vlgmr.msra.gmra.mxu1 %vm5889_vm11, %v6041_v13 }
 0xd2c   : > { %v5958_v29 = vpop.f32.mrf.mxu1 }
 0xd2e   : > { %v7237_v14 = vpop.f32.mrf.mxu1 }
 0xd38   : > { %v6030_v62 = vpop.f32.mrf.mxu1 }
 0xd39   : > { %v6031_v34 = vadd.f32 %v6030_v62, %v5958_v29 }
 0xd3a   : > { %v7252_v30 = vpop.f32.mrf.mxu1 }
 0xd44   : > { %v6110_v35 = vpop.f32.mrf.mxu1 }
 0xd45   : > { %v6114_v26 = vadd.f32 %v6110_v35, %v6031_v34 }
 0xd46   : > { %v7267_v18 = vpop.f32.mrf.mxu1 }
 0xd47   : > { %v6116_v28 = vadd.f32 %v6115_v57, %v6114_v26 }
 0xd49   : > { %6118 = vst.msk [vmem:[%s540_s21] sm:$0x1] %vm6117_vm12, %v6116_v28 }
 0xd4a   : > { %7336 = shalt.err (!%p7333_p3)
}
 0xd4b   : > { %s7337_s22 = scalar_lea.hbm %s6130_s24, 16  ;;  %s7341_s21 = scalar_lea.hbm %s12364_s29, 32 }
 0xd4c   : > { %p7338_p4 = scmp.ne.s32.totalorder %s6130_s24, %s7337_s22  ;;  %p7342_p9 = scmp.lt.s32.totalorder %s6130_s24, %s12364_s29 }
 0xd4d   : > { %p7343_p10 = scmp.lt.s32.totalorder %s7341_s21, %s7337_s22 }
 0xd4e   : > { %p7339_p7 = pnand %p7338_p4, %p7524_p5 }
 0xd4f   : > { %p7344_p11 = por %p7343_p10, %p7342_p9 }
 0xd50   : > { %p7340_p8 = pneg %p7339_p7 }
 0xd52   : > { %p7345_p12 = pnand %p7344_p11, %p7340_p8 }
 0xd54   : > { %7348 = shalt.err (!%p7345_p12)
}
 0xd55   : > { %7268 = dma.vmem_to_hbm [thread:$0]  (%p7524_p5), %s6133_s18, 16, %s6130_s24, %s6120_s20  }
 0xd56 PF: > { %s12365_s27 = sld [smem:[#allocation13_spill]] }
 0xd57   : > { %s12366_s0 = sld [smem:[#allocation11_spill]] }
 0xd5c   : > { %p7274_p13 = scmp.ge.s32.totalorder %s12365_s27, 2 }
 0xd5d   : > { %s6144_s16 = sand.u32 1, %s12366_s0  }
 0xd5e   : > { %p7271_p0 = pnand %p7274_p13, %p7528_p6  ;;  %s6145_s26 = scalar_lea.sflag [#allocation9], %s6144_s16 }
 0xd60   : > { %p7272_p1 = pneg %p7271_p0 }
 0xd62   : > { %7366 = dma.done.wait (%p7272_p1), %s6145_s26, 16  }
 0xd63   : > { %7368 = vsyncadd (%p7272_p1), %s6145_s26, 4294967280  ;;  %s12368_s27 = sld [smem:[#allocation14_spill]]  ;;  %s12371_s24 = smov %s7375_s25 }
 0xd64   : > { %s12369_s22 = sld [smem:[#allocation12_spill]] }
 0xd65   : > { %s12370_s26 = sld [smem:[#allocation15_spill]] }
 0xd69   : > { %p27_p2 = scmp.ge.s32.totalorder %s12368_s27, 4  }
 0xd6a   : > { %s12372_s25 = smov %s12369_s22 }
 0xd6b   :  { %29 = sbr.rel (!%p27_p2) target bundleno = 8 (0x8), region = 160 }
 0xd70   :  { %6149 = vsyncpa [#allocation9], 1 }
 0xd71   :  { %6151 = vsyncpa [#allocation9 + $0x1], 1 }

</bundles_post_ra>
